<compile_context>
chip_gen: v5e
topology: v5e:2x2
jax: 0.10.0
libtpu: 0.0.40
codegen_flags: <defaults>
</compile_context>

<pallas_src>
import jax
import jax.numpy as jnp
import numpy as np
from jax.experimental import pallas as pl
from jax.experimental.pallas import tpu as pltpu


# ---------------------------------------------------------------------------
# Fused kernel: conv1 -> pool -> relu -> conv2 -> pool -> relu -> fc1
# ---------------------------------------------------------------------------
def _make_fused_kernel(tb):
    """Fully fused Encoder forward for one batch tile of `tb` images.

    x5_ref : (24, tb, 140)  conv1 LHS.  Row-major index of dim0 = (dh1, r1, q1)
             where dh1 is the H-pool parity and hq1 = 2*q1 + r1 is the pooled
             output row; lanes pack (kh, wi) (K-packed over the 5 kernel rows).
    w1_ref : (140, 768)  conv1 banded RHS, lanes pack (dw, wp1, c1).
    b1_ref : (1, 384)    conv1 bias tiled over (wp1, c1).
    w2_ref : (5, 384, 512) conv2 banded RHS per kernel row, lanes (dw, wp2, c2pad).
    b2_ref : (1, 256)    conv2 bias tiled over (wp2, c2pad).
    wf_ref : (4, 256, 512) fc1 weight split per pooled row, flatten perm folded in.
    bf_ref : (1, 512)    fc1 bias (padded 500 -> 512).
    o_ref  : (tb, 500)   f32 logits.
    """

    def kernel(x5_ref, w1_ref, b1_ref, w2_ref, b2_ref, wf_ref, bf_ref, o_ref):
        f32 = jnp.float32

        # ---------------- conv1 + 2x2 maxpool + ReLU : ONE matmul -----------
        lhs1 = x5_ref[...].reshape(24 * tb, 140)                     # bf16
        acc1 = jnp.dot(lhs1, w1_ref[...], preferred_element_type=f32)  # (24tb,768)
        z1 = jnp.maximum(acc1[: 12 * tb], acc1[12 * tb:])            # H-pool (dh1)
        z1 = jnp.maximum(z1[:, :384], z1[:, 384:]) + b1_ref[...]     # W-pool + bias
        z1 = jnp.maximum(z1, 0.0).astype(jnp.bfloat16)               # ReLU
        # rows = (r1, q1, b), lanes = (w1, c1); batch innermost -> all conv2
        # slab extractions below are slices over major dims (no relayout).
        z1 = z1.reshape(2, 6, tb, 384)

        # ------------- conv2 + 2x2 maxpool + ReLU : 5 stacked matmuls -------
        # TODO(synk): nn.Dropout2d is identity at inference time; training-mode
        # stochastic channel dropout is not implemented here.
        acc2 = jnp.zeros((8 * tb, 512), f32)
        for kh in range(5):
            slabs = []
            for dh2 in range(2):                  # H-pool parity, stacked on M
                r, q0 = (dh2 + kh) % 2, (dh2 + kh) // 2
                slabs.append(z1[r, q0:q0 + 4].reshape(4 * tb, 384))
            lhs2 = jnp.concatenate(slabs, axis=0)                    # (8tb, 384)
            acc2 = acc2 + jnp.dot(lhs2, w2_ref[kh],
                                  preferred_element_type=f32)
        z2 = jnp.maximum(acc2[: 4 * tb], acc2[4 * tb:])              # H-pool (dh2)
        z2 = jnp.maximum(z2[:, :256], z2[:, 256:]) + b2_ref[...]     # W-pool + bias
        z2 = jnp.maximum(z2, 0.0).astype(jnp.bfloat16)               # (4tb, 256)

        # ---------------- fc1 : 4 accumulated matmuls (per pooled row) ------
        accf = jnp.zeros((tb, 512), f32)
        for h in range(4):
            accf = accf + jnp.dot(z2[h * tb:(h + 1) * tb], wf_ref[h],
                                  preferred_element_type=f32)
        o_ref[...] = (accf + bf_ref[...])[:, : o_ref.shape[1]]

    return kernel


# ---------------------------------------------------------------------------
# Batch tiling
# ---------------------------------------------------------------------------
def _pick_tile(batch):
    """Tile (multiple of 8, <=64) and padded batch; prefers >=4 grid steps."""
    bp = -(-batch // 8) * 8
    for tiles, min_steps in (((64, 32), 4), ((64, 32, 16, 8), 2),
                             ((64, 32, 16, 8), 1)):
        for t in tiles:
            if bp % t == 0 and bp // t >= min_steps:
                return t, bp
    return bp, bp


# ---------------------------------------------------------------------------
# Forward
# ---------------------------------------------------------------------------
def encoder_forward(params, x_nchw):
    B, C, H, W = x_nchw.shape
    assert (C, H, W) == (1, 28, 28), "Encoder expects (B, 1, 28, 28) inputs"
    tb, b_pad = _pick_tile(B)

    xb = x_nchw.reshape(B, 28, 28).astype(jnp.bfloat16)
    if b_pad != B:
        xb = jnp.pad(xb, ((0, b_pad - B), (0, 0), (0, 0)))

    # One tiny XLA gather builds conv1's K-packed, parity-split LHS:
    #   x5[(dh1*2+r1)*6+q1, b, kh*28+wi] = x[b, 2*(2*q1+r1)+dh1+kh, wi]
    dh = np.arange(2)[:, None, None, None]
    r1 = np.arange(2)[None, :, None, None]
    q1 = np.arange(6)[None, None, :, None]
    kh = np.arange(5)[None, None, None, :]
    rows = 4 * q1 + 2 * r1 + dh + kh                      # (2,2,6,5), 0..27
    x5 = xb[:, rows, :]                                   # (b_pad,2,2,6,5,28)
    x5 = jnp.transpose(x5, (1, 2, 3, 0, 4, 5)).reshape(24, b_pad, 140)

    steps = b_pad // tb
    flops = steps * (2 * (24 * tb) * 140 * 768            # conv1
                     + 5 * 2 * (8 * tb) * 384 * 512       # conv2
                     + 4 * 2 * tb * 256 * 512)            # fc1
    bytes_accessed = (x5.size * 2
                      + sum(int(params[k].size) * params[k].dtype.itemsize
                            for k in ("w1", "b1", "w2", "b2", "wfc", "bfc"))
                      + b_pad * 500 * 4)

    out = pl.pallas_call(
        _make_fused_kernel(tb),
        out_shape=jax.ShapeDtypeStruct((b_pad, 500), jnp.float32),
        grid=(steps,),
        in_specs=[
            pl.BlockSpec((24, tb, 140), lambda i: (0, i, 0)),
            pl.BlockSpec((140, 768), lambda i: (0, 0)),
            pl.BlockSpec((1, 384), lambda i: (0, 0)),
            pl.BlockSpec((5, 384, 512), lambda i: (0, 0, 0)),
            pl.BlockSpec((1, 256), lambda i: (0, 0)),
            pl.BlockSpec((4, 256, 512), lambda i: (0, 0, 0)),
            pl.BlockSpec((1, 512), lambda i: (0, 0)),
        ],
        out_specs=pl.BlockSpec((tb, 500), lambda i: (i, 0)),
        compiler_params=pltpu.CompilerParams(
            dimension_semantics=("parallel",),
            vmem_limit_bytes=32 * 1024 * 1024,
        ),
        cost_estimate=pl.CostEstimate(flops=int(flops), transcendentals=0,
                                      bytes_accessed=int(bytes_accessed)),
    )(x5, params["w1"], params["b1"], params["w2"], params["b2"],
      params["wfc"], params["bfc"])

    return out[:B] if b_pad != B else out


# ---------------------------------------------------------------------------
# Parameters: PyTorch-shaped init + one-time packing into the kernel layout
# ---------------------------------------------------------------------------
def init_raw_params(key):
    k = jax.random.split(key, 6)
    s = 0.05
    return {
        "conv1_w": jax.random.normal(k[0], (32, 1, 5, 5), jnp.float32) * s,
        "conv1_b": jax.random.normal(k[1], (32,), jnp.float32) * s,
        "conv2_w": jax.random.normal(k[2], (48, 32, 5, 5), jnp.float32) * s,
        "conv2_b": jax.random.normal(k[3], (48,), jnp.float32) * s,
        "fc1_w": jax.random.normal(k[4], (500, 48 * 4 * 4), jnp.float32) * s,
        "fc1_b": jax.random.normal(k[5], (500,), jnp.float32) * s,
    }


def pack_params(raw):
    """One-time packing of PyTorch-shaped weights into the kernel layout."""
    w1 = np.asarray(raw["conv1_w"], np.float32)   # (32,1,5,5)
    b1 = np.asarray(raw["conv1_b"], np.float32)
    w2 = np.asarray(raw["conv2_w"], np.float32)   # (48,32,5,5)
    b2 = np.asarray(raw["conv2_b"], np.float32)
    fw = np.asarray(raw["fc1_w"], np.float32)     # (500,768)
    fb = np.asarray(raw["fc1_b"], np.float32)
    K = 5

    # conv1 banded RHS, K-packed over the 5 kernel rows:
    #   rhs1[kh*28+wi, dw*384 + wp*32 + co] = w1[co,0,kh, wi - 2*wp - dw]
    kh = np.arange(K)[:, None, None, None, None]
    wi = np.arange(28)[None, :, None, None, None]
    dw = np.arange(2)[None, None, :, None, None]
    wp = np.arange(12)[None, None, None, :, None]
    co = np.arange(32)[None, None, None, None, :]
    kw = wi - 2 * wp - dw
    valid = (kw >= 0) & (kw < K)
    rhs1 = np.where(valid, w1[co, 0, kh, np.clip(kw, 0, K - 1)], 0.0)
    rhs1 = rhs1.reshape(K * 28, 2 * 12 * 32)                     # (140, 768)
    bias1 = np.tile(b1, 12)[None, :]                             # (1, 384)

    # conv2 banded RHS, one (384, 512) band per kernel row:
    #   rhs2[kh][w*32+ci, dw*256 + wp*64 + co] = w2[co,ci,kh, w - 2*wp - dw]
    w_ = np.arange(12)[:, None, None, None, None]
    ci = np.arange(32)[None, :, None, None, None]
    dw = np.arange(2)[None, None, :, None, None]
    wp = np.arange(4)[None, None, None, :, None]
    co = np.arange(64)[None, None, None, None, :]
    kw = w_ - 2 * wp - dw
    valid = (kw >= 0) & (kw < K) & (co < 48)
    rhs2 = np.zeros((K, 12 * 32, 2 * 4 * 64), np.float32)
    for k in range(K):
        vals = np.where(valid,
                        w2[np.clip(co, 0, 47), ci, k, np.clip(kw, 0, K - 1)],
                        0.0)
        rhs2[k] = vals.reshape(12 * 32, 512)
    b2p = np.concatenate([b2, np.zeros(16, np.float32)])
    bias2 = np.tile(b2p, 4)[None, :]                             # (1, 256)

    # fc1: fold the NCHW flatten permutation + channel/output padding in.
    #   wfc[hq2, wp2*64 + co, n] = fw[n, co*16 + hq2*4 + wp2]
    hh = np.arange(4)[:, None, None]
    ww = np.arange(4)[None, :, None]
    cc = np.arange(48)[None, None, :]
    src = cc * 16 + hh * 4 + ww                                  # (4,4,48)
    gathered = np.transpose(fw[:, src], (1, 2, 3, 0))            # (4,4,48,500)
    tmp = np.zeros((4, 4, 64, 512), np.float32)
    tmp[:, :, :48, :500] = gathered
    wfc = tmp.reshape(4, 256, 512)
    bfc = np.zeros((1, 512), np.float32)
    bfc[0, :500] = fb

    bf = jnp.bfloat16
    return {
        "w1": jnp.asarray(rhs1, bf), "b1": jnp.asarray(bias1, jnp.float32),
        "w2": jnp.asarray(rhs2, bf), "b2": jnp.asarray(bias2, jnp.float32),
        "wfc": jnp.asarray(wfc, bf), "bfc": jnp.asarray(bfc, jnp.float32),
    }


# ---------------------------------------------------------------------------
# Pure-JAX reference (numerical sanity check)
# ---------------------------------------------------------------------------
def reference_forward(raw, x):
    x = x.astype(jnp.float32)

    def conv(v, w, b):
        y = jax.lax.conv_general_dilated(
            v, w, window_strides=(1, 1), padding="VALID",
            dimension_numbers=("NCHW", "OIHW", "NCHW"))
        return y + b[None, :, None, None]

    def pool_relu(y):
        b, c, h, w = y.shape
        y = y.reshape(b, c, h // 2, 2, w // 2, 2).max(axis=(3, 5))
        return jnp.maximum(y, 0.0)

    y = pool_relu(conv(x, raw["conv1_w"], raw["conv1_b"]))
    y = pool_relu(conv(y, raw["conv2_w"], raw["conv2_b"]))
    feat = y.reshape(x.shape[0], 48 * 4 * 4)
    return feat @ raw["fc1_w"].T + raw["fc1_b"]


if __name__ == "__main__":
    key = jax.random.PRNGKey(0)
    k_param, k_x = jax.random.split(key)
    raw = init_raw_params(k_param)
    params = pack_params(raw)                     # one-time weight packing

    B = 16
    x = jax.random.normal(k_x, (B, 1, 28, 28), jnp.float32)

    fwd = jax.jit(encoder_forward)
    out = jax.block_until_ready(fwd(params, x))
    assert out.shape == (B, 500), out.shape

    ref = reference_forward(raw, x)
    err = float(jnp.max(jnp.abs(out - ref)))
    scale = float(jnp.max(jnp.abs(ref)))
    assert err <= 0.05 * scale + 0.05, (err, scale)
    print("KERNEL_OK")
</pallas_src>

<mosaic_0001>
module attributes {stable_mosaic.version = 11 : i64} {
  func.func @kernel(%arg0: i32, %arg1: memref<24x8x140xbf16, #tpu.memory_space<vmem>>, %arg2: memref<140x768xbf16, #tpu.memory_space<vmem>>, %arg3: memref<1x384xf32, #tpu.memory_space<vmem>>, %arg4: memref<5x384x512xbf16, #tpu.memory_space<vmem>>, %arg5: memref<1x256xf32, #tpu.memory_space<vmem>>, %arg6: memref<4x256x512xbf16, #tpu.memory_space<vmem>>, %arg7: memref<1x512xf32, #tpu.memory_space<vmem>>, %arg8: memref<8x500xf32, #tpu.memory_space<vmem>>) attributes {dimension_semantics = [#tpu.dimension_semantics<parallel>], iteration_bounds = array<i64: 2>, scalar_prefetch = 0 : i64, scratch_operands = 0 : i64, tpu.core_type = #tpu.core_type<tc>, window_params = [{transform_indices = @transform_0, window_bounds = array<i64: 24, 8, 140>}, {pipeline_mode = #tpu.pipeline_mode<synchronous>, transform_indices = @transform_1, window_bounds = array<i64: 140, 768>}, {pipeline_mode = #tpu.pipeline_mode<synchronous>, transform_indices = @transform_2, window_bounds = array<i64: 1, 384>}, {pipeline_mode = #tpu.pipeline_mode<synchronous>, transform_indices = @transform_3, window_bounds = array<i64: 5, 384, 512>}, {pipeline_mode = #tpu.pipeline_mode<synchronous>, transform_indices = @transform_4, window_bounds = array<i64: 1, 256>}, {pipeline_mode = #tpu.pipeline_mode<synchronous>, transform_indices = @transform_5, window_bounds = array<i64: 4, 256, 512>}, {pipeline_mode = #tpu.pipeline_mode<synchronous>, transform_indices = @transform_6, window_bounds = array<i64: 1, 512>}, {transform_indices = @transform_7, window_bounds = array<i64: 8, 500>}]} {
    %c0 = arith.constant 0 : index
    %c0_0 = arith.constant 0 : index
    %c0_1 = arith.constant 0 : index
    %0 = vector.load %arg1[%c0, %c0_0, %c0_1] : memref<24x8x140xbf16, #tpu.memory_space<vmem>>, vector<24x8x140xbf16>
    %1 = vector.shape_cast %0 : vector<24x8x140xbf16> to vector<192x140xbf16>
    %c0_2 = arith.constant 0 : index
    %c0_3 = arith.constant 0 : index
    %2 = vector.load %arg2[%c0_2, %c0_3] : memref<140x768xbf16, #tpu.memory_space<vmem>>, vector<140x768xbf16>
    %cst = arith.constant dense<0.000000e+00> : vector<192x768xf32>
    %3 = tpu.matmul %1, %2, %cst {dimension_numbers = #tpu.dot_dimension_numbers<[1], [0], [0], [1], [0, 0, 1, 1], [], []>} : vector<192x140xbf16>, vector<140x768xbf16>, vector<192x768xf32> -> vector<192x768xf32>
    %4 = vector.extract_strided_slice %3 {offsets = [0, 0], sizes = [96, 768], strides = [1, 1]} : vector<192x768xf32> to vector<96x768xf32>
    %5 = vector.extract_strided_slice %3 {offsets = [96, 0], sizes = [96, 768], strides = [1, 1]} : vector<192x768xf32> to vector<96x768xf32>
    %6 = arith.maximumf %4, %5 : vector<96x768xf32>
    %7 = vector.extract_strided_slice %6 {offsets = [0, 0], sizes = [96, 384], strides = [1, 1]} : vector<96x768xf32> to vector<96x384xf32>
    %8 = vector.extract_strided_slice %6 {offsets = [0, 384], sizes = [96, 384], strides = [1, 1]} : vector<96x768xf32> to vector<96x384xf32>
    %9 = arith.maximumf %7, %8 : vector<96x384xf32>
    %c0_4 = arith.constant 0 : index
    %c0_5 = arith.constant 0 : index
    %10 = vector.load %arg3[%c0_4, %c0_5] : memref<1x384xf32, #tpu.memory_space<vmem>>, vector<1x384xf32>
    %11 = vector.broadcast %10 : vector<1x384xf32> to vector<96x384xf32>
    %12 = arith.addf %9, %11 : vector<96x384xf32>
    %cst_6 = arith.constant 0.000000e+00 : f32
    %13 = vector.broadcast %cst_6 : f32 to vector<96x384xf32>
    %14 = arith.maximumf %12, %13 : vector<96x384xf32>
    %15 = arith.truncf %14 : vector<96x384xf32> to vector<96x384xbf16>
    %16 = vector.shape_cast %15 : vector<96x384xbf16> to vector<2x6x8x384xbf16>
    %cst_7 = arith.constant 0.000000e+00 : f32
    %17 = vector.broadcast %cst_7 : f32 to vector<64x512xf32>
    %18 = vector.extract_strided_slice %16 {offsets = [0, 0, 0, 0], sizes = [1, 4, 8, 384], strides = [1, 1, 1, 1]} : vector<2x6x8x384xbf16> to vector<1x4x8x384xbf16>
    %19 = vector.shape_cast %18 : vector<1x4x8x384xbf16> to vector<4x8x384xbf16>
    %20 = vector.shape_cast %19 : vector<4x8x384xbf16> to vector<32x384xbf16>
    %21 = vector.extract_strided_slice %16 {offsets = [1, 0, 0, 0], sizes = [1, 4, 8, 384], strides = [1, 1, 1, 1]} : vector<2x6x8x384xbf16> to vector<1x4x8x384xbf16>
    %22 = vector.shape_cast %21 : vector<1x4x8x384xbf16> to vector<4x8x384xbf16>
    %23 = vector.shape_cast %22 : vector<4x8x384xbf16> to vector<32x384xbf16>
    %24 = tpu.concatenate %20, %23 in 0 : vector<32x384xbf16>, vector<32x384xbf16> -> vector<64x384xbf16>
    %c0_8 = arith.constant 0 : index
    %c0_9 = arith.constant 0 : index
    %c0_10 = arith.constant 0 : index
    %25 = vector.load %arg4[%c0_8, %c0_9, %c0_10] : memref<5x384x512xbf16, #tpu.memory_space<vmem>>, vector<1x384x512xbf16>
    %26 = vector.shape_cast %25 : vector<1x384x512xbf16> to vector<384x512xbf16>
    %cst_11 = arith.constant dense<0.000000e+00> : vector<64x512xf32>
    %27 = tpu.matmul %24, %26, %cst_11 {dimension_numbers = #tpu.dot_dimension_numbers<[1], [0], [0], [1], [0, 0, 1, 1], [], []>} : vector<64x384xbf16>, vector<384x512xbf16>, vector<64x512xf32> -> vector<64x512xf32>
    %28 = arith.addf %17, %27 : vector<64x512xf32>
    %29 = vector.extract_strided_slice %16 {offsets = [1, 0, 0, 0], sizes = [1, 4, 8, 384], strides = [1, 1, 1, 1]} : vector<2x6x8x384xbf16> to vector<1x4x8x384xbf16>
    %30 = vector.shape_cast %29 : vector<1x4x8x384xbf16> to vector<4x8x384xbf16>
    %31 = vector.shape_cast %30 : vector<4x8x384xbf16> to vector<32x384xbf16>
    %32 = vector.extract_strided_slice %16 {offsets = [0, 1, 0, 0], sizes = [1, 4, 8, 384], strides = [1, 1, 1, 1]} : vector<2x6x8x384xbf16> to vector<1x4x8x384xbf16>
    %33 = vector.shape_cast %32 : vector<1x4x8x384xbf16> to vector<4x8x384xbf16>
    %34 = vector.shape_cast %33 : vector<4x8x384xbf16> to vector<32x384xbf16>
    %35 = tpu.concatenate %31, %34 in 0 : vector<32x384xbf16>, vector<32x384xbf16> -> vector<64x384xbf16>
    %c1 = arith.constant 1 : index
    %c0_12 = arith.constant 0 : index
    %c0_13 = arith.constant 0 : index
    %36 = vector.load %arg4[%c1, %c0_12, %c0_13] : memref<5x384x512xbf16, #tpu.memory_space<vmem>>, vector<1x384x512xbf16>
    %37 = vector.shape_cast %36 : vector<1x384x512xbf16> to vector<384x512xbf16>
    %cst_14 = arith.constant dense<0.000000e+00> : vector<64x512xf32>
    %38 = tpu.matmul %35, %37, %cst_14 {dimension_numbers = #tpu.dot_dimension_numbers<[1], [0], [0], [1], [0, 0, 1, 1], [], []>} : vector<64x384xbf16>, vector<384x512xbf16>, vector<64x512xf32> -> vector<64x512xf32>
    %39 = arith.addf %28, %38 : vector<64x512xf32>
    %40 = vector.extract_strided_slice %16 {offsets = [0, 1, 0, 0], sizes = [1, 4, 8, 384], strides = [1, 1, 1, 1]} : vector<2x6x8x384xbf16> to vector<1x4x8x384xbf16>
    %41 = vector.shape_cast %40 : vector<1x4x8x384xbf16> to vector<4x8x384xbf16>
    %42 = vector.shape_cast %41 : vector<4x8x384xbf16> to vector<32x384xbf16>
    %43 = vector.extract_strided_slice %16 {offsets = [1, 1, 0, 0], sizes = [1, 4, 8, 384], strides = [1, 1, 1, 1]} : vector<2x6x8x384xbf16> to vector<1x4x8x384xbf16>
    %44 = vector.shape_cast %43 : vector<1x4x8x384xbf16> to vector<4x8x384xbf16>
    %45 = vector.shape_cast %44 : vector<4x8x384xbf16> to vector<32x384xbf16>
    %46 = tpu.concatenate %42, %45 in 0 : vector<32x384xbf16>, vector<32x384xbf16> -> vector<64x384xbf16>
    %c2 = arith.constant 2 : index
    %c0_15 = arith.constant 0 : index
    %c0_16 = arith.constant 0 : index
    %47 = vector.load %arg4[%c2, %c0_15, %c0_16] : memref<5x384x512xbf16, #tpu.memory_space<vmem>>, vector<1x384x512xbf16>
    %48 = vector.shape_cast %47 : vector<1x384x512xbf16> to vector<384x512xbf16>
    %cst_17 = arith.constant dense<0.000000e+00> : vector<64x512xf32>
    %49 = tpu.matmul %46, %48, %cst_17 {dimension_numbers = #tpu.dot_dimension_numbers<[1], [0], [0], [1], [0, 0, 1, 1], [], []>} : vector<64x384xbf16>, vector<384x512xbf16>, vector<64x512xf32> -> vector<64x512xf32>
    %50 = arith.addf %39, %49 : vector<64x512xf32>
    %51 = vector.extract_strided_slice %16 {offsets = [1, 1, 0, 0], sizes = [1, 4, 8, 384], strides = [1, 1, 1, 1]} : vector<2x6x8x384xbf16> to vector<1x4x8x384xbf16>
    %52 = vector.shape_cast %51 : vector<1x4x8x384xbf16> to vector<4x8x384xbf16>
    %53 = vector.shape_cast %52 : vector<4x8x384xbf16> to vector<32x384xbf16>
    %54 = vector.extract_strided_slice %16 {offsets = [0, 2, 0, 0], sizes = [1, 4, 8, 384], strides = [1, 1, 1, 1]} : vector<2x6x8x384xbf16> to vector<1x4x8x384xbf16>
    %55 = vector.shape_cast %54 : vector<1x4x8x384xbf16> to vector<4x8x384xbf16>
    %56 = vector.shape_cast %55 : vector<4x8x384xbf16> to vector<32x384xbf16>
    %57 = tpu.concatenate %53, %56 in 0 : vector<32x384xbf16>, vector<32x384xbf16> -> vector<64x384xbf16>
    %c3 = arith.constant 3 : index
    %c0_18 = arith.constant 0 : index
    %c0_19 = arith.constant 0 : index
    %58 = vector.load %arg4[%c3, %c0_18, %c0_19] : memref<5x384x512xbf16, #tpu.memory_space<vmem>>, vector<1x384x512xbf16>
    %59 = vector.shape_cast %58 : vector<1x384x512xbf16> to vector<384x512xbf16>
    %cst_20 = arith.constant dense<0.000000e+00> : vector<64x512xf32>
    %60 = tpu.matmul %57, %59, %cst_20 {dimension_numbers = #tpu.dot_dimension_numbers<[1], [0], [0], [1], [0, 0, 1, 1], [], []>} : vector<64x384xbf16>, vector<384x512xbf16>, vector<64x512xf32> -> vector<64x512xf32>
    %61 = arith.addf %50, %60 : vector<64x512xf32>
    %62 = vector.extract_strided_slice %16 {offsets = [0, 2, 0, 0], sizes = [1, 4, 8, 384], strides = [1, 1, 1, 1]} : vector<2x6x8x384xbf16> to vector<1x4x8x384xbf16>
    %63 = vector.shape_cast %62 : vector<1x4x8x384xbf16> to vector<4x8x384xbf16>
    %64 = vector.shape_cast %63 : vector<4x8x384xbf16> to vector<32x384xbf16>
    %65 = vector.extract_strided_slice %16 {offsets = [1, 2, 0, 0], sizes = [1, 4, 8, 384], strides = [1, 1, 1, 1]} : vector<2x6x8x384xbf16> to vector<1x4x8x384xbf16>
    %66 = vector.shape_cast %65 : vector<1x4x8x384xbf16> to vector<4x8x384xbf16>
    %67 = vector.shape_cast %66 : vector<4x8x384xbf16> to vector<32x384xbf16>
    %68 = tpu.concatenate %64, %67 in 0 : vector<32x384xbf16>, vector<32x384xbf16> -> vector<64x384xbf16>
    %c4 = arith.constant 4 : index
    %c0_21 = arith.constant 0 : index
    %c0_22 = arith.constant 0 : index
    %69 = vector.load %arg4[%c4, %c0_21, %c0_22] : memref<5x384x512xbf16, #tpu.memory_space<vmem>>, vector<1x384x512xbf16>
    %70 = vector.shape_cast %69 : vector<1x384x512xbf16> to vector<384x512xbf16>
    %cst_23 = arith.constant dense<0.000000e+00> : vector<64x512xf32>
    %71 = tpu.matmul %68, %70, %cst_23 {dimension_numbers = #tpu.dot_dimension_numbers<[1], [0], [0], [1], [0, 0, 1, 1], [], []>} : vector<64x384xbf16>, vector<384x512xbf16>, vector<64x512xf32> -> vector<64x512xf32>
    %72 = arith.addf %61, %71 : vector<64x512xf32>
    %73 = vector.extract_strided_slice %72 {offsets = [0, 0], sizes = [32, 512], strides = [1, 1]} : vector<64x512xf32> to vector<32x512xf32>
    %74 = vector.extract_strided_slice %72 {offsets = [32, 0], sizes = [32, 512], strides = [1, 1]} : vector<64x512xf32> to vector<32x512xf32>
    %75 = arith.maximumf %73, %74 : vector<32x512xf32>
    %76 = vector.extract_strided_slice %75 {offsets = [0, 0], sizes = [32, 256], strides = [1, 1]} : vector<32x512xf32> to vector<32x256xf32>
    %77 = vector.extract_strided_slice %75 {offsets = [0, 256], sizes = [32, 256], strides = [1, 1]} : vector<32x512xf32> to vector<32x256xf32>
    %78 = arith.maximumf %76, %77 : vector<32x256xf32>
    %c0_24 = arith.constant 0 : index
    %c0_25 = arith.constant 0 : index
    %79 = vector.load %arg5[%c0_24, %c0_25] : memref<1x256xf32, #tpu.memory_space<vmem>>, vector<1x256xf32>
    %80 = vector.broadcast %79 : vector<1x256xf32> to vector<32x256xf32>
    %81 = arith.addf %78, %80 : vector<32x256xf32>
    %cst_26 = arith.constant 0.000000e+00 : f32
    %82 = vector.broadcast %cst_26 : f32 to vector<32x256xf32>
    %83 = arith.maximumf %81, %82 : vector<32x256xf32>
    %84 = arith.truncf %83 : vector<32x256xf32> to vector<32x256xbf16>
    %cst_27 = arith.constant 0.000000e+00 : f32
    %85 = vector.broadcast %cst_27 : f32 to vector<8x512xf32>
    %86 = vector.extract_strided_slice %84 {offsets = [0, 0], sizes = [8, 256], strides = [1, 1]} : vector<32x256xbf16> to vector<8x256xbf16>
    %c0_28 = arith.constant 0 : index
    %c0_29 = arith.constant 0 : index
    %c0_30 = arith.constant 0 : index
    %87 = vector.load %arg6[%c0_28, %c0_29, %c0_30] : memref<4x256x512xbf16, #tpu.memory_space<vmem>>, vector<1x256x512xbf16>
    %88 = vector.shape_cast %87 : vector<1x256x512xbf16> to vector<256x512xbf16>
    %cst_31 = arith.constant dense<0.000000e+00> : vector<8x512xf32>
    %89 = tpu.matmul %86, %88, %cst_31 {dimension_numbers = #tpu.dot_dimension_numbers<[1], [0], [0], [1], [0, 0, 1, 1], [], []>} : vector<8x256xbf16>, vector<256x512xbf16>, vector<8x512xf32> -> vector<8x512xf32>
    %90 = arith.addf %85, %89 : vector<8x512xf32>
    %91 = vector.extract_strided_slice %84 {offsets = [8, 0], sizes = [8, 256], strides = [1, 1]} : vector<32x256xbf16> to vector<8x256xbf16>
    %c1_32 = arith.constant 1 : index
    %c0_33 = arith.constant 0 : index
    %c0_34 = arith.constant 0 : index
    %92 = vector.load %arg6[%c1_32, %c0_33, %c0_34] : memref<4x256x512xbf16, #tpu.memory_space<vmem>>, vector<1x256x512xbf16>
    %93 = vector.shape_cast %92 : vector<1x256x512xbf16> to vector<256x512xbf16>
    %cst_35 = arith.constant dense<0.000000e+00> : vector<8x512xf32>
    %94 = tpu.matmul %91, %93, %cst_35 {dimension_numbers = #tpu.dot_dimension_numbers<[1], [0], [0], [1], [0, 0, 1, 1], [], []>} : vector<8x256xbf16>, vector<256x512xbf16>, vector<8x512xf32> -> vector<8x512xf32>
    %95 = arith.addf %90, %94 : vector<8x512xf32>
    %96 = vector.extract_strided_slice %84 {offsets = [16, 0], sizes = [8, 256], strides = [1, 1]} : vector<32x256xbf16> to vector<8x256xbf16>
    %c2_36 = arith.constant 2 : index
    %c0_37 = arith.constant 0 : index
    %c0_38 = arith.constant 0 : index
    %97 = vector.load %arg6[%c2_36, %c0_37, %c0_38] : memref<4x256x512xbf16, #tpu.memory_space<vmem>>, vector<1x256x512xbf16>
    %98 = vector.shape_cast %97 : vector<1x256x512xbf16> to vector<256x512xbf16>
    %cst_39 = arith.constant dense<0.000000e+00> : vector<8x512xf32>
    %99 = tpu.matmul %96, %98, %cst_39 {dimension_numbers = #tpu.dot_dimension_numbers<[1], [0], [0], [1], [0, 0, 1, 1], [], []>} : vector<8x256xbf16>, vector<256x512xbf16>, vector<8x512xf32> -> vector<8x512xf32>
    %100 = arith.addf %95, %99 : vector<8x512xf32>
    %101 = vector.extract_strided_slice %84 {offsets = [24, 0], sizes = [8, 256], strides = [1, 1]} : vector<32x256xbf16> to vector<8x256xbf16>
    %c3_40 = arith.constant 3 : index
    %c0_41 = arith.constant 0 : index
    %c0_42 = arith.constant 0 : index
    %102 = vector.load %arg6[%c3_40, %c0_41, %c0_42] : memref<4x256x512xbf16, #tpu.memory_space<vmem>>, vector<1x256x512xbf16>
    %103 = vector.shape_cast %102 : vector<1x256x512xbf16> to vector<256x512xbf16>
    %cst_43 = arith.constant dense<0.000000e+00> : vector<8x512xf32>
    %104 = tpu.matmul %101, %103, %cst_43 {dimension_numbers = #tpu.dot_dimension_numbers<[1], [0], [0], [1], [0, 0, 1, 1], [], []>} : vector<8x256xbf16>, vector<256x512xbf16>, vector<8x512xf32> -> vector<8x512xf32>
    %105 = arith.addf %100, %104 : vector<8x512xf32>
    %c0_44 = arith.constant 0 : index
    %c0_45 = arith.constant 0 : index
    %106 = vector.load %arg7[%c0_44, %c0_45] : memref<1x512xf32, #tpu.memory_space<vmem>>, vector<1x512xf32>
    %107 = vector.broadcast %106 : vector<1x512xf32> to vector<8x512xf32>
    %108 = arith.addf %105, %107 : vector<8x512xf32>
    %109 = vector.extract_strided_slice %108 {offsets = [0, 0], sizes = [8, 500], strides = [1, 1]} : vector<8x512xf32> to vector<8x500xf32>
    %c0_46 = arith.constant 0 : index
    %c0_47 = arith.constant 0 : index
    %110 = vector.load %arg8[%c0_46, %c0_47] : memref<8x500xf32, #tpu.memory_space<vmem>>, vector<8x500xf32>
    tpu.vector_store %arg8[%c0_46, %c0_47], %109 {strides = array<i32>} : memref<8x500xf32, #tpu.memory_space<vmem>>, vector<8x500xf32>,
    return
  }
  func.func @transform_0(%arg0: i32) -> (i32, i32, i32) {
    %c0_i32 = arith.constant 0 : i32
    %c0_i32_0 = arith.constant 0 : i32
    %c0_i32_1 = arith.constant 0 : i32
    return %c0_i32, %arg0, %c0_i32_0 : i32, i32, i32
  }
  func.func @transform_1(%arg0: i32) -> (i32, i32) {
    %c0_i32 = arith.constant 0 : i32
    %c0_i32_0 = arith.constant 0 : i32
    %c0_i32_1 = arith.constant 0 : i32
    return %c0_i32, %c0_i32_0 : i32, i32
  }
  func.func @transform_2(%arg0: i32) -> (i32, i32) {
    %c0_i32 = arith.constant 0 : i32
    %c0_i32_0 = arith.constant 0 : i32
    %c0_i32_1 = arith.constant 0 : i32
    return %c0_i32, %c0_i32_0 : i32, i32
  }
  func.func @transform_3(%arg0: i32) -> (i32, i32, i32) {
    %c0_i32 = arith.constant 0 : i32
    %c0_i32_0 = arith.constant 0 : i32
    %c0_i32_1 = arith.constant 0 : i32
    %c0_i32_2 = arith.constant 0 : i32
    return %c0_i32, %c0_i32_0, %c0_i32_1 : i32, i32, i32
  }
  func.func @transform_4(%arg0: i32) -> (i32, i32) {
    %c0_i32 = arith.constant 0 : i32
    %c0_i32_0 = arith.constant 0 : i32
    %c0_i32_1 = arith.constant 0 : i32
    return %c0_i32, %c0_i32_0 : i32, i32
  }
  func.func @transform_5(%arg0: i32) -> (i32, i32, i32) {
    %c0_i32 = arith.constant 0 : i32
    %c0_i32_0 = arith.constant 0 : i32
    %c0_i32_1 = arith.constant 0 : i32
    %c0_i32_2 = arith.constant 0 : i32
    return %c0_i32, %c0_i32_0, %c0_i32_1 : i32, i32, i32
  }
  func.func @transform_6(%arg0: i32) -> (i32, i32) {
    %c0_i32 = arith.constant 0 : i32
    %c0_i32_0 = arith.constant 0 : i32
    %c0_i32_1 = arith.constant 0 : i32
    return %c0_i32, %c0_i32_0 : i32, i32
  }
  func.func @transform_7(%arg0: i32) -> (i32, i32) {
    %c0_i32 = arith.constant 0 : i32
    %c0_i32_0 = arith.constant 0 : i32
    return %arg0, %c0_i32 : i32, i32
  }
}

</mosaic_0001>

<bundles_post_ra>
// kernel: encoder_forward.1
= control target key start
LH: loop header
LB: loop body
LE: loop exit
PB: predicated region body
PF: predicated region fallthrough
CT: control target
= control target key end

     0   :  { %12 = vsyncpa [#allocation4], 0  ;;  %s20993_s0 = inlined_call_operand.vmem [shape: bf16[24,16,140], index: 0, kind: input, shape index: {}]   ;;  %s20994_s1 = inlined_call_operand.vmem [shape: bf16[140,768], index: 1, kind: input, shape index: {}]   ;;  %s20995_s2 = inlined_call_operand.vmem [shape: f32[1,384], index: 2, kind: input, shape index: {}]   ;;  %s20996_s3 = inlined_call_operand.vmem [shape: bf16[5,384,512], index: 3, kind: input, shape index: {}]   ;;  %s20997_s4 = inlined_call_operand.vmem [shape: f32[1,256], index: 4, kind: input, shape index: {}]   ;;  %s20998_s5 = inlined_call_operand.vmem [shape: bf16[4,256,512], index: 5, kind: input, shape index: {}]   ;;  %s20999_s6 = inlined_call_operand.vmem [shape: f32[1,512], index: 6, kind: input, shape index: {}]   ;;  %s21000_s7 = inlined_call_operand.hbm [shape: f32[16,500], index: 7, kind: output, shape index: {}]  }
   0x1   :  { %14 = vsyncpa [#allocation4 + $0x1], 0  ;;  %s13811_s24 = smov 0   ;;  %s13813_s25 = smov 0  }
   0x2   :  { %s13815_s26 = smov 0   ;;  %s13817_s27 = smov 0  }
   0x3 LB: > { %s8933_s28 = sadd.s32 4294967295, %s13769_s27   ;;  %s8934_s29 = sadd.s32 4294967294, %s13769_s27   ;;  %s13769_s27 = sphi %s13817_s27, %s21336_s27   ;;  %s13765_s26 = sphi %s13815_s26, %s21335_s26   ;;  %s13761_s25 = sphi %s13813_s25, %s21334_s25   ;;  %s13757_s24 = sphi %s13811_s24, %s21333_s24  }
   0x4   : > { %s13834_s30 = sadd.s32 1, %s13769_s27   ;;  %s27_s8 = sadd.s32 1, %s13765_s26 }
   0x5   : > { %s24_s9 = ssub.s32 %s13769_s27, %s13834_s30  ;;  %p34_p0 = scmp.ne.s32.totalorder %s13765_s26, %s13761_s25 }
   0x6   : > { %p25_p1 = scmp.eq.s32.totalorder %s24_s9, 0  ;;  %p35_p2 = scmp.eq.s32.totalorder %s13769_s27, 0 }
   0x7   : > { %p190_p3 = scmp.eq.s32.totalorder %s8933_s28, 1  ;;  %p195_p4 = scmp.ne.s32.totalorder %s13761_s25, %s13757_s24 }
   0x8   : > { %s13847_s10 = scalar_select %p25_p1, %s13765_s26, %s27_s8  }
   0x9   : > { %p36_p5 = por %p35_p2, %p34_p0  ;;  %p13849_p6 = por %p190_p3, %p34_p0 }
   0xa   : > { %p196_p7 = scmp.eq.s32.totalorder %s8934_s29, 1  ;;  %p8936_p9 = scmp.ge.s32.totalorder %s13769_s27, 2 }
   0xc   : > { %p13853_p8 = por %p196_p7, %p195_p4  ;;  %230 = sbr.rel (%p8936_p9) target bundleno = 45 (0x2d), region = 40 }
  0x11   : > { %233 = sbr.rel (!%p36_p5) target bundleno = 45 (0x2d), region = 44  ;;  %s235_s13 = sand.u32 (%p36_p5), 1, %s13765_s26  }
  0x12   : > { %s12850_s14 = sshll.u32 (%p36_p5), %s13769_s27, 3  ;;  %s13666_s15 = smul.u32 (%p36_p5), 192, %s235_s13 }
  0x13   : > { %s13865_s18 = scalar_lea.vmem (%p36_p5), %s20993_s0, %s12850_s14 }
  0x14   : > { %v315_v0 = vld [vmem:[%s13865_s18] sm:$0xff] (%p36_p5)  ;;  %v317_v1 = vld [vmem:[%s13865_s18 + $0x10] sm:$0xff] (%p36_p5)  ;;  %s13870_s19 = scalar_lea.vmem (%p36_p5), [#allocation2], %s13666_s15 }
  0x15   : > { %v319_v2 = vld [vmem:[%s13865_s18 + $0x20] sm:$0xff] (%p36_p5)  ;;  %316 = vst [vmem:[%s13870_s19] sm:$0xff] (%p36_p5), %v315_v0  ;;  %v321_v3 = vld [vmem:[%s13865_s18 + $0x30] sm:$0xff] (%p36_p5) }
  0x16   : > { %318 = vst [vmem:[%s13870_s19 + $0x8] sm:$0xff] %v317_v1  ;;  %v323_v4 = vld [vmem:[%s13865_s18 + $0x40] sm:$0xff]  ;;  %v325_v5 = vld [vmem:[%s13865_s18 + $0x50] sm:$0xff] }
  0x17   : > { %320 = vst [vmem:[%s13870_s19 + $0x10] sm:$0xff] %v319_v2  ;;  %v327_v6 = vld [vmem:[%s13865_s18 + $0x60] sm:$0xff]  ;;  %v329_v7 = vld [vmem:[%s13865_s18 + $0x70] sm:$0xff] }
  0x18   : > { %322 = vst [vmem:[%s13870_s19 + $0x18] sm:$0xff] %v321_v3  ;;  %v331_v8 = vld [vmem:[%s13865_s18 + $0x80] sm:$0xff]  ;;  %v333_v9 = vld [vmem:[%s13865_s18 + $0x90] sm:$0xff] }
  0x19   : > { %324 = vst [vmem:[%s13870_s19 + $0x20] sm:$0xff] %v323_v4  ;;  %v335_v10 = vld [vmem:[%s13865_s18 + $0xa0] sm:$0xff]  ;;  %v337_v11 = vld [vmem:[%s13865_s18 + $0xb0] sm:$0xff] }
  0x1a   : > { %326 = vst [vmem:[%s13870_s19 + $0x28] sm:$0xff] %v325_v5  ;;  %v339_v12 = vld [vmem:[%s13865_s18 + $0xc0] sm:$0xff]  ;;  %v341_v13 = vld [vmem:[%s13865_s18 + $0xd0] sm:$0xff] }
  0x1b   : > { %328 = vst [vmem:[%s13870_s19 + $0x30] sm:$0xff] %v327_v6  ;;  %v343_v14 = vld [vmem:[%s13865_s18 + $0xe0] sm:$0xff]  ;;  %v345_v15 = vld [vmem:[%s13865_s18 + $0xf0] sm:$0xff] }
  0x1c   : > { %330 = vst [vmem:[%s13870_s19 + $0x38] sm:$0xff] %v329_v7  ;;  %v347_v16 = vld [vmem:[%s13865_s18 + $0x100] sm:$0xff]  ;;  %v349_v17 = vld [vmem:[%s13865_s18 + $0x110] sm:$0xff] }
  0x1d   : > { %332 = vst [vmem:[%s13870_s19 + $0x40] sm:$0xff] %v331_v8  ;;  %v351_v18 = vld [vmem:[%s13865_s18 + $0x120] sm:$0xff]  ;;  %v353_v19 = vld [vmem:[%s13865_s18 + $0x130] sm:$0xff] }
  0x1e   : > { %334 = vst [vmem:[%s13870_s19 + $0x48] sm:$0xff] %v333_v9  ;;  %v355_v20 = vld [vmem:[%s13865_s18 + $0x140] sm:$0xff]  ;;  %v357_v21 = vld [vmem:[%s13865_s18 + $0x150] sm:$0xff] }
  0x1f   : > { %336 = vst [vmem:[%s13870_s19 + $0x50] sm:$0xff] %v335_v10  ;;  %v359_v22 = vld [vmem:[%s13865_s18 + $0x160] sm:$0xff]  ;;  %v361_v23 = vld [vmem:[%s13865_s18 + $0x170] sm:$0xff] }
  0x20   : > { %338 = vst [vmem:[%s13870_s19 + $0x58] sm:$0xff] %v337_v11 }
  0x21   : > { %340 = vst [vmem:[%s13870_s19 + $0x60] sm:$0xff] %v339_v12 }
  0x22   : > { %342 = vst [vmem:[%s13870_s19 + $0x68] sm:$0xff] %v341_v13 }
  0x23   : > { %344 = vst [vmem:[%s13870_s19 + $0x70] sm:$0xff] %v343_v14 }
  0x24   : > { %346 = vst [vmem:[%s13870_s19 + $0x78] sm:$0xff] %v345_v15 }
  0x25   : > { %348 = vst [vmem:[%s13870_s19 + $0x80] sm:$0xff] %v347_v16 }
  0x26   : > { %350 = vst [vmem:[%s13870_s19 + $0x88] sm:$0xff] %v349_v17 }
  0x27   : > { %352 = vst [vmem:[%s13870_s19 + $0x90] sm:$0xff] %v351_v18 }
  0x28   : > { %354 = vst [vmem:[%s13870_s19 + $0x98] sm:$0xff] %v353_v19 }
  0x29   : > { %356 = vst [vmem:[%s13870_s19 + $0xa0] sm:$0xff] %v355_v20 }
  0x2a   : > { %358 = vst [vmem:[%s13870_s19 + $0xa8] sm:$0xff] %v357_v21 }
  0x2b   : > { %360 = vst [vmem:[%s13870_s19 + $0xb0] sm:$0xff] %v359_v22 }
  0x2c   : > { %362 = vst [vmem:[%s13870_s19 + $0xb8] sm:$0xff] %v361_v23 }
  0x2d PF: > { %p8939_p10 = scmp.ge.s32.totalorder %s13769_s27, 1  ;;  %p367_p11 = scmp.lt.s32.totalorder %s13769_s27, 3 }
  0x2f   : > { %p368_p12 = pnand %p8939_p10, %p367_p11 }
  0x31   : > { %371 = sbr.rel (%p368_p12) target bundleno = 2192 (0x890), region = 82 }
  0x36   : > { %v9207_v24 = vld [vmem:[%s20994_s1 + $0x150] sm:$0xf]  ;;  %v12920_v25 = vld [vmem:[%s20994_s1 + $0x164] sm:$0xf0]  ;;  %v12917_v26 = vld [vmem:[%s20994_s1 + $0x154] sm:$0xf] }
  0x37   : > { %v9208_v27 = vor.u32 %v12920_v25, %v9207_v24  ;;  %v9209_v28 = vld [vmem:[%s20994_s1 + $0x168] sm:$0xf0]  ;;  %v12923_v29 = vld [vmem:[%s20994_s1 + $0x184] sm:$0xf]  ;;  %v9233_v30 = vld [vmem:[%s20994_s1 + $0x198] sm:$0x30] }
  0x38   : > { %v9212_v31 = vor.u32 %v12917_v26, %v9209_v28  ;;  %v9236_v32 = vor.u32 %v12923_v29, %v9233_v30  ;;  %vm893_vm0 = vcmask 1045504   ;;  %v9183_v33 = vld [vmem:[%s20994_s1 + $0x120] sm:$0xf]  ;;  %v12914_v34 = vld [vmem:[%s20994_s1 + $0x134] sm:$0xf0]  ;;  %s13944_s22 = sand.u32 1, %s13761_s25  }
  0x39   : > { %912 = vmatpush.bf16.msra.mxu0 %v9208_v27  ;;  %v9184_v35 = vor.u32 %v12914_v34, %v9183_v33  ;;  %v12911_v36 = vld [vmem:[%s20994_s1 + $0x124] sm:$0xf]  ;;  %v9185_v37 = vld [vmem:[%s20994_s1 + $0x138] sm:$0xf0]  ;;  %s13667_s13 = smul.u32 192, %s13944_s22  ;;  %vm856_vm1 = vcmask 97280  }
  0x3a   : > { %1050 = vmatpush.bf16.msra.mxu2 %v9212_v31  ;;  %v898_v38 = vsel %vm893_vm0, %v9236_v32, 0  ;;  %v9188_v39 = vor.u32 %v12911_v36, %v9185_v37  ;;  %v9231_v40 = vld [vmem:[%s20994_s1 + $0x180] sm:$0xf]  ;;  %v12926_v41 = vld [vmem:[%s20994_s1 + $0x194] sm:$0x30]  ;;  %s8940_s8 = sshll.u32 %s13944_s22, 5 }
  0x3b   : > { %1126 = vmatpush.bf16.msra.mxu3 %v898_v38  ;;  %v9232_v42 = vor.u32 %v12926_v41, %v9231_v40  ;;  %v9159_v43 = vld [vmem:[%s20994_s1 + $0xf0] sm:$0xf]  ;;  %v12908_v44 = vld [vmem:[%s20994_s1 + $0x104] sm:$0xf0]  ;;  %s13966_s23 = scalar_lea.vmem [#allocation2], %s13667_s13  ;;  %s20952_s9 = scalar_lea.vmem [#allocation3], %s8940_s8 }
  0x3c   : > { %v12851_v45 = vld [vmem:[%s13966_s23 + $0x4] sm:$0xf]  ;;  %v8945_v46 = vld [vmem:[%s13966_s23 + $0x8] sm:$0xf0]  ;;  %v12905_v47 = vld [vmem:[%s20994_s1 + $0xf4] sm:$0xf]  ;;  %v9160_v50 = vor.u32 %v12908_v44, %v9159_v43 }
  0x3d   : > { %913 = vmatpush.bf16.msra.mxu0 %v9184_v35  ;;  %v13973_v48 = vor.u32 %v12851_v45, %v8945_v46  ;;  %v895_v49 = vsel %vm893_vm0, %v9232_v42, 0  ;;  %v9161_v51 = vld [vmem:[%s20994_s1 + $0x108] sm:$0xf0]  ;;  %v9135_v53 = vld [vmem:[%s20994_s1 + $0xc0] sm:$0xf]  ;;  %s13665_s14 = sshll.u32 %s8933_s28, 5 }
  0x3e   : > { %1051 = vmatpush.bf16.msra.mxu2 %v9188_v39  ;;  %988 = vmatpush.bf16.msra.mxu1 %v895_v49  ;;  %v9164_v52 = vor.u32 %v12905_v47, %v9161_v51  ;;  %v12902_v54 = vld [vmem:[%s20994_s1 + $0xd4] sm:$0xf0]  ;;  %v12899_v55 = vld [vmem:[%s20994_s1 + $0xc4] sm:$0xf]  ;;  %v9137_v56 = vld [vmem:[%s20994_s1 + $0xd8] sm:$0xf0]  ;;  %s8864_s16 = scalar_lea.hbm %s21000_s7, %s13665_s14 }
  0x3f   : > { %9265 = vmatmul.msk.bf16.vlgmr.msra.gmra.mxu3 %vm856_vm1, %v13973_v48  ;;  %v9136_v57 = vor.u32 %v12902_v54, %v9135_v53  ;;  %v9140_v58 = vor.u32 %v12899_v55, %v9137_v56  ;;  %v9111_v59 = vld [vmem:[%s20994_s1 + $0x90] sm:$0xf]  ;;  %v12896_v60 = vld [vmem:[%s20994_s1 + $0xa4] sm:$0xf0]  ;;  %v12893_v61 = vld [vmem:[%s20994_s1 + $0x94] sm:$0xf] }
  0x40   : > { %v9113_v62 = vld [vmem:[%s20994_s1 + $0xa8] sm:$0xf0]  ;;  %v9112_v63 = vor.u32 %v12896_v60, %v9111_v59  ;;  %v9087_v1 = vld [vmem:[%s20994_s1 + $0x60] sm:$0xf]  ;;  %v12890_v2 = vld [vmem:[%s20994_s1 + $0x74] sm:$0xf0] }
  0x41   : > { %914 = vmatpush.bf16.msra.mxu0 %v9160_v50  ;;  %9253 = vmatmul.msk.bf16.vlgmr.msra.gmra.mxu1 %vm856_vm1, %v13973_v48  ;;  %v9116_v0 = vor.u32 %v12893_v61, %v9113_v62  ;;  %v12887_v3 = vld [vmem:[%s20994_s1 + $0x64] sm:$0xf]  ;;  %v9089_v4 = vld [vmem:[%s20994_s1 + $0x78] sm:$0xf0]  ;;  %v12853_v5 = vld [vmem:[%s13966_s23 + $0x14] sm:$0xf]  ;;  %v9088_v7 = vor.u32 %v12890_v2, %v9087_v1 }
  0x42   : > { %1052 = vmatpush.bf16.msra.mxu2 %v9164_v52  ;;  %v8953_v6 = vld [vmem:[%s13966_s23 + $0x18] sm:$0xf0]  ;;  %v9092_v8 = vor.u32 %v12887_v3, %v9089_v4  ;;  %v9063_v9 = vld [vmem:[%s20994_s1 + $0x30] sm:$0xf]  ;;  %v12884_v10 = vld [vmem:[%s20994_s1 + $0x44] sm:$0xf0] }
  0x43   : > { %v14027_v11 = vor.u32 %v12853_v5, %v8953_v6  ;;  %v12881_v12 = vld [vmem:[%s20994_s1 + $0x34] sm:$0xf]  ;;  %v9065_v13 = vld [vmem:[%s20994_s1 + $0x48] sm:$0xf0]  ;;  %v9064_v14 = vor.u32 %v12884_v10, %v9063_v9  ;;  %v9039_v16 = vld [vmem:[%s20994_s1] sm:$0xf] }
  0x44   : > { %v9068_v15 = vor.u32 %v12881_v12, %v9065_v13  ;;  %v12878_v17 = vld [vmem:[%s20994_s1 + $0x14] sm:$0xf0]  ;;  %v12875_v18 = vld [vmem:[%s20994_s1 + $0x4] sm:$0xf]  ;;  %v9041_v19 = vld [vmem:[%s20994_s1 + $0x18] sm:$0xf0] }
  0x45   : > { %915 = vmatpush.bf16.msra.mxu0 %v9136_v57  ;;  %v9040_v20 = vor.u32 %v12878_v17, %v9039_v16  ;;  %v8943_v21 = vld [vmem:[%s13966_s23] sm:$0xf]  ;;  %v12852_v22 = vld [vmem:[%s13966_s23 + $0x4] sm:$0xf0]  ;;  %v9044_v23 = vor.u32 %v12875_v18, %v9041_v19  ;;  %v12855_v25 = vld [vmem:[%s13966_s23 + $0x24] sm:$0xf] }
  0x46   : > { %1053 = vmatpush.bf16.msra.mxu2 %v9140_v58  ;;  %v14053_v24 = vor.u32 %v12852_v22, %v8943_v21  ;;  %v8961_v26 = vld [vmem:[%s13966_s23 + $0x28] sm:$0xf0]  ;;  %v8951_v28 = vld [vmem:[%s13966_s23 + $0x10] sm:$0xf]  ;;  %v12854_v29 = vld [vmem:[%s13966_s23 + $0x14] sm:$0xf0] }
  0x47   : > { %v14059_v27 = vor.u32 %v12855_v25, %v8961_v26  ;;  %v14067_v30 = vor.u32 %v12854_v29, %v8951_v28  ;;  %v12857_v31 = vld [vmem:[%s13966_s23 + $0x34] sm:$0xf]  ;;  %v8969_v32 = vld [vmem:[%s13966_s23 + $0x38] sm:$0xf0]  ;;  %v9239_v34 = vld [vmem:[%s20994_s1 + $0x188] sm:$0xf] }
  0x48   : > { %v14073_v33 = vor.u32 %v12857_v31, %v8969_v32  ;;  %v12927_v35 = vld [vmem:[%s20994_s1 + $0x19c] sm:$0x30]  ;;  %v12856_v38 = vld [vmem:[%s13966_s23 + $0x24] sm:$0xf0]  ;;  %v12859_v41 = vld [vmem:[%s13966_s23 + $0x44] sm:$0xf] }
  0x49   : > { %916 = vmatpush.bf16.msra.mxu0 %v9112_v63  ;;  %21090 = vst [vmem:[#allocation6_spill] sm:$0xff] %v14059_v27  ;;  %v9240_v36 = vor.u32 %v12927_v35, %v9239_v34  ;;  %v8959_v37 = vld [vmem:[%s13966_s23 + $0x20] sm:$0xf]  ;;  %v8977_v42 = vld [vmem:[%s13966_s23 + $0x48] sm:$0xf0]  ;;  %s8866_s28 = sshll.u32 %s20952_s9, 4  ;;  %s8867_s28 = int_to_ptr.vmem [resolvable:$true] %s8866_s28 }
  0x4a   : > { %1054 = vmatpush.bf16.msra.mxu2 %v9116_v0  ;;  %21091 = vst [vmem:[#allocation7_spill] sm:$0xff] %v14067_v30  ;;  %v14088_v40 = vor.u32 %v12856_v38, %v8959_v37  ;;  %v9215_v43 = vld [vmem:[%s20994_s1 + $0x158] sm:$0xf]  ;;  %v12921_v44 = vld [vmem:[%s20994_s1 + $0x16c] sm:$0xf0]  ;;  %v14106_v49 = vor.u32 %v12859_v41, %v8977_v42  ;;  %s8868_s17 = sshll.u32 %s8864_s16, 4  ;;  %s8869_s17 = int_to_ptr.hbm [resolvable:$true] %s8868_s17 }
  0x4b   : > { %v901_v39 = vsel %vm893_vm0, %v9240_v36, 0  ;;  %v12924_v45 = vld [vmem:[%s20994_s1 + $0x18c] sm:$0xf]  ;;  %v9216_v46 = vor.u32 %v12921_v44, %v9215_v43  ;;  %v9241_v47 = vld [vmem:[%s20994_s1 + $0x1a0] sm:$0x30]  ;;  %vm8850_vm2 = vcmask 949248  }
  0x4c   : > { %1264 = vmatpush.bf16.msrb.mxu3 %v901_v39  ;;  %21092 = vst [vmem:[#allocation8_spill] sm:$0xff] %v14088_v40  ;;  %v9244_v50 = vor.u32 %v12924_v45, %v9241_v47  ;;  %v12918_v52 = vld [vmem:[%s20994_s1 + $0x15c] sm:$0xf]  ;;  %v9217_v53 = vld [vmem:[%s20994_s1 + $0x170] sm:$0xf0]  ;;  %s13721_s18 = sshra.s32 %s8869_s17, 4  ;;  %s13722_s18 = int_to_ptr.hbm [resolvable:$true] %s13721_s18 }
  0x4d   : > { %917 = vmatpush.bf16.msra.mxu0 %v9088_v7  ;;  %1188 = vmatpush.bf16.msrb.mxu1 %v9216_v46  ;;  %v9220_v54 = vor.u32 %v12918_v52, %v9217_v53  ;;  %v8967_v55 = vld [vmem:[%s13966_s23 + $0x30] sm:$0xf]  ;;  %v12858_v56 = vld [vmem:[%s13966_s23 + $0x34] sm:$0xf0]  ;;  %v12861_v58 = vld [vmem:[%s13966_s23 + $0x54] sm:$0xf]  ;;  %p13728_p2 = scmp.lt.s32.totalorder %s13722_s18, %s21000_s7 }
  0x4e   : > { %1055 = vmatpush.bf16.msra.mxu2 %v9092_v8  ;;  %v904_v51 = vsel %vm893_vm0, %v9244_v50, 0  ;;  %v14121_v57 = vor.u32 %v12858_v56, %v8967_v55  ;;  %v8985_v59 = vld [vmem:[%s13966_s23 + $0x58] sm:$0xf0]  ;;  %v9191_v61 = vld [vmem:[%s20994_s1 + $0x128] sm:$0xf]  ;;  %s13723_s19 = scalar_lea.hbm %s13722_s18, 32 }
  0x4f   : > { %9266 = vmatmul.msk.bf16.gmra.mxu3 %vm856_vm1, %v14027_v11  ;;  %v14127_v60 = vor.u32 %v12861_v58, %v8985_v59  ;;  %v12915_v62 = vld [vmem:[%s20994_s1 + $0x13c] sm:$0xf0]  ;;  %v12860_v1 = vld [vmem:[%s13966_s23 + $0x44] sm:$0xf0]  ;;  %v12912_v2 = vld [vmem:[%s20994_s1 + $0x12c] sm:$0xf]  ;;  %p13724_p13 = scmp.ne.s32.totalorder %s13722_s18, %s13723_s19 }
  0x50   : > { %v8975_v63 = vld [vmem:[%s13966_s23 + $0x40] sm:$0xf]  ;;  %v9192_v0 = vor.u32 %v12915_v62, %v9191_v61  ;;  %v9193_v3 = vld [vmem:[%s20994_s1 + $0x140] sm:$0xf0]  ;;  %v8993_v7 = vld [vmem:[%s13966_s23 + $0x68] sm:$0xf0] }
  0x51   : > { %918 = vmatpush.bf16.msra.mxu0 %v9064_v14  ;;  %9254 = vmatmul.msk.bf16.gmra.mxu1 %vm856_vm1, %v14027_v11  ;;  %v9196_v4 = vor.u32 %v12912_v2, %v9193_v3  ;;  %v14147_v5 = vor.u32 %v12860_v1, %v8975_v63  ;;  %v12863_v6 = vld [vmem:[%s13966_s23 + $0x64] sm:$0xf]  ;;  %v8983_v9 = vld [vmem:[%s13966_s23 + $0x50] sm:$0xf]  ;;  %v12862_v10 = vld [vmem:[%s13966_s23 + $0x54] sm:$0xf0]  ;;  %p13725_p0 = pnand %p13724_p13, %p13849_p6 }
  0x52   : > { %1056 = vmatpush.bf16.msra.mxu2 %v9068_v15  ;;  %1189 = vmatpush.bf16.msrb.mxu1 %v9192_v0  ;;  %v14153_v8 = vor.u32 %v12863_v6, %v8993_v7  ;;  %v14161_v12 = vor.u32 %v12862_v10, %v8983_v9  ;;  %v12865_v13 = vld [vmem:[%s13966_s23 + $0x74] sm:$0xf]  ;;  %v9001_v14 = vld [vmem:[%s13966_s23 + $0x78] sm:$0xf0]  ;;  %v9167_v15 = vld [vmem:[%s20994_s1 + $0xf8] sm:$0xf] }
  0x53   : > { %v12909_v16 = vld [vmem:[%s20994_s1 + $0x10c] sm:$0xf0]  ;;  %v14173_v17 = vor.u32 %v12865_v13, %v9001_v14  ;;  %v12906_v19 = vld [vmem:[%s20994_s1 + $0xfc] sm:$0xf]  ;;  %v8991_v22 = vld [vmem:[%s13966_s23 + $0x60] sm:$0xf]  ;;  %p13726_p1 = pneg %p13725_p0 }
  0x54   : > { %v9168_v18 = vor.u32 %v12909_v16, %v9167_v15  ;;  %v12867_v26 = vld [vmem:[%s13966_s23 + $0x84] sm:$0xf]  ;;  %v9009_v28 = vld [vmem:[%s13966_s23 + $0x88] sm:$0xf0]  ;;  %v8999_v32 = vld [vmem:[%s13966_s23 + $0x70] sm:$0xf] }
  0x55   : > { %919 = vmatpush.bf16.msra.mxu0 %v9040_v20  ;;  %v9169_v20 = vld [vmem:[%s20994_s1 + $0x110] sm:$0xf0]  ;;  %v14193_v29 = vor.u32 %v12867_v26, %v9009_v28  ;;  %v12866_v34 = vld [vmem:[%s13966_s23 + $0x74] sm:$0xf0]  ;;  %v9143_v36 = vld [vmem:[%s20994_s1 + $0xc8] sm:$0xf] }
  0x56   : > { %1057 = vmatpush.bf16.msra.mxu2 %v9044_v23  ;;  %1190 = vmatpush.bf16.msrb.mxu1 %v9168_v18  ;;  %v9172_v21 = vor.u32 %v12906_v19, %v9169_v20  ;;  %v12864_v23 = vld [vmem:[%s13966_s23 + $0x64] sm:$0xf0]  ;;  %v12903_v37 = vld [vmem:[%s20994_s1 + $0xdc] sm:$0xf0]  ;;  %v14207_v39 = vor.u32 %v12866_v34, %v8999_v32  ;;  %v12900_v42 = vld [vmem:[%s20994_s1 + $0xcc] sm:$0xf] }
  0x57   : > { %v14187_v25 = vor.u32 %v12864_v23, %v8991_v22  ;;  %v9144_v38 = vor.u32 %v12903_v37, %v9143_v36  ;;  %v9145_v43 = vld [vmem:[%s20994_s1 + $0xe0] sm:$0xf0]  ;;  %v12869_v45 = vld [vmem:[%s13966_s23 + $0x94] sm:$0xf]  ;;  %v9017_v46 = vld [vmem:[%s13966_s23 + $0x98] sm:$0xf0] }
  0x58   : > { %920 = vmatmul.bf16.vlgmr.msra.gmra.mxu0 %v14053_v24  ;;  %v9148_v44 = vor.u32 %v12900_v42, %v9145_v43  ;;  %v14219_v50 = vor.u32 %v12869_v45, %v9017_v46  ;;  %v9007_v52 = vld [vmem:[%s13966_s23 + $0x80] sm:$0xf]  ;;  %v12868_v53 = vld [vmem:[%s13966_s23 + $0x84] sm:$0xf0]  ;;  %v9119_v55 = vld [vmem:[%s20994_s1 + $0x98] sm:$0xf] }
  0x59   : > { %1058 = vmatmul.bf16.vlgmr.msra.gmra.mxu2 %v14053_v24  ;;  %1326 = vmatpush.bf16.msrb.mxu0 %v9220_v54  ;;  %v12897_v56 = vld [vmem:[%s20994_s1 + $0xac] sm:$0xf0]  ;;  %v14233_v58 = vor.u32 %v12868_v53, %v9007_v52  ;;  %v9095_v0 = vld [vmem:[%s20994_s1 + $0x68] sm:$0xf]  ;;  %v12891_v1 = vld [vmem:[%s20994_s1 + $0x7c] sm:$0xf0] }
  0x5a   : > { %1402 = vmatpush.bf16.msrb.mxu2 %v904_v51  ;;  %1191 = vmatpush.bf16.msrb.mxu1 %v9144_v38  ;;  %21093 = vst [vmem:[#allocation9_spill] sm:$0xff] %v14219_v50  ;;  %v9120_v59 = vor.u32 %v12897_v56, %v9119_v55  ;;  %v12871_v2 = vld [vmem:[%s13966_s23 + $0xa4] sm:$0xf]  ;;  %v9025_v3 = vld [vmem:[%s13966_s23 + $0xa8] sm:$0xf0]  ;;  %s13727_s29 = scalar_lea.hbm %s21000_s7, 64 }
  0x5b   : > { %21094 = vst [vmem:[#allocation10_spill] sm:$0xff] %v14233_v58  ;;  %v14247_v7 = vor.u32 %v12871_v2, %v9025_v3  ;;  %v9071_v9 = vld [vmem:[%s20994_s1 + $0x38] sm:$0xf]  ;;  %v12885_v10 = vld [vmem:[%s20994_s1 + $0x4c] sm:$0xf0]  ;;  %p13729_p3 = scmp.lt.s32.totalorder %s13727_s29, %s13723_s19 }
  0x5c   : > { %v9072_v14 = vor.u32 %v12885_v10, %v9071_v9  ;;  %v12894_v20 = vld [vmem:[%s20994_s1 + $0x9c] sm:$0xf]  ;;  %v9047_v22 = vld [vmem:[%s20994_s1 + $0x8] sm:$0xf]  ;;  %v12879_v26 = vld [vmem:[%s20994_s1 + $0x1c] sm:$0xf0] }
  0x5d   : > { %1327 = vmatpush.bf16.msrb.mxu0 %v9196_v4  ;;  %v9096_v4 = vor.u32 %v12891_v1, %v9095_v0  ;;  %21096 = vst [vmem:[#allocation12_spill] sm:$0xff] %v14247_v7  ;;  %v9015_v28 = vld [vmem:[%s13966_s23 + $0x90] sm:$0xf]  ;;  %v9048_v32 = vor.u32 %v12879_v26, %v9047_v22  ;;  %v12873_v43 = vld [vmem:[%s13966_s23 + $0xb4] sm:$0xf]  ;;  %p13730_p4 = por %p13729_p3, %p13728_p2 }
  0x5e   : > { %1192 = vmatpush.bf16.msrb.mxu1 %v9120_v59  ;;  %v12882_v0 = vld [vmem:[%s20994_s1 + $0x3c] sm:$0xf]  ;;  %v9073_v1 = vld [vmem:[%s20994_s1 + $0x50] sm:$0xf0]  ;;  %v12872_v2 = vld [vmem:[%s13966_s23 + $0xa4] sm:$0xf0] }
  0x5f   : > { %9267 = vmatmul.msk.bf16.gmra.mxu3 %vm856_vm1, %v14059_v27  ;;  %v12876_v10 = vld [vmem:[%s20994_s1 + $0xc] sm:$0xf]  ;;  %p13731_p5 = pnand %p13730_p4, %p13726_p1 }
  0x61   : > { %9255 = vmatmul.msk.bf16.gmra.mxu1 %vm856_vm1, %v14059_v27  ;;  %1328 = vmatpush.bf16.msrb.mxu0 %v9172_v21  ;;  %v9121_v21 = vld [vmem:[%s20994_s1 + $0xb0] sm:$0xf0] }
  0x62   : > { %1193 = vmatpush.bf16.msrb.mxu1 %v9096_v4  ;;  %v9124_v23 = vor.u32 %v12894_v20, %v9121_v21 }
  0x65   : > { %1329 = vmatpush.bf16.msrb.mxu0 %v9148_v44  ;;  %v9033_v44 = vld [vmem:[%s13966_s23 + $0xb8] sm:$0xf0] }
  0x66   : > { %1194 = vmatpush.bf16.msrb.mxu1 %v9072_v14  ;;  %v14287_v46 = vor.u32 %v12873_v43, %v9033_v44 }
  0x68   : > { %925 = vmatmul.bf16.gmra.mxu0 %v14067_v30  ;;  %21100 = vst [vmem:[#allocation16_spill] sm:$0xff] %v14287_v46 }
  0x69   : > { %1063 = vmatmul.bf16.gmra.mxu2 %v14067_v30  ;;  %1330 = vmatpush.bf16.msrb.mxu0 %v9124_v23 }
  0x6a   : > { %1195 = vmatpush.bf16.msrb.mxu1 %v9048_v32 }
  0x6f   : > { %9268 = vmatmul.msk.bf16.gmra.mxu3 %vm856_vm1, %v14073_v33 }
  0x71   : > { %9256 = vmatmul.msk.bf16.gmra.mxu1 %vm856_vm1, %v14073_v33 }
  0x78   : > { %930 = vmatmul.bf16.gmra.mxu0 %v14088_v40 }
  0x79   : > { %1068 = vmatmul.bf16.gmra.mxu2 %v14088_v40 }
  0x7f   : > { %9269 = vmatmul.msk.bf16.gmra.mxu3 %vm856_vm1, %v14106_v49 }
  0x81   : > { %9257 = vmatmul.msk.bf16.gmra.mxu1 %vm856_vm1, %v14106_v49 }
  0x88   : > { %935 = vmatmul.bf16.gmra.mxu0 %v14121_v57 }
  0x89   : > { %1073 = vmatmul.bf16.gmra.mxu2 %v14121_v57 }
  0x8f   : > { %9270 = vmatmul.msk.bf16.gmra.mxu3 %vm856_vm1, %v14127_v60 }
  0x91   : > { %9258 = vmatmul.msk.bf16.gmra.mxu1 %vm856_vm1, %v14127_v60 }
  0x98   : > { %940 = vmatmul.bf16.gmra.mxu0 %v14147_v5 }
  0x99   : > { %1078 = vmatmul.bf16.gmra.mxu2 %v14147_v5 }
  0x9f   : > { %9271 = vmatmul.msk.bf16.gmra.mxu3 %vm856_vm1, %v14153_v8 }
  0xa1   : > { %9259 = vmatmul.msk.bf16.gmra.mxu1 %vm856_vm1, %v14153_v8 }
  0xa8   : > { %945 = vmatmul.bf16.gmra.mxu0 %v14161_v12 }
  0xa9   : > { %1083 = vmatmul.bf16.gmra.mxu2 %v14161_v12 }
  0xaf   : > { %9272 = vmatmul.msk.bf16.gmra.mxu3 %vm856_vm1, %v14173_v17 }
  0xb1   : > { %9260 = vmatmul.msk.bf16.gmra.mxu1 %vm856_vm1, %v14173_v17 }
  0xb8   : > { %950 = vmatmul.bf16.gmra.mxu0 %v14187_v25 }
  0xb9   : > { %1088 = vmatmul.bf16.gmra.mxu2 %v14187_v25 }
  0xbe   : > { %v990_v31 = vpop.f32.mrf.mxu1 }
  0xbf   : > { %9273 = vmatmul.msk.bf16.gmra.mxu3 %vm856_vm1, %v14193_v29 }
  0xc1   : > { %9261 = vmatmul.msk.bf16.gmra.mxu1 %vm856_vm1, %v14193_v29 }
  0xc2   : > { %v1128_v35 = vpop.f32.mrf.mxu3 }
  0xc6   : > { %v992_v41 = vpop.f32.mrf.mxu1 }
  0xc8   : > { %955 = vmatmul.bf16.gmra.mxu0 %v14207_v39 }
  0xc9   : > { %1093 = vmatmul.bf16.gmra.mxu2 %v14207_v39 }
  0xca   : > { %v1130_v47 = vpop.f32.mrf.mxu3 }
  0xce   : > { %v995_v51 = vpop.f32.mrf.mxu1 }
  0xcf   : > { %9274 = vmatmul.msk.bf16.gmra.mxu3 %vm856_vm1, %v14219_v50 }
  0xd1   : > { %9262 = vmatmul.msk.bf16.gmra.mxu1 %vm856_vm1, %v14219_v50 }
  0xd2   : > { %v1133_v54 = vpop.f32.mrf.mxu3 }
  0xd5   : > { %v921_v61 = vpop.f32.mrf.mxu0 }
  0xd6   : > { %v14235_v62 = vadd.f32 %v990_v31, %v921_v61  ;;  %v997_v63 = vpop.f32.mrf.mxu1  ;;  %v12870_v31 = vld [vmem:[%s13966_s23 + $0x94] sm:$0xf0] }
  0xd7   : > { %v14277_v36 = vor.u32 %v12870_v31, %v9015_v28 }
  0xd8   : > { %21095 = vst [vmem:[#allocation11_spill] sm:$0xff] %v14235_v62  ;;  %960 = vmatmul.bf16.gmra.mxu0 %v14233_v58 }
  0xd9   : > { %1098 = vmatmul.bf16.gmra.mxu2 %v14233_v58  ;;  %21098 = vst [vmem:[#allocation14_spill] sm:$0xff] %v14277_v36 }
  0xda   : > { %v1135_v6 = vpop.f32.mrf.mxu3 }
  0xdc   : > { %v1059_v13 = vpop.f32.mrf.mxu2 }
  0xdd   : > { %v14255_v15 = vadd.f32 %v1128_v35, %v1059_v13  ;;  %v923_v16 = vpop.f32.mrf.mxu0  ;;  %v9049_v13 = vld [vmem:[%s20994_s1 + $0x20] sm:$0xf0] }
  0xde   : > { %v14257_v18 = vadd.f32 %v992_v41, %v923_v16  ;;  %v1000_v19 = vpop.f32.mrf.mxu1  ;;  %v9052_v20 = vor.u32 %v12876_v10, %v9049_v13 }
  0xdf   : > { %21097 = vst [vmem:[#allocation13_spill] sm:$0xff] %v14255_v15  ;;  %9275 = vmatmul.msk.bf16.gmra.mxu3 %vm856_vm1, %v14247_v7 }
  0xe1   : > { %9263 = vmatmul.msk.bf16.gmra.mxu1 %vm856_vm1, %v14247_v7 }
  0xe2   : > { %v1138_v34 = vpop.f32.mrf.mxu3 }
  0xe4   : > { %v1061_v35 = vpop.f32.mrf.mxu2 }
  0xe5   : > { %v14279_v37 = vadd.f32 %v1130_v47, %v1061_v35  ;;  %v926_v38 = vpop.f32.mrf.mxu0  ;;  %v12888_v47 = vld [vmem:[%s20994_s1 + $0x6c] sm:$0xf]  ;;  %v12874_v35 = vld [vmem:[%s13966_s23 + $0xb4] sm:$0xf0] }
  0xe6   : > { %v14281_v41 = vadd.f32 %v995_v51, %v926_v38  ;;  %v1002_v42 = vpop.f32.mrf.mxu1  ;;  %v9097_v51 = vld [vmem:[%s20994_s1 + $0x80] sm:$0xf0] }
  0xe7   : > { %21099 = vst [vmem:[#allocation15_spill] sm:$0xff] %v14279_v37  ;;  %v9100_v56 = vor.u32 %v12888_v47, %v9097_v51 }
  0xe8   : > { %965 = vmatmul.bf16.gmra.mxu0 %v14277_v36 }
  0xe9   : > { %1103 = vmatmul.bf16.gmra.mxu2 %v14277_v36  ;;  %1331 = vmatpush.bf16.msrb.mxu0 %v9100_v56 }
  0xea   : > { %v1140_v45 = vpop.f32.mrf.mxu3 }
  0xec   : > { %v1064_v52 = vpop.f32.mrf.mxu2 }
  0xed   : > { %v14295_v53 = vadd.f32 %v1133_v54, %v1064_v52  ;;  %v928_v55 = vpop.f32.mrf.mxu0  ;;  %v9023_v54 = vld [vmem:[%s13966_s23 + $0xa0] sm:$0xf] }
  0xee   : > { %v14297_v59 = vadd.f32 %v997_v63, %v928_v55  ;;  %v1005_v61 = vpop.f32.mrf.mxu1  ;;  %v9076_v63 = vor.u32 %v12882_v0, %v9073_v1  ;;  %v14311_v9 = vor.u32 %v12872_v2, %v9023_v54 }
  0xef   : > { %21101 = vst [vmem:[#allocation17_spill] sm:$0xff] %v14295_v53  ;;  %9276 = vmatmul.msk.bf16.gmra.mxu3 %vm856_vm1, %v14287_v46 }
  0xf0   : > { %1332 = vmatpush.bf16.msrb.mxu0 %v9076_v63  ;;  %21102 = vst [vmem:[#allocation18_spill] sm:$0xff] %v14311_v9 }
  0xf1   : > { %9264 = vmatmul.msk.bf16.gmra.mxu1 %vm856_vm1, %v14287_v46 }
  0xf2   : > { %v1143_v3 = vpop.f32.mrf.mxu3 }
  0xf4   : > { %v1066_v4 = vpop.f32.mrf.mxu2  ;;  %1333 = vmatpush.bf16.msrb.mxu0 %v9052_v20 }
  0xf5   : > { %v14319_v14 = vadd.f32 %v1135_v6, %v1066_v4  ;;  %v931_v16 = vpop.f32.mrf.mxu0 }
  0xf6   : > { %v14321_v21 = vadd.f32 %v1000_v19, %v931_v16  ;;  %v1007_v22 = vpop.f32.mrf.mxu1  ;;  %v9031_v19 = vld [vmem:[%s13966_s23 + $0xb0] sm:$0xf]  ;;  %s8853_s23 = scalar_lea.sflag [#allocation4], %s13944_s22 }
  0xf7   : > { %21103 = vst [vmem:[#allocation19_spill] sm:$0xff] %v14319_v14  ;;  %v14334_v44 = vor.u32 %v12874_v35, %v9031_v19 }
  0xf8   : > { %970 = vmatmul.bf16.gmra.mxu0 %v14311_v9 }
  0xf9   : > { %1108 = vmatmul.bf16.gmra.mxu2 %v14311_v9  ;;  %21105 = vst [vmem:[#allocation21_spill] sm:$0xff] %v14334_v44 }
  0xfa   : > { %v1145_v23 = vpop.f32.mrf.mxu3 }
  0xfc   : > { %v1069_v26 = vpop.f32.mrf.mxu2 }
  0xfd   : > { %v14325_v28 = vadd.f32 %v1138_v34, %v1069_v26  ;;  %v933_v31 = vpop.f32.mrf.mxu0 }
  0xfe   : > { %v14327_v32 = vadd.f32 %v1002_v42, %v933_v31  ;;  %v1010_v6 = vpop.f32.mrf.mxu1 }
  0xff   : > { %21104 = vst [vmem:[#allocation20_spill] sm:$0xff] %v14325_v28  ;;  %9277 = vmatmul.msk.bf16.vlgmr.msrb.gmra.mxu3 %vm856_vm1, %v13973_v48 }
 0x101   : > { %1196 = vmatmul.bf16.vlgmr.msrb.gmra.mxu1 %v14053_v24 }
 0x102   : > { %v1148_v38 = vpop.f32.mrf.mxu3 }
 0x104   : > { %v1071_v43 = vpop.f32.mrf.mxu2 }
 0x105   : > { %v14336_v52 = vadd.f32 %v1140_v45, %v1071_v43  ;;  %v936_v47 = vpop.f32.mrf.mxu0 }
 0x106   : > { %v14338_v34 = vadd.f32 %v1005_v61, %v936_v47  ;;  %v1012_v51 = vpop.f32.mrf.mxu1 }
 0x107   : > { %21106 = vst [vmem:[#allocation22_spill] sm:$0xff] %v14336_v52 }
 0x108   : > { %975 = vmatmul.bf16.gmra.mxu0 %v14334_v44 }
 0x109   : > { %1113 = vmatmul.bf16.gmra.mxu2 %v14334_v44 }
 0x10a   : > { %v1150_v42 = vpop.f32.mrf.mxu3 }
 0x10c   : > { %v1074_v55 = vpop.f32.mrf.mxu2 }
 0x10d   : > { %v14342_v56 = vadd.f32 %v1143_v3, %v1074_v55  ;;  %v938_v0 = vpop.f32.mrf.mxu0 }
 0x10e   : > { %v14344_v1 = vadd.f32 %v1007_v22, %v938_v0  ;;  %v1015_v54 = vpop.f32.mrf.mxu1 }
 0x10f   : > { %21107 = vst [vmem:[#allocation23_spill] sm:$0xff] %v14342_v56  ;;  %9278 = vmatmul.msk.bf16.gmra.mxu3 %vm856_vm1, %v14027_v11 }
 0x111   : > { %1201 = vmatmul.bf16.gmra.mxu1 %v14067_v30 }
 0x112   : > { %v1153_v45 = vpop.f32.mrf.mxu3 }
 0x114   : > { %v1076_v61 = vpop.f32.mrf.mxu2 }
 0x115   : > { %v14349_v2 = vadd.f32 %v1145_v23, %v1076_v61  ;;  %v941_v63 = vpop.f32.mrf.mxu0 }
 0x116   : > { %v14351_v4 = vadd.f32 %v1010_v6, %v941_v63  ;;  %v1017_v10 = vpop.f32.mrf.mxu1  ;;  %v12928_v63 = vld [vmem:[%s20994_s1 + $0x1a4] sm:$0x30] }
 0x117   : > { %21108 = vst [vmem:[#allocation24_spill] sm:$0xff] %v14349_v2 }
 0x118   : > { %1334 = vmatmul.bf16.vlgmr.msrb.gmra.mxu0 %v14053_v24 }
 0x119   : > { %9289 = vmatmul.msk.bf16.vlgmr.msrb.gmra.mxu2 %vm856_vm1, %v13973_v48 }
 0x11a   : > { %v1155_v3 = vpop.f32.mrf.mxu3 }
 0x11c   : > { %v1079_v13 = vpop.f32.mrf.mxu2 }
 0x11d   : > { %v14356_v16 = vadd.f32 %v1148_v38, %v1079_v13  ;;  %v943_v20 = vpop.f32.mrf.mxu0 }
 0x11e   : > { %v14358_v22 = vadd.f32 %v1012_v51, %v943_v20  ;;  %v1020_v26 = vpop.f32.mrf.mxu1 }
 0x11f   : > { %21109 = vst [vmem:[#allocation25_spill] sm:$0xff] %v14356_v16  ;;  %9279 = vmatmul.msk.bf16.gmra.mxu3 %vm856_vm1, %v14059_v27 }
 0x120   : > { %21110 = vst [vmem:[#allocation26_spill] sm:$0xff] %v14358_v22 }
 0x121   : > { %1206 = vmatmul.bf16.gmra.mxu1 %v14088_v40 }
 0x122   : > { %v1158_v23 = vpop.f32.mrf.mxu3 }
 0x124   : > { %v1081_v31 = vpop.f32.mrf.mxu2 }
 0x125   : > { %v14363_v6 = vadd.f32 %v1150_v42, %v1081_v31  ;;  %v946_v19 = vpop.f32.mrf.mxu0 }
 0x126   : > { %v14365_v35 = vadd.f32 %v1015_v54, %v946_v19  ;;  %v1022_v43 = vpop.f32.mrf.mxu1  ;;  %v9247_v54 = vld [vmem:[%s20994_s1 + $0x190] sm:$0xf] }
 0x127   : > { %21111 = vst [vmem:[#allocation27_spill] sm:$0xff] %v14363_v6 }
 0x128   : > { %21112 = vst [vmem:[#allocation28_spill] sm:$0xff] %v14365_v35  ;;  %1339 = vmatmul.bf16.gmra.mxu0 %v14067_v30 }
 0x129   : > { %9290 = vmatmul.msk.bf16.gmra.mxu2 %vm856_vm1, %v14027_v11 }
 0x12a   : > { %v1160_v38 = vpop.f32.mrf.mxu3 }
 0x12c   : > { %v1084_v47 = vpop.f32.mrf.mxu2 }
 0x12d   : > { %v14370_v51 = vadd.f32 %v1153_v45, %v1084_v47  ;;  %v948_v55 = vpop.f32.mrf.mxu0  ;;  %v9248_v45 = vor.u32 %v12928_v63, %v9247_v54  ;;  %v12925_v54 = vld [vmem:[%s20994_s1 + $0x194] sm:$0xf] }
 0x12e   : > { %v14372_v0 = vadd.f32 %v1017_v10, %v948_v55  ;;  %v1025_v61 = vpop.f32.mrf.mxu1 }
 0x12f   : > { %21113 = vst [vmem:[#allocation29_spill] sm:$0xff] %v14370_v51  ;;  %9280 = vmatmul.msk.bf16.gmra.mxu3 %vm856_vm1, %v14073_v33  ;;  %v907_v31 = vsel %vm893_vm0, %v9248_v45, 0  ;;  %v9249_v45 = vld [vmem:[%s20994_s1 + $0x1a8] sm:$0x30] }
 0x130   : > { %21114 = vst [vmem:[#allocation30_spill] sm:$0xff] %v14372_v0  ;;  %1540 = vmatpush.bf16.msra.mxu3 %v907_v31 }
 0x131   : > { %1211 = vmatmul.bf16.gmra.mxu1 %v14121_v57 }
 0x132   : > { %v1163_v42 = vpop.f32.mrf.mxu3 }
 0x134   : > { %v1086_v13 = vpop.f32.mrf.mxu2 }
 0x135   : > { %v14383_v20 = vadd.f32 %v1155_v3, %v1086_v13  ;;  %v951_v10 = vpop.f32.mrf.mxu0  ;;  %v9223_v3 = vld [vmem:[%s20994_s1 + $0x160] sm:$0xf] }
 0x136   : > { %v14386_v19 = vadd.f32 %v1020_v26, %v951_v10  ;;  %v1027_v47 = vpop.f32.mrf.mxu1  ;;  %v12922_v26 = vld [vmem:[%s20994_s1 + $0x174] sm:$0xf0]  ;;  %v9252_v10 = vor.u32 %v12925_v54, %v9249_v45 }
 0x137   : > { %21115 = vst [vmem:[#allocation31_spill] sm:$0xff] %v14383_v20  ;;  %v9224_v63 = vor.u32 %v12922_v26, %v9223_v3 }
 0x138   : > { %21116 = vst [vmem:[#allocation32_spill] sm:$0xff] %v14386_v19  ;;  %1344 = vmatmul.bf16.gmra.mxu0 %v14088_v40  ;;  %v910_v40 = vsel %vm893_vm0, %v9252_v10, 0 }
 0x139   : > { %9291 = vmatmul.msk.bf16.gmra.mxu2 %vm856_vm1, %v14059_v27  ;;  %1464 = vmatpush.bf16.msra.mxu1 %v9224_v63 }
 0x13a   : > { %v1165_v30 = vpop.f32.mrf.mxu3  ;;  %1678 = vmatpush.bf16.msra.mxu2 %v910_v40 }
 0x13c   : > { %v1089_v13 = vpop.f32.mrf.mxu2 }
 0x13d   : > { %v14405_v31 = vadd.f32 %v1158_v23, %v1089_v13  ;;  %v953_v55 = vpop.f32.mrf.mxu0  ;;  %v12919_v23 = vld [vmem:[%s20994_s1 + $0x164] sm:$0xf] }
 0x13e   : > { %v14407_v19 = vadd.f32 %v1022_v43, %v953_v55  ;;  %v1030_v62 = vpop.f32.mrf.mxu1  ;;  %v9225_v43 = vld [vmem:[%s20994_s1 + $0x178] sm:$0xf0] }
 0x13f   : > { %21117 = vst [vmem:[#allocation33_spill] sm:$0xff] %v14405_v31  ;;  %9281 = vmatmul.msk.bf16.gmra.mxu3 %vm856_vm1, %v14106_v49  ;;  %v9228_v55 = vor.u32 %v12919_v23, %v9225_v43 }
 0x141   : > { %1216 = vmatmul.bf16.gmra.mxu1 %v14147_v5  ;;  %1602 = vmatpush.bf16.msra.mxu0 %v9228_v55 }
 0x142   : > { %v1168_v26 = vpop.f32.mrf.mxu3 }
 0x144   : > { %v1091_v54 = vpop.f32.mrf.mxu2 }
 0x145   : > { %v14423_v63 = vadd.f32 %v1160_v38, %v1091_v54  ;;  %v956_v40 = vpop.f32.mrf.mxu0 }
 0x146   : > { %v14425_v45 = vadd.f32 %v1025_v61, %v956_v40  ;;  %v1032_v13 = vpop.f32.mrf.mxu1 }
 0x147   : > { %21118 = vst [vmem:[#allocation34_spill] sm:$0xff] %v14423_v63 }
 0x148   : > { %1349 = vmatmul.bf16.gmra.mxu0 %v14121_v57 }
 0x149   : > { %9292 = vmatmul.msk.bf16.gmra.mxu2 %vm856_vm1, %v14073_v33 }
 0x14a   : > { %v1170_v23 = vpop.f32.mrf.mxu3 }
 0x14c   : > { %v1094_v43 = vpop.f32.mrf.mxu2 }
 0x14d   : > { %v14434_v55 = vadd.f32 %v1163_v42, %v1094_v43  ;;  %v958_v38 = vpop.f32.mrf.mxu0  ;;  %v9199_v42 = vld [vmem:[%s20994_s1 + $0x130] sm:$0xf] }
 0x14e   : > { %v14436_v54 = vadd.f32 %v1027_v47, %v958_v38  ;;  %v1035_v61 = vpop.f32.mrf.mxu1  ;;  %v12916_v47 = vld [vmem:[%s20994_s1 + $0x144] sm:$0xf0] }
 0x14f   : > { %21119 = vst [vmem:[#allocation35_spill] sm:$0xff] %v14434_v55  ;;  %9282 = vmatmul.msk.bf16.gmra.mxu3 %vm856_vm1, %v14127_v60  ;;  %v9200_v43 = vor.u32 %v12916_v47, %v9199_v42  ;;  %v12913_v42 = vld [vmem:[%s20994_s1 + $0x134] sm:$0xf] }
 0x151   : > { %1221 = vmatmul.bf16.gmra.mxu1 %v14161_v12 }
 0x152   : > { %v1173_v27 = vpop.f32.mrf.mxu3  ;;  %1465 = vmatpush.bf16.msra.mxu1 %v9200_v43 }
 0x154   : > { %v1096_v38 = vpop.f32.mrf.mxu2 }
 0x155   : > { %v14451_v40 = vadd.f32 %v1165_v30, %v1096_v38  ;;  %v961_v3 = vpop.f32.mrf.mxu0  ;;  %v9201_v30 = vld [vmem:[%s20994_s1 + $0x148] sm:$0xf0] }
 0x156   : > { %v14453_v55 = vadd.f32 %v1030_v62, %v961_v3  ;;  %v1037_v10 = vpop.f32.mrf.mxu1  ;;  %v9204_v62 = vor.u32 %v12913_v42, %v9201_v30 }
 0x157   : > { %21120 = vst [vmem:[#allocation36_spill] sm:$0xff] %v14451_v40 }
 0x158   : > { %1354 = vmatmul.bf16.gmra.mxu0 %v14147_v5 }
 0x159   : > { %9293 = vmatmul.msk.bf16.gmra.mxu2 %vm856_vm1, %v14106_v49  ;;  %1603 = vmatpush.bf16.msra.mxu0 %v9204_v62 }
 0x15a   : > { %v1175_v3 = vpop.f32.mrf.mxu3 }
 0x15c   : > { %v1099_v47 = vpop.f32.mrf.mxu2 }
 0x15d   : > { %v14468_v43 = vadd.f32 %v1168_v26, %v1099_v47  ;;  %v963_v38 = vpop.f32.mrf.mxu0 }
 0x15e   : > { %v14470_v53 = vadd.f32 %v1032_v13, %v963_v38  ;;  %v1040_v63 = vpop.f32.mrf.mxu1 }
 0x15f   : > { %21121 = vst [vmem:[#allocation37_spill] sm:$0xff] %v14468_v43  ;;  %9283 = vmatmul.msk.bf16.gmra.mxu3 %vm856_vm1, %v14153_v8 }
 0x161   : > { %1226 = vmatmul.bf16.gmra.mxu1 %v14187_v25 }
 0x162   : > { %v1178_v42 = vpop.f32.mrf.mxu3 }
 0x164   : > { %v1101_v30 = vpop.f32.mrf.mxu2 }
 0x165   : > { %v14479_v62 = vadd.f32 %v1170_v23, %v1101_v30  ;;  %v966_v26 = vpop.f32.mrf.mxu0  ;;  %v9175_v23 = vld [vmem:[%s20994_s1 + $0x100] sm:$0xf] }
 0x166   : > { %v14481_v47 = vadd.f32 %v1035_v61, %v966_v26  ;;  %v1042_v13 = vpop.f32.mrf.mxu1  ;;  %v12910_v61 = vld [vmem:[%s20994_s1 + $0x114] sm:$0xf0] }
 0x167   : > { %21122 = vst [vmem:[#allocation38_spill] sm:$0xff] %v14479_v62  ;;  %v9176_v26 = vor.u32 %v12910_v61, %v9175_v23  ;;  %v12907_v23 = vld [vmem:[%s20994_s1 + $0x104] sm:$0xf] }
 0x168   : > { %1359 = vmatmul.bf16.gmra.mxu0 %v14161_v12 }
 0x169   : > { %9294 = vmatmul.msk.bf16.gmra.mxu2 %vm856_vm1, %v14127_v60  ;;  %1466 = vmatpush.bf16.msra.mxu1 %v9176_v26 }
 0x16a   : > { %v1180_v14 = vpop.f32.mrf.mxu3 }
 0x16c   : > { %v1104_v30 = vpop.f32.mrf.mxu2 }
 0x16d   : > { %v14496_v38 = vadd.f32 %v1173_v27, %v1104_v30  ;;  %v968_v62 = vpop.f32.mrf.mxu0  ;;  %v9177_v27 = vld [vmem:[%s20994_s1 + $0x118] sm:$0xf0] }
 0x16e   : > { %v14498_v40 = vadd.f32 %v1037_v10, %v968_v62  ;;  %v1045_v52 = vpop.f32.mrf.mxu1  ;;  %v9180_v10 = vor.u32 %v12907_v23, %v9177_v27 }
 0x16f   : > { %21123 = vst [vmem:[#allocation39_spill] sm:$0xff] %v14496_v38  ;;  %9284 = vmatmul.msk.bf16.gmra.mxu3 %vm856_vm1, %v14173_v17  ;;  %v12901_v38 = vld [vmem:[%s20994_s1 + $0xd4] sm:$0xf] }
 0x170   : > { %1604 = vmatpush.bf16.msra.mxu0 %v9180_v10 }
 0x171   : > { %1231 = vmatmul.bf16.gmra.mxu1 %v14207_v39 }
 0x172   : > { %v1183_v62 = vpop.f32.mrf.mxu3 }
 0x174   : > { %v1106_v61 = vpop.f32.mrf.mxu2 }
 0x175   : > { %v14513_v30 = vadd.f32 %v1175_v3, %v1106_v61  ;;  %v971_v26 = vpop.f32.mrf.mxu0 }
 0x176   : > { %v14515_v43 = vadd.f32 %v1040_v63, %v971_v26  ;;  %v1047_v28 = vpop.f32.mrf.mxu1 }
 0x177   : > { %21124 = vst [vmem:[#allocation40_spill] sm:$0xff] %v14513_v30 }
 0x178   : > { %21125 = vst [vmem:[#allocation41_spill] sm:$0xff] %v14515_v43  ;;  %1364 = vmatmul.bf16.gmra.mxu0 %v14187_v25 }
 0x179   : > { %9295 = vmatmul.msk.bf16.gmra.mxu2 %vm856_vm1, %v14153_v8 }
 0x17a   : > { %v1185_v23 = vpop.f32.mrf.mxu3 }
 0x17c   : > { %v1109_v27 = vpop.f32.mrf.mxu2 }
 0x17d   : > { %v14524_v10 = vadd.f32 %v1178_v42, %v1109_v27  ;;  %v973_v3 = vpop.f32.mrf.mxu0  ;;  %v9151_v42 = vld [vmem:[%s20994_s1 + $0xd0] sm:$0xf] }
 0x17e   : > { %v14526_v61 = vadd.f32 %v1042_v13, %v973_v3  ;;  %v1197_v63 = vpop.f32.mrf.mxu1  ;;  %v12904_v13 = vld [vmem:[%s20994_s1 + $0xe4] sm:$0xf0] }
 0x17f   : > { %21126 = vst [vmem:[#allocation42_spill] sm:$0xff] %v14524_v10  ;;  %9285 = vmatmul.msk.bf16.gmra.mxu3 %vm856_vm1, %v14193_v29  ;;  %v9152_v3 = vor.u32 %v12904_v13, %v9151_v42 }
 0x180   : > { %21127 = vst [vmem:[#allocation43_spill] sm:$0xff] %v14526_v61 }
 0x181   : > { %1236 = vmatmul.bf16.gmra.mxu1 %v14233_v58 }
 0x182   : > { %v1266_v56 = vpop.f32.mrf.mxu3  ;;  %1467 = vmatpush.bf16.msra.mxu1 %v9152_v3 }
 0x183   : > { %v14535_v30 = vadd.f32 %v1266_v56, %v1197_v63  ;;  %v9153_v56 = vld [vmem:[%s20994_s1 + $0xe8] sm:$0xf0] }
 0x184   : > { %v1111_v27 = vpop.f32.mrf.mxu2  ;;  %v9156_v2 = vor.u32 %v12901_v38, %v9153_v56 }
 0x185   : > { %v14543_v26 = vadd.f32 %v1180_v14, %v1111_v27  ;;  %v976_v10 = vpop.f32.mrf.mxu0 }
 0x186   : > { %v14551_v63 = vadd.f32 %v1045_v52, %v976_v10  ;;  %v1199_v16 = vpop.f32.mrf.mxu1  ;;  %1605 = vmatpush.bf16.msra.mxu0 %v9156_v2 }
 0x187   : > { %21128 = vst [vmem:[#allocation44_spill] sm:$0xff] %v14543_v26 }
 0x188   : > { %21129 = vst [vmem:[#allocation45_spill] sm:$0xff] %v14551_v63  ;;  %1369 = vmatmul.bf16.gmra.mxu0 %v14207_v39 }
 0x189   : > { %9296 = vmatmul.msk.bf16.gmra.mxu2 %vm856_vm1, %v14173_v17 }
 0x18a   : > { %v1268_v42 = vpop.f32.mrf.mxu3 }
 0x18b   : > { %v14560_v13 = vadd.f32 %v1268_v42, %v1199_v16 }
 0x18c   : > { %v1114_v52 = vpop.f32.mrf.mxu2 }
 0x18d   : > { %21130 = vst [vmem:[#allocation46_spill] sm:$0xff] %v14560_v13  ;;  %v14562_v10 = vadd.f32 %v1183_v62, %v1114_v52  ;;  %v978_v27 = vpop.f32.mrf.mxu0  ;;  %v12898_v62 = vld [vmem:[%s20994_s1 + $0xb4] sm:$0xf0] }
 0x18e   : > { %v14564_v38 = vadd.f32 %v1047_v28, %v978_v27  ;;  %v1202_v3 = vpop.f32.mrf.mxu1  ;;  %v9127_v28 = vld [vmem:[%s20994_s1 + $0xa0] sm:$0xf] }
 0x18f   : > { %21131 = vst [vmem:[#allocation47_spill] sm:$0xff] %v14562_v10  ;;  %9286 = vmatmul.msk.bf16.gmra.mxu3 %vm856_vm1, %v14219_v50  ;;  %v9128_v52 = vor.u32 %v12898_v62, %v9127_v28  ;;  %v9079_v62 = vld [vmem:[%s20994_s1 + $0x40] sm:$0xf] }
 0x190   : > { %21132 = vst [vmem:[#allocation48_spill] sm:$0xff] %v14564_v38 }
 0x191   : > { %1241 = vmatmul.bf16.gmra.mxu1 %v14277_v36 }
 0x192   : > { %v1271_v2 = vpop.f32.mrf.mxu3  ;;  %1468 = vmatpush.bf16.msra.mxu1 %v9128_v52 }
 0x193   : > { %v14573_v16 = vadd.f32 %v1271_v2, %v1202_v3  ;;  %v9103_v3 = vld [vmem:[%s20994_s1 + $0x70] sm:$0xf]  ;;  %v12892_v2 = vld [vmem:[%s20994_s1 + $0x84] sm:$0xf0] }
 0x194   : > { %v1116_v42 = vpop.f32.mrf.mxu2  ;;  %v9104_v10 = vor.u32 %v12892_v2, %v9103_v3 }
 0x195   : > { %v14581_v27 = vadd.f32 %v1185_v23, %v1116_v42  ;;  %v1335_v56 = vpop.f32.mrf.mxu0  ;;  %v12886_v42 = vld [vmem:[%s20994_s1 + $0x54] sm:$0xf0] }
 0x196   : > { %v1204_v14 = vpop.f32.mrf.mxu1  ;;  %1469 = vmatpush.bf16.msra.mxu1 %v9104_v10  ;;  %v9080_v37 = vor.u32 %v12886_v42, %v9079_v62  ;;  %v9129_v10 = vld [vmem:[%s20994_s1 + $0xb8] sm:$0xf0] }
 0x197   : > { %21133 = vst [vmem:[#allocation49_spill] sm:$0xff] %v14581_v27 }
 0x198   : > { %1374 = vmatmul.bf16.gmra.mxu0 %v14233_v58 }
 0x199   : > { %9297 = vmatmul.msk.bf16.gmra.mxu2 %vm856_vm1, %v14193_v29 }
 0x19a   : > { %v1273_v23 = vpop.f32.mrf.mxu3  ;;  %1470 = vmatpush.bf16.msra.mxu1 %v9080_v37  ;;  %v12880_v37 = vld [vmem:[%s20994_s1 + $0x24] sm:$0xf0] }
 0x19b   : > { %v14594_v28 = vadd.f32 %v1273_v23, %v1204_v14  ;;  %v12895_v14 = vld [vmem:[%s20994_s1 + $0xa4] sm:$0xf]  ;;  %v9055_v23 = vld [vmem:[%s20994_s1 + $0x10] sm:$0xf] }
 0x19c   : > { %v1404_v52 = vpop.f32.mrf.mxu2  ;;  %v9056_v62 = vor.u32 %v12880_v37, %v9055_v23 }
 0x19d   : > { %v14602_v27 = vadd.f32 %v1404_v52, %v1335_v56  ;;  %v1337_v3 = vpop.f32.mrf.mxu0  ;;  %v9132_v56 = vor.u32 %v12895_v14, %v9129_v10 }
 0x19e   : > { %v1207_v2 = vpop.f32.mrf.mxu1  ;;  %1471 = vmatpush.bf16.msra.mxu1 %v9056_v62  ;;  %v9081_v62 = vld [vmem:[%s20994_s1 + $0x58] sm:$0xf0] }
 0x19f   : > { %9287 = vmatmul.msk.bf16.gmra.mxu3 %vm856_vm1, %v14247_v7  ;;  %1606 = vmatpush.bf16.msra.mxu0 %v9132_v56 }
 0x1a1   : > { %1246 = vmatmul.bf16.gmra.mxu1 %v14311_v9 }
 0x1a2   : > { %v1276_v42 = vpop.f32.mrf.mxu3 }
 0x1a3   : > { %v14619_v52 = vadd.f32 %v1276_v42, %v1207_v2  ;;  %v12889_v2 = vld [vmem:[%s20994_s1 + $0x74] sm:$0xf] }
 0x1a4   : > { %v1406_v20 = vpop.f32.mrf.mxu2 }
 0x1a5   : > { %v14621_v51 = vadd.f32 %v1406_v20, %v1337_v3  ;;  %v1340_v26 = vpop.f32.mrf.mxu0  ;;  %v9105_v20 = vld [vmem:[%s20994_s1 + $0x88] sm:$0xf0] }
 0x1a6   : > { %v1209_v6 = vpop.f32.mrf.mxu1  ;;  %v9108_v56 = vor.u32 %v12889_v2, %v9105_v20  ;;  %v12877_v2 = vld [vmem:[%s20994_s1 + $0x14] sm:$0xf]  ;;  %v9057_v20 = vld [vmem:[%s20994_s1 + $0x28] sm:$0xf0] }
 0x1a7   : > { %v9060_v38 = vor.u32 %v12877_v2, %v9057_v20 }
 0x1a8   : > { %1379 = vmatmul.bf16.gmra.mxu0 %v14277_v36 }
 0x1a9   : > { %9298 = vmatmul.msk.bf16.gmra.mxu2 %vm856_vm1, %v14219_v50  ;;  %1607 = vmatpush.bf16.msra.mxu0 %v9108_v56 }
 0x1aa   : > { %v1278_v14 = vpop.f32.mrf.mxu3 }
 0x1ab   : > { %v14626_v10 = vadd.f32 %v1278_v14, %v1209_v6  ;;  %v12883_v6 = vld [vmem:[%s20994_s1 + $0x44] sm:$0xf] }
 0x1ac   : > { %v1409_v31 = vpop.f32.mrf.mxu2  ;;  %v9084_v42 = vor.u32 %v12883_v6, %v9081_v62 }
 0x1ad   : > { %v14634_v3 = vadd.f32 %v1409_v31, %v1340_v26  ;;  %v1342_v23 = vpop.f32.mrf.mxu0 }
 0x1ae   : > { %v1212_v37 = vpop.f32.mrf.mxu1  ;;  %1608 = vmatpush.bf16.msra.mxu0 %v9084_v42 }
 0x1af   : > { %9288 = vmatmul.msk.bf16.gmra.mxu3 %vm856_vm1, %v14287_v46 }
 0x1b1   : > { %1251 = vmatmul.bf16.gmra.mxu1 %v14334_v44 }
 0x1b2   : > { %v1281_v31 = vpop.f32.mrf.mxu3  ;;  %1609 = vmatpush.bf16.msra.mxu0 %v9060_v38 }
 0x1b3   : > { %v14645_v26 = vadd.f32 %v1281_v31, %v1212_v37 }
 0x1b4   : > { %v1411_v14 = vpop.f32.mrf.mxu2 }
 0x1b5   : > { %21134 = vst [vmem:[#allocation50_spill] sm:$0xff] %v14645_v26  ;;  %v14653_v56 = vadd.f32 %v1411_v14, %v1342_v23  ;;  %v1345_v15 = vpop.f32.mrf.mxu0  ;;  %v21191_v26 = vld [vmem:[#allocation33_spill] sm:$0xff] }
 0x1b6   : > { %v1214_v0 = vpop.f32.mrf.mxu1 }
 0x1b8   : > { %1384 = vmatmul.bf16.gmra.mxu0 %v14311_v9 }
 0x1b9   : > { %9299 = vmatmul.msk.bf16.gmra.mxu2 %vm856_vm1, %v14247_v7 }
 0x1ba   : > { %v1283_v37 = vpop.f32.mrf.mxu3 }
 0x1bb   : > { %v14658_v6 = vadd.f32 %v1283_v37, %v1214_v0 }
 0x1bc   : > { %v1414_v62 = vpop.f32.mrf.mxu2 }
 0x1bd   : > { %21135 = vst [vmem:[#allocation51_spill] sm:$0xff] %v14658_v6  ;;  %v14660_v42 = vadd.f32 %v1414_v62, %v1345_v15  ;;  %v1347_v31 = vpop.f32.mrf.mxu0 }
 0x1be   : > { %v1217_v36 = vpop.f32.mrf.mxu1 }
 0x1bf   : > { %9301 = vmatmul.msk.bf16.vlgmr.msra.gmra.mxu3 %vm856_vm1, %v13973_v48 }
 0x1c1   : > { %1472 = vmatmul.bf16.vlgmr.msra.gmra.mxu1 %v14053_v24 }
 0x1c2   : > { %v1286_v23 = vpop.f32.mrf.mxu3 }
 0x1c3   : > { %v14665_v38 = vadd.f32 %v1286_v23, %v1217_v36  ;;  %v21138_v36 = vld [vmem:[#allocation7_spill] sm:$0xff] }
 0x1c4   : > { %v1416_v14 = vpop.f32.mrf.mxu2 }
 0x1c5   : > { %21136 = vst [vmem:[#allocation52_spill] sm:$0xff] %v14665_v38  ;;  %v14667_v2 = vadd.f32 %v1416_v14, %v1347_v31  ;;  %v1350_v20 = vpop.f32.mrf.mxu0  ;;  %v13045_v38 = vld [vmem:[%s20996_s3 + $0x3a4] sm:$0xf] }
 0x1c6   : > { %v1219_v9 = vpop.f32.mrf.mxu1 }
 0x1c8   : > { %1389 = vmatmul.bf16.gmra.mxu0 %v14334_v44 }
 0x1c9   : > { %9300 = vmatmul.msk.bf16.gmra.mxu2 %vm856_vm1, %v14287_v46 }
 0x1ca   : > { %v1288_v15 = vpop.f32.mrf.mxu3 }
 0x1cb   : > { %v14672_v0 = vadd.f32 %v1288_v15, %v1219_v9 }
 0x1cc   : > { %v1419_v37 = vpop.f32.mrf.mxu2 }
 0x1cd   : > { %21137 = vst [vmem:[#allocation53_spill] sm:$0xff] %v14672_v0  ;;  %v14674_v62 = vadd.f32 %v1419_v37, %v1350_v20  ;;  %v1352_v7 = vpop.f32.mrf.mxu0 }
 0x1ce   : > { %v1222_v63 = vpop.f32.mrf.mxu1 }
 0x1cf   : > { %9302 = vmatmul.msk.bf16.gmra.mxu3 %vm856_vm1, %v14027_v11 }
 0x1d1   : > { %1477 = vmatmul.bf16.gmra.mxu1 %v21138_v36 }
 0x1d2   : > { %v1291_v31 = vpop.f32.mrf.mxu3 }
 0x1d3   : > { %v14679_v23 = vadd.f32 %v1291_v31, %v1222_v63  ;;  %v21141_v63 = vld [vmem:[#allocation6_spill] sm:$0xff] }
 0x1d4   : > { %v1421_v14 = vpop.f32.mrf.mxu2 }
 0x1d5   : > { %21139 = vst [vmem:[#allocation7_spill] sm:$0xff] %v14679_v23  ;;  %v14681_v44 = vadd.f32 %v1421_v14, %v1352_v7  ;;  %v1355_v46 = vpop.f32.mrf.mxu0  ;;  %v21142_v7 = vld [vmem:[#allocation8_spill] sm:$0xff] }
 0x1d6   : > { %v1224_v35 = vpop.f32.mrf.mxu1 }
 0x1d8   : > { %1610 = vmatmul.bf16.vlgmr.msra.gmra.mxu0 %v14053_v24 }
 0x1d9   : > { %9313 = vmatmul.msk.bf16.vlgmr.msra.gmra.mxu2 %vm856_vm1, %v13973_v48 }
 0x1da   : > { %v1293_v9 = vpop.f32.mrf.mxu3 }
 0x1db   : > { %v14686_v20 = vadd.f32 %v1293_v9, %v1224_v35 }
 0x1dc   : > { %v1424_v15 = vpop.f32.mrf.mxu2 }
 0x1dd   : > { %21140 = vst [vmem:[#allocation54_spill] sm:$0xff] %v14686_v20  ;;  %v14688_v37 = vadd.f32 %v1424_v15, %v1355_v46  ;;  %v1357_v50 = vpop.f32.mrf.mxu0 }
 0x1de   : > { %v1227_v61 = vpop.f32.mrf.mxu1 }
 0x1df   : > { %9303 = vmatmul.msk.bf16.gmra.mxu3 %vm856_vm1, %v21141_v63 }
 0x1e1   : > { %1482 = vmatmul.bf16.gmra.mxu1 %v21142_v7 }
 0x1e2   : > { %v1296_v31 = vpop.f32.mrf.mxu3 }
 0x1e3   : > { %v14693_v14 = vadd.f32 %v1296_v31, %v1227_v61 }
 0x1e4   : > { %v1426_v24 = vpop.f32.mrf.mxu2 }
 0x1e5   : > { %21143 = vst [vmem:[#allocation6_spill] sm:$0xff] %v14693_v14  ;;  %v14697_v22 = vadd.f32 %v1426_v24, %v1357_v50  ;;  %v1360_v35 = vpop.f32.mrf.mxu0 }
 0x1e6   : > { %v1229_v9 = vpop.f32.mrf.mxu1 }
 0x1e8   : > { %1615 = vmatmul.bf16.gmra.mxu0 %v21138_v36 }
 0x1e9   : > { %9314 = vmatmul.msk.bf16.gmra.mxu2 %vm856_vm1, %v14027_v11 }
 0x1ea   : > { %v1298_v46 = vpop.f32.mrf.mxu3 }
 0x1eb   : > { %v14702_v15 = vadd.f32 %v1298_v46, %v1229_v9 }
 0x1ec   : > { %v1429_v58 = vpop.f32.mrf.mxu2 }
 0x1ed   : > { %21144 = vst [vmem:[#allocation8_spill] sm:$0xff] %v14702_v15  ;;  %v14706_v31 = vadd.f32 %v1429_v58, %v1360_v35  ;;  %v1362_v43 = vpop.f32.mrf.mxu0 }
 0x1ee   : > { %v1232_v48 = vpop.f32.mrf.mxu1 }
 0x1ef   : > { %9304 = vmatmul.msk.bf16.gmra.mxu3 %vm856_vm1, %v14073_v33 }
 0x1f1   : > { %1487 = vmatmul.bf16.gmra.mxu1 %v14121_v57 }
 0x1f2   : > { %v1301_v50 = vpop.f32.mrf.mxu3 }
 0x1f3   : > { %v14711_v36 = vadd.f32 %v1301_v50, %v1232_v48 }
 0x1f4   : > { %v1431_v11 = vpop.f32.mrf.mxu2 }
 0x1f5   : > { %21145 = vst [vmem:[#allocation55_spill] sm:$0xff] %v14711_v36  ;;  %v14715_v9 = vadd.f32 %v1431_v11, %v1362_v43  ;;  %v1365_v46 = vpop.f32.mrf.mxu0  ;;  %v21146_v11 = vld [vmem:[#allocation11_spill] sm:$0xff] }
 0x1f6   : > { %v1234_v61 = vpop.f32.mrf.mxu1 }
 0x1f8   : > { %1620 = vmatmul.bf16.gmra.mxu0 %v21142_v7  ;;  %v21147_v7 = vld [vmem:[#allocation32_spill] sm:$0xff] }
 0x1f9   : > { %9315 = vmatmul.msk.bf16.gmra.mxu2 %vm856_vm1, %v21141_v63  ;;  %v21148_v24 = vmax.f32 %v21146_v11, %v21147_v7 }
 0x1fa   : > { %v1303_v58 = vpop.f32.mrf.mxu3 }
 0x1fb   : > { %v14720_v35 = vadd.f32 %v1303_v58, %v1234_v61 }
 0x1fc   : > { %v1434_v15 = vpop.f32.mrf.mxu2 }
 0x1fd   : > { %v1435_v50 = vadd.f32 %v1434_v15, %v1365_v46  ;;  %v1367_v13 = vpop.f32.mrf.mxu0 }
 0x1fe   : > { %v1237_v14 = vpop.f32.mrf.mxu1 }
 0x1ff   : > { %v1743_v43 = vmax.f32 %v14602_v27, %v1435_v50  ;;  %9305 = vmatmul.msk.bf16.gmra.mxu3 %vm856_vm1, %v14106_v49 }
 0x201   : > { %v14730_v36 = vmax.f32 %v21148_v24, %v1743_v43  ;;  %1492 = vmatmul.bf16.gmra.mxu1 %v14147_v5  ;;  %v21149_v24 = vmax.f32 %v14257_v18, %v14407_v19  ;;  %v21150_v18 = vmax.f32 %v14281_v41, %v14425_v45  ;;  %v21152_v41 = vmax.f32 %v14297_v59, %v14436_v54 }
 0x202   : > { %v1306_v63 = vpop.f32.mrf.mxu3  ;;  %v21154_v59 = vmax.f32 %v14321_v21, %v14453_v55  ;;  %v21156_v21 = vmax.f32 %v14327_v32, %v14470_v53  ;;  %v21158_v53 = vmax.f32 %v14338_v34, %v14481_v47  ;;  %v21160_v34 = vmax.f32 %v14344_v1, %v14498_v40  ;;  %v21162_v1 = vld [vmem:[#allocation41_spill] sm:$0xff] }
 0x203   : > { %v14733_v61 = vadd.f32 %v1306_v63, %v1237_v14  ;;  %v21163_v40 = vmax.f32 %v14351_v4, %v21162_v1 }
 0x204   : > { %v1436_v58 = vpop.f32.mrf.mxu2 }
 0x205   : > { %v1437_v46 = vadd.f32 %v1436_v58, %v1367_v13  ;;  %v1370_v48 = vpop.f32.mrf.mxu0 }
 0x206   : > { %v1239_v27 = vpop.f32.mrf.mxu1 }
 0x207   : > { %v1749_v50 = vmax.f32 %v14621_v51, %v1437_v46 }
 0x208   : > { %1625 = vmatmul.bf16.gmra.mxu0 %v14121_v57 }
 0x209   : > { %v14742_v43 = vmax.f32 %v21149_v24, %v1749_v50  ;;  %9316 = vmatmul.msk.bf16.gmra.mxu2 %vm856_vm1, %v14073_v33 }
 0x20a   : > { %v1308_v14 = vpop.f32.mrf.mxu3 }
 0x20b   : > { %v14746_v11 = vadd.f32 %v1308_v14, %v1239_v27 }
 0x20c   : > { %v1439_v7 = vpop.f32.mrf.mxu2 }
 0x20d   : > { %v1440_v63 = vadd.f32 %v1439_v7, %v1370_v48  ;;  %v1372_v58 = vpop.f32.mrf.mxu0 }
 0x20e   : > { %v1242_v51 = vpop.f32.mrf.mxu1 }
 0x20f   : > { %v1755_v57 = vmax.f32 %v14634_v3, %v1440_v63  ;;  %9306 = vmatmul.msk.bf16.gmra.mxu3 %vm856_vm1, %v14127_v60 }
 0x211   : > { %v14756_v19 = vmax.f32 %v21150_v18, %v1755_v57  ;;  %1497 = vmatmul.bf16.gmra.mxu1 %v14161_v12 }
 0x212   : > { %v1311_v33 = vpop.f32.mrf.mxu3 }
 0x213   : > { %v14759_v46 = vadd.f32 %v1311_v33, %v1242_v51 }
 0x214   : > { %v1441_v27 = vpop.f32.mrf.mxu2 }
 0x215   : > { %21151 = vst [vmem:[#allocation11_spill] sm:$0xff] %v14759_v46  ;;  %v1442_v50 = vadd.f32 %v1441_v27, %v1372_v58  ;;  %v1375_v24 = vpop.f32.mrf.mxu0  ;;  %v21190_v46 = vld [vmem:[#allocation13_spill] sm:$0xff] }
 0x216   : > { %v1244_v3 = vpop.f32.mrf.mxu1 }
 0x217   : > { %v1761_v14 = vmax.f32 %v14653_v56, %v1442_v50  ;;  %v9521_v50 = vld [vmem:[%s20996_s3 + $0x3d0] sm:$0xf0] }
 0x218   : > { %1630 = vmatmul.bf16.gmra.mxu0 %v14147_v5 }
 0x219   : > { %v14768_v45 = vmax.f32 %v21152_v41, %v1761_v14  ;;  %9317 = vmatmul.msk.bf16.gmra.mxu2 %vm856_vm1, %v14106_v49 }
 0x21a   : > { %v1313_v7 = vpop.f32.mrf.mxu3 }
 0x21b   : > { %v14772_v63 = vadd.f32 %v1313_v7, %v1244_v3 }
 0x21c   : > { %v1444_v51 = vpop.f32.mrf.mxu2 }
 0x21d   : > { %21153 = vst [vmem:[#allocation32_spill] sm:$0xff] %v14772_v63  ;;  %v1445_v57 = vadd.f32 %v1444_v51, %v1375_v24  ;;  %v1377_v18 = vpop.f32.mrf.mxu0 }
 0x21e   : > { %v1247_v56 = vpop.f32.mrf.mxu1 }
 0x21f   : > { %v1767_v5 = vmax.f32 %v14660_v42, %v1445_v57  ;;  %9307 = vmatmul.msk.bf16.gmra.mxu3 %vm856_vm1, %v14153_v8 }
 0x221   : > { %v14782_v54 = vmax.f32 %v21154_v59, %v1767_v5  ;;  %1502 = vmatmul.bf16.gmra.mxu1 %v14187_v25 }
 0x222   : > { %v1316_v49 = vpop.f32.mrf.mxu3 }
 0x223   : > { %v14785_v33 = vadd.f32 %v1316_v49, %v1247_v56 }
 0x224   : > { %v1446_v27 = vpop.f32.mrf.mxu2 }
 0x225   : > { %21155 = vst [vmem:[#allocation56_spill] sm:$0xff] %v14785_v33  ;;  %v1447_v24 = vadd.f32 %v1446_v27, %v1377_v18  ;;  %v1380_v3 = vpop.f32.mrf.mxu0  ;;  %v15000_v33 = vld [vmem:[%s20995_s2] sm:$0x7] }
 0x226   : > { %v1249_v42 = vpop.f32.mrf.mxu1 }
 0x227   : > { %v1773_v14 = vmax.f32 %v14667_v2, %v1447_v24 }
 0x228   : > { %1635 = vmatmul.bf16.gmra.mxu0 %v14161_v12 }
 0x229   : > { %v14794_v55 = vmax.f32 %v21156_v21, %v1773_v14  ;;  %9318 = vmatmul.msk.bf16.gmra.mxu2 %vm856_vm1, %v14127_v60 }
 0x22a   : > { %v1318_v41 = vpop.f32.mrf.mxu3 }
 0x22b   : > { %v14798_v7 = vadd.f32 %v1318_v41, %v1249_v42 }
 0x22c   : > { %v1449_v51 = vpop.f32.mrf.mxu2 }
 0x22d   : > { %21157 = vst [vmem:[#allocation57_spill] sm:$0xff] %v14798_v7  ;;  %v1450_v18 = vadd.f32 %v1449_v51, %v1380_v3  ;;  %v1382_v56 = vpop.f32.mrf.mxu0 }
 0x22e   : > { %v1252_v2 = vpop.f32.mrf.mxu1 }
 0x22f   : > { %v1779_v12 = vmax.f32 %v14674_v62, %v1450_v18  ;;  %9308 = vmatmul.msk.bf16.gmra.mxu3 %vm856_vm1, %v14173_v17 }
 0x231   : > { %v14808_v32 = vmax.f32 %v21158_v53, %v1779_v12  ;;  %1507 = vmatmul.bf16.gmra.mxu1 %v14207_v39 }
 0x232   : > { %v1321_v60 = vpop.f32.mrf.mxu3 }
 0x233   : > { %v14811_v5 = vadd.f32 %v1321_v60, %v1252_v2 }
 0x234   : > { %v1451_v59 = vpop.f32.mrf.mxu2 }
 0x235   : > { %21159 = vst [vmem:[#allocation58_spill] sm:$0xff] %v14811_v5  ;;  %v1452_v27 = vadd.f32 %v1451_v59, %v1382_v56  ;;  %v1385_v24 = vpop.f32.mrf.mxu0 }
 0x236   : > { %v1254_v62 = vpop.f32.mrf.mxu1 }
 0x237   : > { %v1785_v3 = vmax.f32 %v14681_v44, %v1452_v27 }
 0x238   : > { %1640 = vmatmul.bf16.gmra.mxu0 %v14187_v25 }
 0x239   : > { %v14820_v47 = vmax.f32 %v21160_v34, %v1785_v3  ;;  %9319 = vmatmul.msk.bf16.gmra.mxu2 %vm856_vm1, %v14153_v8  ;;  %v21164_v8 = vld [vmem:[#allocation10_spill] sm:$0xff] }
 0x23a   : > { %v1323_v42 = vpop.f32.mrf.mxu3 }
 0x23b   : > { %v14824_v14 = vadd.f32 %v1323_v42, %v1254_v62  ;;  %v21166_v62 = vld [vmem:[#allocation43_spill] sm:$0xff] }
 0x23c   : > { %v1454_v21 = vpop.f32.mrf.mxu2 }
 0x23d   : > { %21161 = vst [vmem:[#allocation59_spill] sm:$0xff] %v14824_v14  ;;  %v1455_v51 = vadd.f32 %v1454_v21, %v1385_v24  ;;  %v1387_v18 = vpop.f32.mrf.mxu0  ;;  %v21165_v24 = vld [vmem:[#allocation26_spill] sm:$0xff] }
 0x23e   : > { %v1473_v44 = vpop.f32.mrf.mxu1  ;;  %v21167_v3 = vmax.f32 %v21165_v24, %v21166_v62  ;;  %v21174_v62 = vld [vmem:[#allocation30_spill] sm:$0xff] }
 0x23f   : > { %v1791_v25 = vmax.f32 %v14688_v37, %v1455_v51  ;;  %9309 = vmatmul.msk.bf16.gmra.mxu3 %vm856_vm1, %v14193_v29 }
 0x241   : > { %v14834_v56 = vmax.f32 %v21163_v40, %v1791_v25  ;;  %1512 = vmatmul.bf16.gmra.mxu1 %v21164_v8  ;;  %v21168_v25 = vld [vmem:[#allocation9_spill] sm:$0xff] }
 0x242   : > { %v1542_v2 = vpop.f32.mrf.mxu3 }
 0x243   : > { %v14837_v12 = vadd.f32 %v1542_v2, %v1473_v44  ;;  %v21173_v2 = vld [vmem:[#allocation14_spill] sm:$0xff] }
 0x244   : > { %v1456_v53 = vpop.f32.mrf.mxu2 }
 0x245   : > { %v1457_v60 = vadd.f32 %v1456_v53, %v1387_v18  ;;  %v1390_v59 = vpop.f32.mrf.mxu0 }
 0x246   : > { %v14839_v27 = vpop.f32.mrf.mxu1 }
 0x247   : > { %v1797_v37 = vmax.f32 %v14697_v22, %v1457_v60  ;;  %v21170_v22 = vld [vmem:[#allocation45_spill] sm:$0xff] }
 0x248   : > { %1645 = vmatmul.bf16.gmra.mxu0 %v14207_v39  ;;  %v21169_v39 = vld [vmem:[#allocation28_spill] sm:$0xff] }
 0x249   : > { %v14846_v4 = vmax.f32 %v21167_v3, %v1797_v37  ;;  %9320 = vmatmul.msk.bf16.gmra.mxu2 %vm856_vm1, %v14173_v17  ;;  %v21171_v1 = vmax.f32 %v21169_v39, %v21170_v22  ;;  %v21175_v3 = vld [vmem:[#allocation48_spill] sm:$0xff] }
 0x24a   : > { %v14850_v34 = vpop.f32.mrf.mxu3 }
 0x24c   : > { %v1459_v42 = vpop.f32.mrf.mxu2 }
 0x24d   : > { %v1460_v21 = vadd.f32 %v1459_v42, %v1390_v59  ;;  %v1392_v51 = vpop.f32.mrf.mxu0  ;;  %v21176_v42 = vmax.f32 %v21174_v62, %v21175_v3 }
 0x24e   : > { %v1478_v18 = vpop.f32.mrf.mxu1 }
 0x24f   : > { %v1803_v44 = vmax.f32 %v14706_v31, %v1460_v21  ;;  %9310 = vmatmul.msk.bf16.gmra.mxu3 %vm856_vm1, %v21168_v25 }
 0x251   : > { %v14858_v40 = vmax.f32 %v21171_v1, %v1803_v44  ;;  %1517 = vmatmul.bf16.gmra.mxu1 %v21173_v2 }
 0x252   : > { %v1547_v53 = vpop.f32.mrf.mxu3 }
 0x253   : > { %21172 = vst [vmem:[#allocation41_spill] sm:$0xff] %v14858_v40  ;;  %v14861_v17 = vadd.f32 %v1547_v53, %v1478_v18  ;;  %v21178_v53 = vld [vmem:[#allocation12_spill] sm:$0xff] }
 0x254   : > { %v1461_v60 = vpop.f32.mrf.mxu2 }
 0x255   : > { %v1462_v37 = vadd.f32 %v1461_v60, %v1392_v51  ;;  %v1611_v59 = vpop.f32.mrf.mxu0 }
 0x256   : > { %v14863_v24 = vpop.f32.mrf.mxu1 }
 0x257   : > { %v1809_v31 = vmax.f32 %v14715_v9, %v1462_v37  ;;  %v9663_v9 = vld [vmem:[%s20996_s3 + $0x4e0] sm:$0xf] }
 0x258   : > { %1650 = vmatmul.bf16.gmra.mxu0 %v21164_v8  ;;  %v13087_v8 = vld [vmem:[%s20996_s3 + $0x4ec] sm:$0xf0] }
 0x259   : > { %v14870_v21 = vmax.f32 %v21176_v42, %v1809_v31  ;;  %9321 = vmatmul.msk.bf16.gmra.mxu2 %vm856_vm1, %v14193_v29  ;;  %v9664_v1 = vor.u32 %v13087_v8, %v9663_v9  ;;  %v21179_v29 = vld [vmem:[#allocation18_spill] sm:$0xff]  ;;  %v9537_v31 = vld [vmem:[%s20996_s3 + $0x3f0] sm:$0xf0]  ;;  %v13119_v9 = vld [vmem:[%s20996_s3 + $0x5ec] sm:$0xf0] }
 0x25a   : > { %v14874_v44 = vpop.f32.mrf.mxu3  ;;  %v9535_v8 = vld [vmem:[%s20996_s3 + $0x3e0] sm:$0xf] }
 0x25b   : > { %21177 = vst [vmem:[#allocation10_spill] sm:$0xff] %v14870_v21  ;;  %2735 = vmatpush.bf16.msrb.mxu3 %v9664_v1  ;;  %v15021_v21 = vperm.slane %v15000_v33, 0 }
 0x25c   : > { %v1680_v18 = vpop.f32.mrf.mxu2 }
 0x25d   : > { %v14876_v39 = vadd.f32 %v1680_v18, %v1611_v59  ;;  %v14878_v51 = vpop.f32.mrf.mxu0  ;;  %v13053_v59 = vld [vmem:[%s20996_s3 + $0x3e4] sm:$0xf]  ;;  %v9791_v18 = vld [vmem:[%s20996_s3 + $0x5e0] sm:$0xf] }
 0x25e   : > { %v1483_v22 = vpop.f32.mrf.mxu1  ;;  %v9540_v3 = vor.u32 %v13053_v59, %v9537_v31  ;;  %v9792_v1 = vor.u32 %v13119_v9, %v9791_v18  ;;  %v21180_v18 = vld [vmem:[#allocation16_spill] sm:$0xff]  ;;  %v21181_v9 = vld [vmem:[#allocation21_spill] sm:$0xff] }
 0x25f   : > { %9311 = vmatmul.msk.bf16.gmra.mxu3 %vm856_vm1, %v21178_v53 }
 0x260   : > { %2793 = vmatpush.bf16.msrb.mxu2 %v9540_v3  ;;  %2764 = vmatpush.bf16.msrb.mxu0 %v9792_v1  ;;  %v9647_v1 = vld [vmem:[%s20996_s3 + $0x4c0] sm:$0xf] }
 0x261   : > { %1522 = vmatmul.bf16.gmra.mxu1 %v21179_v29 }
 0x262   : > { %v1552_v60 = vpop.f32.mrf.mxu3 }
 0x263   : > { %v14889_v37 = vadd.f32 %v1552_v60, %v1483_v22  ;;  %v13055_v60 = vld [vmem:[%s20996_s3 + $0x3ec] sm:$0xf0] }
 0x264   : > { %v14897_v62 = vpop.f32.mrf.mxu2  ;;  %v9536_v59 = vor.u32 %v13055_v60, %v9535_v8 }
 0x265   : > { %v1616_v42 = vpop.f32.mrf.mxu0 }
 0x266   : > { %v14908_v22 = vpop.f32.mrf.mxu1  ;;  %2706 = vmatpush.bf16.msrb.mxu1 %v9536_v59 }
 0x268   : > { %1655 = vmatmul.bf16.gmra.mxu0 %v21173_v2 }
 0x269   : > { %9322 = vmatmul.msk.bf16.gmra.mxu2 %vm856_vm1, %v21168_v25 }
 0x26a   : > { %v14916_v31 = vpop.f32.mrf.mxu3 }
 0x26c   : > { %v1685_v41 = vpop.f32.mrf.mxu2 }
 0x26d   : > { %v14918_v49 = vadd.f32 %v1685_v41, %v1616_v42  ;;  %v14920_v57 = vpop.f32.mrf.mxu0  ;;  %v13083_v41 = vld [vmem:[%s20996_s3 + $0x4cc] sm:$0xf0] }
 0x26e   : > { %v1488_v3 = vpop.f32.mrf.mxu1  ;;  %v9648_v59 = vor.u32 %v13083_v41, %v9647_v1  ;;  %v9519_v41 = vld [vmem:[%s20996_s3 + $0x3c0] sm:$0xf] }
 0x26f   : > { %9312 = vmatmul.msk.bf16.gmra.mxu3 %vm856_vm1, %v21180_v18 }
 0x270   : > { %2736 = vmatpush.bf16.msrb.mxu3 %v9648_v59 }
 0x271   : > { %1527 = vmatmul.bf16.gmra.mxu1 %v21181_v9 }
 0x272   : > { %v1557_v8 = vpop.f32.mrf.mxu3 }
 0x273   : > { %v14925_v2 = vadd.f32 %v1557_v8, %v1488_v3  ;;  %v13049_v8 = vld [vmem:[%s20996_s3 + $0x3c4] sm:$0xf] }
 0x274   : > { %v14927_v60 = vpop.f32.mrf.mxu2  ;;  %v9524_v48 = vor.u32 %v13049_v8, %v9521_v50 }
 0x275   : > { %v1621_v25 = vpop.f32.mrf.mxu0 }
 0x276   : > { %v14935_v42 = vpop.f32.mrf.mxu1  ;;  %2794 = vmatpush.bf16.msrb.mxu2 %v9524_v48 }
 0x278   : > { %1660 = vmatmul.bf16.gmra.mxu0 %v21179_v29  ;;  %v13115_v29 = vld [vmem:[%s20996_s3 + $0x5cc] sm:$0xf0] }
 0x279   : > { %9323 = vmatmul.msk.bf16.gmra.mxu2 %vm856_vm1, %v21178_v53  ;;  %v9775_v53 = vld [vmem:[%s20996_s3 + $0x5c0] sm:$0xf] }
 0x27a   : > { %v14940_v3 = vpop.f32.mrf.mxu3  ;;  %v9776_v15 = vor.u32 %v13115_v29, %v9775_v53 }
 0x27c   : > { %v1690_v58 = vpop.f32.mrf.mxu2  ;;  %2765 = vmatpush.bf16.msrb.mxu0 %v9776_v15 }
 0x27d   : > { %v14948_v13 = vadd.f32 %v1690_v58, %v1621_v25  ;;  %v14950_v1 = vpop.f32.mrf.mxu0  ;;  %v13051_v58 = vld [vmem:[%s20996_s3 + $0x3cc] sm:$0xf0] }
 0x27e   : > { %v1493_v59 = vpop.f32.mrf.mxu1  ;;  %v9520_v50 = vor.u32 %v13051_v58, %v9519_v41 }
 0x280   : > { %2707 = vmatpush.bf16.msrb.mxu1 %v9520_v50 }
 0x282   : > { %v1562_v25 = vpop.f32.mrf.mxu3 }
 0x283   : > { %v14964_v8 = vadd.f32 %v1562_v25, %v1493_v59 }
 0x284   : > { %v14966_v14 = vpop.f32.mrf.mxu2 }
 0x285   : > { %v1626_v20 = vpop.f32.mrf.mxu0 }
 0x286   : > { %v14968_v5 = vpop.f32.mrf.mxu1 }
 0x288   : > { %1665 = vmatmul.bf16.gmra.mxu0 %v21181_v9 }
 0x289   : > { %9324 = vmatmul.msk.bf16.gmra.mxu2 %vm856_vm1, %v21180_v18  ;;  %v9631_v18 = vld [vmem:[%s20996_s3 + $0x4a0] sm:$0xf] }
 0x28a   : > { %v14973_v48 = vpop.f32.mrf.mxu3 }
 0x28c   : > { %v1695_v53 = vpop.f32.mrf.mxu2 }
 0x28d   : > { %v14975_v29 = vadd.f32 %v1695_v53, %v1626_v20  ;;  %v14977_v15 = vpop.f32.mrf.mxu0  ;;  %v13079_v20 = vld [vmem:[%s20996_s3 + $0x4ac] sm:$0xf0] }
 0x28e   : > { %21182 = vst [vmem:[#allocation26_spill] sm:$0xff] %v14977_v15  ;;  %v1498_v41 = vpop.f32.mrf.mxu1  ;;  %v9632_v9 = vor.u32 %v13079_v20, %v9631_v18  ;;  %v9505_v18 = vld [vmem:[%s20996_s3 + $0x3b0] sm:$0xf0] }
 0x28f   : > { %v9508_v20 = vor.u32 %v13045_v38, %v9505_v18  ;;  %v15027_v18 = vperm.slane %v15000_v33, 1 }
 0x290   : > { %2737 = vmatpush.bf16.msrb.mxu3 %v9632_v9  ;;  %v13111_v9 = vld [vmem:[%s20996_s3 + $0x5ac] sm:$0xf0] }
 0x291   : > { %2795 = vmatpush.bf16.msrb.mxu2 %v9508_v20 }
 0x292   : > { %v1567_v59 = vpop.f32.mrf.mxu3 }
 0x293   : > { %v14979_v58 = vadd.f32 %v1567_v59, %v1498_v41 }
 0x294   : > { %v14981_v50 = vpop.f32.mrf.mxu2 }
 0x295   : > { %21183 = vst [vmem:[#allocation43_spill] sm:$0xff] %v14979_v58  ;;  %v1631_v25 = vpop.f32.mrf.mxu0  ;;  %v1856_v58 = vadd.f32 %v15021_v21, %v14730_v36 }
 0x296   : > { %21184 = vst [vmem:[#allocation9_spill] sm:$0xff] %v14981_v50  ;;  %v14983_v23 = vpop.f32.mrf.mxu1 }
 0x297   : > { %21185 = vst [vmem:[#allocation28_spill] sm:$0xff] %v14983_v23 }
 0x29a   : > { %v14991_v53 = vpop.f32.mrf.mxu3 }
 0x29b   : > { %21186 = vst [vmem:[#allocation45_spill] sm:$0xff] %v14991_v53 }
 0x29c   : > { %v1700_v7 = vpop.f32.mrf.mxu2 }
 0x29d   : > { %v14993_v41 = vadd.f32 %v1700_v7, %v1631_v25  ;;  %v14995_v59 = vpop.f32.mrf.mxu0  ;;  %v9759_v7 = vld [vmem:[%s20996_s3 + $0x5a0] sm:$0xf] }
 0x29e   : > { %21188 = vst [vmem:[#allocation30_spill] sm:$0xff] %v14995_v59  ;;  %v1503_v0 = vpop.f32.mrf.mxu1  ;;  %v9503_v59 = vld [vmem:[%s20996_s3 + $0x3a0] sm:$0xf]  ;;  %v9760_v23 = vor.u32 %v13111_v9, %v9759_v7 }
 0x29f   : > { %21187 = vst [vmem:[#allocation14_spill] sm:$0xff] %v14993_v41  ;;  %v13047_v41 = vld [vmem:[%s20996_s3 + $0x3ac] sm:$0xf0] }
 0x2a0   : > { %v9504_v63 = vor.u32 %v13047_v41, %v9503_v59  ;;  %2766 = vmatpush.bf16.msrb.mxu0 %v9760_v23 }
 0x2a2   : > { %v1572_v25 = vpop.f32.mrf.mxu3  ;;  %2708 = vmatpush.bf16.msrb.mxu1 %v9504_v63 }
 0x2a3   : > { %v1573_v53 = vadd.f32 %v1572_v25, %v1503_v0  ;;  %v21192_v0 = vmax.f32 %v21190_v46, %v21191_v26  ;;  %v1892_v25 = vmax.f32 %v1856_v58, 0.0  ;;  %v1859_v26 = vadd.f32 %v15021_v21, %v14742_v43  ;;  %v21195_v46 = vld [vmem:[#allocation15_spill] sm:$0xff]  ;;  %v13075_v43 = vld [vmem:[%s20996_s3 + $0x48c] sm:$0xf0] }
 0x2a4   : > { %v15023_v6 = vpop.f32.mrf.mxu2 }
 0x2a5   : > { %21189 = vst [vmem:[#allocation48_spill] sm:$0xff] %v15023_v6  ;;  %v1744_v38 = vmax.f32 %v14837_v12, %v1573_v53  ;;  %v1636_v50 = vpop.f32.mrf.mxu0  ;;  %v1545_v12 = vadd.f32 %v14850_v34, %v14839_v27  ;;  %v1895_v34 = vmax.f32 %v1859_v26, 0.0 }
 0x2a6   : > { %v1505_v15 = vpop.f32.mrf.mxu1 }
 0x2a7   : > { %v1813_v7 = vmax.f32 %v21192_v0, %v1744_v38  ;;  %v21196_v38 = vld [vmem:[#allocation34_spill] sm:$0xff] }
 0x2a8   : > { %v21197_v0 = vmax.f32 %v21195_v46, %v21196_v38 }
 0x2a9   : > { %v1857_v41 = vadd.f32 %v15027_v18, %v1813_v7 }
 0x2aa   : > { %v1574_v59 = vpop.f32.mrf.mxu3 }
 0x2ab   : > { %v1893_v53 = vmax.f32 %v1857_v41, 0.0  ;;  %v1575_v20 = vadd.f32 %v1574_v59, %v1505_v15 }
 0x2ac   : > { %v1705_v9 = vpop.f32.mrf.mxu2 }
 0x2ad   : > { %v1928_v23 = vpack.c.bf16 %v1893_v53, %v1892_v25  ;;  %v1750_v63 = vmax.f32 %v1545_v12, %v1575_v20  ;;  %v15037_v6 = vadd.f32 %v1705_v9, %v1636_v50  ;;  %v15039_v40 = vpop.f32.mrf.mxu0  ;;  %v1862_v50 = vadd.f32 %v15021_v21, %v14756_v19  ;;  %v9615_v25 = vld [vmem:[%s20996_s3 + $0x480] sm:$0xf]  ;;  %v13041_v19 = vld [vmem:[%s20996_s3 + $0x384] sm:$0xf] }
 0x2ae   : > { %21194 = vst [vmem:[#allocation18_spill] sm:$0xff] %v15039_v40  ;;  %v1508_v36 = vpop.f32.mrf.mxu1  ;;  %v9616_v9 = vor.u32 %v13075_v43, %v9615_v25  ;;  %v21207_v40 = vld [vmem:[#allocation6_spill] sm:$0xff] }
 0x2af   : > { %21193 = vst [vmem:[#allocation12_spill] sm:$0xff] %v15037_v6  ;;  %v1816_v58 = vmax.f32 %v21197_v0, %v1750_v63  ;;  %v9489_v63 = vld [vmem:[%s20996_s3 + $0x390] sm:$0xf0]  ;;  %v1960_v26 = vunpack.c.l.b16 %v1928_v23  ;;  %v1961_v46 = vunpack.c.h.b16 %v1928_v23  ;;  %v1898_v43 = vmax.f32 %v1862_v50, 0.0 }
 0x2b0   : > { %v9492_v0 = vor.u32 %v13041_v19, %v9489_v63  ;;  %2738 = vmatpush.bf16.msrb.mxu3 %v9616_v9  ;;  %v9471_v19 = vld [vmem:[%s20996_s3 + $0x360] sm:$0xf]  ;;  %v13039_v63 = vld [vmem:[%s20996_s3 + $0x36c] sm:$0xf0]  ;;  %v1550_v50 = vadd.f32 %v14874_v44, %v14863_v24 }
 0x2b1   : > { %v1860_v7 = vadd.f32 %v15027_v18, %v1816_v58  ;;  %v9743_v24 = vld [vmem:[%s20996_s3 + $0x580] sm:$0xf]  ;;  %v13107_v44 = vld [vmem:[%s20996_s3 + $0x58c] sm:$0xf0] }
 0x2b2   : > { %v1577_v27 = vpop.f32.mrf.mxu3  ;;  %2796 = vmatpush.bf16.msrb.mxu2 %v9492_v0  ;;  %v9472_v0 = vor.u32 %v13039_v63, %v9471_v19  ;;  %v9744_v19 = vor.u32 %v13107_v44, %v9743_v24 }
 0x2b3   : > { %v1896_v15 = vmax.f32 %v1860_v7, 0.0  ;;  %v1578_v41 = vadd.f32 %v1577_v27, %v1508_v36  ;;  %v9487_v36 = vld [vmem:[%s20996_s3 + $0x380] sm:$0xf]  ;;  %v21199_v27 = vld [vmem:[#allocation17_spill] sm:$0xff] }
 0x2b4   : > { %v15049_v59 = vpop.f32.mrf.mxu2  ;;  %2767 = vmatpush.bf16.msrb.mxu0 %v9744_v19 }
 0x2b5   : > { %21198 = vst [vmem:[#allocation16_spill] sm:$0xff] %v15049_v59  ;;  %v15057_v12 = vpack.c.bf16 %v1896_v15, %v1895_v34  ;;  %v1756_v53 = vmax.f32 %v14861_v17, %v1578_v41  ;;  %v1641_v20 = vpop.f32.mrf.mxu0  ;;  %v13043_v17 = vld [vmem:[%s20996_s3 + $0x38c] sm:$0xf0]  ;;  %v21200_v34 = vld [vmem:[#allocation35_spill] sm:$0xff] }
 0x2b6   : > { %v1510_v38 = vpop.f32.mrf.mxu1  ;;  %v21201_v15 = vmax.f32 %v21199_v27, %v21200_v34  ;;  %v9488_v25 = vor.u32 %v13043_v17, %v9487_v36  ;;  %v13071_v17 = vld [vmem:[%s20996_s3 + $0x46c] sm:$0xf0]  ;;  %v13037_v27 = vld [vmem:[%s20996_s3 + $0x364] sm:$0xf] }
 0x2b7   : > { %v1963_v58 = vunpack.c.l.b16 %v15057_v12  ;;  %v1964_v7 = vunpack.c.h.b16 %v15057_v12  ;;  %v9599_v12 = vld [vmem:[%s20996_s3 + $0x460] sm:$0xf] }
 0x2b8   : > { %v1819_v41 = vmax.f32 %v21201_v15, %v1756_v53  ;;  %2709 = vmatpush.bf16.msrb.mxu1 %v9488_v25  ;;  %v9600_v15 = vor.u32 %v13071_v17, %v9599_v12  ;;  %v9583_v12 = vld [vmem:[%s20996_s3 + $0x440] sm:$0xf]  ;;  %v9457_v17 = vld [vmem:[%s20996_s3 + $0x350] sm:$0xf0] }
 0x2b9   : > { %v15087_v53 = vpack.c.b16 %v1963_v58, %v1960_v26  ;;  %v15089_v9 = vpack.c.b16 %v1964_v7, %v1961_v46  ;;  %v9473_v26 = vld [vmem:[%s20996_s3 + $0x370] sm:$0xf0] }
 0x2ba   : > { %v1863_v23 = vadd.f32 %v15027_v18, %v1819_v41  ;;  %v1579_v36 = vpop.f32.mrf.mxu3  ;;  %v9476_v41 = vor.u32 %v13037_v27, %v9473_v26  ;;  %2739 = vmatpush.bf16.msrb.mxu3 %v9600_v15  ;;  %v21204_v26 = vld [vmem:[#allocation19_spill] sm:$0xff]  ;;  %v15137_v15 = vperm.slane %v15000_v33, 2  ;;  %v13031_v33 = vld [vmem:[%s20996_s3 + $0x32c] sm:$0xf0] }
 0x2bb   : > { %21202 = vst [vmem:[#allocation21_spill] sm:$0xff] %v15087_v53  ;;  %v1580_v46 = vadd.f32 %v1579_v36, %v1510_v38  ;;  %v9455_v38 = vld [vmem:[%s20996_s3 + $0x340] sm:$0xf]  ;;  %v13067_v36 = vld [vmem:[%s20996_s3 + $0x44c] sm:$0xf0] }
 0x2bc   : > { %21203 = vst [vmem:[#allocation13_spill] sm:$0xff] %v15089_v9  ;;  %v1899_v34 = vmax.f32 %v1863_v23, 0.0  ;;  %v1710_v25 = vpop.f32.mrf.mxu2  ;;  %2710 = vmatpush.bf16.msrb.mxu1 %v9472_v0  ;;  %v13035_v23 = vld [vmem:[%s20996_s3 + $0x34c] sm:$0xf0]  ;;  %2797 = vmatpush.bf16.msrb.mxu2 %v9476_v41  ;;  %v13033_v0 = vld [vmem:[%s20996_s3 + $0x344] sm:$0xf]  ;;  %v9584_v41 = vor.u32 %v13067_v36, %v9583_v12 }
 0x2bd   : > { %v1762_v9 = vmax.f32 %v1550_v50, %v1580_v46  ;;  %v1711_v53 = vadd.f32 %v1710_v25, %v1641_v20  ;;  %v1643_v59 = vpop.f32.mrf.mxu0  ;;  %v9456_v20 = vor.u32 %v13035_v23, %v9455_v38  ;;  %v9460_v25 = vor.u32 %v13033_v0, %v9457_v17 }
 0x2be   : > { %v15108_v63 = vpack.c.bf16 %v1899_v34, %v1898_v43  ;;  %v1865_v43 = vadd.f32 %v15021_v21, %v14768_v45  ;;  %v1513_v50 = vpop.f32.mrf.mxu1  ;;  %v21205_v34 = vld [vmem:[#allocation36_spill] sm:$0xff]  ;;  %2740 = vmatpush.bf16.msrb.mxu3 %v9584_v41  ;;  %v9423_v41 = vld [vmem:[%s20996_s3 + $0x300] sm:$0xf] }
 0x2bf   : > { %v21206_v46 = vmax.f32 %v21204_v26, %v21205_v34  ;;  %v1745_v44 = vmax.f32 %v14876_v39, %v1711_v53  ;;  %v9439_v39 = vld [vmem:[%s20996_s3 + $0x320] sm:$0xf] }
 0x2c0   : > { %v1966_v27 = vunpack.c.l.b16 %v15108_v63  ;;  %v1967_v45 = vunpack.c.h.b16 %v15108_v63  ;;  %v21208_v63 = vmax.f32 %v14535_v30, %v21207_v40  ;;  %2711 = vmatpush.bf16.msrb.mxu1 %v9456_v20  ;;  %2798 = vmatpush.bf16.msrb.mxu2 %v9460_v25  ;;  %v9440_v53 = vor.u32 %v13031_v33, %v9439_v39  ;;  %v13063_v30 = vld [vmem:[%s20996_s3 + $0x42c] sm:$0xf0]  ;;  %v13029_v40 = vld [vmem:[%s20996_s3 + $0x324] sm:$0xf] }
 0x2c1   : > { %v1822_v24 = vmax.f32 %v21206_v46, %v1762_v9  ;;  %v9441_v9 = vld [vmem:[%s20996_s3 + $0x330] sm:$0xf0]  ;;  %v1901_v12 = vmax.f32 %v1865_v43, 0.0  ;;  %v13027_v25 = vld [vmem:[%s20996_s3 + $0x30c] sm:$0xf0]  ;;  %v1683_v43 = vadd.f32 %v14897_v62, %v14878_v51  ;;  %v1868_v51 = vadd.f32 %v15021_v21, %v14782_v54 }
 0x2c2   : > { %v15139_v19 = vpack.c.b16 %v1966_v27, %v1963_v58  ;;  %v15141_v38 = vpack.c.b16 %v1967_v45, %v1964_v7  ;;  %v1814_v6 = vmax.f32 %v21208_v63, %v1745_v44  ;;  %v9567_v58 = vld [vmem:[%s20996_s3 + $0x420] sm:$0xf]  ;;  %v1582_v7 = vpop.f32.mrf.mxu3  ;;  %v9444_v26 = vor.u32 %v13029_v40, %v9441_v9  ;;  %v13059_v63 = vld [vmem:[%s20996_s3 + $0x40c] sm:$0xf0]  ;;  %v13025_v39 = vld [vmem:[%s20996_s3 + $0x304] sm:$0xf] }
 0x2c3   : > { %v1866_v23 = vadd.f32 %v15027_v18, %v1822_v24  ;;  %v1583_v36 = vadd.f32 %v1582_v7, %v1513_v50  ;;  %v9568_v0 = vor.u32 %v13063_v30, %v9567_v58  ;;  %v21209_v33 = vld [vmem:[#allocation20_spill] sm:$0xff]  ;;  %v21210_v58 = vld [vmem:[#allocation37_spill] sm:$0xff] }
 0x2c4   : > { %v1712_v17 = vpop.f32.mrf.mxu2  ;;  %2712 = vmatpush.bf16.msrb.mxu1 %v9440_v53  ;;  %v1858_v50 = vadd.f32 %v15137_v15, %v1814_v6  ;;  %2799 = vmatpush.bf16.msrb.mxu2 %v9444_v26  ;;  %v21211_v7 = vmax.f32 %v21209_v33, %v21210_v58  ;;  %v9425_v30 = vld [vmem:[%s20996_s3 + $0x310] sm:$0xf0]  ;;  %v1871_v33 = vadd.f32 %v15021_v21, %v14794_v55  ;;  %v21218_v55 = vld [vmem:[#allocation55_spill] sm:$0xff] }
 0x2c5   : > { %v1902_v20 = vmax.f32 %v1866_v23, 0.0  ;;  %v1768_v46 = vmax.f32 %v14889_v37, %v1583_v36  ;;  %v1713_v24 = vadd.f32 %v1712_v17, %v1643_v59  ;;  %v1646_v44 = vpop.f32.mrf.mxu0  ;;  %2741 = vmatpush.bf16.msrb.mxu3 %v9568_v0  ;;  %v9424_v37 = vor.u32 %v13027_v25, %v9423_v41  ;;  %v9551_v59 = vld [vmem:[%s20996_s3 + $0x400] sm:$0xf]  ;;  %v21213_v26 = vld [vmem:[#allocation8_spill] sm:$0xff] }
 0x2c6   : > { %v1515_v23 = vpop.f32.mrf.mxu1  ;;  %v9552_v9 = vor.u32 %v13059_v63, %v9551_v59  ;;  %v1894_v54 = vmax.f32 %v1858_v50, 0.0  ;;  %v21212_v17 = vld [vmem:[#allocation46_spill] sm:$0xff]  ;;  %v1904_v25 = vmax.f32 %v1868_v51, 0.0 }
 0x2c7   : > { %v1934_v34 = vpack.c.bf16 %v1902_v20, %v1901_v12  ;;  %v1825_v53 = vmax.f32 %v21211_v7, %v1768_v46  ;;  %v1751_v40 = vmax.f32 %v1683_v43, %v1713_v24  ;;  %v9428_v12 = vor.u32 %v13025_v39, %v9425_v30 }
 0x2c8   : > { %2713 = vmatpush.bf16.msrb.mxu1 %v9424_v37  ;;  %v1555_v24 = vadd.f32 %v14916_v31, %v14908_v22  ;;  %v1929_v58 = vpack.c.bf16 %v1894_v54, %v1894_v54  ;;  %v21219_v54 = vmax.f32 %v14573_v16, %v21218_v55  ;;  %v13103_v16 = vld [vmem:[%s20996_s3 + $0x56c] sm:$0xf0] }
 0x2c9   : > { %v1969_v6 = vunpack.c.l.b16 %v1934_v34  ;;  %v1970_v62 = vunpack.c.h.b16 %v1934_v34  ;;  %v1869_v0 = vadd.f32 %v15027_v18, %v1825_v53  ;;  %v21214_v34 = vmax.f32 %v21212_v17, %v21213_v26  ;;  %2742 = vmatpush.bf16.msrb.mxu3 %v9552_v9  ;;  %2800 = vmatpush.bf16.msrb.mxu2 %v9428_v12  ;;  %v21216_v9 = vld [vmem:[#allocation38_spill] sm:$0xff] }
 0x2ca   : > { %v1584_v46 = vpop.f32.mrf.mxu3 }
 0x2cb   : > { %v15192_v20 = vpack.c.b16 %v1969_v6, %v1966_v27  ;;  %v15194_v36 = vpack.c.b16 %v1970_v62, %v1967_v45  ;;  %v1817_v41 = vmax.f32 %v21214_v34, %v1751_v40  ;;  %v1905_v43 = vmax.f32 %v1869_v0, 0.0  ;;  %v21215_v40 = vld [vmem:[#allocation22_spill] sm:$0xff] }
 0x2cc   : > { %v1585_v27 = vadd.f32 %v1584_v46, %v1515_v23  ;;  %v1715_v59 = vpop.f32.mrf.mxu2  ;;  %v21217_v22 = vmax.f32 %v21215_v40, %v21216_v9  ;;  %v1962_v34 = vunpack.c.l.b16 %v1929_v58  ;;  %v1688_v58 = vadd.f32 %v14927_v60, %v14920_v57  ;;  %v9711_v57 = vld [vmem:[%s20996_s3 + $0x540] sm:$0xf]  ;;  %v13099_v60 = vld [vmem:[%s20996_s3 + $0x54c] sm:$0xf0] }
 0x2cd   : > { %v1861_v45 = vadd.f32 %v15137_v15, %v1817_v41  ;;  %v1936_v63 = vpack.c.bf16 %v1905_v43, %v1904_v25  ;;  %v1716_v37 = vadd.f32 %v1715_v59, %v1646_v44  ;;  %v1648_v50 = vpop.f32.mrf.mxu0  ;;  %v1907_v25 = vmax.f32 %v1871_v33, 0.0 }
 0x2ce   : > { %v1774_v39 = vmax.f32 %v1555_v24, %v1585_v27  ;;  %v1518_v53 = vpop.f32.mrf.mxu1  ;;  %v1874_v33 = vadd.f32 %v15021_v21, %v14808_v32 }
 0x2cf   : > { %v1897_v7 = vmax.f32 %v1861_v45, 0.0  ;;  %v2114_v30 = vunpack.c.l.b16 %v1936_v63  ;;  %v2115_v51 = vunpack.c.h.b16 %v1936_v63  ;;  %v1757_v23 = vmax.f32 %v14918_v49, %v1716_v37 }
 0x2d0   : > { %v1828_v31 = vmax.f32 %v21217_v22, %v1774_v39 }
 0x2d1   : > { %v1931_v12 = vpack.c.bf16 %v1897_v7, %v1897_v7  ;;  %v15209_v0 = vpack.c.b16 %v2114_v30, %v1969_v6  ;;  %v15211_v17 = vpack.c.b16 %v2115_v51, %v1970_v62  ;;  %v1820_v26 = vmax.f32 %v21219_v54, %v1757_v23  ;;  %v9727_v62 = vld [vmem:[%s20996_s3 + $0x560] sm:$0xf]  ;;  %v21221_v23 = vld [vmem:[#allocation39_spill] sm:$0xff] }
 0x2d2   : > { %v1872_v44 = vadd.f32 %v15027_v18, %v1828_v31  ;;  %v1587_v46 = vpop.f32.mrf.mxu3  ;;  %v21220_v31 = vld [vmem:[#allocation23_spill] sm:$0xff] }
 0x2d3   : > { %v1965_v41 = vunpack.c.l.b16 %v1931_v12  ;;  %v1864_v43 = vadd.f32 %v15137_v15, %v1820_v26  ;;  %v1588_v27 = vadd.f32 %v1587_v46, %v1518_v53  ;;  %v9728_v53 = vor.u32 %v13103_v16, %v9727_v62 }
 0x2d4   : > { %v1908_v24 = vmax.f32 %v1872_v44, 0.0  ;;  %v1717_v6 = vpop.f32.mrf.mxu2  ;;  %v21222_v12 = vmax.f32 %v21220_v31, %v21221_v23  ;;  %v1910_v26 = vmax.f32 %v1874_v33, 0.0  ;;  %v21226_v33 = vld [vmem:[#allocation24_spill] sm:$0xff]  ;;  %v9679_v23 = vld [vmem:[%s20996_s3 + $0x500] sm:$0xf] }
 0x2d5   : > { %v15218_v49 = vpack.c.b16 %v1965_v41, %v1962_v34  ;;  %v1900_v59 = vmax.f32 %v1864_v43, 0.0  ;;  %v1780_v63 = vmax.f32 %v14925_v2, %v1588_v27  ;;  %v1718_v39 = vadd.f32 %v1717_v6, %v1648_v50  ;;  %v1651_v37 = vpop.f32.mrf.mxu0  ;;  %2768 = vmatpush.bf16.msrb.mxu0 %v9728_v53 }
 0x2d6   : > { %v1938_v45 = vpack.c.bf16 %v1908_v24, %v1907_v25  ;;  %v1520_v7 = vpop.f32.mrf.mxu1  ;;  %v21225_v34 = vmax.f32 %v14594_v28, %v14720_v35  ;;  %v9712_v25 = vor.u32 %v13099_v60, %v9711_v57  ;;  %v9695_v28 = vld [vmem:[%s20996_s3 + $0x520] sm:$0xf]  ;;  %v13095_v35 = vld [vmem:[%s20996_s3 + $0x52c] sm:$0xf0] }
 0x2d7   : > { %v1933_v22 = vpack.c.bf16 %v1900_v59, %v1900_v59  ;;  %v1831_v44 = vmax.f32 %v21222_v12, %v1780_v63  ;;  %v1763_v55 = vmax.f32 %v1688_v58, %v1718_v39  ;;  %v1877_v39 = vadd.f32 %v15021_v21, %v14820_v47  ;;  %v21227_v58 = vld [vmem:[#allocation40_spill] sm:$0xff] }
 0x2d8   : > { %v4858_v40 = vunpack.c.l.b16 %v1938_v45  ;;  %v4859_v9 = vunpack.c.h.b16 %v1938_v45  ;;  %v13091_v47 = vld [vmem:[%s20996_s3 + $0x50c] sm:$0xf0] }
 0x2d9   : > { %v1968_v54 = vunpack.c.l.b16 %v1933_v22  ;;  %v1875_v32 = vadd.f32 %v15027_v18, %v1831_v44  ;;  %v1823_v46 = vmax.f32 %v21225_v34, %v1763_v55  ;;  %2769 = vmatpush.bf16.msrb.mxu0 %v9712_v25  ;;  %v21229_v22 = vmax.f32 %v14619_v52, %v14733_v61 }
 0x2da   : > { %v15234_v2 = vpack.c.b16 %v4858_v40, %v2114_v30  ;;  %v15236_v50 = vpack.c.b16 %v4859_v9, %v2115_v51  ;;  %v1589_v30 = vpop.f32.mrf.mxu3  ;;  %v1560_v51 = vadd.f32 %v14940_v3, %v14935_v42  ;;  %v9680_v55 = vor.u32 %v13091_v47, %v9679_v23  ;;  %v13088_v47 = vld [vmem:[%s20996_s3 + $0x4f4] sm:$0xf0] }
 0x2db   : > { %v15250_v24 = vpack.c.b16 %v1968_v54, %v1965_v41  ;;  %v1911_v43 = vmax.f32 %v1875_v32, 0.0  ;;  %v1590_v27 = vadd.f32 %v1589_v30, %v1520_v7  ;;  %v1867_v6 = vadd.f32 %v15137_v15, %v1823_v46 }
 0x2dc   : > { %21223 = vst [vmem:[#allocation33_spill] sm:$0xff] %v15234_v2  ;;  %v1720_v62 = vpop.f32.mrf.mxu2  ;;  %v9696_v41 = vor.u32 %v13095_v35, %v9695_v28  ;;  %v21228_v7 = vmax.f32 %v21226_v33, %v21227_v58  ;;  %v1880_v52 = vadd.f32 %v15021_v21, %v14834_v56  ;;  %v21231_v28 = vld [vmem:[#allocation42_spill] sm:$0xff]  ;;  %v12942_v2 = vld [vmem:[%s20996_s3 + $0x6c] sm:$0xf] }
 0x2dd   : > { %21224 = vst [vmem:[#allocation15_spill] sm:$0xff] %v15236_v50  ;;  %v1940_v16 = vpack.c.bf16 %v1911_v43, %v1910_v26  ;;  %v1786_v45 = vmax.f32 %v1560_v51, %v1590_v27  ;;  %v1721_v59 = vadd.f32 %v1720_v62, %v1651_v37  ;;  %v1653_v63 = vpop.f32.mrf.mxu0  ;;  %v1903_v42 = vmax.f32 %v1867_v6, 0.0 }
 0x2de   : > { %v1523_v3 = vpop.f32.mrf.mxu1  ;;  %2770 = vmatpush.bf16.msrb.mxu0 %v9696_v41  ;;  %v1693_v43 = vadd.f32 %v14966_v14, %v14950_v1 }
 0x2df   : > { %v1834_v53 = vmax.f32 %v21228_v7, %v1786_v45  ;;  %v1769_v37 = vmax.f32 %v14948_v13, %v1721_v59  ;;  %v1935_v40 = vpack.c.bf16 %v1903_v42, %v1903_v42  ;;  %v1913_v13 = vmax.f32 %v1877_v39, 0.0  ;;  %v21230_v59 = vld [vmem:[#allocation25_spill] sm:$0xff]  ;;  %v13085_v7 = vld [vmem:[%s20996_s3 + $0x4e4] sm:$0xf] }
 0x2e0   : > { %v1992_v27 = vunpack.c.l.b16 %v1940_v16  ;;  %v1993_v6 = vunpack.c.h.b16 %v1940_v16  ;;  %v21232_v35 = vmax.f32 %v21230_v59, %v21231_v28  ;;  %v1565_v16 = vadd.f32 %v14973_v48, %v14968_v5  ;;  %v9655_v59 = vld [vmem:[%s20996_s3 + $0x4c8] sm:$0xf]  ;;  %v21237_v28 = vld [vmem:[#allocation41_spill] sm:$0xff] }
 0x2e1   : > { %v1878_v9 = vadd.f32 %v15027_v18, %v1834_v53  ;;  %v1826_v31 = vmax.f32 %v21229_v22, %v1769_v37  ;;  %v1971_v12 = vunpack.c.l.b16 %v1935_v40  ;;  %v21233_v39 = vmax.f32 %v14626_v10, %v14746_v11  ;;  %v9665_v53 = vld [vmem:[%s20996_s3 + $0x4f0] sm:$0xf0]  ;;  %v13117_v37 = vld [vmem:[%s20996_s3 + $0x5e4] sm:$0xf] }
 0x2e2   : > { %v1592_v44 = vpop.f32.mrf.mxu3  ;;  %2771 = vmatpush.bf16.msrb.mxu0 %v9680_v55  ;;  %v9668_v11 = vor.u32 %v13085_v7, %v9665_v53  ;;  %v9793_v40 = vld [vmem:[%s20996_s3 + $0x5f0] sm:$0xf0] }
 0x2e3   : > { %v1914_v32 = vmax.f32 %v1878_v9, 0.0  ;;  %v1870_v57 = vadd.f32 %v15137_v15, %v1826_v31  ;;  %v1593_v60 = vadd.f32 %v1592_v44, %v1523_v3  ;;  %v15278_v61 = vpack.c.b16 %v1971_v12, %v1968_v54  ;;  %v9671_v9 = vld [vmem:[%s20996_s3 + $0x4e8] sm:$0xf] }
 0x2e4   : > { %v1722_v26 = vpop.f32.mrf.mxu2  ;;  %v1916_v3 = vmax.f32 %v1880_v52, 0.0  ;;  %v9796_v23 = vor.u32 %v13117_v37, %v9793_v40  ;;  %2822 = vmatpush.bf16.msra.mxu1 %v9668_v11  ;;  %v13077_v11 = vld [vmem:[%s20996_s3 + $0x4a4] sm:$0xf] }
 0x2e5   : > { %v15280_v34 = vpack.c.bf16 %v1914_v32, %v1913_v13  ;;  %v1906_v46 = vmax.f32 %v1870_v57, 0.0  ;;  %v1792_v30 = vmax.f32 %v14964_v8, %v1593_v60  ;;  %v1723_v25 = vadd.f32 %v1722_v26, %v1653_v63  ;;  %v1656_v51 = vpop.f32.mrf.mxu0  ;;  %v13081_v26 = vld [vmem:[%s20996_s3 + $0x4c4] sm:$0xf] }
 0x2e6   : > { %v1525_v62 = vpop.f32.mrf.mxu1  ;;  %v9672_v32 = vor.u32 %v13088_v47, %v9671_v9  ;;  %v1883_v57 = vadd.f32 %v15021_v21, %v14846_v4  ;;  %2851 = vmatpush.bf16.msra.mxu3 %v9796_v23  ;;  %v9761_v23 = vld [vmem:[%s20996_s3 + $0x5b0] sm:$0xf0]  ;;  %v9639_v47 = vld [vmem:[%s20996_s3 + $0x4a8] sm:$0xf] }
 0x2e7   : > { %v1995_v45 = vunpack.c.l.b16 %v15280_v34  ;;  %v1996_v56 = vunpack.c.h.b16 %v15280_v34  ;;  %v15287_v54 = vpack.c.bf16 %v1906_v46, %v1906_v46  ;;  %v1837_v42 = vmax.f32 %v21232_v35, %v1792_v30  ;;  %v9649_v34 = vld [vmem:[%s20996_s3 + $0x4d0] sm:$0xf0] }
 0x2e8   : > { %v1775_v8 = vmax.f32 %v1693_v43, %v1723_v25  ;;  %v21234_v25 = vld [vmem:[#allocation27_spill] sm:$0xff]  ;;  %2909 = vmatpush.bf16.msra.mxu2 %v9672_v32  ;;  %v15356_v35 = vadd.f32 %v15021_v21, %v21237_v28  ;;  %v1919_v40 = vmax.f32 %v1883_v57, 0.0  ;;  %v13080_v57 = vld [vmem:[%s20996_s3 + $0x4b4] sm:$0xf0] }
 0x2e9   : > { %v15292_v63 = vpack.c.b16 %v1995_v45, %v1992_v27  ;;  %v15294_v41 = vpack.c.b16 %v1996_v56, %v1993_v6  ;;  %v2116_v14 = vunpack.c.l.b16 %v15287_v54  ;;  %v1881_v1 = vadd.f32 %v15027_v18, %v1837_v42  ;;  %v13113_v6 = vld [vmem:[%s20996_s3 + $0x5c4] sm:$0xf]  ;;  %v21244_v54 = vld [vmem:[#allocation9_spill] sm:$0xff] }
 0x2ea   : > { %v1829_v33 = vmax.f32 %v21233_v39, %v1775_v8  ;;  %v1594_v58 = vpop.f32.mrf.mxu3  ;;  %v13084_v8 = vld [vmem:[%s20996_s3 + $0x4d4] sm:$0xf0] }
 0x2eb   : > { %v15314_v5 = vpack.c.b16 %v2116_v14, %v1971_v12  ;;  %v1917_v48 = vmax.f32 %v1881_v1, 0.0  ;;  %v1595_v10 = vadd.f32 %v1594_v58, %v1525_v62  ;;  %2714 = vmatmul.bf16.vlgmr.msrb.gmra.mxu1 %v15292_v63  ;;  %2743 = vmatmul.bf16.vlgmr.msrb.gmra.mxu3 %v15294_v41  ;;  %v9777_v62 = vld [vmem:[%s20996_s3 + $0x5d0] sm:$0xf0]  ;;  %v21239_v58 = vld [vmem:[#allocation11_spill] sm:$0xff]  ;;  %v21245_v28 = vld [vmem:[#allocation29_spill] sm:$0xff] }
 0x2ec   : > { %v1873_v22 = vadd.f32 %v15137_v15, %v1829_v33  ;;  %2801 = vmatmul.bf16.vlgmr.msrb.gmra.mxu2 %v15292_v63  ;;  %v1725_v31 = vpop.f32.mrf.mxu2  ;;  %v21238_v33 = vld [vmem:[#allocation50_spill] sm:$0xff] }
 0x2ed   : > { %v15329_v12 = vpack.c.bf16 %v1917_v48, %v1916_v3  ;;  %v1798_v44 = vmax.f32 %v1565_v16, %v1595_v10  ;;  %v1726_v55 = vadd.f32 %v1725_v31, %v1656_v51  ;;  %v1658_v13 = vpop.f32.mrf.mxu0  ;;  %v21235_v51 = vld [vmem:[#allocation44_spill] sm:$0xff]  ;;  %v9652_v3 = vor.u32 %v13081_v26, %v9649_v34  ;;  %v21242_v26 = vld [vmem:[#allocation43_spill] sm:$0xff] }
 0x2ee   : > { %v1909_v60 = vmax.f32 %v1873_v22, 0.0  ;;  %v1528_v52 = vpop.f32.mrf.mxu1  ;;  %v21236_v43 = vmax.f32 %v21234_v25, %v21235_v51  ;;  %v21240_v7 = vmax.f32 %v21238_v33, %v21239_v58  ;;  %v9656_v10 = vor.u32 %v13084_v8, %v9655_v59  ;;  %v21243_v51 = vld [vmem:[#allocation26_spill] sm:$0xff]  ;;  %v9623_v8 = vld [vmem:[%s20996_s3 + $0x488] sm:$0xf] }
 0x2ef   : > { %v1998_v46 = vunpack.c.l.b16 %v15329_v12  ;;  %v1999_v30 = vunpack.c.h.b16 %v15329_v12  ;;  %v1781_v4 = vmax.f32 %v14975_v29, %v1726_v55  ;;  %v9780_v29 = vor.u32 %v13113_v6, %v9777_v62  ;;  %2823 = vmatpush.bf16.msra.mxu1 %v9652_v3  ;;  %v9617_v6 = vld [vmem:[%s20996_s3 + $0x490] sm:$0xf0]  ;;  %v13105_v62 = vld [vmem:[%s20996_s3 + $0x584] sm:$0xf] }
 0x2f0   : > { %v1840_v27 = vmax.f32 %v21236_v43, %v1798_v44  ;;  %v1939_v42 = vpack.c.bf16 %v1909_v60, %v1909_v60  ;;  %2910 = vmatpush.bf16.msra.mxu2 %v9656_v10  ;;  %v1922_v60 = vmax.f32 %v15356_v35, 0.0  ;;  %v21246_v35 = vld [vmem:[#allocation47_spill] sm:$0xff] }
 0x2f1   : > { %v15361_v1 = vpack.c.b16 %v1998_v46, %v1995_v45  ;;  %v15363_v16 = vpack.c.b16 %v1999_v30, %v1996_v56  ;;  %v1832_v53 = vmax.f32 %v21240_v7, %v1781_v4  ;;  %2852 = vmatpush.bf16.msra.mxu3 %v9780_v29  ;;  %v9633_v45 = vld [vmem:[%s20996_s3 + $0x4b0] sm:$0xf0]  ;;  %v13109_v56 = vld [vmem:[%s20996_s3 + $0x5a4] sm:$0xf] }
 0x2f2   : > { %v1884_v39 = vadd.f32 %v15027_v18, %v1840_v27  ;;  %v4860_v37 = vunpack.c.l.b16 %v1939_v42  ;;  %v1597_v48 = vpop.f32.mrf.mxu3  ;;  %v9636_v31 = vor.u32 %v13077_v11, %v9633_v45  ;;  %v9764_v32 = vor.u32 %v13109_v56, %v9761_v23  ;;  %v13073_v4 = vld [vmem:[%s20996_s3 + $0x484] sm:$0xf]  ;;  %v9745_v29 = vld [vmem:[%s20996_s3 + $0x590] sm:$0xf0]  ;;  %v21250_v56 = vld [vmem:[#allocation51_spill] sm:$0xff] }
 0x2f3   : > { %v1598_v22 = vadd.f32 %v1597_v48, %v1528_v52  ;;  %v1876_v44 = vadd.f32 %v15137_v15, %v1832_v53  ;;  %v9640_v27 = vor.u32 %v13080_v57, %v9639_v47  ;;  %v21247_v42 = vmax.f32 %v21245_v28, %v21246_v35  ;;  %v13069_v23 = vld [vmem:[%s20996_s3 + $0x464] sm:$0xf]  ;;  %v21253_v47 = vld [vmem:[#allocation28_spill] sm:$0xff] }
 0x2f4   : > { %v1920_v9 = vmax.f32 %v1884_v39, 0.0  ;;  %v15386_v12 = vpack.c.b16 %v4860_v37, %v2116_v14  ;;  %v1727_v55 = vpop.f32.mrf.mxu2  ;;  %v1698_v14 = vadd.f32 %v21244_v54, %v21243_v51  ;;  %2824 = vmatpush.bf16.msra.mxu1 %v9636_v31  ;;  %v13076_v39 = vld [vmem:[%s20996_s3 + $0x494] sm:$0xf0]  ;;  %v9620_v53 = vor.u32 %v13073_v4, %v9617_v6  ;;  %v21255_v28 = vld [vmem:[#allocation10_spill] sm:$0xff] }
 0x2f5   : > { %v1804_v34 = vmax.f32 %v21242_v26, %v1598_v22  ;;  %v1728_v25 = vadd.f32 %v1727_v55, %v1658_v13  ;;  %v1661_v43 = vpop.f32.mrf.mxu0  ;;  %2853 = vmatpush.bf16.msra.mxu3 %v9764_v32  ;;  %v1912_v33 = vmax.f32 %v1876_v44, 0.0  ;;  %2911 = vmatpush.bf16.msra.mxu2 %v9640_v27  ;;  %v9748_v37 = vor.u32 %v13105_v62, %v9745_v29  ;;  %v21254_v44 = vld [vmem:[#allocation45_spill] sm:$0xff]  ;;  %v9729_v26 = vld [vmem:[%s20996_s3 + $0x570] sm:$0xf0]  ;;  %v13065_v29 = vld [vmem:[%s20996_s3 + $0x444] sm:$0xf] }
 0x2f6   : > { %21241 = vst [vmem:[#allocation34_spill] sm:$0xff] %v15386_v12  ;;  %v15393_v52 = vpack.c.bf16 %v1920_v9, %v1919_v40  ;;  %v1530_v7 = vpop.f32.mrf.mxu1  ;;  %v9624_v45 = vor.u32 %v13076_v39, %v9623_v8  ;;  %v21251_v40 = vld [vmem:[#allocation32_spill] sm:$0xff]  ;;  %v1570_v55 = vadd.f32 %v21254_v44, %v21253_v47  ;;  %v1889_v35 = vadd.f32 %v15021_v21, %v21255_v28  ;;  %v21256_v39 = vld [vmem:[#allocation31_spill] sm:$0xff]  ;;  %v21265_v28 = vld [vmem:[#allocation30_spill] sm:$0xff] }
 0x2f7   : > { %v1843_v3 = vmax.f32 %v21247_v42, %v1804_v34  ;;  %v1787_v58 = vmax.f32 %v1698_v14, %v1728_v25  ;;  %v21252_v9 = vmax.f32 %v21250_v56, %v21251_v40  ;;  %v9607_v34 = vld [vmem:[%s20996_s3 + $0x468] sm:$0xf]  ;;  %v13072_v14 = vld [vmem:[%s20996_s3 + $0x474] sm:$0xf0]  ;;  %v1941_v42 = vpack.c.bf16 %v1912_v33, %v1912_v33  ;;  %v21259_v33 = vld [vmem:[#allocation14_spill] sm:$0xff] }
 0x2f8   : > { %v2001_v13 = vunpack.c.l.b16 %v15393_v52  ;;  %v2002_v59 = vunpack.c.h.b16 %v15393_v52  ;;  %2825 = vmatpush.bf16.msra.mxu1 %v9620_v53  ;;  %v9608_v62 = vor.u32 %v13072_v14, %v9607_v34  ;;  %v21262_v47 = vld [vmem:[#allocation52_spill] sm:$0xff]  ;;  %v1925_v14 = vmax.f32 %v1889_v35, 0.0  ;;  %v13056_v35 = vld [vmem:[%s20996_s3 + $0x3f4] sm:$0xf0]  ;;  %v12950_v12 = vld [vmem:[%s20996_s3 + $0xac] sm:$0xf] }
 0x2f9   : > { %v1887_v11 = vadd.f32 %v15027_v18, %v1843_v3  ;;  %v1835_v22 = vmax.f32 %v21252_v9, %v1787_v58  ;;  %2854 = vmatpush.bf16.msra.mxu3 %v9748_v37  ;;  %2912 = vmatpush.bf16.msra.mxu2 %v9624_v45  ;;  %v21257_v58 = vld [vmem:[#allocation49_spill] sm:$0xff]  ;;  %v13097_v37 = vld [vmem:[%s20996_s3 + $0x544] sm:$0xf]  ;;  %v9591_v45 = vld [vmem:[%s20996_s3 + $0x448] sm:$0xf] }
 0x2fa   : > { %v15421_v48 = vpack.c.b16 %v2001_v13, %v1998_v46  ;;  %v15423_v10 = vpack.c.b16 %v2002_v59, %v1999_v30  ;;  %v1599_v31 = vpop.f32.mrf.mxu3  ;;  %v9601_v46 = vld [vmem:[%s20996_s3 + $0x470] sm:$0xf0]  ;;  %v13101_v30 = vld [vmem:[%s20996_s3 + $0x564] sm:$0xf] }
 0x2fb   : > { %v1923_v32 = vmax.f32 %v1887_v11, 0.0  ;;  %v1600_v57 = vadd.f32 %v1599_v31, %v1530_v7  ;;  %v9604_v52 = vor.u32 %v13069_v23, %v9601_v46  ;;  %v1879_v25 = vadd.f32 %v15137_v15, %v1835_v22  ;;  %v9713_v11 = vld [vmem:[%s20996_s3 + $0x550] sm:$0xf0]  ;;  %v13068_v31 = vld [vmem:[%s20996_s3 + $0x454] sm:$0xf0] }
 0x2fc   : > { %21248 = vst [vmem:[#allocation17_spill] sm:$0xff] %v15421_v48  ;;  %2719 = vmatmul.bf16.gmra.mxu1 %v15421_v48  ;;  %2748 = vmatmul.bf16.gmra.mxu3 %v15423_v10  ;;  %v1730_v51 = vpop.f32.mrf.mxu2  ;;  %v9732_v54 = vor.u32 %v13101_v30, %v9729_v26  ;;  %v21258_v7 = vmax.f32 %v21256_v39, %v21257_v58  ;;  %v21263_v44 = vld [vmem:[#allocation56_spill] sm:$0xff] }
 0x2fd   : > { %21249 = vst [vmem:[#allocation35_spill] sm:$0xff] %v15423_v10  ;;  %2806 = vmatmul.bf16.gmra.mxu2 %v15421_v48  ;;  %v15453_v27 = vpack.c.bf16 %v1923_v32, %v1922_v60  ;;  %v1810_v4 = vmax.f32 %v1570_v55, %v1600_v57  ;;  %v1731_v6 = vadd.f32 %v1730_v51, %v1661_v43  ;;  %v1915_v3 = vmax.f32 %v1879_v25, 0.0  ;;  %v9585_v60 = vld [vmem:[%s20996_s3 + $0x450] sm:$0xf0]  ;;  %v1663_v40 = vpop.f32.mrf.mxu0  ;;  %v13061_v57 = vld [vmem:[%s20996_s3 + $0x424] sm:$0xf] }
 0x2fe   : > { %2826 = vmatpush.bf16.msra.mxu1 %v9604_v52  ;;  %2855 = vmatpush.bf16.msra.mxu3 %v9732_v54  ;;  %v9588_v9 = vor.u32 %v13065_v29, %v9585_v60  ;;  %v9716_v22 = vor.u32 %v13097_v37, %v9713_v11  ;;  %v21264_v55 = vmax.f32 %v21262_v47, %v21263_v44  ;;  %v1994_v52 = vunpack.c.l.b16 %v1941_v42  ;;  %v9697_v25 = vld [vmem:[%s20996_s3 + $0x530] sm:$0xf0]  ;;  %v9575_v51 = vld [vmem:[%s20996_s3 + $0x428] sm:$0xf]  ;;  %v13064_v54 = vld [vmem:[%s20996_s3 + $0x434] sm:$0xf0] }
 0x2ff   : > { %v3884_v8 = vunpack.c.l.b16 %v15453_v27  ;;  %v3885_v43 = vunpack.c.h.b16 %v15453_v27  ;;  %v1846_v21 = vmax.f32 %v21258_v7, %v1810_v4  ;;  %v1793_v53 = vmax.f32 %v21259_v33, %v1731_v6  ;;  %2913 = vmatpush.bf16.msra.mxu2 %v9608_v62  ;;  %v21266_v42 = vld [vmem:[#allocation48_spill] sm:$0xff]  ;;  %v9543_v33 = vld [vmem:[%s20996_s3 + $0x3e8] sm:$0xf]  ;;  %v13057_v37 = vld [vmem:[%s20996_s3 + $0x404] sm:$0xf] }
 0x300   : > { %v15478_v56 = vpack.c.bf16 %v1915_v3, %v1915_v3  ;;  %v9592_v26 = vor.u32 %v13068_v31, %v9591_v45  ;;  %v1703_v3 = vadd.f32 %v21266_v42, %v21265_v28  ;;  %v9553_v11 = vld [vmem:[%s20996_s3 + $0x410] sm:$0xf0]  ;;  %v13089_v45 = vld [vmem:[%s20996_s3 + $0x504] sm:$0xf]  ;;  %v9559_v31 = vld [vmem:[%s20996_s3 + $0x408] sm:$0xf] }
 0x301   : > { %v15485_v23 = vpack.c.b16 %v3884_v8, %v2001_v13  ;;  %v15489_v46 = vpack.c.b16 %v3885_v43, %v2002_v59  ;;  %v1890_v30 = vadd.f32 %v15027_v18, %v1846_v21  ;;  %v1838_v32 = vmax.f32 %v21264_v55, %v1793_v53  ;;  %v9569_v13 = vld [vmem:[%s20996_s3 + $0x430] sm:$0xf0]  ;;  %v13093_v59 = vld [vmem:[%s20996_s3 + $0x524] sm:$0xf]  ;;  %v13048_v27 = vld [vmem:[%s20996_s3 + $0x3b4] sm:$0xf0] }
 0x302   : > { %v1997_v18 = vunpack.c.l.b16 %v15478_v56  ;;  %2827 = vmatpush.bf16.msra.mxu1 %v9588_v9  ;;  %2856 = vmatpush.bf16.msra.mxu3 %v9716_v22  ;;  %v9572_v34 = vor.u32 %v13061_v57, %v9569_v13  ;;  %v9700_v62 = vor.u32 %v13093_v59, %v9697_v25  ;;  %v9576_v21 = vor.u32 %v13064_v54, %v9575_v51  ;;  %v9681_v22 = vld [vmem:[%s20996_s3 + $0x510] sm:$0xf0]  ;;  %v21267_v13 = vld [vmem:[#allocation53_spill] sm:$0xff]  ;;  %v9527_v25 = vld [vmem:[%s20996_s3 + $0x3c8] sm:$0xf] }
 0x303   : > { %21260 = vst [vmem:[#allocation19_spill] sm:$0xff] %v15485_v23  ;;  %v1926_v4 = vmax.f32 %v1890_v30, 0.0  ;;  %v1882_v6 = vadd.f32 %v15137_v15, %v1838_v32  ;;  %2914 = vmatpush.bf16.msra.mxu2 %v9592_v26  ;;  %v9544_v53 = vor.u32 %v13056_v35, %v9543_v33  ;;  %v9556_v9 = vor.u32 %v13057_v37, %v9553_v11  ;;  %v13060_v30 = vld [vmem:[%s20996_s3 + $0x414] sm:$0xf0]  ;;  %v21274_v33 = vld [vmem:[#allocation7_spill] sm:$0xff]  ;;  %v21275_v35 = vld [vmem:[#allocation58_spill] sm:$0xff] }
 0x304   : > { %21261 = vst [vmem:[#allocation36_spill] sm:$0xff] %v15489_v46  ;;  %v15517_v29 = vpack.c.b16 %v1997_v18, %v1994_v52  ;;  %v1732_v60 = vpop.f32.mrf.mxu2  ;;  %v9684_v55 = vor.u32 %v13089_v45, %v9681_v22  ;;  %v21268_v59 = vld [vmem:[#allocation57_spill] sm:$0xff]  ;;  %v21278_v22 = vld [vmem:[#allocation18_spill] sm:$0xff]  ;;  %v12934_v46 = vld [vmem:[%s20996_s3 + $0x2c] sm:$0xf] }
 0x305   : > { %v1950_v39 = vpack.c.bf16 %v1926_v4, %v1925_v14  ;;  %v1918_v58 = vmax.f32 %v1882_v6, 0.0  ;;  %v1733_v7 = vadd.f32 %v1732_v60, %v1663_v40  ;;  %v1666_v44 = vpop.f32.mrf.mxu0  ;;  %2880 = vmatpush.bf16.msra.mxu0 %v9544_v53  ;;  %v21269_v52 = vmax.f32 %v21267_v13, %v21268_v59  ;;  %v13052_v51 = vld [vmem:[%s20996_s3 + $0x3d4] sm:$0xf0] }
 0x306   : > { %2772 = vmatmul.bf16.vlgmr.msrb.gmra.mxu0 %v15517_v29  ;;  %2828 = vmatpush.bf16.msra.mxu1 %v9572_v34  ;;  %v9560_v34 = vor.u32 %v13060_v30, %v9559_v31  ;;  %v9528_v14 = vor.u32 %v13052_v51, %v9527_v25  ;;  %v13044_v60 = vld [vmem:[%s20996_s3 + $0x394] sm:$0xf0]  ;;  %v21276_v53 = vmax.f32 %v21274_v33, %v21275_v35  ;;  %v21279_v31 = vld [vmem:[#allocation16_spill] sm:$0xff]  ;;  %v9799_v33 = vld [vmem:[%s20996_s3 + $0x5e8] sm:$0xf] }
 0x307   : > { %v1945_v56 = vpack.c.bf16 %v1918_v58, %v1918_v58  ;;  %v1799_v40 = vmax.f32 %v1703_v3, %v1733_v7  ;;  %2857 = vmatpush.bf16.msra.mxu3 %v9700_v62  ;;  %v5826_v47 = vunpack.c.l.b16 %v1950_v39  ;;  %v5827_v32 = vunpack.c.h.b16 %v1950_v39  ;;  %2915 = vmatpush.bf16.msra.mxu2 %v9576_v21  ;;  %v9495_v3 = vld [vmem:[%s20996_s3 + $0x388] sm:$0xf]  ;;  %v21273_v58 = vld [vmem:[#allocation12_spill] sm:$0xff]  ;;  %v13120_v35 = vld [vmem:[%s20996_s3 + $0x5f4] sm:$0xf0] }
 0x308   : > { %v9496_v11 = vor.u32 %v13044_v60, %v9495_v3  ;;  %v1708_v30 = vadd.f32 %v21279_v31, %v21278_v22  ;;  %v13028_v60 = vld [vmem:[%s20996_s3 + $0x314] sm:$0xf0]  ;;  %v9783_v31 = vld [vmem:[%s20996_s3 + $0x5c8] sm:$0xf] }
 0x309   : > { %v2000_v57 = vunpack.c.l.b16 %v1945_v56  ;;  %v1841_v26 = vmax.f32 %v21269_v52, %v1799_v40  ;;  %v15555_v54 = vpack.c.b16 %v5826_v47, %v3884_v8  ;;  %v15559_v4 = vpack.c.b16 %v5827_v32, %v3885_v43  ;;  %v9511_v8 = vld [vmem:[%s20996_s3 + $0x3a8] sm:$0xf]  ;;  %2881 = vmatpush.bf16.msra.mxu0 %v9528_v14  ;;  %v13040_v32 = vld [vmem:[%s20996_s3 + $0x374] sm:$0xf0] }
 0x30a   : > { %2829 = vmatpush.bf16.msra.mxu1 %v9556_v9  ;;  %v9512_v42 = vor.u32 %v13048_v27, %v9511_v8  ;;  %v9463_v14 = vld [vmem:[%s20996_s3 + $0x348] sm:$0xf] }
 0x30b   : > { %21270 = vst [vmem:[#allocation6_spill] sm:$0xff] %v15555_v54  ;;  %v15561_v6 = vpack.c.b16 %v2000_v57, %v1997_v18  ;;  %v1885_v62 = vadd.f32 %v15137_v15, %v1841_v26  ;;  %2858 = vmatpush.bf16.msra.mxu3 %v9684_v55  ;;  %2916 = vmatpush.bf16.msra.mxu2 %v9560_v34  ;;  %v9479_v55 = vld [vmem:[%s20996_s3 + $0x368] sm:$0xf]  ;;  %v21280_v26 = vld [vmem:[#allocation54_spill] sm:$0xff] }
 0x30c   : > { %21271 = vst [vmem:[#allocation20_spill] sm:$0xff] %v15559_v4  ;;  %2724 = vmatmul.bf16.gmra.mxu1 %v15139_v19  ;;  %2753 = vmatmul.bf16.gmra.mxu3 %v15141_v38  ;;  %v1735_v28 = vpop.f32.mrf.mxu2  ;;  %v21281_v34 = vld [vmem:[#allocation59_spill] sm:$0xff]  ;;  %v13020_v4 = vld [vmem:[%s20996_s3 + $0x2d4] sm:$0xf0] }
 0x30d   : > { %21272 = vst [vmem:[#allocation37_spill] sm:$0xff] %v15561_v6  ;;  %2811 = vmatmul.bf16.gmra.mxu2 %v15139_v19  ;;  %v1921_v43 = vmax.f32 %v1885_v62, 0.0  ;;  %v1736_v18 = vadd.f32 %v1735_v28, %v1666_v44  ;;  %2882 = vmatpush.bf16.msra.mxu0 %v9512_v42  ;;  %v1668_v45 = vpop.f32.mrf.mxu0  ;;  %v21282_v25 = vmax.f32 %v21280_v26, %v21281_v34  ;;  %v13036_v62 = vld [vmem:[%s20996_s3 + $0x354] sm:$0xf0]  ;;  %v13046_v34 = vld [vmem:[%s20996_s3 + $0x3ac] sm:$0xf] }
 0x30e   : > { %v9464_v28 = vor.u32 %v13036_v62, %v9463_v14  ;;  %v13112_v26 = vld [vmem:[%s20996_s3 + $0x5b4] sm:$0xf0]  ;;  %v9769_v14 = vld [vmem:[%s20996_s3 + $0x5b8] sm:$0xf0] }
 0x30f   : > { %v1947_v39 = vpack.c.bf16 %v1921_v43, %v1921_v43  ;;  %v1805_v7 = vmax.f32 %v21273_v58, %v1736_v18  ;;  %v9447_v43 = vld [vmem:[%s20996_s3 + $0x328] sm:$0xf]  ;;  %v13032_v18 = vld [vmem:[%s20996_s3 + $0x334] sm:$0xf0] }
 0x310   : > { %v9448_v3 = vor.u32 %v13032_v18, %v9447_v43  ;;  %v9751_v43 = vld [vmem:[%s20996_s3 + $0x588] sm:$0xf]  ;;  %v13108_v18 = vld [vmem:[%s20996_s3 + $0x594] sm:$0xf0] }
 0x311   : > { %v2003_v21 = vunpack.c.l.b16 %v1947_v39  ;;  %v1844_v37 = vmax.f32 %v21276_v53, %v1805_v7  ;;  %2883 = vmatpush.bf16.msra.mxu0 %v9496_v11  ;;  %v13054_v53 = vld [vmem:[%s20996_s3 + $0x3ec] sm:$0xf]  ;;  %v9545_v11 = vld [vmem:[%s20996_s3 + $0x3f8] sm:$0xf0]  ;;  %v13000_v6 = vld [vmem:[%s20996_s3 + $0x234] sm:$0xf0] }
 0x313   : > { %v15583_v56 = vpack.c.b16 %v2003_v21, %v2000_v57  ;;  %v1888_v40 = vadd.f32 %v15137_v15, %v1844_v37  ;;  %v9480_v57 = vor.u32 %v13040_v32, %v9479_v55  ;;  %v9800_v37 = vor.u32 %v13120_v35, %v9799_v33  ;;  %v9529_v55 = vld [vmem:[%s20996_s3 + $0x3d8] sm:$0xf0]  ;;  %v13114_v32 = vld [vmem:[%s20996_s3 + $0x5cc] sm:$0xf]  ;;  %v9735_v33 = vld [vmem:[%s20996_s3 + $0x568] sm:$0xf] }
 0x314   : > { %v1737_v9 = vpop.f32.mrf.mxu2  ;;  %v13104_v35 = vld [vmem:[%s20996_s3 + $0x574] sm:$0xf0] }
 0x315   : > { %21277 = vst [vmem:[#allocation46_spill] sm:$0xff] %v15583_v56  ;;  %v1924_v47 = vmax.f32 %v1888_v40, 0.0  ;;  %v1738_v44 = vadd.f32 %v1737_v9, %v1668_v45  ;;  %2884 = vmatpush.bf16.msra.mxu0 %v9480_v57  ;;  %v13118_v45 = vld [vmem:[%s20996_s3 + $0x5ec] sm:$0xf]  ;;  %v9801_v40 = vld [vmem:[%s20996_s3 + $0x5f8] sm:$0xf0]  ;;  %v9548_v9 = vor.u32 %v13054_v53, %v9545_v11  ;;  %2938 = vmatpush.bf16.msrb.mxu1 %v9800_v37 }
 0x316   : > { %2777 = vmatmul.bf16.gmra.mxu0 %v15583_v56  ;;  %v9804_v22 = vor.u32 %v13118_v45, %v9801_v40  ;;  %v9785_v57 = vld [vmem:[%s20996_s3 + $0x5d8] sm:$0xf0]  ;;  %v13038_v53 = vld [vmem:[%s20996_s3 + $0x36c] sm:$0xf]  ;;  %v9736_v37 = vor.u32 %v13104_v35, %v9735_v33 }
 0x317   : > { %v1949_v13 = vpack.c.bf16 %v1924_v47, %v1924_v47  ;;  %v1811_v59 = vmax.f32 %v1708_v30, %v1738_v44  ;;  %v13116_v30 = vld [vmem:[%s20996_s3 + $0x5d4] sm:$0xf0]  ;;  %v13050_v47 = vld [vmem:[%s20996_s3 + $0x3cc] sm:$0xf]  ;;  %2967 = vmatpush.bf16.msrb.mxu3 %v9548_v9  ;;  %v9481_v11 = vld [vmem:[%s20996_s3 + $0x378] sm:$0xf0] }
 0x318   : > { %v9784_v44 = vor.u32 %v13116_v30, %v9783_v31  ;;  %3025 = vmatpush.bf16.msrb.mxu2 %v9804_v22  ;;  %v13102_v45 = vld [vmem:[%s20996_s3 + $0x56c] sm:$0xf]  ;;  %v9737_v40 = vld [vmem:[%s20996_s3 + $0x578] sm:$0xf0]  ;;  %v9484_v9 = vor.u32 %v13038_v53, %v9481_v11  ;;  %v9719_v22 = vld [vmem:[%s20996_s3 + $0x548] sm:$0xf] }
 0x319   : > { %v3886_v52 = vunpack.c.l.b16 %v1949_v13  ;;  %v1847_v51 = vmax.f32 %v21282_v25, %v1811_v59  ;;  %2885 = vmatpush.bf16.msra.mxu0 %v9464_v28  ;;  %v9532_v13 = vor.u32 %v13050_v47, %v9529_v55  ;;  %v9788_v59 = vor.u32 %v13114_v32, %v9785_v57  ;;  %v9513_v25 = vld [vmem:[%s20996_s3 + $0x3b8] sm:$0xf0]  ;;  %v13100_v31 = vld [vmem:[%s20996_s3 + $0x554] sm:$0xf0]  ;;  %v13034_v30 = vld [vmem:[%s20996_s3 + $0x34c] sm:$0xf] }
 0x31a   : > { %2939 = vmatpush.bf16.msrb.mxu1 %v9784_v44  ;;  %v9516_v28 = vor.u32 %v13046_v34, %v9513_v25  ;;  %v9740_v47 = vor.u32 %v13102_v45, %v9737_v40  ;;  %v9720_v44 = vor.u32 %v13100_v31, %v9719_v22  ;;  %v9465_v55 = vld [vmem:[%s20996_s3 + $0x358] sm:$0xf0]  ;;  %v13098_v32 = vld [vmem:[%s20996_s3 + $0x54c] sm:$0xf] }
 0x31b   : > { %v15604_v8 = vpack.c.b16 %v3886_v52, %v2003_v21  ;;  %v1891_v27 = vadd.f32 %v15137_v15, %v1847_v51  ;;  %v9431_v15 = vld [vmem:[%s20996_s3 + $0x308] sm:$0xf]  ;;  %v13110_v51 = vld [vmem:[%s20996_s3 + $0x5ac] sm:$0xf]  ;;  %2968 = vmatpush.bf16.msrb.mxu3 %v9532_v13  ;;  %v9468_v57 = vor.u32 %v13034_v30, %v9465_v55  ;;  %v9721_v13 = vld [vmem:[%s20996_s3 + $0x558] sm:$0xf0] }
 0x31c   : > { %2729 = vmatmul.bf16.gmra.mxu1 %v15209_v0  ;;  %2758 = vmatmul.bf16.gmra.mxu3 %v15211_v17  ;;  %v9432_v7 = vor.u32 %v13028_v60, %v9431_v15  ;;  %v9497_v15 = vld [vmem:[%s20996_s3 + $0x398] sm:$0xf0]  ;;  %v13106_v60 = vld [vmem:[%s20996_s3 + $0x58c] sm:$0xf]  ;;  %v9724_v25 = vor.u32 %v13098_v32, %v9721_v13 }
 0x31d   : > { %21283 = vst [vmem:[#allocation8_spill] sm:$0xff] %v15604_v8  ;;  %2816 = vmatmul.bf16.gmra.mxu2 %v15209_v0  ;;  %v1927_v42 = vmax.f32 %v1891_v27, 0.0  ;;  %2886 = vmatpush.bf16.msra.mxu0 %v9448_v3  ;;  %v9772_v27 = vor.u32 %v13110_v51, %v9769_v14  ;;  %v9752_v3 = vor.u32 %v13108_v18, %v9751_v43  ;;  %v9449_v34 = vld [vmem:[%s20996_s3 + $0x338] sm:$0xf0]  ;;  %v13086_v43 = vld [vmem:[%s20996_s3 + $0x4ec] sm:$0xf] }
 0x31e   : > { %3026 = vmatpush.bf16.msrb.mxu2 %v9788_v59  ;;  %v9703_v59 = vld [vmem:[%s20996_s3 + $0x528] sm:$0xf]  ;;  %v9673_v18 = vld [vmem:[%s20996_s3 + $0x4f8] sm:$0xf0]  ;;  %v13078_v40 = vld [vmem:[%s20996_s3 + $0x4ac] sm:$0xf] }
 0x31f   : > { %v1951_v39 = vpack.c.bf16 %v1927_v42, %v1927_v42  ;;  %2969 = vmatpush.bf16.msrb.mxu3 %v9516_v28  ;;  %v13042_v42 = vld [vmem:[%s20996_s3 + $0x38c] sm:$0xf]  ;;  %v9705_v28 = vld [vmem:[%s20996_s3 + $0x538] sm:$0xf0] }
 0x320   : > { %v9689_v33 = vld [vmem:[%s20996_s3 + $0x518] sm:$0xf0]  ;;  %v13074_v31 = vld [vmem:[%s20996_s3 + $0x48c] sm:$0xf] }
 0x321   : > { %v5828_v58 = vunpack.c.l.b16 %v1951_v39  ;;  %2887 = vmatpush.bf16.msra.mxu0 %v9432_v7  ;;  %v9753_v39 = vld [vmem:[%s20996_s3 + $0x598] sm:$0xf0] }
 0x322   : > { %3027 = vmatpush.bf16.msrb.mxu2 %v9772_v27  ;;  %v9756_v7 = vor.u32 %v13106_v60, %v9753_v39  ;;  %v13026_v60 = vld [vmem:[%s20996_s3 + $0x30c] sm:$0xf]  ;;  %v9657_v11 = vld [vmem:[%s20996_s3 + $0x4d8] sm:$0xf0] }
 0x323   : > { %v15622_v21 = vpack.c.b16 %v5828_v58, %v3886_v52  ;;  %v9767_v52 = vld [vmem:[%s20996_s3 + $0x5a8] sm:$0xf]  ;;  %v9500_v58 = vor.u32 %v13042_v42, %v9497_v15  ;;  %v9676_v42 = vor.u32 %v13086_v43, %v9673_v18  ;;  %v13092_v15 = vld [vmem:[%s20996_s3 + $0x514] sm:$0xf0]  ;;  %v9625_v30 = vld [vmem:[%s20996_s3 + $0x498] sm:$0xf0] }
 0x324   : > { %v9768_v62 = vor.u32 %v13112_v26, %v9767_v52  ;;  %v13096_v52 = vld [vmem:[%s20996_s3 + $0x534] sm:$0xf0]  ;;  %v13030_v26 = vld [vmem:[%s20996_s3 + $0x32c] sm:$0xf]  ;;  %v9609_v55 = vld [vmem:[%s20996_s3 + $0x478] sm:$0xf0] }
 0x325   : > { %21284 = vst [vmem:[#allocation22_spill] sm:$0xff] %v15622_v21  ;;  %2970 = vmatpush.bf16.msrb.mxu3 %v9500_v58  ;;  %v9704_v51 = vor.u32 %v13096_v52, %v9703_v59  ;;  %v9452_v14 = vor.u32 %v13030_v26, %v9449_v34  ;;  %v9433_v58 = vld [vmem:[%s20996_s3 + $0x318] sm:$0xf0]  ;;  %2996 = vmatpush.bf16.msrb.mxu0 %v9676_v42  ;;  %v13062_v52 = vld [vmem:[%s20996_s3 + $0x42c] sm:$0xf] }
 0x326   : > { %2782 = vmatmul.bf16.gmra.mxu0 %v15250_v24  ;;  %2940 = vmatpush.bf16.msrb.mxu1 %v9768_v62  ;;  %v13094_v62 = vld [vmem:[%s20996_s3 + $0x52c] sm:$0xf]  ;;  %v9436_v35 = vor.u32 %v13026_v60, %v9433_v58  ;;  %v9593_v13 = vld [vmem:[%s20996_s3 + $0x458] sm:$0xf0]  ;;  %v10047_v43 = vld [vmem:[%s20996_s3 + $0x1e0] sm:$0xf] }
 0x327   : > { %3028 = vmatpush.bf16.msrb.mxu2 %v9756_v7  ;;  %v9708_v27 = vor.u32 %v13094_v62, %v9705_v28  ;;  %v13090_v7 = vld [vmem:[%s20996_s3 + $0x50c] sm:$0xf]  ;;  %v9577_v26 = vld [vmem:[%s20996_s3 + $0x438] sm:$0xf0]  ;;  %v9919_v28 = vld [vmem:[%s20996_s3 + $0xe0] sm:$0xf] }
 0x328   : > { %v9692_v53 = vor.u32 %v13090_v7, %v9689_v33  ;;  %v9580_v34 = vor.u32 %v13062_v52, %v9577_v26  ;;  %v12991_v42 = vld [vmem:[%s20996_s3 + $0x1ec] sm:$0xf0]  ;;  %v9903_v7 = vld [vmem:[%s20996_s3 + $0xc0] sm:$0xf] }
 0x329   : > { %2971 = vmatpush.bf16.msrb.mxu3 %v9484_v9  ;;  %v9641_v9 = vld [vmem:[%s20996_s3 + $0x4b8] sm:$0xf0]  ;;  %v10048_v60 = vor.u32 %v12991_v42, %v10047_v43  ;;  %v12955_v33 = vld [vmem:[%s20996_s3 + $0xcc] sm:$0xf0]  ;;  %v9873_v42 = vld [vmem:[%s20996_s3 + $0x90] sm:$0xf0] }
 0x32a   : > { %2941 = vmatpush.bf16.msrb.mxu1 %v9752_v3  ;;  %v9687_v3 = vld [vmem:[%s20996_s3 + $0x508] sm:$0xf]  ;;  %v9644_v22 = vor.u32 %v13078_v40, %v9641_v9  ;;  %v12953_v40 = vld [vmem:[%s20996_s3 + $0xc4] sm:$0xf]  ;;  %v9905_v9 = vld [vmem:[%s20996_s3 + $0xd0] sm:$0xf0] }
 0x32b   : > { %3029 = vmatpush.bf16.msrb.mxu2 %v9740_v47  ;;  %v9688_v39 = vor.u32 %v13092_v15, %v9687_v3  ;;  %v9628_v47 = vor.u32 %v13074_v31, %v9625_v30  ;;  %v12957_v3 = vld [vmem:[%s20996_s3 + $0xe4] sm:$0xf]  ;;  %v9921_v15 = vld [vmem:[%s20996_s3 + $0xf0] sm:$0xf0]  ;;  %v9908_v30 = vor.u32 %v12953_v40, %v9905_v9  ;;  %v12979_v43 = vld [vmem:[%s20996_s3 + $0x18c] sm:$0xf0] }
 0x32c   : > { %2830 = vmatmul.bf16.vlgmr.msra.gmra.mxu1 %v15294_v41  ;;  %2859 = vmatmul.bf16.vlgmr.msra.gmra.mxu3 %v15517_v29 }
 0x32d   : > { %2917 = vmatmul.bf16.vlgmr.msra.gmra.mxu2 %v15294_v41  ;;  %2972 = vmatpush.bf16.msrb.mxu3 %v9468_v57  ;;  %v13066_v57 = vld [vmem:[%s20996_s3 + $0x44c] sm:$0xf] }
 0x32e   : > { %2942 = vmatpush.bf16.msrb.mxu1 %v9736_v37  ;;  %v13082_v37 = vld [vmem:[%s20996_s3 + $0x4cc] sm:$0xf]  ;;  %v9596_v59 = vor.u32 %v13066_v57, %v9593_v13  ;;  %v12983_v57 = vld [vmem:[%s20996_s3 + $0x1ac] sm:$0xf0]  ;;  %v12949_v13 = vld [vmem:[%s20996_s3 + $0xa4] sm:$0xf] }
 0x32f   : > { %3030 = vmatpush.bf16.msrb.mxu2 %v9724_v25  ;;  %v9660_v45 = vor.u32 %v13082_v37, %v9657_v11  ;;  %v13058_v25 = vld [vmem:[%s20996_s3 + $0x40c] sm:$0xf]  ;;  %v9904_v11 = vor.u32 %v12955_v33, %v9903_v7  ;;  %v9983_v7 = vld [vmem:[%s20996_s3 + $0x160] sm:$0xf] }
 0x331   : > { %2973 = vmatpush.bf16.msrb.mxu3 %v9452_v14  ;;  %2997 = vmatpush.bf16.msrb.mxu0 %v9660_v45  ;;  %v12987_v45 = vld [vmem:[%s20996_s3 + $0x1cc] sm:$0xf0] }
 0x332   : > { %2943 = vmatpush.bf16.msrb.mxu1 %v9720_v44  ;;  %v13070_v44 = vld [vmem:[%s20996_s3 + $0x46c] sm:$0xf] }
 0x333   : > { %3031 = vmatpush.bf16.msrb.mxu2 %v9708_v27  ;;  %v9612_v32 = vor.u32 %v13070_v44, %v9609_v55  ;;  %v12959_v27 = vld [vmem:[%s20996_s3 + $0xec] sm:$0xf0]  ;;  %v10015_v55 = vld [vmem:[%s20996_s3 + $0x1a0] sm:$0xf] }
 0x334   : > { %v9920_v18 = vor.u32 %v12959_v27, %v9919_v28  ;;  %v12951_v44 = vld [vmem:[%s20996_s3 + $0xac] sm:$0xf0]  ;;  %v10016_v52 = vor.u32 %v12983_v57, %v10015_v55 }
 0x335   : > { %2974 = vmatpush.bf16.msrb.mxu3 %v9436_v35  ;;  %2998 = vmatpush.bf16.msrb.mxu0 %v9644_v22  ;;  %v10031_v35 = vld [vmem:[%s20996_s3 + $0x1c0] sm:$0xf]  ;;  %v12971_v57 = vld [vmem:[%s20996_s3 + $0x14c] sm:$0xf0] }
 0x336   : > { %2787 = vmatmul.bf16.gmra.mxu0 %v15314_v5  ;;  %2944 = vmatpush.bf16.msrb.mxu1 %v9704_v51  ;;  %v9561_v51 = vld [vmem:[%s20996_s3 + $0x418] sm:$0xf0]  ;;  %v10032_v31 = vor.u32 %v12987_v45, %v10031_v35  ;;  %v12975_v35 = vld [vmem:[%s20996_s3 + $0x16c] sm:$0xf0]  ;;  %v9857_v45 = vld [vmem:[%s20996_s3 + $0x70] sm:$0xf0] }
 0x337   : > { %3032 = vmatpush.bf16.msrb.mxu2 %v9692_v53  ;;  %v9564_v14 = vor.u32 %v13058_v25, %v9561_v51  ;;  %v9871_v25 = vld [vmem:[%s20996_s3 + $0x80] sm:$0xf]  ;;  %v12947_v51 = vld [vmem:[%s20996_s3 + $0x8c] sm:$0xf0]  ;;  %v9984_v40 = vor.u32 %v12975_v35, %v9983_v7 }
 0x338   : > { %v9872_v27 = vor.u32 %v12947_v51, %v9871_v25  ;;  %v9823_v25 = vld [vmem:[%s20996_s3 + $0x20] sm:$0xf]  ;;  %v12935_v51 = vld [vmem:[%s20996_s3 + $0x2c] sm:$0xf0] }
 0x339   : > { %2999 = vmatpush.bf16.msrb.mxu0 %v9628_v47  ;;  %3563 = vmatpush.bf16.msra.mxu3 %v10048_v60  ;;  %v9887_v47 = vld [vmem:[%s20996_s3 + $0xa0] sm:$0xf]  ;;  %v13023_v7 = vld [vmem:[%s20996_s3 + $0x2ec] sm:$0xf0] }
 0x33a   : > { %2945 = vmatpush.bf16.msrb.mxu1 %v9688_v39  ;;  %v9924_v39 = vor.u32 %v12957_v3, %v9921_v15 }
 0x33c   : > { %2835 = vmatmul.bf16.gmra.mxu1 %v15423_v10  ;;  %2864 = vmatmul.bf16.gmra.mxu3 %v15583_v56 }
 0x33d   : > { %2922 = vmatmul.bf16.gmra.mxu2 %v15423_v10  ;;  %3000 = vmatpush.bf16.msrb.mxu0 %v9612_v32  ;;  %v9888_v32 = vor.u32 %v12951_v44, %v9887_v47  ;;  %v9967_v47 = vld [vmem:[%s20996_s3 + $0x140] sm:$0xf] }
 0x33e   : > { %3534 = vmatpush.bf16.msra.mxu1 %v9920_v18  ;;  %3621 = vmatpush.bf16.msra.mxu2 %v9924_v39  ;;  %v12945_v18 = vld [vmem:[%s20996_s3 + $0x84] sm:$0xf]  ;;  %v9855_v39 = vld [vmem:[%s20996_s3 + $0x60] sm:$0xf] }
 0x33f   : > { %3564 = vmatpush.bf16.msra.mxu3 %v10032_v31  ;;  %v9876_v60 = vor.u32 %v12945_v18, %v9873_v42  ;;  %v9839_v31 = vld [vmem:[%s20996_s3 + $0x40] sm:$0xf]  ;;  %v12967_v18 = vld [vmem:[%s20996_s3 + $0x12c] sm:$0xf0]  ;;  %v12933_v42 = vld [vmem:[%s20996_s3 + $0x24] sm:$0xf] }
 0x341   : > { %3001 = vmatpush.bf16.msrb.mxu0 %v9596_v59  ;;  %v9889_v59 = vld [vmem:[%s20996_s3 + $0xb0] sm:$0xf0] }
 0x342   : > { %3535 = vmatpush.bf16.msra.mxu1 %v9904_v11  ;;  %3622 = vmatpush.bf16.msra.mxu2 %v9908_v30  ;;  %v9892_v26 = vor.u32 %v12949_v13, %v9889_v59  ;;  %v12941_v11 = vld [vmem:[%s20996_s3 + $0x64] sm:$0xf]  ;;  %v12939_v30 = vld [vmem:[%s20996_s3 + $0x4c] sm:$0xf0]  ;;  %v9841_v59 = vld [vmem:[%s20996_s3 + $0x50] sm:$0xf0] }
 0x343   : > { %3565 = vmatpush.bf16.msra.mxu3 %v10016_v52  ;;  %v9860_v9 = vor.u32 %v12941_v11, %v9857_v45  ;;  %v12937_v13 = vld [vmem:[%s20996_s3 + $0x44] sm:$0xf]  ;;  %v12931_v11 = vld [vmem:[%s20996_s3 + $0xc] sm:$0xf0]  ;;  %v9935_v45 = vld [vmem:[%s20996_s3 + $0x100] sm:$0xf] }
 0x345   : > { %3002 = vmatpush.bf16.msrb.mxu0 %v9580_v34 }
 0x346   : > { %2888 = vmatmul.bf16.vlgmr.msra.gmra.mxu0 %v15292_v63  ;;  %3536 = vmatpush.bf16.msra.mxu1 %v9888_v32  ;;  %v9840_v32 = vor.u32 %v12939_v30, %v9839_v31  ;;  %v12963_v31 = vld [vmem:[%s20996_s3 + $0x10c] sm:$0xf0]  ;;  %v12929_v30 = vld [vmem:[%s20996_s3 + $0x4] sm:$0xf] }
 0x347   : > { %3623 = vmatpush.bf16.msra.mxu2 %v9892_v26  ;;  %v9968_v26 = vor.u32 %v12971_v57, %v9967_v47  ;;  %v9809_v47 = vld [vmem:[%s20996_s3 + $0x10] sm:$0xf0]  ;;  %v9936_v57 = vor.u32 %v12963_v31, %v9935_v45 }
 0x349   : > { %3003 = vmatpush.bf16.msrb.mxu0 %v9564_v14  ;;  %v9999_v14 = vld [vmem:[%s20996_s3 + $0x180] sm:$0xf] }
 0x34a   : > { %v10000_v15 = vor.u32 %v12979_v43, %v9999_v14  ;;  %3537 = vmatpush.bf16.msra.mxu1 %v9872_v27  ;;  %v9951_v14 = vld [vmem:[%s20996_s3 + $0x120] sm:$0xf]  ;;  %v9824_v43 = vor.u32 %v12935_v51, %v9823_v25 }
 0x34b   : > { %3624 = vmatpush.bf16.msra.mxu2 %v9876_v60  ;;  %v9952_v60 = vor.u32 %v12967_v18, %v9951_v14  ;;  %v10143_v51 = vld [vmem:[%s20996_s3 + $0x2a0] sm:$0xf]  ;;  %v13015_v14 = vld [vmem:[%s20996_s3 + $0x2ac] sm:$0xf0] }
 0x34c   : > { %2840 = vmatmul.bf16.gmra.mxu1 %v15141_v38  ;;  %2869 = vmatmul.bf16.gmra.mxu3 %v15250_v24 }
 0x34d   : > { %2927 = vmatmul.bf16.gmra.mxu2 %v15141_v38  ;;  %3566 = vmatpush.bf16.msra.mxu3 %v10000_v15 }
 0x34f   : > { %3625 = vmatpush.bf16.msra.mxu2 %v9860_v9 }
 0x351   : > { %3567 = vmatpush.bf16.msra.mxu3 %v9984_v40 }
 0x355   : > { %3568 = vmatpush.bf16.msra.mxu3 %v9968_v26 }
 0x356   : > { %2893 = vmatmul.bf16.gmra.mxu0 %v15421_v48 }
 0x359   : > { %3569 = vmatpush.bf16.msra.mxu3 %v9952_v60  ;;  %v13011_v60 = vld [vmem:[%s20996_s3 + $0x28c] sm:$0xf0] }
 0x35c   : > { %2845 = vmatmul.bf16.gmra.mxu1 %v15211_v17  ;;  %2874 = vmatmul.bf16.gmra.mxu3 %v15314_v5 }
 0x35d   : > { %2932 = vmatmul.bf16.gmra.mxu2 %v15211_v17  ;;  %3570 = vmatpush.bf16.msra.mxu3 %v9936_v57 }
 0x366   : > { %2898 = vmatmul.bf16.gmra.mxu0 %v15139_v19 }
 0x368   : > { %v2715_v62 = vpop.f32.mrf.mxu1 }
 0x36c   : > { %2946 = vmatmul.bf16.vlgmr.msrb.gmra.mxu1 %v15517_v29  ;;  %2975 = vmatmul.bf16.vlgmr.msrb.gmra.mxu3 %v15292_v63 }
 0x36d   : > { %3033 = vmatmul.bf16.vlgmr.msrb.gmra.mxu2 %v15517_v29 }
 0x36e   : > { %v2744_v58 = vpop.f32.mrf.mxu3 }
 0x36f   : > { %v15863_v53 = vadd.f32 %v2744_v58, %v2715_v62  ;;  %v15865_v37 = vpop.f32.mrf.mxu2  ;;  %v12943_v58 = vld [vmem:[%s20996_s3 + $0x6c] sm:$0xf0] }
 0x370   : > { %v2717_v22 = vpop.f32.mrf.mxu1  ;;  %v9856_v33 = vor.u32 %v12943_v58, %v9855_v39  ;;  %v10175_v58 = vld [vmem:[%s20996_s3 + $0x2e0] sm:$0xf] }
 0x371   : > { %v10176_v35 = vor.u32 %v13023_v7, %v10175_v58 }
 0x372   : > { %3538 = vmatpush.bf16.msra.mxu1 %v9856_v33 }
 0x373   : > { %3592 = vmatpush.bf16.msra.mxu0 %v10176_v35  ;;  %v13007_v35 = vld [vmem:[%s20996_s3 + $0x26c] sm:$0xf0] }
 0x376   : > { %v2746_v34 = vpop.f32.mrf.mxu3  ;;  %2903 = vmatmul.bf16.gmra.mxu0 %v15209_v0  ;;  %3539 = vmatpush.bf16.msra.mxu1 %v9840_v32 }
 0x377   : > { %v15904_v62 = vadd.f32 %v2746_v34, %v2717_v22  ;;  %v15906_v28 = vpop.f32.mrf.mxu2  ;;  %v9844_v34 = vor.u32 %v12937_v13, %v9841_v59  ;;  %v9812_v13 = vor.u32 %v12929_v30, %v9809_v47  ;;  %v10159_v59 = vld [vmem:[%s20996_s3 + $0x2c0] sm:$0xf]  ;;  %v13003_v30 = vld [vmem:[%s20996_s3 + $0x24c] sm:$0xf0] }
 0x379   : > { %v2720_v3 = vpop.f32.mrf.mxu1  ;;  %3626 = vmatpush.bf16.msra.mxu2 %v9844_v34 }
 0x37a   : > { %3540 = vmatpush.bf16.msra.mxu1 %v9824_v43  ;;  %v10144_v43 = vor.u32 %v13015_v14, %v10143_v51 }
 0x37c   : > { %2951 = vmatmul.bf16.gmra.mxu1 %v15583_v56  ;;  %2980 = vmatmul.bf16.gmra.mxu3 %v15421_v48 }
 0x37d   : > { %3038 = vmatmul.bf16.gmra.mxu2 %v15583_v56 }
 0x37f   : > { %v2749_v22 = vpop.f32.mrf.mxu3 }
 0x380   : > { %v15947_v44 = vadd.f32 %v2749_v22, %v2720_v3  ;;  %v15949_v55 = vpop.f32.mrf.mxu2  ;;  %v9825_v3 = vld [vmem:[%s20996_s3 + $0x30] sm:$0xf0] }
 0x381   : > { %v2722_v52 = vpop.f32.mrf.mxu1  ;;  %v9828_v39 = vor.u32 %v12933_v42, %v9825_v3 }
 0x383   : > { %v2773_v27 = vpop.f32.mrf.mxu0  ;;  %3627 = vmatpush.bf16.msra.mxu2 %v9828_v39 }
 0x384   : > { %v15979_v15 = vadd.f32 %v2773_v27, %v15863_v53  ;;  %v9807_v53 = vld [vmem:[%s20996_s3] sm:$0xf] }
 0x385   : > { %v9808_v22 = vor.u32 %v12931_v11, %v9807_v53 }
 0x386   : > { %3004 = vmatmul.bf16.vlgmr.msrb.gmra.mxu0 %v15294_v41 }
 0x387   : > { %v2751_v33 = vpop.f32.mrf.mxu3  ;;  %3541 = vmatpush.bf16.msra.mxu1 %v9808_v22  ;;  %3628 = vmatpush.bf16.msra.mxu2 %v9812_v13  ;;  %v10079_v13 = vld [vmem:[%s20996_s3 + $0x220] sm:$0xf] }
 0x388   : > { %v2752_v40 = vadd.f32 %v2751_v33, %v2722_v52  ;;  %v15997_v9 = vpop.f32.mrf.mxu2  ;;  %v13019_v52 = vld [vmem:[%s20996_s3 + $0x2cc] sm:$0xf0]  ;;  %v10111_v33 = vld [vmem:[%s20996_s3 + $0x260] sm:$0xf] }
 0x389   : > { %v2725_v32 = vpop.f32.mrf.mxu1  ;;  %v10160_v26 = vor.u32 %v13019_v52, %v10159_v59  ;;  %v10112_v11 = vor.u32 %v13007_v35, %v10111_v33  ;;  %v12999_v59 = vld [vmem:[%s20996_s3 + $0x22c] sm:$0xf0] }
 0x38b   : > { %v2775_v34 = vpop.f32.mrf.mxu0  ;;  %3593 = vmatpush.bf16.msra.mxu0 %v10160_v26  ;;  %v10080_v26 = vor.u32 %v12999_v59, %v10079_v13  ;;  %v12992_v13 = vld [vmem:[%s20996_s3 + $0x1f4] sm:$0xf0] }
 0x38c   : > { %2956 = vmatmul.bf16.gmra.mxu1 %v15250_v24  ;;  %2985 = vmatmul.bf16.gmra.mxu3 %v15139_v19  ;;  %v16017_v25 = vadd.f32 %v2775_v34, %v15904_v62  ;;  %v10127_v62 = vld [vmem:[%s20996_s3 + $0x280] sm:$0xf] }
 0x38d   : > { %3043 = vmatmul.bf16.gmra.mxu2 %v15250_v24  ;;  %v10128_v39 = vor.u32 %v13011_v60, %v10127_v62 }
 0x38f   : > { %v2754_v27 = vpop.f32.mrf.mxu3  ;;  %3594 = vmatpush.bf16.msra.mxu0 %v10144_v43 }
 0x390   : > { %v2755_v18 = vadd.f32 %v2754_v27, %v2725_v32  ;;  %v16026_v42 = vpop.f32.mrf.mxu2  ;;  %v12995_v27 = vld [vmem:[%s20996_s3 + $0x20c] sm:$0xf0] }
 0x391   : > { %v2727_v3 = vpop.f32.mrf.mxu1 }
 0x393   : > { %v2778_v58 = vpop.f32.mrf.mxu0  ;;  %3595 = vmatpush.bf16.msra.mxu0 %v10128_v39 }
 0x394   : > { %v16035_v7 = vadd.f32 %v2778_v58, %v15947_v44  ;;  %v10095_v44 = vld [vmem:[%s20996_s3 + $0x240] sm:$0xf] }
 0x395   : > { %v10096_v47 = vor.u32 %v13003_v30, %v10095_v44  ;;  %v21285_v44 = vld [vmem:[#allocation21_spill] sm:$0xff] }
 0x396   : > { %3009 = vmatmul.bf16.gmra.mxu0 %v15423_v10  ;;  %v21286_v30 = vld [vmem:[#allocation13_spill] sm:$0xff] }
 0x397   : > { %v2756_v53 = vpop.f32.mrf.mxu3  ;;  %3596 = vmatpush.bf16.msra.mxu0 %v10112_v11  ;;  %v13021_v11 = vld [vmem:[%s20996_s3 + $0x2e4] sm:$0xf] }
 0x398   : > { %v2757_v45 = vadd.f32 %v2756_v53, %v2727_v3  ;;  %v16044_v22 = vpop.f32.mrf.mxu2  ;;  %v12989_v53 = vld [vmem:[%s20996_s3 + $0x1e4] sm:$0xf] }
 0x399   : > { %v2730_v31 = vpop.f32.mrf.mxu1 }
 0x39b   : > { %v2780_v32 = vpop.f32.mrf.mxu0  ;;  %3597 = vmatpush.bf16.msra.mxu0 %v10096_v47 }
 0x39c   : > { %2961 = vmatmul.bf16.gmra.mxu1 %v15314_v5  ;;  %2990 = vmatmul.bf16.gmra.mxu3 %v15209_v0  ;;  %v16054_v57 = vadd.f32 %v2780_v32, %v2752_v40  ;;  %v10063_v40 = vld [vmem:[%s20996_s3 + $0x200] sm:$0xf]  ;;  %v10055_v32 = vld [vmem:[%s20996_s3 + $0x1e8] sm:$0xf] }
 0x39d   : > { %3048 = vmatmul.bf16.gmra.mxu2 %v15314_v5  ;;  %v10064_v43 = vor.u32 %v12995_v27, %v10063_v40  ;;  %v12985_v40 = vld [vmem:[%s20996_s3 + $0x1c4] sm:$0xf]  ;;  %v10033_v27 = vld [vmem:[%s20996_s3 + $0x1d0] sm:$0xf0] }
 0x39f   : > { %v2759_v52 = vpop.f32.mrf.mxu3  ;;  %3598 = vmatpush.bf16.msra.mxu0 %v10080_v26  ;;  %v10056_v26 = vor.u32 %v12992_v13, %v10055_v32  ;;  %v10017_v32 = vld [vmem:[%s20996_s3 + $0x1b0] sm:$0xf0]  ;;  %v13013_v13 = vld [vmem:[%s20996_s3 + $0x2a4] sm:$0xf] }
 0x3a0   : > { %v2760_v34 = vadd.f32 %v2759_v52, %v2730_v31  ;;  %v16063_v51 = vpop.f32.mrf.mxu2 }
 0x3a1   : > { %v2732_v14 = vpop.f32.mrf.mxu1  ;;  %3737 = vmatpush.bf16.msrb.mxu2 %v10056_v26 }
 0x3a3   : > { %v2783_v3 = vpop.f32.mrf.mxu0  ;;  %3599 = vmatpush.bf16.msra.mxu0 %v10064_v43 }
 0x3a4   : > { %v16071_v62 = vadd.f32 %v2783_v3, %v2755_v18  ;;  %v10049_v18 = vld [vmem:[%s20996_s3 + $0x1f0] sm:$0xf0] }
 0x3a5   : > { %v10052_v47 = vor.u32 %v12989_v53, %v10049_v18  ;;  %v10039_v53 = vld [vmem:[%s20996_s3 + $0x1c8] sm:$0xf]  ;;  %v12988_v18 = vld [vmem:[%s20996_s3 + $0x1d4] sm:$0xf0] }
 0x3a6   : > { %3014 = vmatmul.bf16.gmra.mxu0 %v15141_v38 }
 0x3a7   : > { %v2761_v60 = vpop.f32.mrf.mxu3  ;;  %3650 = vmatpush.bf16.msrb.mxu1 %v10052_v47  ;;  %v10040_v47 = vor.u32 %v12988_v18, %v10039_v53  ;;  %v12977_v53 = vld [vmem:[%s20996_s3 + $0x184] sm:$0xf]  ;;  %v10001_v18 = vld [vmem:[%s20996_s3 + $0x190] sm:$0xf0] }
 0x3a8   : > { %v16074_v39 = vadd.f32 %v2761_v60, %v2732_v14  ;;  %v16076_v58 = vpop.f32.mrf.mxu2  ;;  %v10036_v60 = vor.u32 %v12985_v40, %v10033_v27  ;;  %v12984_v40 = vld [vmem:[%s20996_s3 + $0x1b4] sm:$0xf0] }
 0x3a9   : > { %v2831_v33 = vpop.f32.mrf.mxu1  ;;  %3738 = vmatpush.bf16.msrb.mxu2 %v10040_v47  ;;  %v10004_v47 = vor.u32 %v12977_v53, %v10001_v18  ;;  %v9991_v53 = vld [vmem:[%s20996_s3 + $0x168] sm:$0xf]  ;;  %v12976_v18 = vld [vmem:[%s20996_s3 + $0x174] sm:$0xf0] }
 0x3aa   : > { %v2832_v35 = vadd.f32 %v2831_v33, %v15865_v37  ;;  %v10177_v37 = vld [vmem:[%s20996_s3 + $0x2f0] sm:$0xf0] }
 0x3ab   : > { %v2785_v31 = vpop.f32.mrf.mxu0  ;;  %v10180_v52 = vor.u32 %v13021_v11, %v10177_v37  ;;  %v10161_v33 = vld [vmem:[%s20996_s3 + $0x2d0] sm:$0xf0]  ;;  %3651 = vmatpush.bf16.msrb.mxu1 %v10036_v60  ;;  %v12981_v37 = vld [vmem:[%s20996_s3 + $0x1a4] sm:$0xf] }
 0x3ac   : > { %3542 = vmatmul.bf16.vlgmr.msra.gmra.mxu1 %v21285_v44  ;;  %3571 = vmatmul.bf16.vlgmr.msra.gmra.mxu3 %v21286_v30  ;;  %v16099_v59 = vadd.f32 %v2785_v31, %v2757_v45  ;;  %v13017_v45 = vld [vmem:[%s20996_s3 + $0x2c4] sm:$0xf]  ;;  %v10020_v26 = vor.u32 %v12981_v37, %v10017_v32  ;;  %v10129_v37 = vld [vmem:[%s20996_s3 + $0x290] sm:$0xf0]  ;;  %v10007_v32 = vld [vmem:[%s20996_s3 + $0x188] sm:$0xf] }
 0x3ad   : > { %3629 = vmatmul.bf16.vlgmr.msra.gmra.mxu2 %v21285_v44  ;;  %3679 = vmatpush.bf16.msrb.mxu3 %v10180_v52  ;;  %v10164_v31 = vor.u32 %v13017_v45, %v10161_v33 }
 0x3af   : > { %v2860_v14 = vpop.f32.mrf.mxu3  ;;  %3652 = vmatpush.bf16.msrb.mxu1 %v10020_v26 }
 0x3b0   : > { %v16111_v43 = vadd.f32 %v2860_v14, %v2832_v35  ;;  %v16113_v3 = vpop.f32.mrf.mxu2  ;;  %v10023_v14 = vld [vmem:[%s20996_s3 + $0x1a8] sm:$0xf] }
 0x3b1   : > { %v2833_v11 = vpop.f32.mrf.mxu1  ;;  %3680 = vmatpush.bf16.msrb.mxu3 %v10164_v31  ;;  %v10024_v60 = vor.u32 %v12984_v40, %v10023_v14  ;;  %v12973_v14 = vld [vmem:[%s20996_s3 + $0x164] sm:$0xf]  ;;  %v9985_v40 = vld [vmem:[%s20996_s3 + $0x170] sm:$0xf0] }
 0x3b2   : > { %v2834_v35 = vadd.f32 %v2833_v11, %v15906_v28  ;;  %v10145_v28 = vld [vmem:[%s20996_s3 + $0x2b0] sm:$0xf0] }
 0x3b3   : > { %v2788_v52 = vpop.f32.mrf.mxu0  ;;  %v10148_v45 = vor.u32 %v13013_v13, %v10145_v28  ;;  %3739 = vmatpush.bf16.msrb.mxu2 %v10024_v60  ;;  %v12980_v13 = vld [vmem:[%s20996_s3 + $0x194] sm:$0xf0]  ;;  %3653 = vmatpush.bf16.msrb.mxu1 %v10004_v47 }
 0x3b4   : > { %v16143_v27 = vadd.f32 %v2788_v52, %v2760_v34  ;;  %v13009_v34 = vld [vmem:[%s20996_s3 + $0x284] sm:$0xf]  ;;  %v10008_v28 = vor.u32 %v12980_v13, %v10007_v32 }
 0x3b5   : > { %3681 = vmatpush.bf16.msrb.mxu3 %v10148_v45  ;;  %v10132_v26 = vor.u32 %v13009_v34, %v10129_v37  ;;  %v13005_v45 = vld [vmem:[%s20996_s3 + $0x264] sm:$0xf]  ;;  %v9992_v37 = vor.u32 %v12976_v18, %v9991_v53 }
 0x3b6   : > { %3019 = vmatmul.bf16.gmra.mxu0 %v15211_v17  ;;  %v12969_v13 = vld [vmem:[%s20996_s3 + $0x144] sm:$0xf] }
 0x3b7   : > { %v2862_v33 = vpop.f32.mrf.mxu3  ;;  %3740 = vmatpush.bf16.msrb.mxu2 %v10008_v28  ;;  %v12965_v18 = vld [vmem:[%s20996_s3 + $0x124] sm:$0xf] }
 0x3b8   : > { %v16155_v11 = vadd.f32 %v2862_v33, %v2834_v35  ;;  %v16157_v31 = vpop.f32.mrf.mxu2  ;;  %v10113_v33 = vld [vmem:[%s20996_s3 + $0x270] sm:$0xf0] }
 0x3b9   : > { %v2836_v52 = vpop.f32.mrf.mxu1  ;;  %3682 = vmatpush.bf16.msrb.mxu3 %v10132_v26  ;;  %v10116_v47 = vor.u32 %v13005_v45, %v10113_v33  ;;  %v9975_v45 = vld [vmem:[%s20996_s3 + $0x148] sm:$0xf] }
 0x3ba   : > { %v2837_v35 = vadd.f32 %v2836_v52, %v15949_v55  ;;  %v9988_v55 = vor.u32 %v12973_v14, %v9985_v40  ;;  %v9969_v52 = vld [vmem:[%s20996_s3 + $0x150] sm:$0xf0] }
 0x3bb   : > { %v2790_v60 = vpop.f32.mrf.mxu0  ;;  %v9972_v28 = vor.u32 %v12969_v13, %v9969_v52  ;;  %v10097_v40 = vld [vmem:[%s20996_s3 + $0x250] sm:$0xf0]  ;;  %3741 = vmatpush.bf16.msrb.mxu2 %v9992_v37  ;;  %v9959_v37 = vld [vmem:[%s20996_s3 + $0x128] sm:$0xf] }
 0x3bc   : > { %3547 = vmatmul.bf16.gmra.mxu1 %v15192_v20  ;;  %3576 = vmatmul.bf16.gmra.mxu3 %v15194_v36  ;;  %v16190_v34 = vadd.f32 %v2790_v60, %v16074_v39  ;;  %v13001_v39 = vld [vmem:[%s20996_s3 + $0x244] sm:$0xf]  ;;  %v12972_v60 = vld [vmem:[%s20996_s3 + $0x154] sm:$0xf0] }
 0x3bd   : > { %3634 = vmatmul.bf16.gmra.mxu2 %v15192_v20  ;;  %3654 = vmatpush.bf16.msrb.mxu1 %v9988_v55  ;;  %v10100_v33 = vor.u32 %v13001_v39, %v10097_v40  ;;  %v9976_v53 = vor.u32 %v12972_v60, %v9975_v45  ;;  %v12968_v39 = vld [vmem:[%s20996_s3 + $0x134] sm:$0xf0]  ;;  %v9927_v60 = vld [vmem:[%s20996_s3 + $0xe8] sm:$0xf] }
 0x3be   : > { %3683 = vmatpush.bf16.msrb.mxu3 %v10116_v47  ;;  %v9953_v47 = vld [vmem:[%s20996_s3 + $0x130] sm:$0xf0]  ;;  %v9960_v45 = vor.u32 %v12968_v39, %v9959_v37  ;;  %v9943_v37 = vld [vmem:[%s20996_s3 + $0x108] sm:$0xf]  ;;  %v12964_v39 = vld [vmem:[%s20996_s3 + $0x114] sm:$0xf0] }
 0x3bf   : > { %v2865_v32 = vpop.f32.mrf.mxu3  ;;  %v9956_v52 = vor.u32 %v12965_v18, %v9953_v47  ;;  %3742 = vmatpush.bf16.msrb.mxu2 %v9976_v53  ;;  %v9937_v53 = vld [vmem:[%s20996_s3 + $0x110] sm:$0xf0]  ;;  %v12993_v47 = vld [vmem:[%s20996_s3 + $0x204] sm:$0xf] }
 0x3c0   : > { %v16202_v26 = vadd.f32 %v2865_v32, %v2837_v35  ;;  %v16204_v14 = vpop.f32.mrf.mxu2  ;;  %v12997_v32 = vld [vmem:[%s20996_s3 + $0x224] sm:$0xf] }
 0x3c1   : > { %v2838_v55 = vpop.f32.mrf.mxu1  ;;  %3655 = vmatpush.bf16.msrb.mxu1 %v9972_v28 }
 0x3c2   : > { %v2839_v35 = vadd.f32 %v2838_v55, %v15997_v9  ;;  %3684 = vmatpush.bf16.msrb.mxu3 %v10100_v33  ;;  %v10081_v9 = vld [vmem:[%s20996_s3 + $0x230] sm:$0xf0]  ;;  %v12960_v55 = vld [vmem:[%s20996_s3 + $0xf4] sm:$0xf0] }
 0x3c3   : > { %v2889_v13 = vpop.f32.mrf.mxu0  ;;  %v10084_v40 = vor.u32 %v12997_v32, %v10081_v9  ;;  %v9928_v18 = vor.u32 %v12960_v55, %v9927_v60  ;;  %v10065_v9 = vld [vmem:[%s20996_s3 + $0x210] sm:$0xf0]  ;;  %3743 = vmatpush.bf16.msrb.mxu2 %v9960_v45  ;;  %v9944_v55 = vor.u32 %v12964_v39, %v9943_v37  ;;  %v9895_v45 = vld [vmem:[%s20996_s3 + $0xa8] sm:$0xf] }
 0x3c4   : > { %v16235_v28 = vadd.f32 %v16113_v3, %v2889_v13  ;;  %v12961_v3 = vld [vmem:[%s20996_s3 + $0x104] sm:$0xf]  ;;  %v10068_v60 = vor.u32 %v12993_v47, %v10065_v9 }
 0x3c5   : > { %3656 = vmatpush.bf16.msrb.mxu1 %v9956_v52  ;;  %v9940_v52 = vor.u32 %v12961_v3, %v9937_v53  ;;  %3708 = vmatpush.bf16.msrb.mxu0 %v9928_v18  ;;  %v12956_v3 = vld [vmem:[%s20996_s3 + $0xd4] sm:$0xf0] }
 0x3c6   : > { %3600 = vmatmul.bf16.vlgmr.msra.gmra.mxu0 %v15218_v49  ;;  %3685 = vmatpush.bf16.msrb.mxu3 %v10084_v40  ;;  %v12952_v18 = vld [vmem:[%s20996_s3 + $0xb4] sm:$0xf0] }
 0x3c7   : > { %v2867_v33 = vpop.f32.mrf.mxu3  ;;  %3744 = vmatpush.bf16.msrb.mxu2 %v9944_v55 }
 0x3c8   : > { %v16253_v32 = vadd.f32 %v2867_v33, %v2839_v35  ;;  %v2925_v13 = vpop.f32.mrf.mxu2  ;;  %v9911_v33 = vld [vmem:[%s20996_s3 + $0xc8] sm:$0xf] }
 0x3c9   : > { %v2841_v40 = vpop.f32.mrf.mxu1  ;;  %3657 = vmatpush.bf16.msrb.mxu1 %v9940_v52  ;;  %v9912_v53 = vor.u32 %v12956_v3, %v9911_v33  ;;  %v9896_v52 = vor.u32 %v12952_v18, %v9895_v45 }
 0x3ca   : > { %v2842_v35 = vadd.f32 %v2841_v40, %v16026_v42  ;;  %3686 = vmatpush.bf16.msrb.mxu3 %v10068_v60  ;;  %v12948_v40 = vld [vmem:[%s20996_s3 + $0x94] sm:$0xf0] }
 0x3cb   : > { %v2891_v21 = vpop.f32.mrf.mxu0  ;;  %3709 = vmatpush.bf16.msrb.mxu0 %v9912_v53 }
 0x3cc   : > { %3552 = vmatmul.bf16.gmra.mxu1 %v15292_v63  ;;  %3581 = vmatmul.bf16.gmra.mxu3 %v15294_v41  ;;  %v16274_v42 = vadd.f32 %v16157_v31, %v2891_v21  ;;  %v9879_v31 = vld [vmem:[%s20996_s3 + $0x88] sm:$0xf] }
 0x3cd   : > { %3639 = vmatmul.bf16.gmra.mxu2 %v15292_v63  ;;  %v9880_v60 = vor.u32 %v12948_v40, %v9879_v31 }
 0x3cf   : > { %v2870_v47 = vpop.f32.mrf.mxu3  ;;  %3710 = vmatpush.bf16.msrb.mxu0 %v9896_v52  ;;  %v9847_v52 = vld [vmem:[%s20996_s3 + $0x48] sm:$0xf] }
 0x3d0   : > { %v16283_v9 = vadd.f32 %v2870_v47, %v2842_v35  ;;  %v2928_v37 = vpop.f32.mrf.mxu2  ;;  %v9863_v35 = vld [vmem:[%s20996_s3 + $0x68] sm:$0xf] }
 0x3d1   : > { %v2843_v39 = vpop.f32.mrf.mxu1 }
 0x3d2   : > { %v2844_v21 = vadd.f32 %v2843_v39, %v16044_v22  ;;  %v12944_v22 = vld [vmem:[%s20996_s3 + $0x74] sm:$0xf0] }
 0x3d3   : > { %v2894_v55 = vpop.f32.mrf.mxu0  ;;  %3711 = vmatpush.bf16.msrb.mxu0 %v9880_v60  ;;  %v9864_v53 = vor.u32 %v12944_v22, %v9863_v35  ;;  %v12940_v39 = vld [vmem:[%s20996_s3 + $0x54] sm:$0xf0] }
 0x3d4   : > { %v16293_v33 = vadd.f32 %v16204_v14, %v2894_v55  ;;  %v9848_v31 = vor.u32 %v12940_v39, %v9847_v52  ;;  %v12936_v60 = vld [vmem:[%s20996_s3 + $0x34] sm:$0xf0] }
 0x3d5   : > { %v12932_v52 = vld [vmem:[%s20996_s3 + $0x14] sm:$0xf0] }
 0x3d6   : > { %3605 = vmatmul.bf16.gmra.mxu0 %v15278_v61 }
 0x3d7   : > { %v2872_v3 = vpop.f32.mrf.mxu3  ;;  %3712 = vmatpush.bf16.msrb.mxu0 %v9864_v53 }
 0x3d8   : > { %v16302_v45 = vadd.f32 %v2872_v3, %v2844_v21  ;;  %v2930_v18 = vpop.f32.mrf.mxu2 }
 0x3d9   : > { %v2846_v47 = vpop.f32.mrf.mxu1 }
 0x3da   : > { %v2847_v14 = vadd.f32 %v2846_v47, %v16063_v51  ;;  %v9831_v51 = vld [vmem:[%s20996_s3 + $0x28] sm:$0xf] }
 0x3db   : > { %v2896_v40 = vpop.f32.mrf.mxu0  ;;  %3713 = vmatpush.bf16.msrb.mxu0 %v9848_v31  ;;  %v9832_v35 = vor.u32 %v12936_v60, %v9831_v51  ;;  %v9815_v47 = vld [vmem:[%s20996_s3 + $0x8] sm:$0xf] }
 0x3dc   : > { %3557 = vmatmul.bf16.gmra.mxu1 %v15421_v48  ;;  %3586 = vmatmul.bf16.gmra.mxu3 %v15423_v10  ;;  %v16313_v21 = vadd.f32 %v2925_v13, %v2896_v40  ;;  %v9816_v39 = vor.u32 %v12932_v52, %v9815_v47  ;;  %v13022_v52 = vld [vmem:[%s20996_s3 + $0x2ec] sm:$0xf] }
 0x3dd   : > { %3644 = vmatmul.bf16.gmra.mxu2 %v15421_v48 }
 0x3df   : > { %v2875_v55 = vpop.f32.mrf.mxu3  ;;  %3714 = vmatpush.bf16.msrb.mxu0 %v9832_v35  ;;  %v10183_v35 = vld [vmem:[%s20996_s3 + $0x2e8] sm:$0xf] }
 0x3e0   : > { %v16322_v22 = vadd.f32 %v2875_v55, %v2847_v14  ;;  %v2933_v3 = vpop.f32.mrf.mxu2 }
 0x3e1   : > { %v2848_v53 = vpop.f32.mrf.mxu1 }
 0x3e2   : > { %v2849_v13 = vadd.f32 %v2848_v53, %v16076_v58  ;;  %v12958_v53 = vld [vmem:[%s20996_s3 + $0xec] sm:$0xf] }
 0x3e3   : > { %v2899_v31 = vpop.f32.mrf.mxu0  ;;  %3715 = vmatpush.bf16.msrb.mxu0 %v9816_v39  ;;  %v10185_v39 = vld [vmem:[%s20996_s3 + $0x2f8] sm:$0xf0] }
 0x3e4   : > { %v16331_v40 = vadd.f32 %v2928_v37, %v2899_v31  ;;  %v13024_v37 = vld [vmem:[%s20996_s3 + $0x2f4] sm:$0xf0] }
 0x3e5   : > { %v10184_v47 = vor.u32 %v13024_v37, %v10183_v35  ;;  %v10167_v37 = vld [vmem:[%s20996_s3 + $0x2c8] sm:$0xf] }
 0x3e6   : > { %3610 = vmatmul.bf16.gmra.mxu0 %v15517_v29 }
 0x3e7   : > { %v2877_v14 = vpop.f32.mrf.mxu3  ;;  %3766 = vmatpush.bf16.msra.mxu1 %v10184_v47  ;;  %v9913_v47 = vld [vmem:[%s20996_s3 + $0xd8] sm:$0xf0] }
 0x3e8   : > { %v16334_v51 = vadd.f32 %v2877_v14, %v2849_v13  ;;  %v16336_v60 = vpop.f32.mrf.mxu2 }
 0x3e9   : > { %v2947_v58 = vpop.f32.mrf.mxu1 }
 0x3ea   : > { %v16339_v55 = vadd.f32 %v2947_v58, %v16235_v28  ;;  %v9929_v28 = vld [vmem:[%s20996_s3 + $0xf8] sm:$0xf0]  ;;  %v10188_v58 = vor.u32 %v13022_v52, %v10185_v39 }
 0x3eb   : > { %v2901_v13 = vpop.f32.mrf.mxu0  ;;  %v9932_v14 = vor.u32 %v12958_v53, %v9929_v28  ;;  %v10168_v53 = vor.u32 %v13020_v4, %v10167_v37  ;;  %v13018_v28 = vld [vmem:[%s20996_s3 + $0x2cc] sm:$0xf]  ;;  %v10169_v52 = vld [vmem:[%s20996_s3 + $0x2d8] sm:$0xf0]  ;;  %v10151_v4 = vld [vmem:[%s20996_s3 + $0x2a8] sm:$0xf] }
 0x3ec   : > { %3658 = vmatmul.bf16.vlgmr.msrb.gmra.mxu1 %v21286_v30  ;;  %3687 = vmatmul.bf16.vlgmr.msrb.gmra.mxu3 %v15218_v49  ;;  %v16361_v31 = vadd.f32 %v2930_v18, %v2901_v13  ;;  %v12954_v18 = vld [vmem:[%s20996_s3 + $0xcc] sm:$0xf]  ;;  %v13016_v37 = vld [vmem:[%s20996_s3 + $0x2b4] sm:$0xf0] }
 0x3ed   : > { %3745 = vmatmul.bf16.vlgmr.msrb.gmra.mxu2 %v21286_v30  ;;  %3795 = vmatpush.bf16.msra.mxu3 %v9932_v14  ;;  %v9916_v14 = vor.u32 %v12954_v18, %v9913_v47  ;;  %v10152_v47 = vor.u32 %v13016_v37, %v10151_v4  ;;  %v10135_v4 = vld [vmem:[%s20996_s3 + $0x288] sm:$0xf]  ;;  %v13012_v37 = vld [vmem:[%s20996_s3 + $0x294] sm:$0xf0] }
 0x3ee   : > { %3853 = vmatpush.bf16.msra.mxu2 %v10188_v58  ;;  %v10172_v58 = vor.u32 %v13018_v28, %v10169_v52  ;;  %3767 = vmatpush.bf16.msra.mxu1 %v10168_v53  ;;  %v13014_v53 = vld [vmem:[%s20996_s3 + $0x2ac] sm:$0xf]  ;;  %v10153_v28 = vld [vmem:[%s20996_s3 + $0x2b8] sm:$0xf0] }
 0x3ef   : > { %v16364_v35 = vpop.f32.mrf.mxu3 }
 0x3f0   : > { %v16375_v13 = vpop.f32.mrf.mxu2 }
 0x3f1   : > { %v2949_v39 = vpop.f32.mrf.mxu1  ;;  %3796 = vmatpush.bf16.msra.mxu3 %v9916_v14  ;;  %v10156_v14 = vor.u32 %v13014_v53, %v10153_v28  ;;  %v10137_v53 = vld [vmem:[%s20996_s3 + $0x298] sm:$0xf0] }
 0x3f2   : > { %v16387_v54 = vadd.f32 %v2949_v39, %v16274_v42  ;;  %3854 = vmatpush.bf16.msra.mxu2 %v10172_v58  ;;  %v9897_v42 = vld [vmem:[%s20996_s3 + $0xb8] sm:$0xf0]  ;;  %3768 = vmatpush.bf16.msra.mxu1 %v10152_v47 }
 0x3f3   : > { %v2904_v18 = vpop.f32.mrf.mxu0  ;;  %v9900_v39 = vor.u32 %v12950_v12, %v9897_v42  ;;  %v9881_v47 = vld [vmem:[%s20996_s3 + $0x98] sm:$0xf0]  ;;  %v13010_v42 = vld [vmem:[%s20996_s3 + $0x28c] sm:$0xf] }
 0x3f4   : > { %v16407_v52 = vadd.f32 %v2933_v3, %v2904_v18  ;;  %v12946_v3 = vld [vmem:[%s20996_s3 + $0x8c] sm:$0xf]  ;;  %v10136_v18 = vor.u32 %v13012_v37, %v10135_v4  ;;  %v10119_v4 = vld [vmem:[%s20996_s3 + $0x268] sm:$0xf]  ;;  %v13008_v37 = vld [vmem:[%s20996_s3 + $0x274] sm:$0xf0] }
 0x3f5   : > { %3797 = vmatpush.bf16.msra.mxu3 %v9900_v39  ;;  %v9884_v39 = vor.u32 %v12946_v3, %v9881_v47  ;;  %v9865_v3 = vld [vmem:[%s20996_s3 + $0x78] sm:$0xf0] }
 0x3f6   : > { %3615 = vmatmul.bf16.gmra.mxu0 %v15583_v56  ;;  %3855 = vmatpush.bf16.msra.mxu2 %v10156_v14  ;;  %v10140_v14 = vor.u32 %v13010_v42, %v10137_v53  ;;  %v10121_v47 = vld [vmem:[%s20996_s3 + $0x278] sm:$0xf0]  ;;  %v9868_v53 = vor.u32 %v12942_v2, %v9865_v3 }
 0x3f7   : > { %v16409_v58 = vpop.f32.mrf.mxu3  ;;  %3769 = vmatpush.bf16.msra.mxu1 %v10136_v18  ;;  %v13006_v18 = vld [vmem:[%s20996_s3 + $0x26c] sm:$0xf]  ;;  %v10105_v3 = vld [vmem:[%s20996_s3 + $0x258] sm:$0xf0] }
 0x3f8   : > { %v16421_v12 = vpop.f32.mrf.mxu2 }
 0x3f9   : > { %v2952_v28 = vpop.f32.mrf.mxu1  ;;  %3798 = vmatpush.bf16.msra.mxu3 %v9884_v39 }
 0x3fa   : > { %v16433_v50 = vadd.f32 %v2952_v28, %v16293_v33  ;;  %v10120_v33 = vor.u32 %v13008_v37, %v10119_v4  ;;  %3856 = vmatpush.bf16.msra.mxu2 %v10140_v14  ;;  %v10124_v28 = vor.u32 %v13006_v18, %v10121_v47  ;;  %v10103_v4 = vld [vmem:[%s20996_s3 + $0x248] sm:$0xf]  ;;  %v13004_v37 = vld [vmem:[%s20996_s3 + $0x254] sm:$0xf0]  ;;  %v9849_v14 = vld [vmem:[%s20996_s3 + $0x58] sm:$0xf0] }
 0x3fb   : > { %v2906_v8 = vpop.f32.mrf.mxu0  ;;  %v10104_v2 = vor.u32 %v13004_v37, %v10103_v4  ;;  %v10087_v37 = vld [vmem:[%s20996_s3 + $0x228] sm:$0xf] }
 0x3fc   : > { %3663 = vmatmul.bf16.gmra.mxu1 %v15194_v36  ;;  %3692 = vmatmul.bf16.gmra.mxu3 %v15278_v61  ;;  %v16456_v42 = vadd.f32 %v16336_v60, %v2906_v8  ;;  %v12938_v8 = vld [vmem:[%s20996_s3 + $0x4c] sm:$0xf] }
 0x3fd   : > { %3750 = vmatmul.bf16.gmra.mxu2 %v15194_v36  ;;  %3770 = vmatpush.bf16.msra.mxu1 %v10120_v33  ;;  %v13002_v33 = vld [vmem:[%s20996_s3 + $0x24c] sm:$0xf]  ;;  %v9852_v47 = vor.u32 %v12938_v8, %v9849_v14  ;;  %v10088_v14 = vor.u32 %v13000_v6, %v10087_v37 }
 0x3fe   : > { %3799 = vmatpush.bf16.msra.mxu3 %v9868_v53  ;;  %3857 = vmatpush.bf16.msra.mxu2 %v10124_v28  ;;  %v10108_v4 = vor.u32 %v13002_v33, %v10105_v3  ;;  %v12998_v28 = vld [vmem:[%s20996_s3 + $0x22c] sm:$0xf] }
 0x3ff   : > { %v16459_v39 = vpop.f32.mrf.mxu3  ;;  %v12990_v6 = vld [vmem:[%s20996_s3 + $0x1ec] sm:$0xf] }
 0x400   : > { %v16470_v60 = vpop.f32.mrf.mxu2 }
 0x401   : > { %v2954_v18 = vpop.f32.mrf.mxu1  ;;  %3771 = vmatpush.bf16.msra.mxu1 %v10104_v2  ;;  %v10089_v2 = vld [vmem:[%s20996_s3 + $0x238] sm:$0xf0] }
 0x402   : > { %v16482_v53 = vadd.f32 %v2954_v18, %v16313_v21  ;;  %3800 = vmatpush.bf16.msra.mxu3 %v9852_v47  ;;  %v9833_v21 = vld [vmem:[%s20996_s3 + $0x38] sm:$0xf0]  ;;  %3858 = vmatpush.bf16.msra.mxu2 %v10108_v4  ;;  %v10092_v18 = vor.u32 %v12998_v28, %v10089_v2  ;;  %v12930_v4 = vld [vmem:[%s20996_s3 + $0xc] sm:$0xf] }
 0x403   : > { %v3005_v8 = vpop.f32.mrf.mxu0  ;;  %v9836_v3 = vor.u32 %v12934_v46, %v9833_v21  ;;  %v10057_v47 = vld [vmem:[%s20996_s3 + $0x1f8] sm:$0xf0]  ;;  %v10071_v46 = vld [vmem:[%s20996_s3 + $0x208] sm:$0xf]  ;;  %v12994_v2 = vld [vmem:[%s20996_s3 + $0x20c] sm:$0xf] }
 0x404   : > { %21287 = vst [vmem:[#allocation38_spill] sm:$0xff] %v16482_v53  ;;  %v3006_v33 = vadd.f32 %v3005_v8, %v16364_v35  ;;  %v10060_v53 = vor.u32 %v12990_v6, %v10057_v47  ;;  %v12996_v35 = vld [vmem:[%s20996_s3 + $0x214] sm:$0xf0]  ;;  %v9817_v28 = vld [vmem:[%s20996_s3 + $0x18] sm:$0xf0] }
 0x405   : > { %3772 = vmatpush.bf16.msra.mxu1 %v10088_v14  ;;  %v10072_v21 = vor.u32 %v12996_v35, %v10071_v46  ;;  %v9820_v47 = vor.u32 %v12930_v4, %v9817_v28  ;;  %v12986_v46 = vld [vmem:[%s20996_s3 + $0x1cc] sm:$0xf]  ;;  %v10041_v35 = vld [vmem:[%s20996_s3 + $0x1d8] sm:$0xf0] }
 0x406   : > { %3716 = vmatmul.bf16.vlgmr.msrb.gmra.mxu0 %v21285_v44  ;;  %3801 = vmatpush.bf16.msra.mxu3 %v9836_v3  ;;  %v16520_v8 = vadd.f32 %v16375_v13, %v3006_v33  ;;  %v10073_v3 = vld [vmem:[%s20996_s3 + $0x218] sm:$0xf0] }
 0x407   : > { %v2983_v37 = vpop.f32.mrf.mxu3  ;;  %3824 = vmatpush.bf16.msra.mxu0 %v10060_v53  ;;  %3859 = vmatpush.bf16.msra.mxu2 %v10092_v18  ;;  %v10076_v33 = vor.u32 %v12994_v2, %v10073_v3  ;;  %v12982_v53 = vld [vmem:[%s20996_s3 + $0x1ac] sm:$0xf]  ;;  %v10025_v18 = vld [vmem:[%s20996_s3 + $0x1b8] sm:$0xf0] }
 0x408   : > { %21288 = vst [vmem:[#allocation55_spill] sm:$0xff] %v16520_v8  ;;  %v3041_v14 = vpop.f32.mrf.mxu2  ;;  %v10044_v8 = vor.u32 %v12986_v46, %v10041_v35 }
 0x409   : > { %v2957_v6 = vpop.f32.mrf.mxu1  ;;  %3773 = vmatpush.bf16.msra.mxu1 %v10072_v21  ;;  %v10028_v21 = vor.u32 %v12982_v53, %v10025_v18 }
 0x40a   : > { %v16532_v13 = vadd.f32 %v2957_v6, %v16331_v40  ;;  %3802 = vmatpush.bf16.msra.mxu3 %v9820_v47 }
 0x40b   : > { %v3007_v23 = vpop.f32.mrf.mxu0  ;;  %3825 = vmatpush.bf16.msra.mxu0 %v10044_v8  ;;  %3860 = vmatpush.bf16.msra.mxu2 %v10076_v33  ;;  %v10009_v8 = vld [vmem:[%s20996_s3 + $0x198] sm:$0xf0] }
 0x40c   : > { %3668 = vmatmul.bf16.gmra.mxu1 %v15294_v41  ;;  %3697 = vmatmul.bf16.gmra.mxu3 %v15517_v29  ;;  %v3008_v40 = vadd.f32 %v3007_v23, %v16409_v58  ;;  %v12978_v58 = vld [vmem:[%s20996_s3 + $0x18c] sm:$0xf] }
 0x40d   : > { %3755 = vmatmul.bf16.gmra.mxu2 %v15294_v41  ;;  %v10012_v6 = vor.u32 %v12978_v58, %v10009_v8 }
 0x40e   : > { %v16551_v28 = vadd.f32 %v16421_v12, %v3008_v40  ;;  %v12974_v12 = vld [vmem:[%s20996_s3 + $0x16c] sm:$0xf] }
 0x40f   : > { %v2986_v4 = vpop.f32.mrf.mxu3  ;;  %3826 = vmatpush.bf16.msra.mxu0 %v10028_v21  ;;  %v12970_v21 = vld [vmem:[%s20996_s3 + $0x14c] sm:$0xf] }
 0x410   : > { %v3044_v2 = vpop.f32.mrf.mxu2 }
 0x411   : > { %v2959_v3 = vpop.f32.mrf.mxu1 }
 0x412   : > { %v16554_v23 = vadd.f32 %v2959_v3, %v16361_v31  ;;  %v9993_v31 = vld [vmem:[%s20996_s3 + $0x178] sm:$0xf0] }
 0x413   : > { %v3010_v47 = vpop.f32.mrf.mxu0  ;;  %3827 = vmatpush.bf16.msra.mxu0 %v10012_v6  ;;  %v9996_v35 = vor.u32 %v12974_v12, %v9993_v31  ;;  %v9977_v3 = vld [vmem:[%s20996_s3 + $0x158] sm:$0xf0] }
 0x414   : > { %v3011_v33 = vadd.f32 %v3010_v47, %v16459_v39  ;;  %v9980_v58 = vor.u32 %v12970_v21, %v9977_v3  ;;  %v9961_v6 = vld [vmem:[%s20996_s3 + $0x138] sm:$0xf0] }
 0x415   : > { %v9945_v21 = vld [vmem:[%s20996_s3 + $0x118] sm:$0xf0] }
 0x416   : > { %3721 = vmatmul.bf16.gmra.mxu0 %v15192_v20  ;;  %v16571_v40 = vadd.f32 %v16470_v60, %v3011_v33 }
 0x417   : > { %v2988_v46 = vpop.f32.mrf.mxu3  ;;  %3828 = vmatpush.bf16.msra.mxu0 %v9996_v35 }
 0x418   : > { %v3046_v53 = vpop.f32.mrf.mxu2 }
 0x419   : > { %v2962_v18 = vpop.f32.mrf.mxu1 }
 0x41a   : > { %v16574_v39 = vadd.f32 %v2962_v18, %v16407_v52  ;;  %v12966_v52 = vld [vmem:[%s20996_s3 + $0x12c] sm:$0xf] }
 0x41b   : > { %v3012_v8 = vpop.f32.mrf.mxu0  ;;  %3829 = vmatpush.bf16.msra.mxu0 %v9980_v58  ;;  %v9964_v33 = vor.u32 %v12966_v52, %v9961_v6  ;;  %v12962_v18 = vld [vmem:[%s20996_s3 + $0x10c] sm:$0xf] }
 0x41c   : > { %3673 = vmatmul.bf16.gmra.mxu1 %v15423_v10  ;;  %3702 = vmatmul.bf16.gmra.mxu3 %v15583_v56  ;;  %v3013_v60 = vadd.f32 %v3012_v8, %v2983_v37  ;;  %v9948_v3 = vor.u32 %v12962_v18, %v9945_v21  ;;  %v13149_v21 = vld [vmem:[%s20996_s3 + $0x6e4] sm:$0xf] }
 0x41d   : > { %3760 = vmatmul.bf16.gmra.mxu2 %v15423_v10 }
 0x41e   : > { %v16593_v12 = vadd.f32 %v3041_v14, %v3013_v60 }
 0x41f   : > { %v16591_v47 = vpop.f32.mrf.mxu3  ;;  %3830 = vmatpush.bf16.msra.mxu0 %v9964_v33  ;;  %v10399_v33 = vld [vmem:[%s20996_s3 + $0x6e0] sm:$0xf] }
 0x420   : > { %v16595_v31 = vpop.f32.mrf.mxu2 }
 0x421   : > { %v2964_v35 = vpop.f32.mrf.mxu1 }
 0x422   : > { %v16598_v37 = vadd.f32 %v2964_v35, %v16456_v42  ;;  %v10527_v35 = vld [vmem:[%s20996_s3 + $0x7e0] sm:$0xf] }
 0x423   : > { %v3015_v58 = vpop.f32.mrf.mxu0  ;;  %3831 = vmatpush.bf16.msra.mxu0 %v9948_v3  ;;  %v10401_v3 = vld [vmem:[%s20996_s3 + $0x6f0] sm:$0xf0] }
 0x424   : > { %v3016_v8 = vadd.f32 %v3015_v58, %v2986_v4  ;;  %v13151_v4 = vld [vmem:[%s20996_s3 + $0x6ec] sm:$0xf0] }
 0x426   : > { %3726 = vmatmul.bf16.gmra.mxu0 %v15292_v63  ;;  %v16609_v60 = vadd.f32 %v3044_v2, %v3016_v8  ;;  %v10400_v2 = vor.u32 %v13151_v4, %v10399_v33  ;;  %v10383_v33 = vld [vmem:[%s20996_s3 + $0x6c0] sm:$0xf]  ;;  %v13147_v4 = vld [vmem:[%s20996_s3 + $0x6cc] sm:$0xf0] }
 0x427   : > { %v16606_v14 = vpop.f32.mrf.mxu3 }
 0x428   : > { %v16611_v42 = vpop.f32.mrf.mxu2  ;;  %4476 = vmatpush.bf16.msrb.mxu1 %v10400_v2  ;;  %v10384_v2 = vor.u32 %v13147_v4, %v10383_v33  ;;  %v13143_v33 = vld [vmem:[%s20996_s3 + $0x6ac] sm:$0xf0] }
 0x429   : > { %v3543_v52 = vpop.f32.mrf.mxu1 }
 0x42a   : > { %v3544_v6 = vadd.f32 %v3543_v52, %v15979_v15  ;;  %v13183_v15 = vld [vmem:[%s20996_s3 + $0x7ec] sm:$0xf0]  ;;  %v10404_v52 = vor.u32 %v13149_v21, %v10401_v3  ;;  %v13145_v21 = vld [vmem:[%s20996_s3 + $0x6c4] sm:$0xf]  ;;  %v10385_v3 = vld [vmem:[%s20996_s3 + $0x6d0] sm:$0xf0] }
 0x42b   : > { %v3017_v18 = vpop.f32.mrf.mxu0  ;;  %v10528_v8 = vor.u32 %v13183_v15, %v10527_v35  ;;  %v13179_v15 = vld [vmem:[%s20996_s3 + $0x7cc] sm:$0xf0] }
 0x42c   : > { %3774 = vmatmul.bf16.vlgmr.msra.gmra.mxu1 %v15218_v49  ;;  %3803 = vmatmul.bf16.vlgmr.msra.gmra.mxu3 %v21285_v44  ;;  %v3018_v58 = vadd.f32 %v3017_v18, %v2988_v46  ;;  %v10511_v46 = vld [vmem:[%s20996_s3 + $0x7c0] sm:$0xf] }
 0x42d   : > { %3861 = vmatmul.bf16.vlgmr.msra.gmra.mxu2 %v15218_v49  ;;  %4505 = vmatpush.bf16.msrb.mxu3 %v10528_v8 }
 0x42e   : > { %4563 = vmatpush.bf16.msrb.mxu2 %v10404_v52  ;;  %v16644_v18 = vadd.f32 %v3046_v53, %v3018_v58  ;;  %v10388_v58 = vor.u32 %v13145_v21, %v10385_v3  ;;  %4477 = vmatpush.bf16.msrb.mxu1 %v10384_v2  ;;  %v10369_v2 = vld [vmem:[%s20996_s3 + $0x6b0] sm:$0xf0] }
 0x42f   : > { %v3572_v44 = vpop.f32.mrf.mxu3 }
 0x430   : > { %v16646_v49 = vadd.f32 %v3572_v44, %v3544_v6  ;;  %v3630_v35 = vpop.f32.mrf.mxu2  ;;  %v10512_v6 = vor.u32 %v13179_v15, %v10511_v46  ;;  %v10367_v44 = vld [vmem:[%s20996_s3 + $0x6a0] sm:$0xf] }
 0x431   : > { %v16658_v8 = vadd.f32 %v3630_v35, %v16111_v43  ;;  %v3545_v53 = vpop.f32.mrf.mxu1  ;;  %v10495_v43 = vld [vmem:[%s20996_s3 + $0x7a0] sm:$0xf]  ;;  %v10368_v46 = vor.u32 %v13143_v33, %v10367_v44  ;;  %v13141_v35 = vld [vmem:[%s20996_s3 + $0x6a4] sm:$0xf] }
 0x432   : > { %v3546_v52 = vadd.f32 %v3545_v53, %v16017_v25  ;;  %4506 = vmatpush.bf16.msrb.mxu3 %v10512_v6  ;;  %4564 = vmatpush.bf16.msrb.mxu2 %v10388_v58  ;;  %v13175_v25 = vld [vmem:[%s20996_s3 + $0x7ac] sm:$0xf0]  ;;  %v10372_v3 = vor.u32 %v13141_v35, %v10369_v2  ;;  %v10351_v6 = vld [vmem:[%s20996_s3 + $0x680] sm:$0xf]  ;;  %v10353_v35 = vld [vmem:[%s20996_s3 + $0x690] sm:$0xf0] }
 0x433   : > { %v3020_v4 = vpop.f32.mrf.mxu0  ;;  %v10496_v21 = vor.u32 %v13175_v25, %v10495_v43  ;;  %4478 = vmatpush.bf16.msrb.mxu1 %v10368_v46  ;;  %v13139_v58 = vld [vmem:[%s20996_s3 + $0x68c] sm:$0xf0]  ;;  %v10479_v44 = vld [vmem:[%s20996_s3 + $0x780] sm:$0xf]  ;;  %v13137_v25 = vld [vmem:[%s20996_s3 + $0x684] sm:$0xf] }
 0x434   : > { %v3021_v15 = vadd.f32 %v3020_v4, %v16591_v47  ;;  %v10352_v4 = vor.u32 %v13139_v58, %v10351_v6  ;;  %v13171_v46 = vld [vmem:[%s20996_s3 + $0x78c] sm:$0xf0] }
 0x435   : > { %v10480_v2 = vor.u32 %v13171_v46, %v10479_v44  ;;  %v13167_v58 = vld [vmem:[%s20996_s3 + $0x76c] sm:$0xf0]  ;;  %v13133_v44 = vld [vmem:[%s20996_s3 + $0x664] sm:$0xf] }
 0x436   : > { %3731 = vmatmul.bf16.gmra.mxu0 %v15421_v48  ;;  %4507 = vmatpush.bf16.msrb.mxu3 %v10496_v21  ;;  %v16691_v47 = vadd.f32 %v16595_v31, %v3021_v15  ;;  %v10356_v21 = vor.u32 %v13137_v25, %v10353_v35 }
 0x437   : > { %v3574_v53 = vpop.f32.mrf.mxu3  ;;  %4565 = vmatpush.bf16.msrb.mxu2 %v10372_v3  ;;  %4479 = vmatpush.bf16.msrb.mxu1 %v10352_v4  ;;  %v10335_v3 = vld [vmem:[%s20996_s3 + $0x660] sm:$0xf] }
 0x438   : > { %v16693_v33 = vadd.f32 %v3574_v53, %v3546_v52  ;;  %v3632_v43 = vpop.f32.mrf.mxu2  ;;  %v13135_v53 = vld [vmem:[%s20996_s3 + $0x66c] sm:$0xf0] }
 0x439   : > { %v16705_v31 = vadd.f32 %v3632_v43, %v16155_v11  ;;  %v3548_v52 = vpop.f32.mrf.mxu1  ;;  %v10463_v11 = vld [vmem:[%s20996_s3 + $0x760] sm:$0xf]  ;;  %v10337_v43 = vld [vmem:[%s20996_s3 + $0x670] sm:$0xf0] }
 0x43a   : > { %v3549_v15 = vadd.f32 %v3548_v52, %v16035_v7  ;;  %4508 = vmatpush.bf16.msrb.mxu3 %v10480_v2  ;;  %v10336_v7 = vor.u32 %v13135_v53, %v10335_v3  ;;  %v10464_v46 = vor.u32 %v13167_v58, %v10463_v11  ;;  %v10340_v25 = vor.u32 %v13133_v44, %v10337_v43  ;;  %v10319_v52 = vld [vmem:[%s20996_s3 + $0x640] sm:$0xf]  ;;  %v13131_v2 = vld [vmem:[%s20996_s3 + $0x64c] sm:$0xf0]  ;;  %v10321_v58 = vld [vmem:[%s20996_s3 + $0x650] sm:$0xf0] }
 0x43b   : > { %v3022_v6 = vpop.f32.mrf.mxu0  ;;  %4566 = vmatpush.bf16.msrb.mxu2 %v10356_v21  ;;  %v10320_v11 = vor.u32 %v13131_v2, %v10319_v52 }
 0x43c   : > { %3779 = vmatmul.bf16.gmra.mxu1 %v15278_v61  ;;  %3808 = vmatmul.bf16.gmra.mxu3 %v15192_v20  ;;  %v3023_v4 = vadd.f32 %v3022_v6, %v16606_v14  ;;  %v10447_v14 = vld [vmem:[%s20996_s3 + $0x740] sm:$0xf]  ;;  %v13163_v6 = vld [vmem:[%s20996_s3 + $0x74c] sm:$0xf0] }
 0x43d   : > { %3866 = vmatmul.bf16.gmra.mxu2 %v15278_v61  ;;  %4480 = vmatpush.bf16.msrb.mxu1 %v10336_v7  ;;  %v13129_v7 = vld [vmem:[%s20996_s3 + $0x644] sm:$0xf] }
 0x43e   : > { %4509 = vmatpush.bf16.msrb.mxu3 %v10464_v46  ;;  %v16740_v3 = vadd.f32 %v16611_v42, %v3023_v4  ;;  %v10324_v4 = vor.u32 %v13129_v7, %v10321_v58  ;;  %v10303_v46 = vld [vmem:[%s20996_s3 + $0x620] sm:$0xf]  ;;  %v13215_v58 = vld [vmem:[%s20996_s3 + $0x8ec] sm:$0xf0] }
 0x43f   : > { %v3577_v35 = vpop.f32.mrf.mxu3  ;;  %4567 = vmatpush.bf16.msrb.mxu2 %v10340_v25  ;;  %v13125_v25 = vld [vmem:[%s20996_s3 + $0x624] sm:$0xf]  ;;  %v10655_v7 = vld [vmem:[%s20996_s3 + $0x8e0] sm:$0xf] }
 0x440   : > { %v16742_v21 = vadd.f32 %v3577_v35, %v3549_v15  ;;  %v3635_v53 = vpop.f32.mrf.mxu2  ;;  %v10448_v15 = vor.u32 %v13163_v6, %v10447_v14  ;;  %v13127_v35 = vld [vmem:[%s20996_s3 + $0x62c] sm:$0xf0]  ;;  %v10305_v14 = vld [vmem:[%s20996_s3 + $0x630] sm:$0xf0] }
 0x441   : > { %v16754_v44 = vadd.f32 %v3635_v53, %v16202_v26  ;;  %v3550_v42 = vpop.f32.mrf.mxu1  ;;  %4481 = vmatpush.bf16.msrb.mxu1 %v10320_v11  ;;  %v10431_v26 = vld [vmem:[%s20996_s3 + $0x720] sm:$0xf]  ;;  %v10304_v2 = vor.u32 %v13127_v35, %v10303_v46  ;;  %v10308_v6 = vor.u32 %v13125_v25, %v10305_v14 }
 0x442   : > { %v3551_v43 = vadd.f32 %v3550_v42, %v16054_v57  ;;  %4510 = vmatpush.bf16.msrb.mxu3 %v10448_v15  ;;  %v13159_v57 = vld [vmem:[%s20996_s3 + $0x72c] sm:$0xf0]  ;;  %v10656_v15 = vor.u32 %v13215_v58, %v10655_v7  ;;  %v10415_v46 = vld [vmem:[%s20996_s3 + $0x700] sm:$0xf] }
 0x443   : > { %v3601_v52 = vpop.f32.mrf.mxu0  ;;  %v10432_v11 = vor.u32 %v13159_v57, %v10431_v26  ;;  %4568 = vmatpush.bf16.msrb.mxu2 %v10324_v4  ;;  %v13123_v4 = vld [vmem:[%s20996_s3 + $0x60c] sm:$0xf0]  ;;  %v10289_v57 = vld [vmem:[%s20996_s3 + $0x610] sm:$0xf0]  ;;  %v10639_v58 = vld [vmem:[%s20996_s3 + $0x8c0] sm:$0xf] }
 0x444   : > { %v16776_v53 = vadd.f32 %v3601_v52, %v16646_v49  ;;  %v10287_v49 = vld [vmem:[%s20996_s3 + $0x600] sm:$0xf]  ;;  %4534 = vmatpush.bf16.msrb.mxu0 %v10656_v15  ;;  %v13207_v15 = vld [vmem:[%s20996_s3 + $0x8ac] sm:$0xf0] }
 0x445   : > { %4482 = vmatpush.bf16.msrb.mxu1 %v10304_v2  ;;  %v10288_v52 = vor.u32 %v13123_v4, %v10287_v49  ;;  %v13121_v2 = vld [vmem:[%s20996_s3 + $0x604] sm:$0xf] }
 0x446   : > { %3832 = vmatmul.bf16.vlgmr.msra.gmra.mxu0 %v21286_v30  ;;  %4511 = vmatpush.bf16.msrb.mxu3 %v10432_v11  ;;  %v13155_v30 = vld [vmem:[%s20996_s3 + $0x70c] sm:$0xf0]  ;;  %v10292_v7 = vor.u32 %v13121_v2, %v10289_v57 }
 0x447   : > { %v3579_v42 = vpop.f32.mrf.mxu3  ;;  %4569 = vmatpush.bf16.msrb.mxu2 %v10308_v6  ;;  %v10623_v6 = vld [vmem:[%s20996_s3 + $0x8a0] sm:$0xf]  ;;  %v13203_v2 = vld [vmem:[%s20996_s3 + $0x88c] sm:$0xf0] }
 0x448   : > { %v3580_v35 = vadd.f32 %v3579_v42, %v3551_v43  ;;  %v3637_v26 = vpop.f32.mrf.mxu2  ;;  %v10416_v43 = vor.u32 %v13155_v30, %v10415_v46  ;;  %v13211_v42 = vld [vmem:[%s20996_s3 + $0x8cc] sm:$0xf0]  ;;  %v10624_v46 = vor.u32 %v13207_v15, %v10623_v6  ;;  %v10607_v30 = vld [vmem:[%s20996_s3 + $0x880] sm:$0xf] }
 0x449   : > { %v16804_v25 = vadd.f32 %v3637_v26, %v16253_v32  ;;  %v3553_v14 = vpop.f32.mrf.mxu1  ;;  %4483 = vmatpush.bf16.msrb.mxu1 %v10288_v52  ;;  %v10640_v49 = vor.u32 %v13211_v42, %v10639_v58  ;;  %v10608_v57 = vor.u32 %v13203_v2, %v10607_v30  ;;  %v10575_v6 = vld [vmem:[%s20996_s3 + $0x840] sm:$0xf]  ;;  %v13195_v15 = vld [vmem:[%s20996_s3 + $0x84c] sm:$0xf0] }
 0x44a   : > { %v3554_v11 = vadd.f32 %v3553_v14, %v16071_v62  ;;  %4512 = vmatpush.bf16.msrb.mxu3 %v10416_v43 }
 0x44b   : > { %v3603_v32 = vpop.f32.mrf.mxu0  ;;  %4535 = vmatpush.bf16.msrb.mxu0 %v10640_v49  ;;  %4570 = vmatpush.bf16.msrb.mxu2 %v10292_v7 }
 0x44c   : > { %3784 = vmatmul.bf16.gmra.mxu1 %v15517_v29  ;;  %3813 = vmatmul.bf16.gmra.mxu3 %v15292_v63  ;;  %v16816_v62 = vadd.f32 %v3603_v32, %v16693_v33 }
 0x44d   : > { %3871 = vmatmul.bf16.gmra.mxu2 %v15517_v29 }
 0x44f   : > { %v3582_v4 = vpop.f32.mrf.mxu3  ;;  %4536 = vmatpush.bf16.msrb.mxu0 %v10624_v46 }
 0x450   : > { %v3583_v26 = vadd.f32 %v3582_v4, %v3554_v11  ;;  %v3640_v52 = vpop.f32.mrf.mxu2  ;;  %v10576_v4 = vor.u32 %v13195_v15, %v10575_v6 }
 0x451   : > { %v16826_v63 = vadd.f32 %v3640_v52, %v16283_v9  ;;  %v3555_v33 = vpop.f32.mrf.mxu1  ;;  %v10591_v9 = vld [vmem:[%s20996_s3 + $0x860] sm:$0xf]  ;;  %v13191_v52 = vld [vmem:[%s20996_s3 + $0x82c] sm:$0xf0] }
 0x452   : > { %v3556_v29 = vadd.f32 %v3555_v33, %v16099_v59  ;;  %v13199_v59 = vld [vmem:[%s20996_s3 + $0x86c] sm:$0xf0] }
 0x453   : > { %v3606_v14 = vpop.f32.mrf.mxu0  ;;  %4537 = vmatpush.bf16.msrb.mxu0 %v10608_v57  ;;  %v10592_v7 = vor.u32 %v13199_v59, %v10591_v9  ;;  %v10543_v9 = vld [vmem:[%s20996_s3 + $0x800] sm:$0xf]  ;;  %v13187_v59 = vld [vmem:[%s20996_s3 + $0x80c] sm:$0xf0] }
 0x454   : > { %v16836_v43 = vadd.f32 %v3606_v14, %v16742_v21 }
 0x456   : > { %3837 = vmatmul.bf16.gmra.mxu0 %v15194_v36 }
 0x457   : > { %v3584_v11 = vpop.f32.mrf.mxu3  ;;  %4538 = vmatpush.bf16.msrb.mxu0 %v10592_v7 }
 0x458   : > { %v3585_v58 = vadd.f32 %v3584_v11, %v3556_v29  ;;  %v3642_v42 = vpop.f32.mrf.mxu2  ;;  %v10544_v11 = vor.u32 %v13187_v59, %v10543_v9  ;;  %v10513_v9 = vld [vmem:[%s20996_s3 + $0x7d0] sm:$0xf0] }
 0x459   : > { %v16846_v49 = vadd.f32 %v3642_v42, %v16302_v45  ;;  %v3558_v21 = vpop.f32.mrf.mxu1 }
 0x45a   : > { %v3559_v32 = vadd.f32 %v3558_v21, %v16143_v27  ;;  %v10559_v27 = vld [vmem:[%s20996_s3 + $0x820] sm:$0xf] }
 0x45b   : > { %v3608_v46 = vpop.f32.mrf.mxu0  ;;  %4539 = vmatpush.bf16.msrb.mxu0 %v10576_v4  ;;  %v10560_v29 = vor.u32 %v13191_v52, %v10559_v27  ;;  %v13181_v4 = vld [vmem:[%s20996_s3 + $0x7e4] sm:$0xf]  ;;  %v10535_v27 = vld [vmem:[%s20996_s3 + $0x7e8] sm:$0xf]  ;;  %v13184_v52 = vld [vmem:[%s20996_s3 + $0x7f4] sm:$0xf0] }
 0x45c   : > { %3789 = vmatmul.bf16.gmra.mxu1 %v15583_v56  ;;  %3818 = vmatmul.bf16.gmra.mxu3 %v15421_v48  ;;  %v16857_v45 = vadd.f32 %v3608_v46, %v3580_v35  ;;  %v13196_v48 = vld [vmem:[%s20996_s3 + $0x854] sm:$0xf0] }
 0x45d   : > { %3876 = vmatmul.bf16.gmra.mxu2 %v15583_v56  ;;  %v21294_v56 = vld [vmem:[#allocation8_spill] sm:$0xff] }
 0x45f   : > { %v3587_v33 = vpop.f32.mrf.mxu3  ;;  %4540 = vmatpush.bf16.msrb.mxu0 %v10560_v29 }
 0x460   : > { %v3588_v30 = vadd.f32 %v3587_v33, %v3559_v32  ;;  %v3645_v2 = vpop.f32.mrf.mxu2 }
 0x461   : > { %v16867_v57 = vadd.f32 %v3645_v2, %v16322_v22  ;;  %v3560_v35 = vpop.f32.mrf.mxu1  ;;  %v10536_v2 = vor.u32 %v13184_v52, %v10535_v27 }
 0x462   : > { %v3561_v14 = vadd.f32 %v3560_v35, %v16190_v34 }
 0x463   : > { %v3611_v7 = vpop.f32.mrf.mxu0  ;;  %4541 = vmatpush.bf16.msrb.mxu0 %v10544_v11  ;;  %4679 = vmatpush.bf16.msra.mxu2 %v10536_v2  ;;  %v13176_v2 = vld [vmem:[%s20996_s3 + $0x7b4] sm:$0xf0] }
 0x464   : > { %v16876_v42 = vadd.f32 %v3611_v7, %v3583_v26  ;;  %v10529_v26 = vld [vmem:[%s20996_s3 + $0x7f0] sm:$0xf0] }
 0x466   : > { %3842 = vmatmul.bf16.gmra.mxu0 %v15294_v41  ;;  %v13213_v41 = vld [vmem:[%s20996_s3 + $0x8e4] sm:$0xf] }
 0x467   : > { %v3589_v21 = vpop.f32.mrf.mxu3 }
 0x468   : > { %v16879_v22 = vadd.f32 %v3589_v21, %v3561_v14  ;;  %v3647_v32 = vpop.f32.mrf.mxu2  ;;  %v13177_v14 = vld [vmem:[%s20996_s3 + $0x7c4] sm:$0xf]  ;;  %v10641_v21 = vld [vmem:[%s20996_s3 + $0x8d0] sm:$0xf0] }
 0x469   : > { %v16882_v34 = vadd.f32 %v3647_v32, %v16334_v51  ;;  %v3659_v6 = vpop.f32.mrf.mxu1  ;;  %v10532_v51 = vor.u32 %v13181_v4, %v10529_v26  ;;  %v10516_v7 = vor.u32 %v13177_v14, %v10513_v9  ;;  %v10519_v32 = vld [vmem:[%s20996_s3 + $0x7c8] sm:$0xf] }
 0x46a   : > { %v3660_v15 = vadd.f32 %v3659_v6, %v16658_v8  ;;  %v10657_v8 = vld [vmem:[%s20996_s3 + $0x8f0] sm:$0xf0]  ;;  %v13180_v6 = vld [vmem:[%s20996_s3 + $0x7d4] sm:$0xf0] }
 0x46b   : > { %v3613_v46 = vpop.f32.mrf.mxu0  ;;  %v10660_v29 = vor.u32 %v13213_v41, %v10657_v8  ;;  %4592 = vmatpush.bf16.msra.mxu1 %v10532_v51  ;;  %v10520_v41 = vor.u32 %v13180_v6, %v10519_v32  ;;  %v10497_v51 = vld [vmem:[%s20996_s3 + $0x7b0] sm:$0xf0]  ;;  %v13205_v8 = vld [vmem:[%s20996_s3 + $0x8a4] sm:$0xf] }
 0x46c   : > { %4484 = vmatmul.bf16.vlgmr.msrb.gmra.mxu1 %v15139_v19  ;;  %4513 = vmatmul.bf16.vlgmr.msrb.gmra.mxu3 %v15141_v38  ;;  %v16905_v33 = vadd.f32 %v3613_v46, %v3585_v58  ;;  %v13209_v58 = vld [vmem:[%s20996_s3 + $0x8c4] sm:$0xf] }
 0x46d   : > { %4571 = vmatmul.bf16.vlgmr.msrb.gmra.mxu2 %v15139_v19  ;;  %4621 = vmatpush.bf16.msra.mxu3 %v10660_v29  ;;  %v10644_v26 = vor.u32 %v13209_v58, %v10641_v21  ;;  %v13173_v46 = vld [vmem:[%s20996_s3 + $0x7a4] sm:$0xf]  ;;  %v10503_v29 = vld [vmem:[%s20996_s3 + $0x7a8] sm:$0xf]  ;;  %v10481_v21 = vld [vmem:[%s20996_s3 + $0x790] sm:$0xf0] }
 0x46e   : > { %4680 = vmatpush.bf16.msra.mxu2 %v10520_v41  ;;  %v10500_v52 = vor.u32 %v13173_v46, %v10497_v51  ;;  %v10504_v9 = vor.u32 %v13176_v2, %v10503_v29  ;;  %v10487_v41 = vld [vmem:[%s20996_s3 + $0x788] sm:$0xf]  ;;  %v13172_v46 = vld [vmem:[%s20996_s3 + $0x794] sm:$0xf0]  ;;  %v13197_v29 = vld [vmem:[%s20996_s3 + $0x864] sm:$0xf] }
 0x46f   : > { %v3688_v35 = vpop.f32.mrf.mxu3  ;;  %4593 = vmatpush.bf16.msra.mxu1 %v10516_v7  ;;  %v13169_v7 = vld [vmem:[%s20996_s3 + $0x784] sm:$0xf] }
 0x470   : > { %v16917_v59 = vadd.f32 %v3688_v35, %v3660_v15  ;;  %v16919_v11 = vpop.f32.mrf.mxu2 }
 0x471   : > { %v3661_v4 = vpop.f32.mrf.mxu1  ;;  %4622 = vmatpush.bf16.msra.mxu3 %v10644_v26  ;;  %v10609_v26 = vld [vmem:[%s20996_s3 + $0x890] sm:$0xf0] }
 0x472   : > { %v3662_v15 = vadd.f32 %v3661_v4, %v16705_v31  ;;  %v10625_v31 = vld [vmem:[%s20996_s3 + $0x8b0] sm:$0xf0]  ;;  %4681 = vmatpush.bf16.msra.mxu2 %v10504_v9  ;;  %v10484_v4 = vor.u32 %v13169_v7, %v10481_v21  ;;  %v10471_v9 = vld [vmem:[%s20996_s3 + $0x768] sm:$0xf] }
 0x473   : > { %v3616_v27 = vpop.f32.mrf.mxu0  ;;  %v10628_v14 = vor.u32 %v13205_v8, %v10625_v31  ;;  %4594 = vmatpush.bf16.msra.mxu1 %v10500_v52  ;;  %v13165_v52 = vld [vmem:[%s20996_s3 + $0x764] sm:$0xf]  ;;  %v10465_v31 = vld [vmem:[%s20996_s3 + $0x770] sm:$0xf0] }
 0x474   : > { %v16949_v35 = vadd.f32 %v3616_v27, %v3588_v30  ;;  %v13201_v30 = vld [vmem:[%s20996_s3 + $0x884] sm:$0xf]  ;;  %v10488_v27 = vor.u32 %v13172_v46, %v10487_v41  ;;  %v10449_v41 = vld [vmem:[%s20996_s3 + $0x750] sm:$0xf0] }
 0x475   : > { %4623 = vmatpush.bf16.msra.mxu3 %v10628_v14  ;;  %v10612_v8 = vor.u32 %v13201_v30, %v10609_v26  ;;  %v10593_v14 = vld [vmem:[%s20996_s3 + $0x870] sm:$0xf0]  ;;  %v13161_v26 = vld [vmem:[%s20996_s3 + $0x744] sm:$0xf] }
 0x476   : > { %3847 = vmatmul.bf16.gmra.mxu0 %v15423_v10  ;;  %v10596_v21 = vor.u32 %v13197_v29, %v10593_v14  ;;  %4682 = vmatpush.bf16.msra.mxu2 %v10488_v27  ;;  %v10577_v27 = vld [vmem:[%s20996_s3 + $0x850] sm:$0xf0]  ;;  %v13157_v14 = vld [vmem:[%s20996_s3 + $0x724] sm:$0xf]  ;;  %v13204_v10 = vld [vmem:[%s20996_s3 + $0x894] sm:$0xf0] }
 0x477   : > { %v3690_v58 = vpop.f32.mrf.mxu3  ;;  %4595 = vmatpush.bf16.msra.mxu1 %v10484_v4 }
 0x478   : > { %v16961_v32 = vadd.f32 %v3690_v58, %v3662_v15  ;;  %v16963_v6 = vpop.f32.mrf.mxu2  ;;  %v13168_v58 = vld [vmem:[%s20996_s3 + $0x774] sm:$0xf0] }
 0x479   : > { %v3664_v51 = vpop.f32.mrf.mxu1  ;;  %4624 = vmatpush.bf16.msra.mxu3 %v10612_v8  ;;  %v10472_v30 = vor.u32 %v13168_v58, %v10471_v9  ;;  %v10452_v8 = vor.u32 %v13161_v26, %v10449_v41  ;;  %v10433_v9 = vld [vmem:[%s20996_s3 + $0x730] sm:$0xf0]  ;;  %v13189_v58 = vld [vmem:[%s20996_s3 + $0x824] sm:$0xf]  ;;  %v13160_v26 = vld [vmem:[%s20996_s3 + $0x734] sm:$0xf0] }
 0x47a   : > { %v3665_v15 = vadd.f32 %v3664_v51, %v16754_v44  ;;  %v10468_v44 = vor.u32 %v13165_v52, %v10465_v31  ;;  %v10455_v52 = vld [vmem:[%s20996_s3 + $0x748] sm:$0xf]  ;;  %v13164_v31 = vld [vmem:[%s20996_s3 + $0x754] sm:$0xf0] }
 0x47b   : > { %v3618_v2 = vpop.f32.mrf.mxu0  ;;  %4683 = vmatpush.bf16.msra.mxu2 %v10472_v30  ;;  %v10439_v30 = vld [vmem:[%s20996_s3 + $0x728] sm:$0xf] }
 0x47c   : > { %4489 = vmatmul.bf16.gmra.mxu1 %v15209_v0  ;;  %4518 = vmatmul.bf16.gmra.mxu3 %v15211_v17  ;;  %v16996_v7 = vadd.f32 %v3618_v2, %v16879_v22  ;;  %v13193_v22 = vld [vmem:[%s20996_s3 + $0x844] sm:$0xf] }
 0x47d   : > { %4576 = vmatmul.bf16.gmra.mxu2 %v15209_v0  ;;  %4596 = vmatpush.bf16.msra.mxu1 %v10468_v44  ;;  %v10580_v2 = vor.u32 %v13193_v22, %v10577_v27  ;;  %v10456_v44 = vor.u32 %v13164_v31, %v10455_v52  ;;  %v10407_v27 = vld [vmem:[%s20996_s3 + $0x6e8] sm:$0xf]  ;;  %v13152_v52 = vld [vmem:[%s20996_s3 + $0x6f4] sm:$0xf0] }
 0x47e   : > { %4625 = vmatpush.bf16.msra.mxu3 %v10596_v21 }
 0x47f   : > { %v3693_v4 = vpop.f32.mrf.mxu3  ;;  %4684 = vmatpush.bf16.msra.mxu2 %v10456_v44  ;;  %v10417_v44 = vld [vmem:[%s20996_s3 + $0x710] sm:$0xf0] }
 0x480   : > { %v17008_v46 = vadd.f32 %v3693_v4, %v3665_v15  ;;  %v17010_v51 = vpop.f32.mrf.mxu2  ;;  %v10436_v4 = vor.u32 %v13157_v14, %v10433_v9  ;;  %v13185_v14 = vld [vmem:[%s20996_s3 + $0x804] sm:$0xf] }
 0x481   : > { %v3666_v29 = vpop.f32.mrf.mxu1  ;;  %4597 = vmatpush.bf16.msra.mxu1 %v10452_v8  ;;  %v10440_v8 = vor.u32 %v13160_v26, %v10439_v30 }
 0x482   : > { %v3667_v15 = vadd.f32 %v3666_v29, %v16804_v25  ;;  %4626 = vmatpush.bf16.msra.mxu3 %v10580_v2  ;;  %v10561_v25 = vld [vmem:[%s20996_s3 + $0x830] sm:$0xf0]  ;;  %v10408_v29 = vor.u32 %v13152_v52, %v10407_v27  ;;  %v13148_v27 = vld [vmem:[%s20996_s3 + $0x6d4] sm:$0xf0] }
 0x483   : > { %v3717_v21 = vpop.f32.mrf.mxu0  ;;  %v10564_v22 = vor.u32 %v13189_v58, %v10561_v25  ;;  %v13156_v25 = vld [vmem:[%s20996_s3 + $0x714] sm:$0xf0]  ;;  %4685 = vmatpush.bf16.msra.mxu2 %v10440_v8  ;;  %v10375_v8 = vld [vmem:[%s20996_s3 + $0x6a8] sm:$0xf] }
 0x484   : > { %v3718_v41 = vadd.f32 %v3717_v21, %v16339_v55  ;;  %v13153_v55 = vld [vmem:[%s20996_s3 + $0x704] sm:$0xf]  ;;  %4650 = vmatpush.bf16.msra.mxu0 %v10408_v29  ;;  %v13144_v29 = vld [vmem:[%s20996_s3 + $0x6b4] sm:$0xf0] }
 0x485   : > { %4598 = vmatpush.bf16.msra.mxu1 %v10436_v4  ;;  %v10420_v21 = vor.u32 %v13153_v55, %v10417_v44  ;;  %v10423_v4 = vld [vmem:[%s20996_s3 + $0x708] sm:$0xf]  ;;  %v10376_v44 = vor.u32 %v13144_v29, %v10375_v8 }
 0x486   : > { %4542 = vmatmul.bf16.vlgmr.msrb.gmra.mxu0 %v15250_v24  ;;  %4627 = vmatpush.bf16.msra.mxu3 %v10564_v22  ;;  %v17049_v2 = vadd.f32 %v16919_v11, %v3718_v41  ;;  %v10545_v11 = vld [vmem:[%s20996_s3 + $0x810] sm:$0xf0]  ;;  %v10424_v41 = vor.u32 %v13156_v25, %v10423_v4  ;;  %v10391_v22 = vld [vmem:[%s20996_s3 + $0x6c8] sm:$0xf] }
 0x487   : > { %v3695_v31 = vpop.f32.mrf.mxu3  ;;  %v10548_v26 = vor.u32 %v13185_v14, %v10545_v11  ;;  %v10392_v52 = vor.u32 %v13148_v27, %v10391_v22  ;;  %v10359_v25 = vld [vmem:[%s20996_s3 + $0x688] sm:$0xf] }
 0x488   : > { %v17060_v9 = vadd.f32 %v3695_v31, %v3667_v15  ;;  %v17062_v58 = vpop.f32.mrf.mxu2  ;;  %4686 = vmatpush.bf16.msra.mxu2 %v10424_v41  ;;  %v10327_v29 = vld [vmem:[%s20996_s3 + $0x648] sm:$0xf] }
 0x489   : > { %v3669_v30 = vpop.f32.mrf.mxu1  ;;  %4599 = vmatpush.bf16.msra.mxu1 %v10420_v21  ;;  %4651 = vmatpush.bf16.msra.mxu0 %v10392_v52 }
 0x48a   : > { %v3670_v15 = vadd.f32 %v3669_v30, %v16826_v63  ;;  %4628 = vmatpush.bf16.msra.mxu3 %v10548_v26  ;;  %v13140_v30 = vld [vmem:[%s20996_s3 + $0x694] sm:$0xf0] }
 0x48b   : > { %v3719_v31 = vpop.f32.mrf.mxu0  ;;  %v10360_v26 = vor.u32 %v13140_v30, %v10359_v25  ;;  %v21289_v25 = vld [vmem:[#allocation19_spill] sm:$0xff] }
 0x48c   : > { %4494 = vmatmul.bf16.gmra.mxu1 %v15361_v1  ;;  %4523 = vmatmul.bf16.gmra.mxu3 %v15363_v16  ;;  %v3720_v63 = vadd.f32 %v3719_v31, %v16387_v54 }
 0x48d   : > { %4581 = vmatmul.bf16.gmra.mxu2 %v15361_v1  ;;  %4652 = vmatpush.bf16.msra.mxu0 %v10376_v44 }
 0x48e   : > { %v17091_v14 = vadd.f32 %v16963_v6, %v3720_v63 }
 0x48f   : > { %v3698_v55 = vpop.f32.mrf.mxu3 }
 0x490   : > { %v17093_v21 = vadd.f32 %v3698_v55, %v3670_v15  ;;  %v3756_v54 = vpop.f32.mrf.mxu2  ;;  %v10343_v15 = vld [vmem:[%s20996_s3 + $0x668] sm:$0xf]  ;;  %v13132_v55 = vld [vmem:[%s20996_s3 + $0x654] sm:$0xf0] }
 0x491   : > { %v3671_v11 = vpop.f32.mrf.mxu1  ;;  %4653 = vmatpush.bf16.msra.mxu0 %v10360_v26  ;;  %v10328_v44 = vor.u32 %v13132_v55, %v10327_v29  ;;  %v13128_v26 = vld [vmem:[%s20996_s3 + $0x634] sm:$0xf0]  ;;  %v10295_v29 = vld [vmem:[%s20996_s3 + $0x608] sm:$0xf] }
 0x492   : > { %v3672_v4 = vadd.f32 %v3671_v11, %v16846_v49  ;;  %v13136_v49 = vld [vmem:[%s20996_s3 + $0x674] sm:$0xf0] }
 0x493   : > { %v3722_v41 = vpop.f32.mrf.mxu0  ;;  %v10344_v27 = vor.u32 %v13136_v49, %v10343_v15  ;;  %v13124_v55 = vld [vmem:[%s20996_s3 + $0x614] sm:$0xf0] }
 0x494   : > { %v3723_v6 = vadd.f32 %v3722_v41, %v16433_v50 }
 0x495   : > { %4654 = vmatpush.bf16.msra.mxu0 %v10344_v27 }
 0x496   : > { %4547 = vmatmul.bf16.gmra.mxu0 %v15314_v5  ;;  %v17111_v52 = vadd.f32 %v17010_v51, %v3723_v6  ;;  %v21290_v51 = vld [vmem:[#allocation36_spill] sm:$0xff] }
 0x497   : > { %v3700_v22 = vpop.f32.mrf.mxu3 }
 0x498   : > { %v17113_v31 = vadd.f32 %v3700_v22, %v3672_v4  ;;  %v3758_v63 = vpop.f32.mrf.mxu2  ;;  %v21291_v4 = vld [vmem:[#allocation38_spill] sm:$0xff] }
 0x499   : > { %v3674_v50 = vpop.f32.mrf.mxu1  ;;  %4655 = vmatpush.bf16.msra.mxu0 %v10328_v44  ;;  %v10296_v44 = vor.u32 %v13124_v55, %v10295_v29  ;;  %v13214_v29 = vld [vmem:[%s20996_s3 + $0x8ec] sm:$0xf]  ;;  %v10665_v55 = vld [vmem:[%s20996_s3 + $0x8f8] sm:$0xf0] }
 0x49a   : > { %v3675_v8 = vadd.f32 %v3674_v50, %v16867_v57  ;;  %v10311_v57 = vld [vmem:[%s20996_s3 + $0x628] sm:$0xf] }
 0x49b   : > { %v3724_v11 = vpop.f32.mrf.mxu0  ;;  %v10312_v6 = vor.u32 %v13128_v26, %v10311_v57 }
 0x49c   : > { %4499 = vmatmul.bf16.gmra.mxu1 %v21289_v25  ;;  %4528 = vmatmul.bf16.gmra.mxu3 %v21290_v51  ;;  %v3725_v30 = vadd.f32 %v3724_v11, %v21291_v4  ;;  %v21292_v4 = vld [vmem:[#allocation37_spill] sm:$0xff] }
 0x49d   : > { %4586 = vmatmul.bf16.gmra.mxu2 %v21289_v25  ;;  %4656 = vmatpush.bf16.msra.mxu0 %v10312_v6  ;;  %v10663_v6 = vld [vmem:[%s20996_s3 + $0x8e8] sm:$0xf] }
 0x49e   : > { %v17133_v15 = vadd.f32 %v17062_v58, %v3725_v30 }
 0x49f   : > { %v3703_v41 = vpop.f32.mrf.mxu3 }
 0x4a0   : > { %v17135_v49 = vadd.f32 %v3703_v41, %v3675_v8  ;;  %v17137_v22 = vpop.f32.mrf.mxu2 }
 0x4a1   : > { %v3676_v27 = vpop.f32.mrf.mxu1  ;;  %4657 = vmatpush.bf16.msra.mxu0 %v10296_v44 }
 0x4a2   : > { %v3677_v50 = vadd.f32 %v3676_v27, %v16882_v34 }
 0x4a3   : > { %v3727_v11 = vpop.f32.mrf.mxu0 }
 0x4a4   : > { %v3728_v58 = vadd.f32 %v3727_v11, %v16532_v13  ;;  %v13216_v13 = vld [vmem:[%s20996_s3 + $0x8f4] sm:$0xf0] }
 0x4a6   : > { %4552 = vmatmul.bf16.gmra.mxu0 %v21292_v4  ;;  %v17148_v30 = vadd.f32 %v3756_v54, %v3728_v58  ;;  %v13150_v54 = vld [vmem:[%s20996_s3 + $0x6ec] sm:$0xf]  ;;  %v10668_v58 = vor.u32 %v13214_v29, %v10665_v55  ;;  %v10649_v55 = vld [vmem:[%s20996_s3 + $0x8d8] sm:$0xf0] }
 0x4a7   : > { %v3705_v8 = vpop.f32.mrf.mxu3  ;;  %v13210_v29 = vld [vmem:[%s20996_s3 + $0x8cc] sm:$0xf] }
 0x4a8   : > { %v17150_v57 = vadd.f32 %v3705_v8, %v3677_v50  ;;  %v17152_v34 = vpop.f32.mrf.mxu2  ;;  %v10664_v50 = vor.u32 %v13216_v13, %v10663_v6  ;;  %4795 = vmatpush.bf16.msrb.mxu2 %v10668_v58  ;;  %v10647_v6 = vld [vmem:[%s20996_s3 + $0x8c8] sm:$0xf]  ;;  %v13212_v13 = vld [vmem:[%s20996_s3 + $0x8d4] sm:$0xf0]  ;;  %v10652_v58 = vor.u32 %v13210_v29, %v10649_v55  ;;  %v10633_v29 = vld [vmem:[%s20996_s3 + $0x8b8] sm:$0xf0] }
 0x4a9   : > { %v3775_v26 = vpop.f32.mrf.mxu1 }
 0x4aa   : > { %v17155_v41 = vadd.f32 %v3775_v26, %v17049_v2  ;;  %v10409_v2 = vld [vmem:[%s20996_s3 + $0x6f8] sm:$0xf0]  ;;  %4708 = vmatpush.bf16.msrb.mxu1 %v10664_v50 }
 0x4ab   : > { %v3729_v27 = vpop.f32.mrf.mxu0  ;;  %v10412_v11 = vor.u32 %v13150_v54, %v10409_v2  ;;  %v21293_v54 = vld [vmem:[#allocation55_spill] sm:$0xff]  ;;  %v10648_v2 = vor.u32 %v13212_v13, %v10647_v6  ;;  %v13208_v13 = vld [vmem:[%s20996_s3 + $0x8b4] sm:$0xf0] }
 0x4ac   : > { %4600 = vmatmul.bf16.vlgmr.msra.gmra.mxu1 %v15141_v38  ;;  %4629 = vmatmul.bf16.vlgmr.msra.gmra.mxu3 %v15250_v24  ;;  %v3730_v44 = vadd.f32 %v3729_v27, %v16554_v23  ;;  %v13146_v23 = vld [vmem:[%s20996_s3 + $0x6cc] sm:$0xf]  ;;  %v10631_v6 = vld [vmem:[%s20996_s3 + $0x8a8] sm:$0xf] }
 0x4ad   : > { %4687 = vmatmul.bf16.vlgmr.msra.gmra.mxu2 %v15141_v38  ;;  %4737 = vmatpush.bf16.msrb.mxu3 %v10412_v11 }
 0x4ae   : > { %v17179_v26 = vadd.f32 %v3758_v63, %v3730_v44  ;;  %v10393_v63 = vld [vmem:[%s20996_s3 + $0x6d8] sm:$0xf0]  ;;  %4709 = vmatpush.bf16.msrb.mxu1 %v10648_v2  ;;  %4796 = vmatpush.bf16.msrb.mxu2 %v10652_v58  ;;  %v13206_v2 = vld [vmem:[%s20996_s3 + $0x8ac] sm:$0xf] }
 0x4af   : > { %v3804_v8 = vpop.f32.mrf.mxu3  ;;  %v10396_v11 = vor.u32 %v13146_v23, %v10393_v63  ;;  %v10632_v63 = vor.u32 %v13208_v13, %v10631_v6  ;;  %v10615_v13 = vld [vmem:[%s20996_s3 + $0x888] sm:$0xf] }
 0x4b0   : > { %v17191_v27 = vadd.f32 %v3804_v8, %v21293_v54  ;;  %v17193_v50 = vpop.f32.mrf.mxu2  ;;  %v13142_v54 = vld [vmem:[%s20996_s3 + $0x6ac] sm:$0xf] }
 0x4b1   : > { %v3777_v44 = vpop.f32.mrf.mxu1  ;;  %4738 = vmatpush.bf16.msrb.mxu3 %v10396_v11  ;;  %v10636_v11 = vor.u32 %v13206_v2, %v10633_v29  ;;  %v10617_v2 = vld [vmem:[%s20996_s3 + $0x898] sm:$0xf0] }
 0x4b2   : > { %v17205_v8 = vadd.f32 %v3777_v44, %v17091_v14  ;;  %v10377_v14 = vld [vmem:[%s20996_s3 + $0x6b8] sm:$0xf0]  ;;  %4710 = vmatpush.bf16.msrb.mxu1 %v10632_v63 }
 0x4b3   : > { %v3732_v23 = vpop.f32.mrf.mxu0  ;;  %v10380_v44 = vor.u32 %v13142_v54, %v10377_v14  ;;  %4797 = vmatpush.bf16.msrb.mxu2 %v10636_v11  ;;  %v10361_v63 = vld [vmem:[%s20996_s3 + $0x698] sm:$0xf0]  ;;  %v13202_v14 = vld [vmem:[%s20996_s3 + $0x88c] sm:$0xf]  ;;  %v13200_v11 = vld [vmem:[%s20996_s3 + $0x874] sm:$0xf0] }
 0x4b4   : > { %v3733_v55 = vadd.f32 %v3732_v23, %v16574_v39  ;;  %v13138_v39 = vld [vmem:[%s20996_s3 + $0x68c] sm:$0xf] }
 0x4b5   : > { %4739 = vmatpush.bf16.msrb.mxu3 %v10380_v44  ;;  %v10620_v44 = vor.u32 %v13202_v14, %v10617_v2 }
 0x4b6   : > { %4557 = vmatmul.bf16.gmra.mxu0 %v21294_v56  ;;  %v17228_v6 = vadd.f32 %v17137_v22, %v3733_v55  ;;  %v10616_v22 = vor.u32 %v13204_v10, %v10615_v13  ;;  %v10364_v55 = vor.u32 %v13138_v39, %v10361_v63  ;;  %v10599_v10 = vld [vmem:[%s20996_s3 + $0x868] sm:$0xf]  ;;  %v10345_v39 = vld [vmem:[%s20996_s3 + $0x678] sm:$0xf0] }
 0x4b7   : > { %v3806_v58 = vpop.f32.mrf.mxu3  ;;  %v10601_v63 = vld [vmem:[%s20996_s3 + $0x878] sm:$0xf0]  ;;  %4798 = vmatpush.bf16.msrb.mxu2 %v10620_v44 }
 0x4b8   : > { %v17240_v54 = vadd.f32 %v3806_v58, %v16551_v28  ;;  %v17242_v23 = vpop.f32.mrf.mxu2  ;;  %4711 = vmatpush.bf16.msrb.mxu1 %v10616_v22  ;;  %v13134_v58 = vld [vmem:[%s20996_s3 + $0x66c] sm:$0xf] }
 0x4b9   : > { %v3780_v29 = vpop.f32.mrf.mxu1  ;;  %4740 = vmatpush.bf16.msrb.mxu3 %v10364_v55  ;;  %v13198_v22 = vld [vmem:[%s20996_s3 + $0x86c] sm:$0xf]  ;;  %v10348_v2 = vor.u32 %v13134_v58, %v10345_v39  ;;  %v10585_v39 = vld [vmem:[%s20996_s3 + $0x858] sm:$0xf0] }
 0x4ba   : > { %v17254_v28 = vadd.f32 %v3780_v29, %v17111_v52  ;;  %v10600_v52 = vor.u32 %v13200_v11, %v10599_v10  ;;  %v10604_v29 = vor.u32 %v13198_v22, %v10601_v63  ;;  %v10583_v11 = vld [vmem:[%s20996_s3 + $0x848] sm:$0xf] }
 0x4bb   : > { %v3734_v13 = vpop.f32.mrf.mxu0 }
 0x4bc   : > { %4605 = vmatmul.bf16.gmra.mxu1 %v15211_v17  ;;  %4634 = vmatmul.bf16.gmra.mxu3 %v15314_v5  ;;  %v3735_v14 = vadd.f32 %v3734_v13, %v16598_v37  ;;  %v13130_v37 = vld [vmem:[%s20996_s3 + $0x64c] sm:$0xf]  ;;  %v10584_v13 = vor.u32 %v13196_v48, %v10583_v11 }
 0x4bd   : > { %4692 = vmatmul.bf16.gmra.mxu2 %v15211_v17  ;;  %4712 = vmatpush.bf16.msrb.mxu1 %v10600_v52  ;;  %v13194_v52 = vld [vmem:[%s20996_s3 + $0x84c] sm:$0xf] }
 0x4be   : > { %4741 = vmatpush.bf16.msrb.mxu3 %v10348_v2  ;;  %v17279_v10 = vadd.f32 %v17152_v34, %v3735_v14  ;;  %v10329_v34 = vld [vmem:[%s20996_s3 + $0x658] sm:$0xf0]  ;;  %4799 = vmatpush.bf16.msrb.mxu2 %v10604_v29  ;;  %v10588_v48 = vor.u32 %v13194_v52, %v10585_v39  ;;  %v10567_v14 = vld [vmem:[%s20996_s3 + $0x828] sm:$0xf]  ;;  %v13192_v2 = vld [vmem:[%s20996_s3 + $0x834] sm:$0xf0] }
 0x4bf   : > { %v3809_v55 = vpop.f32.mrf.mxu3  ;;  %v10332_v63 = vor.u32 %v13130_v37, %v10329_v34  ;;  %v10568_v37 = vor.u32 %v13192_v2, %v10567_v14  ;;  %v13190_v29 = vld [vmem:[%s20996_s3 + $0x82c] sm:$0xf] }
 0x4c0   : > { %v17291_v44 = vadd.f32 %v3809_v55, %v16571_v40  ;;  %v17293_v58 = vpop.f32.mrf.mxu2  ;;  %v13126_v55 = vld [vmem:[%s20996_s3 + $0x62c] sm:$0xf] }
 0x4c1   : > { %v3782_v22 = vpop.f32.mrf.mxu1  ;;  %4713 = vmatpush.bf16.msrb.mxu1 %v10584_v13  ;;  %v10569_v13 = vld [vmem:[%s20996_s3 + $0x838] sm:$0xf0] }
 0x4c2   : > { %v17305_v40 = vadd.f32 %v3782_v22, %v17133_v15  ;;  %4742 = vmatpush.bf16.msrb.mxu3 %v10332_v63  ;;  %v10313_v15 = vld [vmem:[%s20996_s3 + $0x638] sm:$0xf0]  ;;  %4800 = vmatpush.bf16.msrb.mxu2 %v10588_v48  ;;  %v10572_v39 = vor.u32 %v13190_v29, %v10569_v13  ;;  %v13182_v22 = vld [vmem:[%s20996_s3 + $0x7ec] sm:$0xf]  ;;  %v10551_v48 = vld [vmem:[%s20996_s3 + $0x808] sm:$0xf] }
 0x4c3   : > { %v3833_v11 = vpop.f32.mrf.mxu0  ;;  %v10316_v52 = vor.u32 %v13126_v55, %v10313_v15  ;;  %v10537_v63 = vld [vmem:[%s20996_s3 + $0x7f8] sm:$0xf0]  ;;  %v13188_v55 = vld [vmem:[%s20996_s3 + $0x814] sm:$0xf0]  ;;  %v13186_v13 = vld [vmem:[%s20996_s3 + $0x80c] sm:$0xf] }
 0x4c4   : > { %v3834_v34 = vadd.f32 %v3833_v11, %v17191_v27  ;;  %v10540_v27 = vor.u32 %v13182_v22, %v10537_v63  ;;  %v13122_v11 = vld [vmem:[%s20996_s3 + $0x60c] sm:$0xf]  ;;  %v10552_v15 = vor.u32 %v13188_v55, %v10551_v48  ;;  %v10297_v29 = vld [vmem:[%s20996_s3 + $0x618] sm:$0xf0] }
 0x4c5   : > { %4714 = vmatpush.bf16.msrb.mxu1 %v10568_v37  ;;  %v10300_v22 = vor.u32 %v13122_v11, %v10297_v29  ;;  %v10521_v48 = vld [vmem:[%s20996_s3 + $0x7d8] sm:$0xf0] }
 0x4c6   : > { %v17333_v14 = vadd.f32 %v17193_v50, %v3834_v34  ;;  %4658 = vmatmul.bf16.vlgmr.msra.gmra.mxu0 %v15139_v19  ;;  %4743 = vmatpush.bf16.msrb.mxu3 %v10316_v52  ;;  %v10553_v34 = vld [vmem:[%s20996_s3 + $0x818] sm:$0xf0] }
 0x4c7   : > { %v3811_v2 = vpop.f32.mrf.mxu3  ;;  %4766 = vmatpush.bf16.msrb.mxu0 %v10540_v27  ;;  %4801 = vmatpush.bf16.msrb.mxu2 %v10572_v39  ;;  %v13174_v39 = vld [vmem:[%s20996_s3 + $0x7ac] sm:$0xf]  ;;  %v10505_v27 = vld [vmem:[%s20996_s3 + $0x7b8] sm:$0xf0] }
 0x4c8   : > { %21295 = vst [vmem:[#allocation23_spill] sm:$0xff] %v17333_v14  ;;  %v3812_v50 = vadd.f32 %v3811_v2, %v16593_v12  ;;  %v3869_v37 = vpop.f32.mrf.mxu2  ;;  %v10556_v12 = vor.u32 %v13186_v13, %v10553_v34  ;;  %v13178_v2 = vld [vmem:[%s20996_s3 + $0x7cc] sm:$0xf]  ;;  %v10508_v29 = vor.u32 %v13174_v39, %v10505_v27 }
 0x4c9   : > { %v3785_v52 = vpop.f32.mrf.mxu1  ;;  %4715 = vmatpush.bf16.msrb.mxu1 %v10552_v15  ;;  %v10524_v55 = vor.u32 %v13178_v2, %v10521_v48 }
 0x4ca   : > { %v17356_v63 = vadd.f32 %v3785_v52, %v17148_v30  ;;  %4744 = vmatpush.bf16.msrb.mxu3 %v10300_v22  ;;  %v13170_v52 = vld [vmem:[%s20996_s3 + $0x78c] sm:$0xf]  ;;  %v10489_v22 = vld [vmem:[%s20996_s3 + $0x798] sm:$0xf0] }
 0x4cb   : > { %v3835_v14 = vpop.f32.mrf.mxu0  ;;  %4767 = vmatpush.bf16.msrb.mxu0 %v10524_v55  ;;  %4802 = vmatpush.bf16.msrb.mxu2 %v10556_v12 }
 0x4cc   : > { %4610 = vmatmul.bf16.gmra.mxu1 %v15363_v16  ;;  %4639 = vmatmul.bf16.gmra.mxu3 %v21292_v4  ;;  %v3836_v30 = vadd.f32 %v3835_v14, %v17240_v54 }
 0x4cd   : > { %4697 = vmatmul.bf16.gmra.mxu2 %v15363_v16 }
 0x4ce   : > { %v17375_v11 = vadd.f32 %v17242_v23, %v3836_v30  ;;  %v10492_v23 = vor.u32 %v13170_v52, %v10489_v22  ;;  %v10441_v22 = vld [vmem:[%s20996_s3 + $0x738] sm:$0xf0] }
 0x4cf   : > { %v3814_v15 = vpop.f32.mrf.mxu3  ;;  %4768 = vmatpush.bf16.msrb.mxu0 %v10508_v29  ;;  %v13162_v29 = vld [vmem:[%s20996_s3 + $0x74c] sm:$0xf] }
 0x4d0   : > { %v3815_v13 = vadd.f32 %v3814_v15, %v16609_v60  ;;  %v3872_v54 = vpop.f32.mrf.mxu2  ;;  %v13166_v60 = vld [vmem:[%s20996_s3 + $0x76c] sm:$0xf] }
 0x4d1   : > { %v3787_v14 = vpop.f32.mrf.mxu1 }
 0x4d2   : > { %v17379_v34 = vadd.f32 %v3787_v14, %v17179_v26  ;;  %v10473_v26 = vld [vmem:[%s20996_s3 + $0x778] sm:$0xf0] }
 0x4d3   : > { %v3838_v12 = vpop.f32.mrf.mxu0  ;;  %4769 = vmatpush.bf16.msrb.mxu0 %v10492_v23  ;;  %v10476_v30 = vor.u32 %v13166_v60, %v10473_v26 }
 0x4d4   : > { %v3839_v2 = vadd.f32 %v3838_v12, %v17291_v44 }
 0x4d6   : > { %v17395_v48 = vadd.f32 %v17293_v58, %v3839_v2  ;;  %4663 = vmatmul.bf16.gmra.mxu0 %v15209_v0  ;;  %v10457_v58 = vld [vmem:[%s20996_s3 + $0x758] sm:$0xf0] }
 0x4d7   : > { %v3816_v55 = vpop.f32.mrf.mxu3  ;;  %4770 = vmatpush.bf16.msrb.mxu0 %v10476_v30  ;;  %v10460_v14 = vor.u32 %v13162_v29, %v10457_v58  ;;  %v13154_v30 = vld [vmem:[%s20996_s3 + $0x70c] sm:$0xf] }
 0x4d8   : > { %v3817_v39 = vadd.f32 %v3816_v55, %v16644_v18  ;;  %v3874_v27 = vpop.f32.mrf.mxu2 }
 0x4d9   : > { %v3790_v44 = vpop.f32.mrf.mxu1 }
 0x4da   : > { %v17400_v15 = vadd.f32 %v3790_v44, %v17228_v6  ;;  %v13158_v6 = vld [vmem:[%s20996_s3 + $0x72c] sm:$0xf]  ;;  %v10425_v44 = vld [vmem:[%s20996_s3 + $0x718] sm:$0xf0] }
 0x4db   : > { %v3840_v52 = vpop.f32.mrf.mxu0  ;;  %4771 = vmatpush.bf16.msrb.mxu0 %v10460_v14  ;;  %v10444_v2 = vor.u32 %v13158_v6, %v10441_v22  ;;  %v10879_v6 = vld [vmem:[%s20996_s3 + $0x9e0] sm:$0xf] }
 0x4dc   : > { %4615 = vmatmul.bf16.gmra.mxu1 %v21290_v51  ;;  %4644 = vmatmul.bf16.gmra.mxu3 %v21294_v56  ;;  %v3841_v18 = vadd.f32 %v3840_v52, %v3812_v50 }
 0x4dd   : > { %4702 = vmatmul.bf16.gmra.mxu2 %v21290_v51 }
 0x4de   : > { %v17417_v23 = vadd.f32 %v3869_v37, %v3841_v18  ;;  %v10428_v37 = vor.u32 %v13154_v30, %v10425_v44 }
 0x4df   : > { %v3819_v12 = vpop.f32.mrf.mxu3  ;;  %4772 = vmatpush.bf16.msrb.mxu0 %v10444_v2  ;;  %v13245_v2 = vld [vmem:[%s20996_s3 + $0x9e4] sm:$0xf] }
 0x4e0   : > { %v3820_v60 = vadd.f32 %v3819_v12, %v16691_v47  ;;  %v3877_v26 = vpop.f32.mrf.mxu2  ;;  %v13279_v12 = vld [vmem:[%s20996_s3 + $0xaec] sm:$0xf0] }
 0x4e1   : > { %v3792_v55 = vpop.f32.mrf.mxu1 }
 0x4e2   : > { %v17421_v50 = vadd.f32 %v3792_v55, %v17279_v10  ;;  %v10881_v55 = vld [vmem:[%s20996_s3 + $0x9f0] sm:$0xf0] }
 0x4e3   : > { %v3843_v29 = vpop.f32.mrf.mxu0  ;;  %4773 = vmatpush.bf16.msrb.mxu0 %v10428_v37  ;;  %v10884_v37 = vor.u32 %v13245_v2, %v10881_v55  ;;  %v13239_v55 = vld [vmem:[%s20996_s3 + $0x9ac] sm:$0xf0] }
 0x4e4   : > { %v3844_v58 = vadd.f32 %v3843_v29, %v3815_v13  ;;  %v13247_v13 = vld [vmem:[%s20996_s3 + $0x9ec] sm:$0xf0] }
 0x4e5   : > { %5531 = vmatpush.bf16.msra.mxu2 %v10884_v37 }
 0x4e6   : > { %v17429_v14 = vadd.f32 %v3872_v54, %v3844_v58  ;;  %4668 = vmatmul.bf16.gmra.mxu0 %v15361_v1  ;;  %v11007_v54 = vld [vmem:[%s20996_s3 + $0xae0] sm:$0xf] }
 0x4e7   : > { %v3821_v47 = vpop.f32.mrf.mxu3  ;;  %v11008_v44 = vor.u32 %v13279_v12, %v11007_v54  ;;  %v10863_v58 = vld [vmem:[%s20996_s3 + $0x9c0] sm:$0xf]  ;;  %v13241_v54 = vld [vmem:[%s20996_s3 + $0x9c4] sm:$0xf] }
 0x4e8   : > { %v17433_v10 = vadd.f32 %v3821_v47, %v16740_v3  ;;  %v17435_v52 = vpop.f32.mrf.mxu2  ;;  %v10880_v3 = vor.u32 %v13247_v13, %v10879_v6  ;;  %v13243_v47 = vld [vmem:[%s20996_s3 + $0x9cc] sm:$0xf0] }
 0x4e9   : > { %v4485_v18 = vpop.f32.mrf.mxu1  ;;  %5473 = vmatpush.bf16.msra.mxu3 %v11008_v44  ;;  %v13275_v13 = vld [vmem:[%s20996_s3 + $0xacc] sm:$0xf0] }
 0x4ea   : > { %5444 = vmatpush.bf16.msra.mxu1 %v10880_v3 }
 0x4eb   : > { %v3845_v22 = vpop.f32.mrf.mxu0 }
 0x4ec   : > { %4716 = vmatmul.bf16.vlgmr.msrb.gmra.mxu1 %v15250_v24  ;;  %4745 = vmatmul.bf16.vlgmr.msrb.gmra.mxu3 %v15139_v19  ;;  %v3846_v30 = vadd.f32 %v3845_v22, %v3817_v39  ;;  %v10865_v22 = vld [vmem:[%s20996_s3 + $0x9d0] sm:$0xf0] }
 0x4ed   : > { %4803 = vmatmul.bf16.vlgmr.msrb.gmra.mxu2 %v15250_v24  ;;  %v10991_v24 = vld [vmem:[%s20996_s3 + $0xac0] sm:$0xf]  ;;  %v10868_v2 = vor.u32 %v13241_v54, %v10865_v22 }
 0x4ee   : > { %v17458_v19 = vadd.f32 %v3874_v27, %v3846_v30  ;;  %v10864_v27 = vor.u32 %v13243_v47, %v10863_v58  ;;  %v10992_v12 = vor.u32 %v13275_v13, %v10991_v24  ;;  %v10975_v30 = vld [vmem:[%s20996_s3 + $0xaa0] sm:$0xf]  ;;  %v13237_v58 = vld [vmem:[%s20996_s3 + $0x9a4] sm:$0xf]  ;;  %v10849_v47 = vld [vmem:[%s20996_s3 + $0x9b0] sm:$0xf0] }
 0x4ef   : > { %v4514_v29 = vpop.f32.mrf.mxu3  ;;  %5532 = vmatpush.bf16.msra.mxu2 %v10868_v2  ;;  %v10852_v13 = vor.u32 %v13237_v58, %v10849_v47  ;;  %v13235_v2 = vld [vmem:[%s20996_s3 + $0x98c] sm:$0xf0]  ;;  %v10815_v47 = vld [vmem:[%s20996_s3 + $0x960] sm:$0xf] }
 0x4f0   : > { %v17469_v39 = vadd.f32 %v4514_v29, %v4485_v18  ;;  %v17471_v6 = vpop.f32.mrf.mxu2  ;;  %5445 = vmatpush.bf16.msra.mxu1 %v10864_v27  ;;  %5474 = vmatpush.bf16.msra.mxu3 %v10992_v12  ;;  %v10847_v18 = vld [vmem:[%s20996_s3 + $0x9a0] sm:$0xf]  ;;  %v13271_v29 = vld [vmem:[%s20996_s3 + $0xaac] sm:$0xf0] }
 0x4f1   : > { %v4487_v3 = vpop.f32.mrf.mxu1  ;;  %v10848_v37 = vor.u32 %v13239_v55, %v10847_v18  ;;  %v10976_v27 = vor.u32 %v13271_v29, %v10975_v30  ;;  %v10831_v12 = vld [vmem:[%s20996_s3 + $0x980] sm:$0xf]  ;;  %v13267_v30 = vld [vmem:[%s20996_s3 + $0xa8c] sm:$0xf0] }
 0x4f2   : > { %v10832_v55 = vor.u32 %v13235_v2, %v10831_v12  ;;  %v13263_v12 = vld [vmem:[%s20996_s3 + $0xa6c] sm:$0xf0]  ;;  %v13229_v2 = vld [vmem:[%s20996_s3 + $0x964] sm:$0xf] }
 0x4f3   : > { %v3848_v44 = vpop.f32.mrf.mxu0  ;;  %5533 = vmatpush.bf16.msra.mxu2 %v10852_v13 }
 0x4f4   : > { %v3849_v24 = vadd.f32 %v3848_v44, %v3820_v60  ;;  %5446 = vmatpush.bf16.msra.mxu1 %v10848_v37  ;;  %5475 = vmatpush.bf16.msra.mxu3 %v10976_v27  ;;  %v10959_v60 = vld [vmem:[%s20996_s3 + $0xa80] sm:$0xf]  ;;  %v13233_v44 = vld [vmem:[%s20996_s3 + $0x984] sm:$0xf]  ;;  %v10833_v37 = vld [vmem:[%s20996_s3 + $0x990] sm:$0xf0] }
 0x4f5   : > { %v10960_v58 = vor.u32 %v13267_v30, %v10959_v60  ;;  %v10943_v27 = vld [vmem:[%s20996_s3 + $0xa60] sm:$0xf]  ;;  %v10817_v60 = vld [vmem:[%s20996_s3 + $0x970] sm:$0xf0] }
 0x4f6   : > { %v17500_v54 = vadd.f32 %v3877_v26, %v3849_v24  ;;  %4673 = vmatmul.bf16.gmra.mxu0 %v21289_v25  ;;  %v13231_v24 = vld [vmem:[%s20996_s3 + $0x96c] sm:$0xf0]  ;;  %v10944_v30 = vor.u32 %v13263_v12, %v10943_v27  ;;  %v13225_v27 = vld [vmem:[%s20996_s3 + $0x944] sm:$0xf] }
 0x4f7   : > { %v4516_v22 = vpop.f32.mrf.mxu3 }
 0x4f8   : > { %v17512_v18 = vadd.f32 %v4516_v22, %v4487_v3  ;;  %v17514_v26 = vpop.f32.mrf.mxu2  ;;  %5447 = vmatpush.bf16.msra.mxu1 %v10832_v55  ;;  %v10836_v3 = vor.u32 %v13233_v44, %v10833_v37  ;;  %5476 = vmatpush.bf16.msra.mxu3 %v10960_v58  ;;  %v10816_v22 = vor.u32 %v13231_v24, %v10815_v47  ;;  %v10799_v58 = vld [vmem:[%s20996_s3 + $0x940] sm:$0xf]  ;;  %v13227_v47 = vld [vmem:[%s20996_s3 + $0x94c] sm:$0xf0] }
 0x4f9   : > { %v4490_v29 = vpop.f32.mrf.mxu1  ;;  %v13259_v24 = vld [vmem:[%s20996_s3 + $0xa4c] sm:$0xf0] }
 0x4fa   : > { %5534 = vmatpush.bf16.msra.mxu2 %v10836_v3 }
 0x4fb   : > { %v3850_v13 = vpop.f32.mrf.mxu0 }
 0x4fc   : > { %4721 = vmatmul.bf16.gmra.mxu1 %v15314_v5  ;;  %4750 = vmatmul.bf16.gmra.mxu3 %v15209_v0  ;;  %v3851_v55 = vadd.f32 %v3850_v13, %v17433_v10  ;;  %v10820_v0 = vor.u32 %v13229_v2, %v10817_v60  ;;  %v10801_v13 = vld [vmem:[%s20996_s3 + $0x950] sm:$0xf0]  ;;  %v10783_v2 = vld [vmem:[%s20996_s3 + $0x920] sm:$0xf]  ;;  %v13223_v60 = vld [vmem:[%s20996_s3 + $0x92c] sm:$0xf0] }
 0x4fd   : > { %4808 = vmatmul.bf16.gmra.mxu2 %v15314_v5  ;;  %5448 = vmatpush.bf16.msra.mxu1 %v10816_v22  ;;  %v10927_v5 = vld [vmem:[%s20996_s3 + $0xa40] sm:$0xf] }
 0x4fe   : > { %v17548_v44 = vadd.f32 %v17435_v52, %v3851_v55  ;;  %5477 = vmatpush.bf16.msra.mxu3 %v10944_v30  ;;  %v10800_v52 = vor.u32 %v13227_v47, %v10799_v58  ;;  %v10928_v12 = vor.u32 %v13259_v24, %v10927_v5  ;;  %5535 = vmatpush.bf16.msra.mxu2 %v10820_v0  ;;  %v10911_v55 = vld [vmem:[%s20996_s3 + $0xa20] sm:$0xf]  ;;  %v13255_v0 = vld [vmem:[%s20996_s3 + $0xa2c] sm:$0xf0]  ;;  %v13221_v58 = vld [vmem:[%s20996_s3 + $0x924] sm:$0xf] }
 0x4ff   : > { %v4519_v37 = vpop.f32.mrf.mxu3  ;;  %v10785_v47 = vld [vmem:[%s20996_s3 + $0x930] sm:$0xf0] }
 0x500   : > { %v17559_v10 = vadd.f32 %v4519_v37, %v4490_v29  ;;  %v17561_v3 = vpop.f32.mrf.mxu2  ;;  %v10804_v29 = vor.u32 %v13225_v27, %v10801_v13  ;;  %v10784_v37 = vor.u32 %v13223_v60, %v10783_v2  ;;  %v10788_v24 = vor.u32 %v13221_v58, %v10785_v47  ;;  %v11135_v27 = vld [vmem:[%s20996_s3 + $0xbe0] sm:$0xf]  ;;  %v13311_v13 = vld [vmem:[%s20996_s3 + $0xbec] sm:$0xf0]  ;;  %v10769_v58 = vld [vmem:[%s20996_s3 + $0x910] sm:$0xf0] }
 0x501   : > { %v4492_v22 = vpop.f32.mrf.mxu1  ;;  %5449 = vmatpush.bf16.msra.mxu1 %v10800_v52  ;;  %v10912_v52 = vor.u32 %v13255_v0, %v10911_v55  ;;  %v13219_v60 = vld [vmem:[%s20996_s3 + $0x90c] sm:$0xf0]  ;;  %v10895_v55 = vld [vmem:[%s20996_s3 + $0xa00] sm:$0xf]  ;;  %v13217_v0 = vld [vmem:[%s20996_s3 + $0x904] sm:$0xf] }
 0x502   : > { %5478 = vmatpush.bf16.msra.mxu3 %v10928_v12  ;;  %5536 = vmatpush.bf16.msra.mxu2 %v10804_v29  ;;  %v10767_v29 = vld [vmem:[%s20996_s3 + $0x900] sm:$0xf] }
 0x503   : > { %v4543_v30 = vpop.f32.mrf.mxu0 }
 0x504   : > { %v4544_v5 = vadd.f32 %v4543_v30, %v17469_v39  ;;  %v11136_v39 = vor.u32 %v13311_v13, %v11135_v27  ;;  %v13307_v27 = vld [vmem:[%s20996_s3 + $0xbcc] sm:$0xf0] }
 0x505   : > { %5450 = vmatpush.bf16.msra.mxu1 %v10784_v37  ;;  %v10768_v37 = vor.u32 %v13219_v60, %v10767_v29  ;;  %v13303_v29 = vld [vmem:[%s20996_s3 + $0xbac] sm:$0xf0] }
 0x506   : > { %v17598_v12 = vadd.f32 %v4544_v5, %v16776_v53  ;;  %4774 = vmatmul.bf16.vlgmr.msrb.gmra.mxu0 %v15141_v38  ;;  %5479 = vmatpush.bf16.msra.mxu3 %v10912_v52  ;;  %v13251_v38 = vld [vmem:[%s20996_s3 + $0xa0c] sm:$0xf0]  ;;  %v11119_v52 = vld [vmem:[%s20996_s3 + $0xbc0] sm:$0xf] }
 0x507   : > { %v4521_v2 = vpop.f32.mrf.mxu3  ;;  %5502 = vmatpush.bf16.msra.mxu0 %v11136_v39  ;;  %v10896_v5 = vor.u32 %v13251_v38, %v10895_v55  ;;  %5537 = vmatpush.bf16.msra.mxu2 %v10788_v24  ;;  %v11120_v13 = vor.u32 %v13307_v27, %v11119_v52  ;;  %v11103_v24 = vld [vmem:[%s20996_s3 + $0xba0] sm:$0xf]  ;;  %v13295_v27 = vld [vmem:[%s20996_s3 + $0xb6c] sm:$0xf0] }
 0x508   : > { %v4522_v30 = vadd.f32 %v4521_v2, %v4492_v22  ;;  %v17610_v53 = vpop.f32.mrf.mxu2  ;;  %v10772_v22 = vor.u32 %v13217_v0, %v10769_v58  ;;  %v11087_v58 = vld [vmem:[%s20996_s3 + $0xb80] sm:$0xf] }
 0x509   : > { %v4495_v47 = vpop.f32.mrf.mxu1  ;;  %5451 = vmatpush.bf16.msra.mxu1 %v10768_v37  ;;  %v11104_v37 = vor.u32 %v13303_v29, %v11103_v24 }
 0x50a   : > { %5480 = vmatpush.bf16.msra.mxu3 %v10896_v5  ;;  %v13299_v5 = vld [vmem:[%s20996_s3 + $0xb8c] sm:$0xf0] }
 0x50b   : > { %v4545_v2 = vpop.f32.mrf.mxu0  ;;  %5503 = vmatpush.bf16.msra.mxu0 %v11120_v13  ;;  %5538 = vmatpush.bf16.msra.mxu2 %v10772_v22  ;;  %v11088_v22 = vor.u32 %v13299_v5, %v11087_v58  ;;  %v13287_v5 = vld [vmem:[%s20996_s3 + $0xb2c] sm:$0xf0] }
 0x50c   : > { %4726 = vmatmul.bf16.gmra.mxu1 %v21292_v4  ;;  %4755 = vmatmul.bf16.gmra.mxu3 %v15361_v1  ;;  %v4546_v39 = vadd.f32 %v4545_v2, %v17512_v18 }
 0x50d   : > { %4813 = vmatmul.bf16.gmra.mxu2 %v21292_v4 }
 0x50e   : > { %v17638_v60 = vadd.f32 %v4546_v39, %v16816_v62 }
 0x50f   : > { %v4524_v55 = vpop.f32.mrf.mxu3  ;;  %5504 = vmatpush.bf16.msra.mxu0 %v11104_v37  ;;  %v13291_v37 = vld [vmem:[%s20996_s3 + $0xb4c] sm:$0xf0] }
 0x510   : > { %v4525_v38 = vadd.f32 %v4524_v55, %v4495_v47  ;;  %v17640_v0 = vpop.f32.mrf.mxu2  ;;  %v11071_v47 = vld [vmem:[%s20996_s3 + $0xb60] sm:$0xf] }
 0x511   : > { %v4497_v18 = vpop.f32.mrf.mxu1  ;;  %v11072_v39 = vor.u32 %v13295_v27, %v11071_v47  ;;  %v11055_v55 = vld [vmem:[%s20996_s3 + $0xb40] sm:$0xf] }
 0x512   : > { %v11056_v58 = vor.u32 %v13291_v37, %v11055_v55 }
 0x513   : > { %v4548_v52 = vpop.f32.mrf.mxu0  ;;  %5505 = vmatpush.bf16.msra.mxu0 %v11088_v22 }
 0x514   : > { %v4549_v62 = vadd.f32 %v4548_v52, %v17559_v10 }
 0x516   : > { %v17656_v13 = vadd.f32 %v4549_v62, %v16836_v43  ;;  %4779 = vmatmul.bf16.gmra.mxu0 %v15211_v17 }
 0x517   : > { %v4526_v2 = vpop.f32.mrf.mxu3  ;;  %5506 = vmatpush.bf16.msra.mxu0 %v11072_v39  ;;  %v13283_v39 = vld [vmem:[%s20996_s3 + $0xb0c] sm:$0xf0] }
 0x518   : > { %v4527_v24 = vadd.f32 %v4526_v2, %v4497_v18  ;;  %v17659_v29 = vpop.f32.mrf.mxu2  ;;  %v11039_v18 = vld [vmem:[%s20996_s3 + $0xb20] sm:$0xf] }
 0x519   : > { %v4500_v10 = vpop.f32.mrf.mxu1  ;;  %v11040_v62 = vor.u32 %v13287_v5, %v11039_v18  ;;  %v11023_v2 = vld [vmem:[%s20996_s3 + $0xb00] sm:$0xf] }
 0x51a   : > { %v11024_v55 = vor.u32 %v13283_v39, %v11023_v2  ;;  %v11015_v2 = vld [vmem:[%s20996_s3 + $0xae8] sm:$0xf]  ;;  %v13280_v39 = vld [vmem:[%s20996_s3 + $0xaf4] sm:$0xf0] }
 0x51b   : > { %v4550_v43 = vpop.f32.mrf.mxu0  ;;  %5507 = vmatpush.bf16.msra.mxu0 %v11056_v58 }
 0x51c   : > { %4731 = vmatmul.bf16.gmra.mxu1 %v21294_v56  ;;  %4760 = vmatmul.bf16.gmra.mxu3 %v21289_v25  ;;  %v4551_v17 = vadd.f32 %v4550_v43, %v4522_v30 }
 0x51d   : > { %4818 = vmatmul.bf16.gmra.mxu2 %v21294_v56 }
 0x51e   : > { %v17677_v22 = vadd.f32 %v4551_v17, %v16857_v45 }
 0x51f   : > { %v4529_v52 = vpop.f32.mrf.mxu3  ;;  %5508 = vmatpush.bf16.msra.mxu0 %v11040_v62 }
 0x520   : > { %v4530_v47 = vadd.f32 %v4529_v52, %v4500_v10  ;;  %v17679_v27 = vpop.f32.mrf.mxu2  ;;  %v13277_v52 = vld [vmem:[%s20996_s3 + $0xae4] sm:$0xf] }
 0x521   : > { %v4502_v30 = vpop.f32.mrf.mxu1 }
 0x523   : > { %v4553_v37 = vpop.f32.mrf.mxu0  ;;  %5509 = vmatpush.bf16.msra.mxu0 %v11024_v55 }
 0x524   : > { %v4554_v58 = vadd.f32 %v4553_v37, %v4525_v38  ;;  %v11009_v38 = vld [vmem:[%s20996_s3 + $0xaf0] sm:$0xf0] }
 0x526   : > { %v17688_v45 = vadd.f32 %v4554_v58, %v16876_v42  ;;  %4784 = vmatmul.bf16.gmra.mxu0 %v15363_v16  ;;  %v13309_v42 = vld [vmem:[%s20996_s3 + $0xbe4] sm:$0xf]  ;;  %v11016_v58 = vor.u32 %v13280_v39, %v11015_v2  ;;  %v13276_v2 = vld [vmem:[%s20996_s3 + $0xad4] sm:$0xf0] }
 0x527   : > { %v4531_v10 = vpop.f32.mrf.mxu3 }
 0x528   : > { %v17691_v43 = vadd.f32 %v4531_v10, %v4502_v30  ;;  %v17693_v17 = vpop.f32.mrf.mxu2  ;;  %v11012_v30 = vor.u32 %v13277_v52, %v11009_v38  ;;  %5647 = vmatpush.bf16.msrb.mxu2 %v11016_v58  ;;  %v13273_v52 = vld [vmem:[%s20996_s3 + $0xac4] sm:$0xf]  ;;  %v10993_v38 = vld [vmem:[%s20996_s3 + $0xad0] sm:$0xf0] }
 0x529   : > { %v4601_v18 = vpop.f32.mrf.mxu1 }
 0x52a   : > { %v4602_v5 = vadd.f32 %v4601_v18, %v17471_v6  ;;  %v11137_v6 = vld [vmem:[%s20996_s3 + $0xbf0] sm:$0xf0]  ;;  %5560 = vmatpush.bf16.msrb.mxu1 %v11012_v30 }
 0x52b   : > { %v4555_v62 = vpop.f32.mrf.mxu0  ;;  %v11140_v37 = vor.u32 %v13309_v42, %v11137_v6  ;;  %v11121_v30 = vld [vmem:[%s20996_s3 + $0xbd0] sm:$0xf0]  ;;  %v10999_v6 = vld [vmem:[%s20996_s3 + $0xac8] sm:$0xf] }
 0x52c   : > { %5452 = vmatmul.bf16.vlgmr.msra.gmra.mxu1 %v15361_v1  ;;  %5481 = vmatmul.bf16.vlgmr.msra.gmra.mxu3 %v15363_v16  ;;  %v4556_v55 = vadd.f32 %v4555_v62, %v4527_v24  ;;  %v13305_v24 = vld [vmem:[%s20996_s3 + $0xbc4] sm:$0xf] }
 0x52d   : > { %5539 = vmatmul.bf16.vlgmr.msra.gmra.mxu2 %v15361_v1  ;;  %5589 = vmatpush.bf16.msrb.mxu3 %v11140_v37  ;;  %v11000_v37 = vor.u32 %v13276_v2, %v10999_v6 }
 0x52e   : > { %v17718_v10 = vadd.f32 %v4556_v55, %v16905_v33  ;;  %v10996_v33 = vor.u32 %v13273_v52, %v10993_v38  ;;  %v11124_v55 = vor.u32 %v13305_v24, %v11121_v30  ;;  %v10977_v52 = vld [vmem:[%s20996_s3 + $0xab0] sm:$0xf0]  ;;  %v13301_v38 = vld [vmem:[%s20996_s3 + $0xba4] sm:$0xf] }
 0x52f   : > { %v4630_v18 = vpop.f32.mrf.mxu3  ;;  %5648 = vmatpush.bf16.msrb.mxu2 %v11000_v37  ;;  %v13265_v37 = vld [vmem:[%s20996_s3 + $0xa84] sm:$0xf] }
 0x530   : > { %v4631_v42 = vadd.f32 %v4630_v18, %v4602_v5  ;;  %v17729_v62 = vpop.f32.mrf.mxu2  ;;  %5561 = vmatpush.bf16.msrb.mxu1 %v10996_v33  ;;  %v13269_v18 = vld [vmem:[%s20996_s3 + $0xaa4] sm:$0xf]  ;;  %v13272_v33 = vld [vmem:[%s20996_s3 + $0xab4] sm:$0xf0] }
 0x531   : > { %v4603_v39 = vpop.f32.mrf.mxu1  ;;  %5590 = vmatpush.bf16.msrb.mxu3 %v11124_v55 }
 0x532   : > { %v17741_v5 = vadd.f32 %v4631_v42, %v16917_v59  ;;  %v4604_v58 = vadd.f32 %v4603_v39, %v17514_v26  ;;  %v10980_v59 = vor.u32 %v13269_v18, %v10977_v52  ;;  %v11105_v26 = vld [vmem:[%s20996_s3 + $0xbb0] sm:$0xf0]  ;;  %v10983_v42 = vld [vmem:[%s20996_s3 + $0xaa8] sm:$0xf] }
 0x533   : > { %v4558_v24 = vpop.f32.mrf.mxu0  ;;  %v11108_v6 = vor.u32 %v13301_v38, %v11105_v26  ;;  %v10984_v2 = vor.u32 %v13272_v33, %v10983_v42  ;;  %v10961_v18 = vld [vmem:[%s20996_s3 + $0xa90] sm:$0xf0]  ;;  %v13268_v26 = vld [vmem:[%s20996_s3 + $0xa94] sm:$0xf0] }
 0x534   : > { %v4559_v30 = vadd.f32 %v4558_v24, %v4530_v47  ;;  %5562 = vmatpush.bf16.msrb.mxu1 %v10980_v59  ;;  %v13297_v47 = vld [vmem:[%s20996_s3 + $0xb84] sm:$0xf]  ;;  %v11089_v24 = vld [vmem:[%s20996_s3 + $0xb90] sm:$0xf0]  ;;  %v10967_v59 = vld [vmem:[%s20996_s3 + $0xa88] sm:$0xf] }
 0x535   : > { %5591 = vmatpush.bf16.msrb.mxu3 %v11108_v6  ;;  %5649 = vmatpush.bf16.msrb.mxu2 %v10984_v2  ;;  %v11092_v33 = vor.u32 %v13297_v47, %v11089_v24  ;;  %v10968_v6 = vor.u32 %v13268_v26, %v10967_v59  ;;  %v13261_v2 = vld [vmem:[%s20996_s3 + $0xa64] sm:$0xf]  ;;  %v10951_v47 = vld [vmem:[%s20996_s3 + $0xa68] sm:$0xf] }
 0x536   : > { %v17763_v39 = vadd.f32 %v4559_v30, %v16949_v35  ;;  %4789 = vmatmul.bf16.gmra.mxu0 %v21290_v51  ;;  %v10964_v35 = vor.u32 %v13265_v37, %v10961_v18  ;;  %v13293_v37 = vld [vmem:[%s20996_s3 + $0xb64] sm:$0xf] }
 0x537   : > { %v4632_v55 = vpop.f32.mrf.mxu3 }
 0x538   : > { %v4633_v52 = vadd.f32 %v4632_v55, %v4604_v58  ;;  %v17775_v38 = vpop.f32.mrf.mxu2  ;;  %5563 = vmatpush.bf16.msrb.mxu1 %v10964_v35  ;;  %v10945_v55 = vld [vmem:[%s20996_s3 + $0xa70] sm:$0xf0] }
 0x539   : > { %v4606_v42 = vpop.f32.mrf.mxu1  ;;  %5592 = vmatpush.bf16.msrb.mxu3 %v11092_v33  ;;  %5650 = vmatpush.bf16.msrb.mxu2 %v10968_v6  ;;  %v13257_v33 = vld [vmem:[%s20996_s3 + $0xa44] sm:$0xf] }
 0x53a   : > { %v17787_v58 = vadd.f32 %v4633_v52, %v16961_v32  ;;  %v4607_v30 = vadd.f32 %v4606_v42, %v17561_v3  ;;  %v10948_v32 = vor.u32 %v13261_v2, %v10945_v55  ;;  %v11073_v3 = vld [vmem:[%s20996_s3 + $0xb70] sm:$0xf0]  ;;  %v13264_v52 = vld [vmem:[%s20996_s3 + $0xa74] sm:$0xf0] }
 0x53b   : > { %v4560_v18 = vpop.f32.mrf.mxu0  ;;  %v11076_v24 = vor.u32 %v13293_v37, %v11073_v3  ;;  %v10952_v59 = vor.u32 %v13264_v52, %v10951_v47  ;;  %v10929_v2 = vld [vmem:[%s20996_s3 + $0xa50] sm:$0xf0] }
 0x53c   : > { %5457 = vmatmul.bf16.gmra.mxu1 %v21289_v25  ;;  %5486 = vmatmul.bf16.gmra.mxu3 %v21290_v51  ;;  %v4561_v35 = vadd.f32 %v4560_v18, %v17691_v43  ;;  %v13289_v43 = vld [vmem:[%s20996_s3 + $0xb44] sm:$0xf]  ;;  %v10932_v37 = vor.u32 %v13257_v33, %v10929_v2  ;;  %v10935_v18 = vld [vmem:[%s20996_s3 + $0xa48] sm:$0xf] }
 0x53d   : > { %5544 = vmatmul.bf16.gmra.mxu2 %v21289_v25  ;;  %5564 = vmatpush.bf16.msrb.mxu1 %v10948_v32  ;;  %v13260_v32 = vld [vmem:[%s20996_s3 + $0xa54] sm:$0xf0]  ;;  %v13285_v33 = vld [vmem:[%s20996_s3 + $0xb24] sm:$0xf] }
 0x53e   : > { %v17813_v26 = vadd.f32 %v4561_v35, %v16996_v7  ;;  %5593 = vmatpush.bf16.msrb.mxu3 %v11076_v24  ;;  %v11057_v7 = vld [vmem:[%s20996_s3 + $0xb50] sm:$0xf0]  ;;  %5651 = vmatpush.bf16.msrb.mxu2 %v10952_v59  ;;  %v10936_v35 = vor.u32 %v13260_v32, %v10935_v18  ;;  %v13253_v24 = vld [vmem:[%s20996_s3 + $0xa24] sm:$0xf]  ;;  %v10919_v59 = vld [vmem:[%s20996_s3 + $0xa28] sm:$0xf] }
 0x53f   : > { %v4635_v42 = vpop.f32.mrf.mxu3  ;;  %v11060_v47 = vor.u32 %v13289_v43, %v11057_v7  ;;  %v13256_v43 = vld [vmem:[%s20996_s3 + $0xa34] sm:$0xf0]  ;;  %v10887_v18 = vld [vmem:[%s20996_s3 + $0x9e8] sm:$0xf] }
 0x540   : > { %v4636_v6 = vadd.f32 %v4635_v42, %v4607_v30  ;;  %v17824_v55 = vpop.f32.mrf.mxu2  ;;  %v10913_v42 = vld [vmem:[%s20996_s3 + $0xa30] sm:$0xf0]  ;;  %v10920_v7 = vor.u32 %v13256_v43, %v10919_v59  ;;  %v13248_v32 = vld [vmem:[%s20996_s3 + $0x9f4] sm:$0xf0] }
 0x541   : > { %v4608_v3 = vpop.f32.mrf.mxu1  ;;  %5565 = vmatpush.bf16.msrb.mxu1 %v10932_v37  ;;  %v10916_v2 = vor.u32 %v13253_v24, %v10913_v42  ;;  %v13281_v24 = vld [vmem:[%s20996_s3 + $0xb04] sm:$0xf]  ;;  %v13252_v59 = vld [vmem:[%s20996_s3 + $0xa14] sm:$0xf0] }
 0x542   : > { %v17836_v52 = vadd.f32 %v4636_v6, %v17008_v46  ;;  %v4609_v30 = vadd.f32 %v4608_v3, %v17610_v53  ;;  %5594 = vmatpush.bf16.msrb.mxu3 %v11060_v47  ;;  %v11041_v53 = vld [vmem:[%s20996_s3 + $0xb30] sm:$0xf0]  ;;  %5652 = vmatpush.bf16.msrb.mxu2 %v10936_v35  ;;  %v10888_v47 = vor.u32 %v13248_v32, %v10887_v18 }
 0x543   : > { %v4659_v46 = vpop.f32.mrf.mxu0  ;;  %v11044_v37 = vor.u32 %v13285_v33, %v11041_v53  ;;  %v10897_v35 = vld [vmem:[%s20996_s3 + $0xa10] sm:$0xf0]  ;;  %v10903_v53 = vld [vmem:[%s20996_s3 + $0xa08] sm:$0xf] }
 0x544   : > { %v17858_v6 = vadd.f32 %v17729_v62, %v4659_v46  ;;  %v13249_v62 = vld [vmem:[%s20996_s3 + $0xa04] sm:$0xf]  ;;  %5618 = vmatpush.bf16.msrb.mxu0 %v10888_v47  ;;  %v10904_v32 = vor.u32 %v13252_v59, %v10903_v53 }
 0x545   : > { %5566 = vmatpush.bf16.msrb.mxu1 %v10916_v2  ;;  %v10900_v46 = vor.u32 %v13249_v62, %v10897_v35  ;;  %v11025_v2 = vld [vmem:[%s20996_s3 + $0xb10] sm:$0xf0]  ;;  %v13244_v62 = vld [vmem:[%s20996_s3 + $0x9d4] sm:$0xf0] }
 0x546   : > { %5510 = vmatmul.bf16.vlgmr.msra.gmra.mxu0 %v21292_v4  ;;  %5595 = vmatpush.bf16.msrb.mxu3 %v11044_v37  ;;  %v11028_v37 = vor.u32 %v13281_v24, %v11025_v2 }
 0x547   : > { %v4637_v3 = vpop.f32.mrf.mxu3  ;;  %5653 = vmatpush.bf16.msrb.mxu2 %v10920_v7  ;;  %v13240_v7 = vld [vmem:[%s20996_s3 + $0x9b4] sm:$0xf0] }
 0x548   : > { %v4638_v42 = vadd.f32 %v4637_v3, %v4609_v30  ;;  %v4695_v33 = vpop.f32.mrf.mxu2  ;;  %v10871_v3 = vld [vmem:[%s20996_s3 + $0x9c8] sm:$0xf] }
 0x549   : > { %v4611_v43 = vpop.f32.mrf.mxu1  ;;  %5567 = vmatpush.bf16.msrb.mxu1 %v10900_v46  ;;  %v10872_v35 = vor.u32 %v13244_v62, %v10871_v3 }
 0x54a   : > { %v17886_v18 = vadd.f32 %v4638_v42, %v17060_v9  ;;  %v4612_v30 = vadd.f32 %v4611_v43, %v17640_v0  ;;  %5596 = vmatpush.bf16.msrb.mxu3 %v11028_v37  ;;  %v10855_v0 = vld [vmem:[%s20996_s3 + $0x9a8] sm:$0xf]  ;;  %v13236_v37 = vld [vmem:[%s20996_s3 + $0x994] sm:$0xf0] }
 0x54b   : > { %v4661_v47 = vpop.f32.mrf.mxu0  ;;  %5619 = vmatpush.bf16.msrb.mxu0 %v10872_v35  ;;  %5654 = vmatpush.bf16.msrb.mxu2 %v10904_v32  ;;  %v10856_v42 = vor.u32 %v13240_v7, %v10855_v0  ;;  %v10839_v43 = vld [vmem:[%s20996_s3 + $0x988] sm:$0xf] }
 0x54c   : > { %5462 = vmatmul.bf16.gmra.mxu1 %v15192_v20  ;;  %5491 = vmatmul.bf16.gmra.mxu3 %v15194_v36  ;;  %v17898_v9 = vadd.f32 %v17775_v38, %v4661_v47  ;;  %v10840_v32 = vor.u32 %v13236_v37, %v10839_v43  ;;  %v21296_v37 = vld [vmem:[#allocation33_spill] sm:$0xff] }
 0x54d   : > { %5549 = vmatmul.bf16.gmra.mxu2 %v15192_v20 }
 0x54f   : > { %v4640_v24 = vpop.f32.mrf.mxu3  ;;  %5620 = vmatpush.bf16.msrb.mxu0 %v10856_v42  ;;  %v10807_v42 = vld [vmem:[%s20996_s3 + $0x948] sm:$0xf] }
 0x550   : > { %v4641_v46 = vadd.f32 %v4640_v24, %v4612_v30  ;;  %v4698_v2 = vpop.f32.mrf.mxu2 }
 0x551   : > { %v4613_v53 = vpop.f32.mrf.mxu1 }
 0x552   : > { %v17908_v38 = vadd.f32 %v4641_v46, %v17093_v21  ;;  %v4614_v59 = vadd.f32 %v4613_v53, %v17659_v29  ;;  %v10823_v21 = vld [vmem:[%s20996_s3 + $0x968] sm:$0xf]  ;;  %v13232_v29 = vld [vmem:[%s20996_s3 + $0x974] sm:$0xf0] }
 0x553   : > { %v4664_v3 = vpop.f32.mrf.mxu0  ;;  %5621 = vmatpush.bf16.msrb.mxu0 %v10840_v32  ;;  %v10824_v35 = vor.u32 %v13232_v29, %v10823_v21  ;;  %v13228_v46 = vld [vmem:[%s20996_s3 + $0x954] sm:$0xf0] }
 0x554   : > { %v17918_v30 = vadd.f32 %v17824_v55, %v4664_v3  ;;  %v10808_v53 = vor.u32 %v13228_v46, %v10807_v42  ;;  %v13220_v42 = vld [vmem:[%s20996_s3 + $0x914] sm:$0xf0] }
 0x556   : > { %5515 = vmatmul.bf16.gmra.mxu0 %v21294_v56 }
 0x557   : > { %v4642_v62 = vpop.f32.mrf.mxu3  ;;  %5622 = vmatpush.bf16.msrb.mxu0 %v10824_v35 }
 0x558   : > { %v4643_v47 = vadd.f32 %v4642_v62, %v4614_v59  ;;  %v4700_v0 = vpop.f32.mrf.mxu2  ;;  %v21297_v59 = vld [vmem:[#allocation15_spill] sm:$0xff] }
 0x559   : > { %v4616_v7 = vpop.f32.mrf.mxu1 }
 0x55a   : > { %v17928_v55 = vadd.f32 %v4643_v47, %v17113_v31  ;;  %v4617_v24 = vadd.f32 %v4616_v7, %v17679_v27  ;;  %v10791_v31 = vld [vmem:[%s20996_s3 + $0x928] sm:$0xf]  ;;  %v13224_v27 = vld [vmem:[%s20996_s3 + $0x934] sm:$0xf0] }
 0x55b   : > { %v4666_v43 = vpop.f32.mrf.mxu0  ;;  %5623 = vmatpush.bf16.msrb.mxu0 %v10808_v53  ;;  %v10792_v21 = vor.u32 %v13224_v27, %v10791_v31  ;;  %v10775_v7 = vld [vmem:[%s20996_s3 + $0x908] sm:$0xf] }
 0x55c   : > { %5467 = vmatmul.bf16.gmra.mxu1 %v21296_v37  ;;  %5496 = vmatmul.bf16.gmra.mxu3 %v21297_v59  ;;  %v17939_v32 = vadd.f32 %v4695_v33, %v4666_v43  ;;  %v10776_v46 = vor.u32 %v13220_v42, %v10775_v7  ;;  %v13310_v7 = vld [vmem:[%s20996_s3 + $0xbec] sm:$0xf]  ;;  %v11145_v42 = vld [vmem:[%s20996_s3 + $0xbf8] sm:$0xf0] }
 0x55d   : > { %5554 = vmatmul.bf16.gmra.mxu2 %v21296_v37 }
 0x55f   : > { %v4645_v3 = vpop.f32.mrf.mxu3  ;;  %5624 = vmatpush.bf16.msrb.mxu0 %v10792_v21  ;;  %v11143_v21 = vld [vmem:[%s20996_s3 + $0xbe8] sm:$0xf] }
 0x560   : > { %v4646_v29 = vadd.f32 %v4645_v3, %v4617_v24  ;;  %v4703_v62 = vpop.f32.mrf.mxu2 }
 0x561   : > { %v4618_v35 = vpop.f32.mrf.mxu1 }
 0x562   : > { %v17949_v33 = vadd.f32 %v4646_v29, %v17135_v49  ;;  %v4619_v47 = vadd.f32 %v4618_v35, %v17693_v17  ;;  %v13246_v29 = vld [vmem:[%s20996_s3 + $0x9ec] sm:$0xf] }
 0x563   : > { %v4669_v53 = vpop.f32.mrf.mxu0  ;;  %5625 = vmatpush.bf16.msrb.mxu0 %v10776_v46 }
 0x564   : > { %21298 = vst [vmem:[#allocation39_spill] sm:$0xff] %v17949_v33  ;;  %v17958_v43 = vadd.f32 %v4698_v2, %v4669_v53  ;;  %v13312_v2 = vld [vmem:[%s20996_s3 + $0xbf4] sm:$0xf0]  ;;  %v11148_v53 = vor.u32 %v13310_v7, %v11145_v42 }
 0x566   : > { %5520 = vmatmul.bf16.gmra.mxu0 %v15278_v61  ;;  %5763 = vmatpush.bf16.msra.mxu2 %v11148_v53  ;;  %v13304_v53 = vld [vmem:[%s20996_s3 + $0xbb4] sm:$0xf0] }
 0x567   : > { %v4647_v24 = vpop.f32.mrf.mxu3 }
 0x568   : > { %v4648_v49 = vadd.f32 %v4647_v24, %v4619_v47  ;;  %v17961_v31 = vpop.f32.mrf.mxu2 }
 0x569   : > { %v4717_v17 = vpop.f32.mrf.mxu1 }
 0x56a   : > { %v17964_v27 = vadd.f32 %v4648_v49, %v17150_v57  ;;  %v4718_v3 = vadd.f32 %v4717_v17, %v17858_v6  ;;  %v11144_v57 = vor.u32 %v13312_v2, %v11143_v21  ;;  %v10889_v6 = vld [vmem:[%s20996_s3 + $0x9f8] sm:$0xf0]  ;;  %v11127_v49 = vld [vmem:[%s20996_s3 + $0xbc8] sm:$0xf]  ;;  %v13308_v17 = vld [vmem:[%s20996_s3 + $0xbd4] sm:$0xf0] }
 0x56b   : > { %v4671_v47 = vpop.f32.mrf.mxu0  ;;  %v10892_v46 = vor.u32 %v13246_v29, %v10889_v6  ;;  %v11128_v21 = vor.u32 %v13308_v17, %v11127_v49  ;;  %v10873_v2 = vld [vmem:[%s20996_s3 + $0x9d8] sm:$0xf0]  ;;  %v13306_v29 = vld [vmem:[%s20996_s3 + $0xbcc] sm:$0xf] }
 0x56c   : > { %21299 = vst [vmem:[#allocation24_spill] sm:$0xff] %v17964_v27  ;;  %v17977_v35 = vadd.f32 %v4718_v3, %v17155_v41  ;;  %5568 = vmatmul.bf16.vlgmr.msrb.gmra.mxu1 %v15363_v16  ;;  %5597 = vmatmul.bf16.vlgmr.msrb.gmra.mxu3 %v21292_v4  ;;  %v17990_v41 = vadd.f32 %v4700_v0, %v4671_v47  ;;  %v13242_v0 = vld [vmem:[%s20996_s3 + $0x9cc] sm:$0xf]  ;;  %v11129_v47 = vld [vmem:[%s20996_s3 + $0xbd8] sm:$0xf0] }
 0x56d   : > { %5655 = vmatmul.bf16.vlgmr.msrb.gmra.mxu2 %v15363_v16  ;;  %5676 = vmatpush.bf16.msra.mxu1 %v11144_v57  ;;  %v10876_v6 = vor.u32 %v13242_v0, %v10873_v2  ;;  %v11132_v7 = vor.u32 %v13306_v29, %v11129_v47  ;;  %v13238_v49 = vld [vmem:[%s20996_s3 + $0x9ac] sm:$0xf]  ;;  %v11113_v29 = vld [vmem:[%s20996_s3 + $0xbb8] sm:$0xf0] }
 0x56e   : > { %21300 = vst [vmem:[#allocation40_spill] sm:$0xff] %v17977_v35  ;;  %5705 = vmatpush.bf16.msra.mxu3 %v10892_v46  ;;  %v11111_v46 = vld [vmem:[%s20996_s3 + $0xba8] sm:$0xf]  ;;  %v13302_v2 = vld [vmem:[%s20996_s3 + $0xbac] sm:$0xf] }
 0x56f   : > { %v17993_v24 = vpop.f32.mrf.mxu3  ;;  %5764 = vmatpush.bf16.msra.mxu2 %v11132_v7  ;;  %v21302_v7 = vld [vmem:[#allocation34_spill] sm:$0xff]  ;;  %v11001_v27 = vld [vmem:[%s20996_s3 + $0xad8] sm:$0xf0] }
 0x570   : > { %v18004_v3 = vpop.f32.mrf.mxu2 }
 0x571   : > { %v4719_v57 = vpop.f32.mrf.mxu1  ;;  %5677 = vmatpush.bf16.msra.mxu1 %v11128_v21  ;;  %v10857_v21 = vld [vmem:[%s20996_s3 + $0x9b8] sm:$0xf0] }
 0x572   : > { %v4720_v42 = vadd.f32 %v4719_v57, %v17898_v9  ;;  %5706 = vmatpush.bf16.msra.mxu3 %v10876_v6  ;;  %v11112_v9 = vor.u32 %v13304_v53, %v11111_v46  ;;  %v10860_v57 = vor.u32 %v13238_v49, %v10857_v21  ;;  %v11116_v6 = vor.u32 %v13302_v2, %v11113_v29  ;;  %v13300_v46 = vld [vmem:[%s20996_s3 + $0xb94] sm:$0xf0]  ;;  %v11097_v21 = vld [vmem:[%s20996_s3 + $0xb98] sm:$0xf0] }
 0x573   : > { %v4674_v0 = vpop.f32.mrf.mxu0 }
 0x574   : > { %v18026_v17 = vadd.f32 %v4720_v42, %v17205_v8  ;;  %v18037_v47 = vadd.f32 %v4703_v62, %v4674_v0  ;;  %v11095_v42 = vld [vmem:[%s20996_s3 + $0xb88] sm:$0xf]  ;;  %v13234_v62 = vld [vmem:[%s20996_s3 + $0x98c] sm:$0xf]  ;;  %5765 = vmatpush.bf16.msra.mxu2 %v11116_v6  ;;  %v10841_v0 = vld [vmem:[%s20996_s3 + $0x998] sm:$0xf0] }
 0x575   : > { %5678 = vmatpush.bf16.msra.mxu1 %v11112_v9  ;;  %v11096_v49 = vor.u32 %v13300_v46, %v11095_v42  ;;  %v13298_v9 = vld [vmem:[%s20996_s3 + $0xb8c] sm:$0xf]  ;;  %v10844_v29 = vor.u32 %v13234_v62, %v10841_v0  ;;  %v11079_v6 = vld [vmem:[%s20996_s3 + $0xb68] sm:$0xf]  ;;  %v13296_v42 = vld [vmem:[%s20996_s3 + $0xb74] sm:$0xf0] }
 0x576   : > { %21301 = vst [vmem:[#allocation25_spill] sm:$0xff] %v18026_v17  ;;  %5525 = vmatmul.bf16.gmra.mxu0 %v21302_v7  ;;  %5707 = vmatpush.bf16.msra.mxu3 %v10860_v57  ;;  %v11100_v17 = vor.u32 %v13298_v9, %v11097_v21  ;;  %v13230_v46 = vld [vmem:[%s20996_s3 + $0x96c] sm:$0xf]  ;;  %v11081_v9 = vld [vmem:[%s20996_s3 + $0xb78] sm:$0xf0] }
 0x577   : > { %v18039_v8 = vpop.f32.mrf.mxu3  ;;  %v13294_v0 = vld [vmem:[%s20996_s3 + $0xb6c] sm:$0xf] }
 0x578   : > { %v18051_v53 = vpop.f32.mrf.mxu2  ;;  %5766 = vmatpush.bf16.msra.mxu2 %v11100_v17 }
 0x579   : > { %v4722_v2 = vpop.f32.mrf.mxu1  ;;  %5679 = vmatpush.bf16.msra.mxu1 %v11096_v49  ;;  %v10825_v49 = vld [vmem:[%s20996_s3 + $0x978] sm:$0xf0] }
 0x57a   : > { %v4723_v57 = vadd.f32 %v4722_v2, %v17918_v30  ;;  %5708 = vmatpush.bf16.msra.mxu3 %v10844_v29  ;;  %v11080_v30 = vor.u32 %v13296_v42, %v11079_v6  ;;  %v10828_v21 = vor.u32 %v13230_v46, %v10825_v49  ;;  %v11084_v2 = vor.u32 %v13294_v0, %v11081_v9  ;;  %v13292_v6 = vld [vmem:[%s20996_s3 + $0xb54] sm:$0xf0]  ;;  %v10809_v46 = vld [vmem:[%s20996_s3 + $0x958] sm:$0xf0] }
 0x57b   : > { %v4676_v62 = vpop.f32.mrf.mxu0 }
 0x57c   : > { %v18073_v35 = vadd.f32 %v4723_v57, %v17254_v28  ;;  %5573 = vmatmul.bf16.gmra.mxu1 %v21290_v51  ;;  %5602 = vmatmul.bf16.gmra.mxu3 %v21294_v56  ;;  %v18087_v28 = vadd.f32 %v17961_v31, %v4676_v62  ;;  %v11063_v57 = vld [vmem:[%s20996_s3 + $0xb48] sm:$0xf]  ;;  %v13226_v31 = vld [vmem:[%s20996_s3 + $0x94c] sm:$0xf] }
 0x57d   : > { %5660 = vmatmul.bf16.gmra.mxu2 %v21290_v51  ;;  %5680 = vmatpush.bf16.msra.mxu1 %v11080_v30  ;;  %v11064_v17 = vor.u32 %v13292_v6, %v11063_v57  ;;  %v13290_v62 = vld [vmem:[%s20996_s3 + $0xb4c] sm:$0xf]  ;;  %v11065_v30 = vld [vmem:[%s20996_s3 + $0xb58] sm:$0xf0]  ;;  %v10812_v0 = vor.u32 %v13226_v31, %v10809_v46  ;;  %v11047_v57 = vld [vmem:[%s20996_s3 + $0xb28] sm:$0xf] }
 0x57e   : > { %21303 = vst [vmem:[#allocation42_spill] sm:$0xff] %v18073_v35  ;;  %5709 = vmatpush.bf16.msra.mxu3 %v10828_v21  ;;  %5767 = vmatpush.bf16.msra.mxu2 %v11084_v2  ;;  %v11068_v21 = vor.u32 %v13290_v62, %v11065_v30  ;;  %v13288_v6 = vld [vmem:[%s20996_s3 + $0xb34] sm:$0xf0]  ;;  %v13222_v35 = vld [vmem:[%s20996_s3 + $0x92c] sm:$0xf] }
 0x57f   : > { %v18090_v29 = vpop.f32.mrf.mxu3  ;;  %v11048_v2 = vor.u32 %v13288_v6, %v11047_v57  ;;  %v13286_v46 = vld [vmem:[%s20996_s3 + $0xb2c] sm:$0xf]  ;;  %v11049_v62 = vld [vmem:[%s20996_s3 + $0xb38] sm:$0xf0] }
 0x580   : > { %v18101_v42 = vpop.f32.mrf.mxu2 }
 0x581   : > { %v4724_v49 = vpop.f32.mrf.mxu1  ;;  %5681 = vmatpush.bf16.msra.mxu1 %v11064_v17  ;;  %v10793_v17 = vld [vmem:[%s20996_s3 + $0x938] sm:$0xf0] }
 0x582   : > { %v4725_v9 = vadd.f32 %v4724_v49, %v17939_v32  ;;  %5710 = vmatpush.bf16.msra.mxu3 %v10812_v0  ;;  %v10796_v49 = vor.u32 %v13222_v35, %v10793_v17  ;;  %5768 = vmatpush.bf16.msra.mxu2 %v11068_v21  ;;  %v13278_v0 = vld [vmem:[%s20996_s3 + $0xaec] sm:$0xf]  ;;  %v11031_v35 = vld [vmem:[%s20996_s3 + $0xb08] sm:$0xf]  ;;  %v13284_v21 = vld [vmem:[%s20996_s3 + $0xb14] sm:$0xf0] }
 0x583   : > { %v4775_v32 = vpop.f32.mrf.mxu0  ;;  %v10777_v17 = vld [vmem:[%s20996_s3 + $0x918] sm:$0xf0] }
 0x584   : > { %v18123_v31 = vadd.f32 %v4725_v9, %v17305_v40  ;;  %v4776_v30 = vadd.f32 %v4775_v32, %v17993_v24  ;;  %v11052_v40 = vor.u32 %v13286_v46, %v11049_v62  ;;  %v11017_v9 = vld [vmem:[%s20996_s3 + $0xaf8] sm:$0xf0]  ;;  %v13218_v32 = vld [vmem:[%s20996_s3 + $0x90c] sm:$0xf] }
 0x585   : > { %5682 = vmatpush.bf16.msra.mxu1 %v11048_v2  ;;  %v11020_v24 = vor.u32 %v13278_v0, %v11017_v9  ;;  %v13282_v46 = vld [vmem:[%s20996_s3 + $0xb0c] sm:$0xf]  ;;  %v11033_v62 = vld [vmem:[%s20996_s3 + $0xb18] sm:$0xf0]  ;;  %v10780_v9 = vor.u32 %v13218_v32, %v10777_v17 }
 0x586   : > { %21304 = vst [vmem:[#allocation27_spill] sm:$0xff] %v18123_v31  ;;  %v4805_v57 = vadd.f32 %v18004_v3, %v4776_v30  ;;  %5626 = vmatmul.bf16.vlgmr.msrb.gmra.mxu0 %v15361_v1  ;;  %5711 = vmatpush.bf16.msra.mxu3 %v10796_v49  ;;  %v11032_v3 = vor.u32 %v13284_v21, %v11031_v35  ;;  %v21305_v30 = vld [vmem:[#allocation23_spill] sm:$0xff] }
 0x587   : > { %v18142_v6 = vpop.f32.mrf.mxu3  ;;  %5734 = vmatpush.bf16.msra.mxu0 %v11020_v24  ;;  %5769 = vmatpush.bf16.msra.mxu2 %v11052_v40  ;;  %v11036_v21 = vor.u32 %v13282_v46, %v11033_v62  ;;  %v13274_v31 = vld [vmem:[%s20996_s3 + $0xacc] sm:$0xf]  ;;  %v10969_v62 = vld [vmem:[%s20996_s3 + $0xa98] sm:$0xf0] }
 0x588   : > { %v18154_v2 = vpop.f32.mrf.mxu2  ;;  %v18166_v49 = vadd.f32 %v4805_v57, %v21305_v30  ;;  %v11004_v33 = vor.u32 %v13274_v31, %v11001_v27  ;;  %v13270_v40 = vld [vmem:[%s20996_s3 + $0xaac] sm:$0xf] }
 0x589   : > { %v4727_v0 = vpop.f32.mrf.mxu1  ;;  %5683 = vmatpush.bf16.msra.mxu1 %v11032_v3  ;;  %v13266_v46 = vld [vmem:[%s20996_s3 + $0xa8c] sm:$0xf] }
 0x58a   : > { %v4728_v35 = vadd.f32 %v4727_v0, %v17958_v43  ;;  %5712 = vmatpush.bf16.msra.mxu3 %v10780_v9  ;;  %v10972_v30 = vor.u32 %v13266_v46, %v10969_v62  ;;  %v10953_v9 = vld [vmem:[%s20996_s3 + $0xa78] sm:$0xf0] }
 0x58b   : > { %v4777_v24 = vpop.f32.mrf.mxu0  ;;  %5735 = vmatpush.bf16.msra.mxu0 %v11004_v33  ;;  %5770 = vmatpush.bf16.msra.mxu2 %v11036_v21 }
 0x58c   : > { %v18176_v57 = vadd.f32 %v4728_v35, %v17356_v63  ;;  %5578 = vmatmul.bf16.gmra.mxu1 %v15194_v36  ;;  %5607 = vmatmul.bf16.gmra.mxu3 %v15278_v61  ;;  %v4778_v43 = vadd.f32 %v4777_v24, %v18039_v8  ;;  %v10985_v63 = vld [vmem:[%s20996_s3 + $0xab8] sm:$0xf0] }
 0x58d   : > { %5665 = vmatmul.bf16.gmra.mxu2 %v15194_v36  ;;  %v10988_v32 = vor.u32 %v13270_v40, %v10985_v63  ;;  %v13258_v63 = vld [vmem:[%s20996_s3 + $0xa4c] sm:$0xf] }
 0x58e   : > { %v4807_v27 = vadd.f32 %v18051_v53, %v4778_v43 }
 0x58f   : > { %v4756_v31 = vpop.f32.mrf.mxu3  ;;  %5736 = vmatpush.bf16.msra.mxu0 %v10988_v32 }
 0x590   : > { %v4814_v3 = vpop.f32.mrf.mxu2  ;;  %v18190_v17 = vadd.f32 %v4807_v27, %v17375_v11 }
 0x591   : > { %v4729_v8 = vpop.f32.mrf.mxu1 }
 0x592   : > { %v4730_v33 = vadd.f32 %v4729_v8, %v17990_v41  ;;  %v13262_v41 = vld [vmem:[%s20996_s3 + $0xa6c] sm:$0xf] }
 0x593   : > { %v4780_v0 = vpop.f32.mrf.mxu0  ;;  %5737 = vmatpush.bf16.msra.mxu0 %v10972_v30  ;;  %v10956_v24 = vor.u32 %v13262_v41, %v10953_v9  ;;  %v13250_v41 = vld [vmem:[%s20996_s3 + $0xa0c] sm:$0xf] }
 0x594   : > { %v18200_v53 = vadd.f32 %v4730_v33, %v17379_v34  ;;  %v4781_v11 = vadd.f32 %v4780_v0, %v18090_v29  ;;  %v10921_v33 = vld [vmem:[%s20996_s3 + $0xa38] sm:$0xf0] }
 0x596   : > { %v4810_v35 = vadd.f32 %v18101_v42, %v4781_v11  ;;  %5631 = vmatmul.bf16.gmra.mxu0 %v21289_v25  ;;  %v10937_v42 = vld [vmem:[%s20996_s3 + $0xa58] sm:$0xf0] }
 0x597   : > { %v4758_v21 = vpop.f32.mrf.mxu3  ;;  %5738 = vmatpush.bf16.msra.mxu0 %v10956_v24  ;;  %v10940_v27 = vor.u32 %v13258_v63, %v10937_v42 }
 0x598   : > { %v4816_v34 = vpop.f32.mrf.mxu2  ;;  %v18212_v43 = vadd.f32 %v4810_v35, %v17395_v48 }
 0x599   : > { %v4732_v29 = vpop.f32.mrf.mxu1 }
 0x59a   : > { %v4733_v40 = vadd.f32 %v4732_v29, %v18037_v47  ;;  %v13254_v47 = vld [vmem:[%s20996_s3 + $0xa2c] sm:$0xf] }
 0x59b   : > { %v4782_v8 = vpop.f32.mrf.mxu0  ;;  %5739 = vmatpush.bf16.msra.mxu0 %v10940_v27  ;;  %v10924_v62 = vor.u32 %v13254_v47, %v10921_v33  ;;  %v11359_v27 = vld [vmem:[%s20996_s3 + $0xce0] sm:$0xf]  ;;  %v11361_v47 = vld [vmem:[%s20996_s3 + $0xcf0] sm:$0xf0] }
 0x59c   : > { %v18222_v32 = vadd.f32 %v4733_v40, %v17400_v15  ;;  %5583 = vmatmul.bf16.gmra.mxu1 %v21297_v59  ;;  %5612 = vmatmul.bf16.gmra.mxu3 %v21302_v7  ;;  %v4783_v48 = vadd.f32 %v4782_v8, %v18142_v6  ;;  %v13375_v8 = vld [vmem:[%s20996_s3 + $0xdec] sm:$0xf0] }
 0x59d   : > { %5670 = vmatmul.bf16.gmra.mxu2 %v21297_v59 }
 0x59e   : > { %v4812_v15 = vadd.f32 %v18154_v2, %v4783_v48  ;;  %v10905_v2 = vld [vmem:[%s20996_s3 + $0xa18] sm:$0xf0]  ;;  %v13341_v48 = vld [vmem:[%s20996_s3 + $0xce4] sm:$0xf] }
 0x59f   : > { %v18235_v46 = vpop.f32.mrf.mxu3  ;;  %5740 = vmatpush.bf16.msra.mxu0 %v10924_v62  ;;  %v10908_v9 = vor.u32 %v13250_v41, %v10905_v2  ;;  %v11364_v62 = vor.u32 %v13341_v48, %v11361_v47  ;;  %v13339_v41 = vld [vmem:[%s20996_s3 + $0xccc] sm:$0xf0]  ;;  %v13333_v47 = vld [vmem:[%s20996_s3 + $0xca4] sm:$0xf] }
 0x5a0   : > { %v18237_v30 = vpop.f32.mrf.mxu2  ;;  %v18240_v6 = vadd.f32 %v4812_v15, %v17417_v23  ;;  %v13367_v48 = vld [vmem:[%s20996_s3 + $0xdac] sm:$0xf0] }
 0x5a1   : > { %v4734_v0 = vpop.f32.mrf.mxu1  ;;  %6499 = vmatpush.bf16.msrb.mxu2 %v11364_v62 }
 0x5a2   : > { %v4735_v11 = vadd.f32 %v4734_v0, %v18087_v28 }
 0x5a3   : > { %v4785_v24 = vpop.f32.mrf.mxu0  ;;  %5741 = vmatpush.bf16.msra.mxu0 %v10908_v9  ;;  %v13371_v9 = vld [vmem:[%s20996_s3 + $0xdcc] sm:$0xf0] }
 0x5a4   : > { %v18250_v35 = vadd.f32 %v4735_v11, %v17421_v50  ;;  %v4786_v29 = vadd.f32 %v4785_v24, %v4756_v31  ;;  %v13343_v50 = vld [vmem:[%s20996_s3 + $0xcec] sm:$0xf0]  ;;  %v11487_v31 = vld [vmem:[%s20996_s3 + $0xde0] sm:$0xf]  ;;  %v13337_v24 = vld [vmem:[%s20996_s3 + $0xcc4] sm:$0xf] }
 0x5a5   : > { %v11488_v15 = vor.u32 %v13375_v8, %v11487_v31  ;;  %v11343_v11 = vld [vmem:[%s20996_s3 + $0xcc0] sm:$0xf] }
 0x5a6   : > { %v4815_v23 = vadd.f32 %v4814_v3, %v4786_v29  ;;  %5636 = vmatmul.bf16.gmra.mxu0 %v15192_v20  ;;  %v11345_v29 = vld [vmem:[%s20996_s3 + $0xcd0] sm:$0xf0]  ;;  %v11327_v31 = vld [vmem:[%s20996_s3 + $0xca0] sm:$0xf] }
 0x5a7   : > { %v18252_v40 = vpop.f32.mrf.mxu3  ;;  %6441 = vmatpush.bf16.msrb.mxu3 %v11488_v15 }
 0x5a8   : > { %v18255_v28 = vpop.f32.mrf.mxu2  ;;  %v18258_v63 = vadd.f32 %v4815_v23, %v17429_v14  ;;  %v11360_v14 = vor.u32 %v13343_v50, %v11359_v27  ;;  %v11348_v50 = vor.u32 %v13337_v24, %v11345_v29  ;;  %v13363_v24 = vld [vmem:[%s20996_s3 + $0xd8c] sm:$0xf0]  ;;  %v13329_v29 = vld [vmem:[%s20996_s3 + $0xc84] sm:$0xf] }
 0x5a9   : > { %v5453_v42 = vpop.f32.mrf.mxu1 }
 0x5aa   : > { %6412 = vmatpush.bf16.msrb.mxu1 %v11360_v14  ;;  %6500 = vmatpush.bf16.msrb.mxu2 %v11348_v50  ;;  %v11455_v14 = vld [vmem:[%s20996_s3 + $0xda0] sm:$0xf] }
 0x5ab   : > { %v4787_v3 = vpop.f32.mrf.mxu0  ;;  %v11456_v62 = vor.u32 %v13367_v48, %v11455_v14  ;;  %v11295_v14 = vld [vmem:[%s20996_s3 + $0xc60] sm:$0xf] }
 0x5ac   : > { %5684 = vmatmul.bf16.vlgmr.msra.gmra.mxu1 %v21292_v4  ;;  %5713 = vmatmul.bf16.vlgmr.msra.gmra.mxu3 %v15361_v1  ;;  %v4788_v33 = vadd.f32 %v4787_v3, %v4758_v21  ;;  %v11471_v21 = vld [vmem:[%s20996_s3 + $0xdc0] sm:$0xf]  ;;  %v13335_v3 = vld [vmem:[%s20996_s3 + $0xcac] sm:$0xf0] }
 0x5ad   : > { %5771 = vmatmul.bf16.vlgmr.msra.gmra.mxu2 %v21292_v4  ;;  %v11472_v27 = vor.u32 %v13371_v9, %v11471_v21  ;;  %v11328_v8 = vor.u32 %v13335_v3, %v11327_v31  ;;  %v13331_v21 = vld [vmem:[%s20996_s3 + $0xc8c] sm:$0xf0] }
 0x5ae   : > { %v4817_v1 = vadd.f32 %v4816_v34, %v4788_v33  ;;  %v11344_v34 = vor.u32 %v13339_v41, %v11343_v11  ;;  %v11329_v33 = vld [vmem:[%s20996_s3 + $0xcb0] sm:$0xf0]  ;;  %v11311_v41 = vld [vmem:[%s20996_s3 + $0xc80] sm:$0xf] }
 0x5af   : > { %v5482_v0 = vpop.f32.mrf.mxu3  ;;  %6442 = vmatpush.bf16.msrb.mxu3 %v11472_v27  ;;  %v11313_v27 = vld [vmem:[%s20996_s3 + $0xc90] sm:$0xf0] }
 0x5b0   : > { %v18290_v4 = vadd.f32 %v5482_v0, %v5453_v42  ;;  %v18292_v2 = vpop.f32.mrf.mxu2  ;;  %v18304_v23 = vadd.f32 %v4817_v1, %v17458_v19  ;;  %6413 = vmatpush.bf16.msrb.mxu1 %v11344_v34  ;;  %v11332_v1 = vor.u32 %v13333_v47, %v11329_v33  ;;  %v11316_v3 = vor.u32 %v13329_v29, %v11313_v27  ;;  %v13359_v47 = vld [vmem:[%s20996_s3 + $0xd6c] sm:$0xf0]  ;;  %v13325_v33 = vld [vmem:[%s20996_s3 + $0xc64] sm:$0xf]  ;;  %v11281_v29 = vld [vmem:[%s20996_s3 + $0xc50] sm:$0xf0] }
 0x5b1   : > { %v5455_v42 = vpop.f32.mrf.mxu1 }
 0x5b2   : > { %6501 = vmatpush.bf16.msrb.mxu2 %v11332_v1 }
 0x5b3   : > { %v4790_v19 = vpop.f32.mrf.mxu0  ;;  %6443 = vmatpush.bf16.msrb.mxu3 %v11456_v62 }
 0x5b4   : > { %v4791_v15 = vadd.f32 %v4790_v19, %v18235_v46  ;;  %6414 = vmatpush.bf16.msrb.mxu1 %v11328_v8  ;;  %v11439_v46 = vld [vmem:[%s20996_s3 + $0xd80] sm:$0xf]  ;;  %v13327_v19 = vld [vmem:[%s20996_s3 + $0xc6c] sm:$0xf0] }
 0x5b5   : > { %v11440_v31 = vor.u32 %v13363_v24, %v11439_v46  ;;  %v11423_v8 = vld [vmem:[%s20996_s3 + $0xd60] sm:$0xf]  ;;  %v13321_v24 = vld [vmem:[%s20996_s3 + $0xc44] sm:$0xf] }
 0x5b6   : > { %v4820_v0 = vadd.f32 %v18237_v30, %v4791_v15  ;;  %5641 = vmatmul.bf16.gmra.mxu0 %v21296_v37  ;;  %v11312_v30 = vor.u32 %v13331_v21, %v11311_v41  ;;  %v11297_v15 = vld [vmem:[%s20996_s3 + $0xc70] sm:$0xf0]  ;;  %v11424_v1 = vor.u32 %v13359_v47, %v11423_v8  ;;  %6502 = vmatpush.bf16.msrb.mxu2 %v11316_v3  ;;  %v11279_v41 = vld [vmem:[%s20996_s3 + $0xc40] sm:$0xf]  ;;  %v13323_v21 = vld [vmem:[%s20996_s3 + $0xc4c] sm:$0xf0] }
 0x5b7   : > { %v5484_v11 = vpop.f32.mrf.mxu3  ;;  %6444 = vmatpush.bf16.msrb.mxu3 %v11440_v31  ;;  %v11284_v3 = vor.u32 %v13321_v24, %v11281_v29  ;;  %v11391_v8 = vld [vmem:[%s20996_s3 + $0xd20] sm:$0xf]  ;;  %v13317_v47 = vld [vmem:[%s20996_s3 + $0xc24] sm:$0xf] }
 0x5b8   : > { %v18336_v34 = vadd.f32 %v5484_v11, %v5455_v42  ;;  %v18338_v9 = vpop.f32.mrf.mxu2  ;;  %v18350_v50 = vadd.f32 %v4820_v0, %v17500_v54  ;;  %6415 = vmatpush.bf16.msrb.mxu1 %v11312_v30  ;;  %v11296_v54 = vor.u32 %v13327_v19, %v11295_v14  ;;  %v11280_v30 = vor.u32 %v13323_v21, %v11279_v41  ;;  %v11263_v14 = vld [vmem:[%s20996_s3 + $0xc20] sm:$0xf]  ;;  %v13319_v19 = vld [vmem:[%s20996_s3 + $0xc2c] sm:$0xf0]  ;;  %v13313_v29 = vld [vmem:[%s20996_s3 + $0xc04] sm:$0xf] }
 0x5b9   : > { %v5458_v42 = vpop.f32.mrf.mxu1  ;;  %v11247_v21 = vld [vmem:[%s20996_s3 + $0xc00] sm:$0xf] }
 0x5bb   : > { %v4792_v48 = vpop.f32.mrf.mxu0  ;;  %6445 = vmatpush.bf16.msrb.mxu3 %v11424_v1 }
 0x5bc   : > { %5689 = vmatmul.bf16.gmra.mxu1 %v21294_v56  ;;  %5718 = vmatmul.bf16.gmra.mxu3 %v21289_v25  ;;  %v4793_v62 = vadd.f32 %v4792_v48, %v18252_v40  ;;  %v11300_v25 = vor.u32 %v13325_v33, %v11297_v15  ;;  %v11264_v48 = vor.u32 %v13319_v19, %v11263_v14  ;;  %v11265_v33 = vld [vmem:[%s20996_s3 + $0xc30] sm:$0xf0]  ;;  %v11599_v19 = vld [vmem:[%s20996_s3 + $0xec0] sm:$0xf] }
 0x5bd   : > { %5776 = vmatmul.bf16.gmra.mxu2 %v21294_v56  ;;  %6416 = vmatpush.bf16.msrb.mxu1 %v11296_v54  ;;  %v11407_v56 = vld [vmem:[%s20996_s3 + $0xd40] sm:$0xf]  ;;  %v13351_v54 = vld [vmem:[%s20996_s3 + $0xd2c] sm:$0xf0]  ;;  %v11268_v1 = vor.u32 %v13317_v47, %v11265_v33 }
 0x5be   : > { %v4822_v0 = vadd.f32 %v18255_v28, %v4793_v62  ;;  %v13355_v28 = vld [vmem:[%s20996_s3 + $0xd4c] sm:$0xf0]  ;;  %6503 = vmatpush.bf16.msrb.mxu2 %v11300_v25  ;;  %v11392_v62 = vor.u32 %v13351_v54, %v11391_v8  ;;  %v11615_v25 = vld [vmem:[%s20996_s3 + $0xee0] sm:$0xf] }
 0x5bf   : > { %v5487_v11 = vpop.f32.mrf.mxu3  ;;  %v11408_v31 = vor.u32 %v13355_v28, %v11407_v56  ;;  %v13315_v56 = vld [vmem:[%s20996_s3 + $0xc0c] sm:$0xf0]  ;;  %v11583_v47 = vld [vmem:[%s20996_s3 + $0xea0] sm:$0xf] }
 0x5c0   : > { %v18384_v40 = vadd.f32 %v5487_v11, %v5458_v42  ;;  %v18386_v46 = vpop.f32.mrf.mxu2  ;;  %v18398_v27 = vadd.f32 %v4822_v0, %v17548_v44  ;;  %v13407_v0 = vld [vmem:[%s20996_s3 + $0xeec] sm:$0xf0]  ;;  %v11248_v24 = vor.u32 %v13315_v56, %v11247_v21 }
 0x5c1   : > { %v5460_v42 = vpop.f32.mrf.mxu1  ;;  %6417 = vmatpush.bf16.msrb.mxu1 %v11280_v30  ;;  %6446 = vmatpush.bf16.msrb.mxu3 %v11408_v31  ;;  %v11375_v30 = vld [vmem:[%s20996_s3 + $0xd00] sm:$0xf]  ;;  %v11249_v31 = vld [vmem:[%s20996_s3 + $0xc10] sm:$0xf0]  ;;  %v13403_v8 = vld [vmem:[%s20996_s3 + $0xecc] sm:$0xf0] }
 0x5c2   : > { %6504 = vmatpush.bf16.msrb.mxu2 %v11284_v3  ;;  %v13399_v33 = vld [vmem:[%s20996_s3 + $0xeac] sm:$0xf0] }
 0x5c3   : > { %v5511_v44 = vpop.f32.mrf.mxu0 }
 0x5c4   : > { %v5512_v15 = vadd.f32 %v5511_v44, %v18290_v4  ;;  %v11616_v4 = vor.u32 %v13407_v0, %v11615_v25  ;;  %v11600_v44 = vor.u32 %v13403_v8, %v11599_v19  ;;  %v13387_v19 = vld [vmem:[%s20996_s3 + $0xe4c] sm:$0xf0] }
 0x5c5   : > { %6418 = vmatpush.bf16.msrb.mxu1 %v11264_v48  ;;  %6447 = vmatpush.bf16.msrb.mxu3 %v11392_v62 }
 0x5c6   : > { %v18426_v11 = vadd.f32 %v5512_v15, %v17598_v12  ;;  %5742 = vmatmul.bf16.vlgmr.msra.gmra.mxu0 %v15363_v16  ;;  %v13347_v16 = vld [vmem:[%s20996_s3 + $0xd0c] sm:$0xf0]  ;;  %6505 = vmatpush.bf16.msrb.mxu2 %v11268_v1  ;;  %v11584_v1 = vor.u32 %v13399_v33, %v11583_v47 }
 0x5c7   : > { %v5489_v41 = vpop.f32.mrf.mxu3  ;;  %6470 = vmatpush.bf16.msrb.mxu0 %v11616_v4  ;;  %v11376_v14 = vor.u32 %v13347_v16, %v11375_v30  ;;  %v13395_v4 = vld [vmem:[%s20996_s3 + $0xe8c] sm:$0xf0]  ;;  %v11551_v30 = vld [vmem:[%s20996_s3 + $0xe60] sm:$0xf] }
 0x5c8   : > { %v5490_v28 = vadd.f32 %v5489_v41, %v5460_v42  ;;  %v18438_v12 = vpop.f32.mrf.mxu2  ;;  %v11252_v42 = vor.u32 %v13313_v29, %v11249_v31  ;;  %v11567_v41 = vld [vmem:[%s20996_s3 + $0xe80] sm:$0xf] }
 0x5c9   : > { %v5463_v3 = vpop.f32.mrf.mxu1  ;;  %6419 = vmatpush.bf16.msrb.mxu1 %v11248_v24  ;;  %6448 = vmatpush.bf16.msrb.mxu3 %v11376_v14  ;;  %v11568_v21 = vor.u32 %v13395_v4, %v11567_v41  ;;  %v13391_v24 = vld [vmem:[%s20996_s3 + $0xe6c] sm:$0xf0] }
 0x5ca   : > { %6506 = vmatpush.bf16.msrb.mxu2 %v11252_v42  ;;  %v11552_v31 = vor.u32 %v13391_v24, %v11551_v30  ;;  %v11535_v42 = vld [vmem:[%s20996_s3 + $0xe40] sm:$0xf]  ;;  %v13379_v41 = vld [vmem:[%s20996_s3 + $0xe0c] sm:$0xf0] }
 0x5cb   : > { %v5513_v48 = vpop.f32.mrf.mxu0  ;;  %6471 = vmatpush.bf16.msrb.mxu0 %v11600_v44  ;;  %v11536_v8 = vor.u32 %v13387_v19, %v11535_v42  ;;  %v11519_v44 = vld [vmem:[%s20996_s3 + $0xe20] sm:$0xf] }
 0x5cc   : > { %5694 = vmatmul.bf16.gmra.mxu1 %v15278_v61  ;;  %5723 = vmatmul.bf16.gmra.mxu3 %v15192_v20  ;;  %v5514_v54 = vadd.f32 %v5513_v48, %v18336_v34  ;;  %v13383_v48 = vld [vmem:[%s20996_s3 + $0xe2c] sm:$0xf0] }
 0x5cd   : > { %5781 = vmatmul.bf16.gmra.mxu2 %v15278_v61  ;;  %v11520_v33 = vor.u32 %v13383_v48, %v11519_v44 }
 0x5ce   : > { %v18466_v15 = vadd.f32 %v5514_v54, %v17638_v60 }
 0x5cf   : > { %v5492_v62 = vpop.f32.mrf.mxu3  ;;  %6472 = vmatpush.bf16.msrb.mxu0 %v11584_v1 }
 0x5d0   : > { %v5493_v25 = vadd.f32 %v5492_v62, %v5463_v3  ;;  %v18468_v0 = vpop.f32.mrf.mxu2 }
 0x5d1   : > { %v5465_v34 = vpop.f32.mrf.mxu1 }
 0x5d3   : > { %v5516_v56 = vpop.f32.mrf.mxu0  ;;  %6473 = vmatpush.bf16.msrb.mxu0 %v11568_v21 }
 0x5d4   : > { %v5517_v60 = vadd.f32 %v5516_v56, %v18384_v40 }
 0x5d6   : > { %v18484_v16 = vadd.f32 %v5517_v60, %v17656_v13  ;;  %5747 = vmatmul.bf16.gmra.mxu0 %v21290_v51 }
 0x5d7   : > { %v5494_v29 = vpop.f32.mrf.mxu3  ;;  %6474 = vmatpush.bf16.msrb.mxu0 %v11552_v31 }
 0x5d8   : > { %v5495_v3 = vadd.f32 %v5494_v29, %v5465_v34  ;;  %v18487_v14 = vpop.f32.mrf.mxu2  ;;  %v11503_v34 = vld [vmem:[%s20996_s3 + $0xe00] sm:$0xf] }
 0x5d9   : > { %v5468_v40 = vpop.f32.mrf.mxu1  ;;  %v11504_v4 = vor.u32 %v13379_v41, %v11503_v34  ;;  %v11473_v34 = vld [vmem:[%s20996_s3 + $0xdd0] sm:$0xf0] }
 0x5db   : > { %v5518_v13 = vpop.f32.mrf.mxu0  ;;  %6475 = vmatpush.bf16.msrb.mxu0 %v11536_v8  ;;  %v11495_v8 = vld [vmem:[%s20996_s3 + $0xde8] sm:$0xf] }
 0x5dc   : > { %5699 = vmatmul.bf16.gmra.mxu1 %v21302_v7  ;;  %5728 = vmatmul.bf16.gmra.mxu3 %v21296_v37  ;;  %v5519_v51 = vadd.f32 %v5518_v13, %v5490_v28  ;;  %v13376_v13 = vld [vmem:[%s20996_s3 + $0xdf4] sm:$0xf0] }
 0x5dd   : > { %5786 = vmatmul.bf16.gmra.mxu2 %v21302_v7  ;;  %v11496_v48 = vor.u32 %v13376_v13, %v11495_v8  ;;  %v11463_v13 = vld [vmem:[%s20996_s3 + $0xda8] sm:$0xf] }
 0x5de   : > { %v18505_v54 = vadd.f32 %v5519_v51, %v17677_v22 }
 0x5df   : > { %v5497_v47 = vpop.f32.mrf.mxu3  ;;  %6476 = vmatpush.bf16.msrb.mxu0 %v11520_v33  ;;  %6615 = vmatpush.bf16.msra.mxu2 %v11496_v48 }
 0x5e0   : > { %v5498_v62 = vadd.f32 %v5497_v47, %v5468_v40  ;;  %v18507_v1 = vpop.f32.mrf.mxu2  ;;  %v13373_v40 = vld [vmem:[%s20996_s3 + $0xde4] sm:$0xf] }
 0x5e1   : > { %v5470_v28 = vpop.f32.mrf.mxu1 }
 0x5e3   : > { %v5521_v21 = vpop.f32.mrf.mxu0  ;;  %6477 = vmatpush.bf16.msrb.mxu0 %v11504_v4 }
 0x5e4   : > { %v5522_v56 = vadd.f32 %v5521_v21, %v5493_v25  ;;  %v11489_v25 = vld [vmem:[%s20996_s3 + $0xdf0] sm:$0xf0] }
 0x5e5   : > { %v11492_v19 = vor.u32 %v13373_v40, %v11489_v25  ;;  %v11601_v21 = vld [vmem:[%s20996_s3 + $0xed0] sm:$0xf0] }
 0x5e6   : > { %v18516_v22 = vadd.f32 %v5522_v56, %v17688_v45  ;;  %5752 = vmatmul.bf16.gmra.mxu0 %v15194_v36  ;;  %v13405_v45 = vld [vmem:[%s20996_s3 + $0xee4] sm:$0xf]  ;;  %v11479_v56 = vld [vmem:[%s20996_s3 + $0xdc8] sm:$0xf] }
 0x5e7   : > { %v5499_v60 = vpop.f32.mrf.mxu3  ;;  %6528 = vmatpush.bf16.msra.mxu1 %v11492_v19  ;;  %v11457_v19 = vld [vmem:[%s20996_s3 + $0xdb0] sm:$0xf0] }
 0x5e8   : > { %v18519_v30 = vadd.f32 %v5499_v60, %v5470_v28  ;;  %v18521_v24 = vpop.f32.mrf.mxu2  ;;  %v13369_v28 = vld [vmem:[%s20996_s3 + $0xdc4] sm:$0xf]  ;;  %v13372_v60 = vld [vmem:[%s20996_s3 + $0xdd4] sm:$0xf0] }
 0x5e9   : > { %v5569_v29 = vpop.f32.mrf.mxu1  ;;  %v11480_v25 = vor.u32 %v13372_v60, %v11479_v56  ;;  %v11569_v56 = vld [vmem:[%s20996_s3 + $0xe90] sm:$0xf0]  ;;  %v11447_v60 = vld [vmem:[%s20996_s3 + $0xd88] sm:$0xf] }
 0x5ea   : > { %v5570_v31 = vadd.f32 %v5569_v29, %v18292_v2  ;;  %v11617_v2 = vld [vmem:[%s20996_s3 + $0xef0] sm:$0xf0] }
 0x5eb   : > { %v5523_v42 = vpop.f32.mrf.mxu0  ;;  %v11620_v44 = vor.u32 %v13405_v45, %v11617_v2  ;;  %6616 = vmatpush.bf16.msra.mxu2 %v11480_v25  ;;  %v13397_v2 = vld [vmem:[%s20996_s3 + $0xea4] sm:$0xf] }
 0x5ec   : > { %6420 = vmatmul.bf16.vlgmr.msrb.gmra.mxu1 %v15192_v20  ;;  %6449 = vmatmul.bf16.vlgmr.msrb.gmra.mxu3 %v15194_v36  ;;  %v5524_v51 = vadd.f32 %v5523_v42, %v5495_v3  ;;  %v13401_v3 = vld [vmem:[%s20996_s3 + $0xec4] sm:$0xf] }
 0x5ed   : > { %6507 = vmatmul.bf16.vlgmr.msrb.gmra.mxu2 %v15192_v20  ;;  %6557 = vmatpush.bf16.msra.mxu3 %v11620_v44  ;;  %v11604_v40 = vor.u32 %v13401_v3, %v11601_v21  ;;  %v13365_v42 = vld [vmem:[%s20996_s3 + $0xda4] sm:$0xf] }
 0x5ee   : > { %v18546_v47 = vadd.f32 %v5524_v51, %v17718_v10  ;;  %v11476_v10 = vor.u32 %v13369_v28, %v11473_v34  ;;  %v13368_v51 = vld [vmem:[%s20996_s3 + $0xdb4] sm:$0xf0]  ;;  %v13361_v3 = vld [vmem:[%s20996_s3 + $0xd84] sm:$0xf] }
 0x5ef   : > { %v5598_v33 = vpop.f32.mrf.mxu3 }
 0x5f0   : > { %v5599_v41 = vadd.f32 %v5598_v33, %v5570_v31  ;;  %v18557_v4 = vpop.f32.mrf.mxu2  ;;  %6529 = vmatpush.bf16.msra.mxu1 %v11476_v10  ;;  %v11464_v33 = vor.u32 %v13368_v51, %v11463_v13  ;;  %v11431_v13 = vld [vmem:[%s20996_s3 + $0xd68] sm:$0xf]  ;;  %v13360_v51 = vld [vmem:[%s20996_s3 + $0xd74] sm:$0xf0] }
 0x5f1   : > { %v5571_v29 = vpop.f32.mrf.mxu1  ;;  %6558 = vmatpush.bf16.msra.mxu3 %v11604_v40 }
 0x5f2   : > { %v18569_v31 = vadd.f32 %v5599_v41, %v17741_v5  ;;  %v5572_v45 = vadd.f32 %v5571_v29, %v18338_v9  ;;  %v11460_v5 = vor.u32 %v13365_v42, %v11457_v19  ;;  %v11585_v9 = vld [vmem:[%s20996_s3 + $0xeb0] sm:$0xf0]  ;;  %6617 = vmatpush.bf16.msra.mxu2 %v11464_v33  ;;  %v13364_v29 = vld [vmem:[%s20996_s3 + $0xd94] sm:$0xf0]  ;;  %v11432_v33 = vor.u32 %v13360_v51, %v11431_v13 }
 0x5f3   : > { %v5526_v8 = vpop.f32.mrf.mxu0  ;;  %v11588_v48 = vor.u32 %v13397_v2, %v11585_v9  ;;  %v11441_v41 = vld [vmem:[%s20996_s3 + $0xd90] sm:$0xf0]  ;;  %v11448_v19 = vor.u32 %v13364_v29, %v11447_v60  ;;  %v13357_v2 = vld [vmem:[%s20996_s3 + $0xd64] sm:$0xf]  ;;  %v11415_v60 = vld [vmem:[%s20996_s3 + $0xd48] sm:$0xf] }
 0x5f4   : > { %v5527_v44 = vadd.f32 %v5526_v8, %v5498_v62  ;;  %6530 = vmatpush.bf16.msra.mxu1 %v11460_v5  ;;  %v13393_v62 = vld [vmem:[%s20996_s3 + $0xe84] sm:$0xf]  ;;  %v11425_v8 = vld [vmem:[%s20996_s3 + $0xd70] sm:$0xf0]  ;;  %v13356_v29 = vld [vmem:[%s20996_s3 + $0xd54] sm:$0xf0] }
 0x5f5   : > { %6559 = vmatpush.bf16.msra.mxu3 %v11588_v48  ;;  %v11572_v25 = vor.u32 %v13393_v62, %v11569_v56  ;;  %v13389_v5 = vld [vmem:[%s20996_s3 + $0xe64] sm:$0xf]  ;;  %v11409_v62 = vld [vmem:[%s20996_s3 + $0xd50] sm:$0xf0]  ;;  %v13352_v13 = vld [vmem:[%s20996_s3 + $0xd34] sm:$0xf0] }
 0x5f6   : > { %v18591_v28 = vadd.f32 %v5527_v44, %v17763_v39  ;;  %5757 = vmatmul.bf16.gmra.mxu0 %v21297_v59  ;;  %v11444_v39 = vor.u32 %v13361_v3, %v11441_v41  ;;  %6618 = vmatpush.bf16.msra.mxu2 %v11448_v19  ;;  %v13353_v41 = vld [vmem:[%s20996_s3 + $0xd44] sm:$0xf] }
 0x5f7   : > { %v5600_v34 = vpop.f32.mrf.mxu3  ;;  %v11412_v56 = vor.u32 %v13353_v41, %v11409_v62 }
 0x5f8   : > { %v5601_v10 = vadd.f32 %v5600_v34, %v5572_v45  ;;  %v18603_v21 = vpop.f32.mrf.mxu2  ;;  %6531 = vmatpush.bf16.msra.mxu1 %v11444_v39 }
 0x5f9   : > { %v5574_v40 = vpop.f32.mrf.mxu1  ;;  %6560 = vmatpush.bf16.msra.mxu3 %v11572_v25 }
 0x5fa   : > { %v18615_v45 = vadd.f32 %v5601_v10, %v17787_v58  ;;  %v5575_v42 = vadd.f32 %v5574_v40, %v18386_v46  ;;  %v11428_v58 = vor.u32 %v13357_v2, %v11425_v8  ;;  %v11553_v46 = vld [vmem:[%s20996_s3 + $0xe70] sm:$0xf0]  ;;  %6619 = vmatpush.bf16.msra.mxu2 %v11432_v33  ;;  %v11416_v2 = vor.u32 %v13356_v29, %v11415_v60  ;;  %v13349_v8 = vld [vmem:[%s20996_s3 + $0xd24] sm:$0xf]  ;;  %v11367_v33 = vld [vmem:[%s20996_s3 + $0xce8] sm:$0xf] }
 0x5fb   : > { %v5528_v9 = vpop.f32.mrf.mxu0  ;;  %v11556_v48 = vor.u32 %v13389_v5, %v11553_v46  ;;  %v11393_v5 = vld [vmem:[%s20996_s3 + $0xd30] sm:$0xf0]  ;;  %v11399_v46 = vld [vmem:[%s20996_s3 + $0xd28] sm:$0xf] }
 0x5fc   : > { %6425 = vmatmul.bf16.gmra.mxu1 %v21296_v37  ;;  %6454 = vmatmul.bf16.gmra.mxu3 %v21297_v59  ;;  %v5529_v44 = vadd.f32 %v5528_v9, %v18519_v30  ;;  %v13385_v30 = vld [vmem:[%s20996_s3 + $0xe44] sm:$0xf]  ;;  %v11505_v29 = vld [vmem:[%s20996_s3 + $0xe10] sm:$0xf0] }
 0x5fd   : > { %6512 = vmatmul.bf16.gmra.mxu2 %v21296_v37  ;;  %6532 = vmatpush.bf16.msra.mxu1 %v11428_v58  ;;  %v13381_v9 = vld [vmem:[%s20996_s3 + $0xe24] sm:$0xf]  ;;  %v11396_v58 = vor.u32 %v13349_v8, %v11393_v5 }
 0x5fe   : > { %v18641_v34 = vadd.f32 %v5529_v44, %v17813_v26  ;;  %6561 = vmatpush.bf16.msra.mxu3 %v11556_v48  ;;  %v11537_v26 = vld [vmem:[%s20996_s3 + $0xe50] sm:$0xf0]  ;;  %6620 = vmatpush.bf16.msra.mxu2 %v11416_v2  ;;  %v11400_v48 = vor.u32 %v13352_v13, %v11399_v46  ;;  %v21307_v13 = vld [vmem:[#allocation17_spill] sm:$0xff] }
 0x5ff   : > { %v5603_v3 = vpop.f32.mrf.mxu3  ;;  %v11540_v25 = vor.u32 %v13385_v30, %v11537_v26  ;;  %v11377_v30 = vld [vmem:[%s20996_s3 + $0xd10] sm:$0xf0] }
 0x600   : > { %v5604_v10 = vadd.f32 %v5603_v3, %v5575_v42  ;;  %v18652_v39 = vpop.f32.mrf.mxu2  ;;  %v13344_v3 = vld [vmem:[%s20996_s3 + $0xcf4] sm:$0xf0] }
 0x601   : > { %v5576_v40 = vpop.f32.mrf.mxu1  ;;  %6533 = vmatpush.bf16.msra.mxu1 %v11412_v56  ;;  %v11368_v62 = vor.u32 %v13344_v3, %v11367_v33 }
 0x602   : > { %v18664_v19 = vadd.f32 %v5604_v10, %v17836_v52  ;;  %v5577_v42 = vadd.f32 %v5576_v40, %v18438_v12  ;;  %6562 = vmatpush.bf16.msra.mxu3 %v11540_v25  ;;  %v11521_v12 = vld [vmem:[%s20996_s3 + $0xe30] sm:$0xf0]  ;;  %v13377_v10 = vld [vmem:[%s20996_s3 + $0xe04] sm:$0xf]  ;;  %v11383_v40 = vld [vmem:[%s20996_s3 + $0xd08] sm:$0xf]  ;;  %6621 = vmatpush.bf16.msra.mxu2 %v11400_v48 }
 0x603   : > { %v5627_v52 = vpop.f32.mrf.mxu0  ;;  %v11524_v44 = vor.u32 %v13381_v9, %v11521_v12  ;;  %v13348_v25 = vld [vmem:[%s20996_s3 + $0xd14] sm:$0xf0]  ;;  %6586 = vmatpush.bf16.msra.mxu0 %v11368_v62  ;;  %v11508_v8 = vor.u32 %v13377_v10, %v11505_v29  ;;  %v11319_v10 = vld [vmem:[%s20996_s3 + $0xc88] sm:$0xf] }
 0x604   : > { %v18686_v51 = vadd.f32 %v18557_v4, %v5627_v52  ;;  %v13345_v4 = vld [vmem:[%s20996_s3 + $0xd04] sm:$0xf]  ;;  %v11384_v9 = vor.u32 %v13348_v25, %v11383_v40  ;;  %v11351_v52 = vld [vmem:[%s20996_s3 + $0xcc8] sm:$0xf]  ;;  %v13336_v48 = vld [vmem:[%s20996_s3 + $0xcb4] sm:$0xf0] }
 0x605   : > { %6534 = vmatpush.bf16.msra.mxu1 %v11396_v58  ;;  %v11380_v60 = vor.u32 %v13345_v4, %v11377_v30  ;;  %v13340_v58 = vld [vmem:[%s20996_s3 + $0xcd4] sm:$0xf0] }
 0x606   : > { %6478 = vmatmul.bf16.vlgmr.msrb.gmra.mxu0 %v15278_v61  ;;  %6563 = vmatpush.bf16.msra.mxu3 %v11524_v44  ;;  %v11352_v12 = vor.u32 %v13340_v58, %v11351_v52  ;;  %v11335_v44 = vld [vmem:[%s20996_s3 + $0xca8] sm:$0xf] }
 0x607   : > { %v5605_v41 = vpop.f32.mrf.mxu3  ;;  %6622 = vmatpush.bf16.msra.mxu2 %v11384_v9  ;;  %v11336_v3 = vor.u32 %v13336_v48, %v11335_v44  ;;  %v11287_v58 = vld [vmem:[%s20996_s3 + $0xc48] sm:$0xf]  ;;  %v21309_v48 = vld [vmem:[#allocation6_spill] sm:$0xff] }
 0x608   : > { %v5606_v56 = vadd.f32 %v5605_v41, %v5577_v42  ;;  %v5663_v26 = vpop.f32.mrf.mxu2  ;;  %6587 = vmatpush.bf16.msra.mxu0 %v11352_v12  ;;  %v13324_v12 = vld [vmem:[%s20996_s3 + $0xc54] sm:$0xf0] }
 0x609   : > { %v5579_v2 = vpop.f32.mrf.mxu1  ;;  %6535 = vmatpush.bf16.msra.mxu1 %v11380_v60 }
 0x60a   : > { %v18714_v5 = vadd.f32 %v5606_v56, %v17886_v18  ;;  %v5580_v42 = vadd.f32 %v5579_v2, %v18468_v0  ;;  %6564 = vmatpush.bf16.msra.mxu3 %v11508_v8  ;;  %v21308_v18 = vld [vmem:[#allocation35_spill] sm:$0xff]  ;;  %v13332_v56 = vld [vmem:[%s20996_s3 + $0xc94] sm:$0xf0] }
 0x60b   : > { %v5629_v46 = vpop.f32.mrf.mxu0  ;;  %v11320_v60 = vor.u32 %v13332_v56, %v11319_v10 }
 0x60c   : > { %21306 = vst [vmem:[#allocation44_spill] sm:$0xff] %v18714_v5  ;;  %6430 = vmatmul.bf16.gmra.mxu1 %v21307_v13  ;;  %6459 = vmatmul.bf16.gmra.mxu3 %v21308_v18  ;;  %v18726_v0 = vadd.f32 %v18603_v21, %v5629_v46  ;;  %v11288_v46 = vor.u32 %v13324_v12, %v11287_v58 }
 0x60d   : > { %6517 = vmatmul.bf16.gmra.mxu2 %v21307_v13  ;;  %6588 = vmatpush.bf16.msra.mxu0 %v11336_v3 }
 0x60f   : > { %v5608_v33 = vpop.f32.mrf.mxu3 }
 0x610   : > { %v5609_v41 = vadd.f32 %v5608_v33, %v5580_v42  ;;  %v5666_v62 = vpop.f32.mrf.mxu2  ;;  %v21310_v33 = vld [vmem:[#allocation20_spill] sm:$0xff] }
 0x611   : > { %v5581_v4 = vpop.f32.mrf.mxu1  ;;  %6589 = vmatpush.bf16.msra.mxu0 %v11320_v60  ;;  %v21311_v60 = vld [vmem:[#allocation39_spill] sm:$0xff] }
 0x612   : > { %v18736_v21 = vadd.f32 %v5609_v41, %v17908_v38  ;;  %v5582_v30 = vadd.f32 %v5581_v4, %v18487_v14  ;;  %v11303_v38 = vld [vmem:[%s20996_s3 + $0xc68] sm:$0xf]  ;;  %v13328_v14 = vld [vmem:[%s20996_s3 + $0xc74] sm:$0xf0] }
 0x613   : > { %v5632_v29 = vpop.f32.mrf.mxu0  ;;  %v11304_v2 = vor.u32 %v13328_v14, %v11303_v38  ;;  %v11255_v38 = vld [vmem:[%s20996_s3 + $0xc08] sm:$0xf]  ;;  %v13316_v14 = vld [vmem:[%s20996_s3 + $0xc14] sm:$0xf0] }
 0x614   : > { %v18746_v40 = vadd.f32 %v18652_v39, %v5632_v29 }
 0x615   : > { %6590 = vmatpush.bf16.msra.mxu0 %v11304_v2 }
 0x616   : > { %6483 = vmatmul.bf16.gmra.mxu0 %v21302_v7 }
 0x617   : > { %v5610_v25 = vpop.f32.mrf.mxu3 }
 0x618   : > { %v5611_v8 = vadd.f32 %v5610_v25, %v5582_v30  ;;  %v5668_v42 = vpop.f32.mrf.mxu2  ;;  %v11256_v25 = vor.u32 %v13316_v14, %v11255_v38  ;;  %v11625_v38 = vld [vmem:[%s20996_s3 + $0xef8] sm:$0xf0] }
 0x619   : > { %v5584_v9 = vpop.f32.mrf.mxu1  ;;  %6591 = vmatpush.bf16.msra.mxu0 %v11288_v46  ;;  %v21313_v46 = vld [vmem:[#allocation24_spill] sm:$0xff] }
 0x61a   : > { %v18756_v39 = vadd.f32 %v5611_v8, %v17928_v55  ;;  %v5585_v52 = vadd.f32 %v5584_v9, %v18507_v1  ;;  %v11271_v55 = vld [vmem:[%s20996_s3 + $0xc28] sm:$0xf]  ;;  %v13320_v1 = vld [vmem:[%s20996_s3 + $0xc34] sm:$0xf0] }
 0x61b   : > { %v5634_v44 = vpop.f32.mrf.mxu0  ;;  %v11272_v4 = vor.u32 %v13320_v1, %v11271_v55  ;;  %v11623_v1 = vld [vmem:[%s20996_s3 + $0xee8] sm:$0xf] }
 0x61c   : > { %6435 = vmatmul.bf16.gmra.mxu1 %v21309_v48  ;;  %6464 = vmatmul.bf16.gmra.mxu3 %v21310_v33  ;;  %v18767_v3 = vadd.f32 %v5663_v26, %v5634_v44 }
 0x61d   : > { %6522 = vmatmul.bf16.gmra.mxu2 %v21309_v48  ;;  %6592 = vmatpush.bf16.msra.mxu0 %v11272_v4  ;;  %v21315_v4 = vld [vmem:[#allocation40_spill] sm:$0xff] }
 0x61f   : > { %v5613_v41 = vpop.f32.mrf.mxu3 }
 0x620   : > { %v5614_v30 = vadd.f32 %v5613_v41, %v5585_v52  ;;  %v5671_v10 = vpop.f32.mrf.mxu2  ;;  %v21312_v52 = vld [vmem:[#allocation46_spill] sm:$0xff]  ;;  %v13342_v41 = vld [vmem:[%s20996_s3 + $0xcec] sm:$0xf] }
 0x621   : > { %v5586_v56 = vpop.f32.mrf.mxu1  ;;  %6593 = vmatpush.bf16.msra.mxu0 %v11256_v25 }
 0x622   : > { %v18777_v26 = vadd.f32 %v5614_v30, %v21311_v60  ;;  %v5587_v29 = vadd.f32 %v5586_v56, %v18521_v24  ;;  %v11369_v60 = vld [vmem:[%s20996_s3 + $0xcf8] sm:$0xf0] }
 0x623   : > { %v5637_v2 = vpop.f32.mrf.mxu0  ;;  %v11372_v25 = vor.u32 %v13342_v41, %v11369_v60  ;;  %v11609_v41 = vld [vmem:[%s20996_s3 + $0xed8] sm:$0xf0] }
 0x624   : > { %v18786_v8 = vadd.f32 %v5666_v62, %v5637_v2  ;;  %v13408_v62 = vld [vmem:[%s20996_s3 + $0xef4] sm:$0xf0] }
 0x625   : > { %6673 = vmatpush.bf16.msrb.mxu3 %v11372_v25  ;;  %v13334_v25 = vld [vmem:[%s20996_s3 + $0xcac] sm:$0xf] }
 0x626   : > { %6488 = vmatmul.bf16.gmra.mxu0 %v21312_v52 }
 0x627   : > { %v5615_v9 = vpop.f32.mrf.mxu3 }
 0x628   : > { %v5616_v58 = vadd.f32 %v5615_v9, %v5587_v29  ;;  %v18789_v12 = vpop.f32.mrf.mxu2  ;;  %v13406_v29 = vld [vmem:[%s20996_s3 + $0xeec] sm:$0xf] }
 0x629   : > { %v5685_v24 = vpop.f32.mrf.mxu1  ;;  %v11628_v2 = vor.u32 %v13406_v29, %v11625_v38  ;;  %v11591_v29 = vld [vmem:[%s20996_s3 + $0xea8] sm:$0xf]  ;;  %v13400_v38 = vld [vmem:[%s20996_s3 + $0xeb4] sm:$0xf0] }
 0x62a   : > { %v18792_v44 = vadd.f32 %v5616_v58, %v21313_v46  ;;  %v5686_v55 = vadd.f32 %v5685_v24, %v18686_v51  ;;  %v11624_v51 = vor.u32 %v13408_v62, %v11623_v1  ;;  %v11607_v58 = vld [vmem:[%s20996_s3 + $0xec8] sm:$0xf]  ;;  %v13404_v24 = vld [vmem:[%s20996_s3 + $0xed4] sm:$0xf0]  ;;  %v11353_v1 = vld [vmem:[%s20996_s3 + $0xcd8] sm:$0xf0] }
 0x62b   : > { %v5639_v56 = vpop.f32.mrf.mxu0  ;;  %6731 = vmatpush.bf16.msrb.mxu2 %v11628_v2  ;;  %v13402_v62 = vld [vmem:[%s20996_s3 + $0xecc] sm:$0xf]  ;;  %v21317_v2 = vld [vmem:[#allocation25_spill] sm:$0xff] }
 0x62c   : > { %21314 = vst [vmem:[#allocation41_spill] sm:$0xff] %v18792_v44  ;;  %v18805_v30 = vadd.f32 %v5686_v55, %v21315_v4  ;;  %6536 = vmatmul.bf16.vlgmr.msra.gmra.mxu1 %v15194_v36  ;;  %6565 = vmatmul.bf16.vlgmr.msra.gmra.mxu3 %v15278_v61  ;;  %v18818_v14 = vadd.f32 %v5668_v42, %v5639_v56  ;;  %v13338_v42 = vld [vmem:[%s20996_s3 + $0xccc] sm:$0xf] }
 0x62d   : > { %6623 = vmatmul.bf16.vlgmr.msra.gmra.mxu2 %v15194_v36  ;;  %6644 = vmatpush.bf16.msrb.mxu1 %v11624_v51  ;;  %v11608_v55 = vor.u32 %v13404_v24, %v11607_v58  ;;  %v11356_v56 = vor.u32 %v13338_v42, %v11353_v1  ;;  %v11612_v51 = vor.u32 %v13402_v62, %v11609_v41  ;;  %v11337_v42 = vld [vmem:[%s20996_s3 + $0xcb8] sm:$0xf0]  ;;  %v21322_v44 = vld [vmem:[#allocation27_spill] sm:$0xff] }
 0x62e   : > { %21316 = vst [vmem:[#allocation50_spill] sm:$0xff] %v18805_v30  ;;  %v11593_v1 = vld [vmem:[%s20996_s3 + $0xeb8] sm:$0xf0]  ;;  %v11340_v41 = vor.u32 %v13334_v25, %v11337_v42 }
 0x62f   : > { %v18821_v9 = vpop.f32.mrf.mxu3  ;;  %6674 = vmatpush.bf16.msrb.mxu3 %v11356_v56  ;;  %6732 = vmatpush.bf16.msrb.mxu2 %v11612_v51  ;;  %v21319_v51 = vld [vmem:[#allocation22_spill] sm:$0xff] }
 0x630   : > { %v18832_v46 = vpop.f32.mrf.mxu2 }
 0x631   : > { %v5687_v4 = vpop.f32.mrf.mxu1  ;;  %6645 = vmatpush.bf16.msrb.mxu1 %v11608_v55  ;;  %v13398_v55 = vld [vmem:[%s20996_s3 + $0xeac] sm:$0xf] }
 0x632   : > { %v5688_v60 = vadd.f32 %v5687_v4, %v18726_v0  ;;  %v11592_v0 = vor.u32 %v13400_v38, %v11591_v29  ;;  %v11596_v4 = vor.u32 %v13398_v55, %v11593_v1  ;;  %v13396_v29 = vld [vmem:[%s20996_s3 + $0xe94] sm:$0xf0] }
 0x633   : > { %v5642_v24 = vpop.f32.mrf.mxu0  ;;  %6675 = vmatpush.bf16.msrb.mxu3 %v11340_v41 }
 0x634   : > { %v18854_v58 = vadd.f32 %v5688_v60, %v21317_v2  ;;  %v18865_v62 = vadd.f32 %v5671_v10, %v5642_v24  ;;  %v11575_v60 = vld [vmem:[%s20996_s3 + $0xe88] sm:$0xf]  ;;  %v13330_v10 = vld [vmem:[%s20996_s3 + $0xc8c] sm:$0xf]  ;;  %6733 = vmatpush.bf16.msrb.mxu2 %v11596_v4  ;;  %v11321_v2 = vld [vmem:[%s20996_s3 + $0xc98] sm:$0xf0] }
 0x635   : > { %6646 = vmatpush.bf16.msrb.mxu1 %v11592_v0  ;;  %v11576_v25 = vor.u32 %v13396_v29, %v11575_v60  ;;  %v13394_v24 = vld [vmem:[%s20996_s3 + $0xe8c] sm:$0xf]  ;;  %v11577_v0 = vld [vmem:[%s20996_s3 + $0xe98] sm:$0xf0]  ;;  %v11324_v55 = vor.u32 %v13330_v10, %v11321_v2  ;;  %v11559_v4 = vld [vmem:[%s20996_s3 + $0xe68] sm:$0xf] }
 0x636   : > { %21318 = vst [vmem:[#allocation11_spill] sm:$0xff] %v18854_v58  ;;  %6493 = vmatmul.bf16.gmra.mxu0 %v21319_v51  ;;  %v11580_v41 = vor.u32 %v13394_v24, %v11577_v0  ;;  %v13392_v60 = vld [vmem:[%s20996_s3 + $0xe74] sm:$0xf0]  ;;  %v13326_v29 = vld [vmem:[%s20996_s3 + $0xc6c] sm:$0xf]  ;;  %v21320_v58 = vld [vmem:[#allocation42_spill] sm:$0xff] }
 0x637   : > { %v18867_v56 = vpop.f32.mrf.mxu3  ;;  %6676 = vmatpush.bf16.msrb.mxu3 %v11324_v55  ;;  %v13390_v2 = vld [vmem:[%s20996_s3 + $0xe6c] sm:$0xf]  ;;  %v11561_v24 = vld [vmem:[%s20996_s3 + $0xe78] sm:$0xf0] }
 0x638   : > { %v18879_v38 = vpop.f32.mrf.mxu2  ;;  %6734 = vmatpush.bf16.msrb.mxu2 %v11580_v41 }
 0x639   : > { %v5690_v42 = vpop.f32.mrf.mxu1  ;;  %6647 = vmatpush.bf16.msrb.mxu1 %v11576_v25  ;;  %v11305_v25 = vld [vmem:[%s20996_s3 + $0xc78] sm:$0xf0] }
 0x63a   : > { %v5691_v1 = vadd.f32 %v5690_v42, %v18746_v40  ;;  %v11560_v40 = vor.u32 %v13392_v60, %v11559_v4  ;;  %v11308_v0 = vor.u32 %v13326_v29, %v11305_v25  ;;  %v11564_v42 = vor.u32 %v13390_v2, %v11561_v24  ;;  %v13388_v4 = vld [vmem:[%s20996_s3 + $0xe54] sm:$0xf0]  ;;  %v11289_v29 = vld [vmem:[%s20996_s3 + $0xc58] sm:$0xf0] }
 0x63b   : > { %v5644_v10 = vpop.f32.mrf.mxu0 }
 0x63c   : > { %v18901_v30 = vadd.f32 %v5691_v1, %v21320_v58  ;;  %6541 = vmatmul.bf16.gmra.mxu1 %v21297_v59  ;;  %6570 = vmatmul.bf16.gmra.mxu3 %v21302_v7  ;;  %v18915_v58 = vadd.f32 %v18789_v12, %v5644_v10  ;;  %v11543_v1 = vld [vmem:[%s20996_s3 + $0xe48] sm:$0xf]  ;;  %v13322_v12 = vld [vmem:[%s20996_s3 + $0xc4c] sm:$0xf] }
 0x63d   : > { %6628 = vmatmul.bf16.gmra.mxu2 %v21297_v59  ;;  %6648 = vmatpush.bf16.msrb.mxu1 %v11560_v40  ;;  %v11544_v41 = vor.u32 %v13388_v4, %v11543_v1  ;;  %v13386_v10 = vld [vmem:[%s20996_s3 + $0xe4c] sm:$0xf]  ;;  %v11545_v40 = vld [vmem:[%s20996_s3 + $0xe58] sm:$0xf0]  ;;  %v11292_v2 = vor.u32 %v13322_v12, %v11289_v29  ;;  %v11527_v1 = vld [vmem:[%s20996_s3 + $0xe28] sm:$0xf] }
 0x63e   : > { %21321 = vst [vmem:[#allocation43_spill] sm:$0xff] %v18901_v30  ;;  %6677 = vmatpush.bf16.msrb.mxu3 %v11308_v0  ;;  %6735 = vmatpush.bf16.msrb.mxu2 %v11564_v42  ;;  %v11548_v0 = vor.u32 %v13386_v10, %v11545_v40  ;;  %v13384_v4 = vld [vmem:[%s20996_s3 + $0xe34] sm:$0xf0]  ;;  %v13318_v30 = vld [vmem:[%s20996_s3 + $0xc2c] sm:$0xf] }
 0x63f   : > { %v18918_v55 = vpop.f32.mrf.mxu3  ;;  %v11528_v42 = vor.u32 %v13384_v4, %v11527_v1  ;;  %v13382_v29 = vld [vmem:[%s20996_s3 + $0xe2c] sm:$0xf]  ;;  %v11529_v10 = vld [vmem:[%s20996_s3 + $0xe38] sm:$0xf0] }
 0x640   : > { %v18929_v60 = vpop.f32.mrf.mxu2 }
 0x641   : > { %v5692_v25 = vpop.f32.mrf.mxu1  ;;  %6649 = vmatpush.bf16.msrb.mxu1 %v11544_v41  ;;  %v11273_v41 = vld [vmem:[%s20996_s3 + $0xc38] sm:$0xf0] }
 0x642   : > { %v5693_v24 = vadd.f32 %v5692_v25, %v18767_v3  ;;  %6678 = vmatpush.bf16.msrb.mxu3 %v11292_v2  ;;  %v11276_v25 = vor.u32 %v13318_v30, %v11273_v41  ;;  %6736 = vmatpush.bf16.msrb.mxu2 %v11548_v0  ;;  %v13374_v2 = vld [vmem:[%s20996_s3 + $0xdec] sm:$0xf]  ;;  %v11511_v30 = vld [vmem:[%s20996_s3 + $0xe08] sm:$0xf]  ;;  %v13380_v0 = vld [vmem:[%s20996_s3 + $0xe14] sm:$0xf0] }
 0x643   : > { %v5743_v3 = vpop.f32.mrf.mxu0  ;;  %v11257_v41 = vld [vmem:[%s20996_s3 + $0xc18] sm:$0xf0] }
 0x644   : > { %v18951_v12 = vadd.f32 %v5693_v24, %v21322_v44  ;;  %v5744_v40 = vadd.f32 %v5743_v3, %v18821_v9  ;;  %v11532_v44 = vor.u32 %v13382_v29, %v11529_v10  ;;  %v11497_v24 = vld [vmem:[%s20996_s3 + $0xdf8] sm:$0xf0]  ;;  %v13314_v3 = vld [vmem:[%s20996_s3 + $0xc0c] sm:$0xf] }
 0x645   : > { %6650 = vmatpush.bf16.msrb.mxu1 %v11528_v42  ;;  %v11500_v9 = vor.u32 %v13374_v2, %v11497_v24  ;;  %v13378_v29 = vld [vmem:[%s20996_s3 + $0xe0c] sm:$0xf]  ;;  %v11513_v10 = vld [vmem:[%s20996_s3 + $0xe18] sm:$0xf0]  ;;  %v11260_v2 = vor.u32 %v13314_v3, %v11257_v41 }
 0x646   : > { %21323 = vst [vmem:[#allocation26_spill] sm:$0xff] %v18951_v12  ;;  %v5773_v1 = vadd.f32 %v18832_v46, %v5744_v40  ;;  %6594 = vmatmul.bf16.vlgmr.msra.gmra.mxu0 %v15192_v20  ;;  %6679 = vmatpush.bf16.msrb.mxu3 %v11276_v25  ;;  %v11512_v46 = vor.u32 %v13380_v0, %v11511_v30  ;;  %v13370_v0 = vld [vmem:[%s20996_s3 + $0xdcc] sm:$0xf]  ;;  %v11481_v12 = vld [vmem:[%s20996_s3 + $0xdd8] sm:$0xf0] }
 0x647   : > { %v18970_v4 = vpop.f32.mrf.mxu3  ;;  %6702 = vmatpush.bf16.msrb.mxu0 %v11500_v9  ;;  %6737 = vmatpush.bf16.msrb.mxu2 %v11532_v44  ;;  %v11516_v30 = vor.u32 %v13378_v29, %v11513_v10  ;;  %v11484_v5 = vor.u32 %v13370_v0, %v11481_v12  ;;  %v13366_v44 = vld [vmem:[%s20996_s3 + $0xdac] sm:$0xf]  ;;  %v11449_v10 = vld [vmem:[%s20996_s3 + $0xd98] sm:$0xf0] }
 0x648   : > { %v18982_v42 = vpop.f32.mrf.mxu2  ;;  %v18994_v40 = vadd.f32 %v5773_v1, %v18166_v49  ;;  %v13362_v29 = vld [vmem:[%s20996_s3 + $0xd8c] sm:$0xf] }
 0x649   : > { %v5695_v25 = vpop.f32.mrf.mxu1  ;;  %6651 = vmatpush.bf16.msrb.mxu1 %v11512_v46 }
 0x64a   : > { %v5696_v24 = vadd.f32 %v5695_v25, %v18786_v8  ;;  %6680 = vmatpush.bf16.msrb.mxu3 %v11260_v2  ;;  %v11452_v25 = vor.u32 %v13362_v29, %v11449_v10 }
 0x64b   : > { %v5745_v1 = vpop.f32.mrf.mxu0  ;;  %6703 = vmatpush.bf16.msrb.mxu0 %v11484_v5  ;;  %6738 = vmatpush.bf16.msrb.mxu2 %v11516_v30 }
 0x64c   : > { %v19004_v49 = vadd.f32 %v5696_v24, %v18176_v57  ;;  %6546 = vmatmul.bf16.gmra.mxu1 %v21308_v18  ;;  %6575 = vmatmul.bf16.gmra.mxu3 %v21312_v52  ;;  %v5746_v8 = vadd.f32 %v5745_v1, %v18867_v56  ;;  %v11465_v57 = vld [vmem:[%s20996_s3 + $0xdb8] sm:$0xf0] }
 0x64d   : > { %6633 = vmatmul.bf16.gmra.mxu2 %v21308_v18  ;;  %v11468_v3 = vor.u32 %v13366_v44, %v11465_v57  ;;  %v11433_v24 = vld [vmem:[%s20996_s3 + $0xd78] sm:$0xf0]  ;;  %v13354_v57 = vld [vmem:[%s20996_s3 + $0xd4c] sm:$0xf] }
 0x64e   : > { %v5775_v12 = vadd.f32 %v18879_v38, %v5746_v8 }
 0x64f   : > { %v5724_v9 = vpop.f32.mrf.mxu3  ;;  %6704 = vmatpush.bf16.msrb.mxu0 %v11468_v3 }
 0x650   : > { %v5782_v46 = vpop.f32.mrf.mxu2  ;;  %v19018_v41 = vadd.f32 %v5775_v12, %v18190_v17 }
 0x651   : > { %v5697_v56 = vpop.f32.mrf.mxu1 }
 0x652   : > { %v5698_v5 = vadd.f32 %v5697_v56, %v18818_v14  ;;  %v13358_v14 = vld [vmem:[%s20996_s3 + $0xd6c] sm:$0xf] }
 0x653   : > { %v5748_v2 = vpop.f32.mrf.mxu0  ;;  %6705 = vmatpush.bf16.msrb.mxu0 %v11452_v25  ;;  %v11436_v1 = vor.u32 %v13358_v14, %v11433_v24  ;;  %v13346_v14 = vld [vmem:[%s20996_s3 + $0xd0c] sm:$0xf]  ;;  %v11385_v24 = vld [vmem:[%s20996_s3 + $0xd18] sm:$0xf0] }
 0x654   : > { %v19028_v38 = vadd.f32 %v5698_v5, %v18200_v53  ;;  %v5749_v17 = vadd.f32 %v5748_v2, %v18918_v55  ;;  %v11401_v5 = vld [vmem:[%s20996_s3 + $0xd38] sm:$0xf0] }
 0x656   : > { %v5778_v30 = vadd.f32 %v18929_v60, %v5749_v17  ;;  %6599 = vmatmul.bf16.gmra.mxu0 %v21296_v37  ;;  %v11417_v60 = vld [vmem:[%s20996_s3 + $0xd58] sm:$0xf0] }
 0x657   : > { %v5726_v0 = vpop.f32.mrf.mxu3  ;;  %6706 = vmatpush.bf16.msrb.mxu0 %v11436_v1  ;;  %v11420_v12 = vor.u32 %v13354_v57, %v11417_v60 }
 0x658   : > { %v5784_v53 = vpop.f32.mrf.mxu2  ;;  %v19040_v8 = vadd.f32 %v5778_v30, %v18212_v43  ;;  %v11388_v30 = vor.u32 %v13346_v14, %v11385_v24 }
 0x659   : > { %v5700_v55 = vpop.f32.mrf.mxu1 }
 0x65a   : > { %v5701_v44 = vadd.f32 %v5700_v55, %v18865_v62  ;;  %v13350_v62 = vld [vmem:[%s20996_s3 + $0xd2c] sm:$0xf] }
 0x65b   : > { %v5750_v56 = vpop.f32.mrf.mxu0  ;;  %6707 = vmatpush.bf16.msrb.mxu0 %v11420_v12  ;;  %v11404_v10 = vor.u32 %v13350_v62, %v11401_v5 }
 0x65c   : > { %v19050_v3 = vadd.f32 %v5701_v44, %v18222_v32  ;;  %6551 = vmatmul.bf16.gmra.mxu1 %v21310_v33  ;;  %6580 = vmatmul.bf16.gmra.mxu3 %v21319_v51  ;;  %v5751_v43 = vadd.f32 %v5750_v56, %v18970_v4 }
 0x65d   : > { %6638 = vmatmul.bf16.gmra.mxu2 %v21310_v33 }
 0x65e   : > { %v5780_v32 = vadd.f32 %v18982_v42, %v5751_v43 }
 0x65f   : > { %v5729_v29 = vpop.f32.mrf.mxu3  ;;  %6708 = vmatpush.bf16.msrb.mxu0 %v11404_v10 }
 0x660   : > { %v5787_v25 = vpop.f32.mrf.mxu2  ;;  %v19064_v2 = vadd.f32 %v5780_v32, %v18240_v6 }
 0x661   : > { %v5702_v4 = vpop.f32.mrf.mxu1 }
 0x662   : > { %v5703_v17 = vadd.f32 %v5702_v4, %v18915_v58 }
 0x663   : > { %v5753_v1 = vpop.f32.mrf.mxu0  ;;  %6709 = vmatpush.bf16.msrb.mxu0 %v11388_v30 }
 0x664   : > { %v19074_v42 = vadd.f32 %v5703_v17, %v18250_v35  ;;  %v5754_v55 = vadd.f32 %v5753_v1, %v5724_v9 }
 0x666   : > { %v5783_v6 = vadd.f32 %v5782_v46, %v5754_v55  ;;  %6604 = vmatmul.bf16.gmra.mxu0 %v21307_v13 }
 0x667   : > { %v5731_v44 = vpop.f32.mrf.mxu3 }
 0x668   : > { %v5789_v58 = vpop.f32.mrf.mxu2  ;;  %v19078_v57 = vadd.f32 %v5783_v6, %v18258_v63 }
 0x669   : > { %v6421_v60 = vpop.f32.mrf.mxu1 }
 0x66b   : > { %v5755_v12 = vpop.f32.mrf.mxu0 }
 0x66c   : > { %6652 = vmatmul.bf16.vlgmr.msrb.gmra.mxu1 %v15278_v61  ;;  %6681 = vmatmul.bf16.vlgmr.msrb.gmra.mxu3 %v15192_v20  ;;  %v5756_v56 = vadd.f32 %v5755_v12, %v5726_v0 }
 0x66d   : > { %6739 = vmatmul.bf16.vlgmr.msrb.gmra.mxu2 %v15278_v61 }
 0x66e   : > { %v5785_v35 = vadd.f32 %v5784_v53, %v5756_v56 }
 0x66f   : > { %v6450_v9 = vpop.f32.mrf.mxu3 }
 0x670   : > { %v6451_v43 = vadd.f32 %v6450_v9, %v6421_v60  ;;  %v6508_v46 = vpop.f32.mrf.mxu2  ;;  %v19084_v62 = vadd.f32 %v5785_v35, %v18304_v23 }
 0x671   : > { %v6423_v5 = vpop.f32.mrf.mxu1 }
 0x673   : > { %v5758_v32 = vpop.f32.mrf.mxu0 }
 0x674   : > { %v5759_v63 = vadd.f32 %v5758_v32, %v5729_v29 }
 0x676   : > { %v5788_v10 = vadd.f32 %v5787_v25, %v5759_v63  ;;  %6609 = vmatmul.bf16.gmra.mxu0 %v21309_v48 }
 0x677   : > { %v6452_v4 = vpop.f32.mrf.mxu3 }
 0x678   : > { %v19087_v17 = vpop.f32.mrf.mxu2  ;;  %v19090_v20 = vadd.f32 %v5788_v10, %v18350_v50 }
 0x679   : > { %v6426_v61 = vpop.f32.mrf.mxu1 }
 0x67b   : > { %v5760_v0 = vpop.f32.mrf.mxu0 }
 0x67c   : > { %6657 = vmatmul.bf16.gmra.mxu1 %v21302_v7  ;;  %6686 = vmatmul.bf16.gmra.mxu3 %v21296_v37  ;;  %v5761_v23 = vadd.f32 %v5760_v0, %v5731_v44 }
 0x67d   : > { %6744 = vmatmul.bf16.gmra.mxu2 %v21302_v7 }
 0x67e   : > { %v5790_v53 = vadd.f32 %v5789_v58, %v5761_v23 }
 0x67f   : > { %v6455_v29 = vpop.f32.mrf.mxu3 }
 0x680   : > { %v6456_v25 = vadd.f32 %v6455_v29, %v6426_v61  ;;  %v19095_v14 = vpop.f32.mrf.mxu2  ;;  %v19098_v24 = vadd.f32 %v5790_v53, %v18398_v27  ;;  %v6453_v53 = vadd.f32 %v6452_v4, %v6423_v5 }
 0x681   : > { %v6428_v30 = vpop.f32.mrf.mxu1 }
 0x683   : > { %v6479_v50 = vpop.f32.mrf.mxu0 }
 0x684   : > { %v6480_v1 = vadd.f32 %v6479_v50, %v6451_v43 }
 0x686   : > { %v19101_v55 = vadd.f32 %v6480_v1, %v18426_v11  ;;  %6710 = vmatmul.bf16.vlgmr.msrb.gmra.mxu0 %v15194_v36 }
 0x687   : > { %v6457_v6 = vpop.f32.mrf.mxu3 }
 0x688   : > { %v19104_v37 = vpop.f32.mrf.mxu2 }
 0x689   : > { %v6431_v7 = vpop.f32.mrf.mxu1 }
 0x68b   : > { %v6481_v44 = vpop.f32.mrf.mxu0 }
 0x68c   : > { %6662 = vmatmul.bf16.gmra.mxu1 %v21312_v52  ;;  %6691 = vmatmul.bf16.gmra.mxu3 %v21307_v13 }
 0x68d   : > { %6749 = vmatmul.bf16.gmra.mxu2 %v21312_v52 }
 0x68f   : > { %v6460_v27 = vpop.f32.mrf.mxu3 }
 0x690   : > { %v6461_v58 = vadd.f32 %v6460_v27, %v6431_v7  ;;  %v19109_v60 = vpop.f32.mrf.mxu2 }
 0x691   : > { %v6433_v12 = vpop.f32.mrf.mxu1 }
 0x693   : > { %v6484_v11 = vpop.f32.mrf.mxu0 }
 0x694   : > { %v6485_v56 = vadd.f32 %v6484_v11, %v6456_v25  ;;  %v6482_v25 = vadd.f32 %v6481_v44, %v6453_v53 }
 0x696   : > { %v19112_v35 = vadd.f32 %v6485_v56, %v18484_v16  ;;  %6715 = vmatmul.bf16.gmra.mxu0 %v21297_v59  ;;  %v19131_v27 = vadd.f32 %v6482_v25, %v18466_v15 }
 0x697   : > { %v6462_v36 = vpop.f32.mrf.mxu3 }
 0x698   : > { %v19115_v9 = vpop.f32.mrf.mxu2  ;;  %v6463_v50 = vadd.f32 %v6462_v36, %v6433_v12  ;;  %v6458_v36 = vadd.f32 %v6457_v6, %v6428_v30 }
 0x699   : > { %v6436_v43 = vpop.f32.mrf.mxu1 }
 0x69b   : > { %v6486_v32 = vpop.f32.mrf.mxu0 }
 0x69c   : > { %6667 = vmatmul.bf16.gmra.mxu1 %v21319_v51  ;;  %6696 = vmatmul.bf16.gmra.mxu3 %v21309_v48 }
 0x69d   : > { %6754 = vmatmul.bf16.gmra.mxu2 %v21319_v51 }
 0x69f   : > { %v6465_v13 = vpop.f32.mrf.mxu3 }
 0x6a0   : > { %v6466_v52 = vadd.f32 %v6465_v13, %v6436_v43  ;;  %v19120_v63 = vpop.f32.mrf.mxu2 }
 0x6a1   : > { %v6438_v10 = vpop.f32.mrf.mxu1 }
 0x6a3   : > { %v6489_v16 = vpop.f32.mrf.mxu0 }
 0x6a4   : > { %v6490_v61 = vadd.f32 %v6489_v16, %v6461_v58 }
 0x6a6   : > { %v19123_v0 = vadd.f32 %v6490_v61, %v18516_v22  ;;  %6720 = vmatmul.bf16.gmra.mxu0 %v21308_v18  ;;  %v6487_v61 = vadd.f32 %v6486_v32, %v6458_v36 }
 0x6a7   : > { %v6467_v59 = vpop.f32.mrf.mxu3 }
 0x6a8   : > { %v19126_v23 = vpop.f32.mrf.mxu2  ;;  %v6792_v48 = vmax.f32 %v19101_v55, %v19123_v0  ;;  %v11751_v55 = vld [vmem:[%s20998_s5 + $0x268] sm:$0xf]  ;;  %v13488_v0 = vld [vmem:[%s20998_s5 + $0x274] sm:$0xf0] }
 0x6a9   : > { %v6537_v51 = vpop.f32.mrf.mxu1 }
 0x6aa   : > { %v6538_v29 = vadd.f32 %v6537_v51, %v6508_v46 }
 0x6ab   : > { %v6491_v1 = vpop.f32.mrf.mxu0 }
 0x6ac   : > { %v6492_v7 = vadd.f32 %v6491_v1, %v6463_v50 }
 0x6ae   : > { %v19134_v22 = vadd.f32 %v6492_v7, %v18546_v47 }
 0x6af   : > { %v6566_v58 = vpop.f32.mrf.mxu3 }
 0x6b0   : > { %v6567_v18 = vadd.f32 %v6566_v58, %v6538_v29  ;;  %v6624_v11 = vpop.f32.mrf.mxu2  ;;  %v6796_v5 = vmax.f32 %v19131_v27, %v19134_v22 }
 0x6b1   : > { %v6539_v4 = vpop.f32.mrf.mxu1 }
 0x6b2   : > { %v19139_v56 = vadd.f32 %v6567_v18, %v18569_v31  ;;  %v6468_v31 = vadd.f32 %v6467_v59, %v6438_v10 }
 0x6b3   : > { %v6494_v46 = vpop.f32.mrf.mxu0 }
 0x6b4   : > { %v6495_v44 = vadd.f32 %v6494_v46, %v6466_v52  ;;  %v19151_v52 = vadd.f32 %v6487_v61, %v18505_v54 }
 0x6b6   : > { %v19142_v12 = vadd.f32 %v6495_v44, %v18591_v28  ;;  %6725 = vmatmul.bf16.gmra.mxu0 %v21310_v33 }
 0x6b7   : > { %v6568_v15 = vpop.f32.mrf.mxu3 }
 0x6b8   : > { %v19145_v47 = vpop.f32.mrf.mxu2  ;;  %v6800_v43 = vmax.f32 %v19112_v35, %v19142_v12 }
 0x6b9   : > { %v6542_v13 = vpop.f32.mrf.mxu1 }
 0x6ba   : > { %v6543_v16 = vadd.f32 %v6542_v13, %v19095_v14 }
 0x6bb   : > { %v6496_v53 = vpop.f32.mrf.mxu0 }
 0x6bc   : > { %v6497_v51 = vadd.f32 %v6496_v53, %v6468_v31 }
 0x6be   : > { %v19154_v28 = vadd.f32 %v6497_v51, %v18641_v34 }
 0x6bf   : > { %v6571_v33 = vpop.f32.mrf.mxu3 }
 0x6c0   : > { %v6572_v29 = vadd.f32 %v6571_v33, %v6543_v16  ;;  %v6629_v25 = vpop.f32.mrf.mxu2  ;;  %v6804_v30 = vmax.f32 %v19151_v52, %v19154_v28 }
 0x6c1   : > { %v6544_v6 = vpop.f32.mrf.mxu1 }
 0x6c2   : > { %v19159_v50 = vadd.f32 %v6572_v29, %v18664_v19  ;;  %v6540_v19 = vadd.f32 %v6539_v4, %v19087_v17 }
 0x6c3   : > { %v6595_v14 = vpop.f32.mrf.mxu0 }
 0x6c4   : > { %v6625_v32 = vadd.f32 %v6624_v11, %v6595_v14  ;;  %v6569_v16 = vadd.f32 %v6568_v15, %v6540_v19  ;;  %v13501_v19 = vld [vmem:[%s20998_s5 + $0x2e4] sm:$0xf] }
 0x6c6   : > { %v19176_v51 = vadd.f32 %v6569_v16, %v18615_v45  ;;  %v6545_v45 = vadd.f32 %v6544_v6, %v19104_v37 }
 0x6c7   : > { %v6573_v10 = vpop.f32.mrf.mxu3 }
 0x6c8   : > { %v19161_v59 = vpop.f32.mrf.mxu2  ;;  %v6574_v37 = vadd.f32 %v6573_v10, %v6545_v45  ;;  %v11937_v10 = vld [vmem:[%s20998_s5 + $0x3f0] sm:$0xf0] }
 0x6c9   : > { %v6547_v54 = vpop.f32.mrf.mxu1  ;;  %v21324_v45 = vld [vmem:[#allocation44_spill] sm:$0xff] }
 0x6ca   : > { %v6548_v1 = vadd.f32 %v6547_v54, %v19109_v60 }
 0x6cb   : > { %v19164_v34 = vpop.f32.mrf.mxu0 }
 0x6cf   : > { %v6576_v7 = vpop.f32.mrf.mxu3 }
 0x6d0   : > { %v6577_v58 = vadd.f32 %v6576_v7, %v6548_v1  ;;  %v6634_v18 = vpop.f32.mrf.mxu2  ;;  %v11807_v7 = vld [vmem:[%s20998_s5 + $0x2e0] sm:$0xf] }
 0x6d1   : > { %v6549_v46 = vpop.f32.mrf.mxu1 }
 0x6d2   : > { %v19167_v44 = vadd.f32 %v6577_v58, %v18736_v21  ;;  %v6550_v60 = vadd.f32 %v6549_v46, %v19115_v9  ;;  %v13503_v58 = vld [vmem:[%s20998_s5 + $0x2ec] sm:$0xf0] }
 0x6d3   : > { %v6600_v36 = vpop.f32.mrf.mxu0  ;;  %v11808_v46 = vor.u32 %v13503_v58, %v11807_v7  ;;  %v21325_v7 = vld [vmem:[#allocation41_spill] sm:$0xff] }
 0x6d4   : > { %v6793_v11 = vmax.f32 %v19139_v56, %v19167_v44  ;;  %v19172_v13 = vadd.f32 %v6629_v25, %v6600_v36  ;;  %v11809_v36 = vld [vmem:[%s20998_s5 + $0x2f0] sm:$0xf0] }
 0x6d5   : > { %7298 = vmatpush.bf16.msra.mxu1 %v11808_v46  ;;  %v13531_v46 = vld [vmem:[%s20998_s5 + $0x3cc] sm:$0xf0] }
 0x6d7   : > { %v6578_v61 = vpop.f32.mrf.mxu3 }
 0x6d8   : > { %v6579_v31 = vadd.f32 %v6578_v61, %v6550_v60  ;;  %v19181_v33 = vpop.f32.mrf.mxu2  ;;  %v11812_v61 = vor.u32 %v13501_v19, %v11809_v36  ;;  %v11793_v19 = vld [vmem:[%s20998_s5 + $0x2d0] sm:$0xf0] }
 0x6d9   : > { %v6552_v53 = vpop.f32.mrf.mxu1 }
 0x6da   : > { %v19179_v21 = vadd.f32 %v6579_v31, %v18756_v39  ;;  %v6553_v17 = vadd.f32 %v6552_v53, %v19120_v63  ;;  %7324 = vmatpush.bf16.msra.mxu0 %v11812_v61  ;;  %v21326_v61 = vld [vmem:[#allocation50_spill] sm:$0xff] }
 0x6db   : > { %v19186_v29 = vpop.f32.mrf.mxu0 }
 0x6dc   : > { %v21330_v44 = vmax.f32 %v19176_v51, %v19179_v21  ;;  %v13439_v51 = vld [vmem:[%s20998_s5 + $0xec] sm:$0xf0]  ;;  %v12191_v21 = vld [vmem:[%s20998_s5 + $0x1e0] sm:$0xf] }
 0x6df   : > { %v6581_v15 = vpop.f32.mrf.mxu3 }
 0x6e0   : > { %v6582_v9 = vadd.f32 %v6581_v15, %v6553_v17  ;;  %v19194_v54 = vpop.f32.mrf.mxu2  ;;  %v11791_v15 = vld [vmem:[%s20998_s5 + $0x2c0] sm:$0xf] }
 0x6e1   : > { %v6554_v25 = vpop.f32.mrf.mxu1 }
 0x6e2   : > { %v19189_v14 = vadd.f32 %v6582_v9, %v18777_v26  ;;  %v11935_v26 = vld [vmem:[%s20998_s5 + $0x3e0] sm:$0xf]  ;;  %v6555_v6 = vadd.f32 %v6554_v25, %v19126_v23  ;;  %v13533_v23 = vld [vmem:[%s20998_s5 + $0x3e4] sm:$0xf]  ;;  %v13499_v9 = vld [vmem:[%s20998_s5 + $0x2cc] sm:$0xf0] }
 0x6e3   : > { %v6605_v1 = vpop.f32.mrf.mxu0  ;;  %v11940_v53 = vor.u32 %v13533_v23, %v11937_v10  ;;  %v11919_v25 = vld [vmem:[%s20998_s5 + $0x3c0] sm:$0xf] }
 0x6e4   : > { %v19196_v63 = vadd.f32 %v6634_v18, %v6605_v1  ;;  %v13535_v18 = vld [vmem:[%s20998_s5 + $0x3ec] sm:$0xf0]  ;;  %v19233_v1 = vadd.f32 %v6574_v37, %v21324_v45  ;;  %v11920_v37 = vor.u32 %v13531_v46, %v11919_v25 }
 0x6e5   : > { %v11936_v60 = vor.u32 %v13535_v18, %v11935_v26  ;;  %7337 = vmatpush.bf16.msra.mxu2 %v11940_v53  ;;  %v13497_v18 = vld [vmem:[%s20998_s5 + $0x2c4] sm:$0xf]  ;;  %v11775_v53 = vld [vmem:[%s20998_s5 + $0x2a0] sm:$0xf]  ;;  %v13527_v45 = vld [vmem:[%s20998_s5 + $0x3ac] sm:$0xf0] }
 0x6e6   : > { %v11796_v36 = vor.u32 %v13497_v18, %v11793_v19  ;;  %v13525_v18 = vld [vmem:[%s20998_s5 + $0x3a4] sm:$0xf]  ;;  %v11905_v19 = vld [vmem:[%s20998_s5 + $0x3b0] sm:$0xf0] }
 0x6e7   : > { %v6583_v16 = vpop.f32.mrf.mxu3  ;;  %7311 = vmatpush.bf16.msra.mxu3 %v11936_v60 }
 0x6e8   : > { %v6584_v31 = vadd.f32 %v6583_v16, %v6555_v6  ;;  %v11792_v6 = vor.u32 %v13499_v9, %v11791_v15  ;;  %v11921_v16 = vld [vmem:[%s20998_s5 + $0x3d0] sm:$0xf0]  ;;  %7325 = vmatpush.bf16.msra.mxu0 %v11796_v36  ;;  %v11903_v15 = vld [vmem:[%s20998_s5 + $0x3a0] sm:$0xf]  ;;  %v19269_v9 = vpop.f32.mrf.mxu2 }
 0x6e9   : > { %v6653_v17 = vpop.f32.mrf.mxu1 }
 0x6ea   : > { %v19236_v58 = vadd.f32 %v6584_v31, %v21325_v7  ;;  %v6654_v26 = vadd.f32 %v6653_v17, %v6625_v32  ;;  %v13529_v32 = vld [vmem:[%s20998_s5 + $0x3c4] sm:$0xf]  ;;  %7299 = vmatpush.bf16.msra.mxu1 %v11792_v6  ;;  %v13495_v17 = vld [vmem:[%s20998_s5 + $0x2ac] sm:$0xf0]  ;;  %v11904_v6 = vor.u32 %v13527_v45, %v11903_v15 }
 0x6eb   : > { %v19258_v10 = vpop.f32.mrf.mxu0  ;;  %v11924_v31 = vor.u32 %v13529_v32, %v11921_v16  ;;  %7312 = vmatpush.bf16.msra.mxu3 %v11920_v37  ;;  %v11776_v25 = vor.u32 %v13495_v17, %v11775_v53  ;;  %v13493_v7 = vld [vmem:[%s20998_s5 + $0x2a4] sm:$0xf]  ;;  %v11908_v37 = vor.u32 %v13525_v18, %v11905_v19  ;;  %v11759_v32 = vld [vmem:[%s20998_s5 + $0x280] sm:$0xf]  ;;  %v13491_v16 = vld [vmem:[%s20998_s5 + $0x28c] sm:$0xf0] }
 0x6ec   : > { %v19256_v23 = vadd.f32 %v6654_v26, %v21326_v61  ;;  %v11777_v26 = vld [vmem:[%s20998_s5 + $0x2b0] sm:$0xf0]  ;;  %v11760_v61 = vor.u32 %v13491_v16, %v11759_v32  ;;  %v13523_v53 = vld [vmem:[%s20998_s5 + $0x38c] sm:$0xf0]  ;;  %v13489_v17 = vld [vmem:[%s20998_s5 + $0x284] sm:$0xf] }
 0x6ed   : > { %7338 = vmatpush.bf16.msra.mxu2 %v11924_v31  ;;  %v11780_v46 = vor.u32 %v13493_v7, %v11777_v26  ;;  %v11887_v31 = vld [vmem:[%s20998_s5 + $0x380] sm:$0xf]  ;;  %v13521_v45 = vld [vmem:[%s20998_s5 + $0x384] sm:$0xf]  ;;  %v11889_v7 = vld [vmem:[%s20998_s5 + $0x390] sm:$0xf0] }
 0x6ee   : > { %7300 = vmatpush.bf16.msra.mxu1 %v11776_v25  ;;  %v11888_v15 = vor.u32 %v13523_v53, %v11887_v31  ;;  %v11761_v25 = vld [vmem:[%s20998_s5 + $0x290] sm:$0xf0]  ;;  %v11743_v19 = vld [vmem:[%s20998_s5 + $0x260] sm:$0xf]  ;;  %v13485_v31 = vld [vmem:[%s20998_s5 + $0x264] sm:$0xf] }
 0x6ef   : > { %7313 = vmatpush.bf16.msra.mxu3 %v11904_v6  ;;  %7326 = vmatpush.bf16.msra.mxu0 %v11780_v46  ;;  %v11764_v6 = vor.u32 %v13489_v17, %v11761_v25  ;;  %v11892_v46 = vor.u32 %v13521_v45, %v11889_v7  ;;  %v11871_v32 = vld [vmem:[%s20998_s5 + $0x360] sm:$0xf]  ;;  %v19324_v16 = vpop.f32.mrf.mxu3  ;;  %v11745_v53 = vld [vmem:[%s20998_s5 + $0x270] sm:$0xf0]  ;;  %v13517_v25 = vld [vmem:[%s20998_s5 + $0x364] sm:$0xf] }
 0x6f0   : > { %v11873_v45 = vld [vmem:[%s20998_s5 + $0x370] sm:$0xf0]  ;;  %v19341_v7 = vpop.f32.mrf.mxu2 }
 0x6f1   : > { %v19286_v36 = vpop.f32.mrf.mxu1  ;;  %7339 = vmatpush.bf16.msra.mxu2 %v11908_v37  ;;  %v13487_v37 = vld [vmem:[%s20998_s5 + $0x26c] sm:$0xf0] }
 0x6f2   : > { %7301 = vmatpush.bf16.msra.mxu1 %v11760_v61  ;;  %v11744_v61 = vor.u32 %v13487_v37, %v11743_v19  ;;  %v13483_v19 = vld [vmem:[%s20998_s5 + $0x24c] sm:$0xf0]  ;;  %v11855_v37 = vld [vmem:[%s20998_s5 + $0x340] sm:$0xf] }
 0x6f3   : > { %v6610_v26 = vpop.f32.mrf.mxu0  ;;  %7314 = vmatpush.bf16.msra.mxu3 %v11888_v15  ;;  %7327 = vmatpush.bf16.msra.mxu0 %v11764_v6  ;;  %v11748_v15 = vor.u32 %v13485_v31, %v11745_v53  ;;  %v13481_v31 = vld [vmem:[%s20998_s5 + $0x244] sm:$0xf]  ;;  %v11729_v53 = vld [vmem:[%s20998_s5 + $0x250] sm:$0xf0] }
 0x6f4   : > { %v19313_v18 = vadd.f32 %v19194_v54, %v6610_v26  ;;  %v13519_v54 = vld [vmem:[%s20998_s5 + $0x36c] sm:$0xf0]  ;;  %v11876_v26 = vor.u32 %v13517_v25, %v11873_v45  ;;  %v11732_v25 = vor.u32 %v13481_v31, %v11729_v53  ;;  %v21327_v45 = vld [vmem:[#allocation43_spill] sm:$0xff]  ;;  %v13477_v31 = vld [vmem:[%s20998_s5 + $0x224] sm:$0xf] }
 0x6f5   : > { %7340 = vmatpush.bf16.msra.mxu2 %v11892_v46  ;;  %v11872_v17 = vor.u32 %v13519_v54, %v11871_v32  ;;  %v11727_v46 = vld [vmem:[%s20998_s5 + $0x240] sm:$0xf]  ;;  %v13515_v54 = vld [vmem:[%s20998_s5 + $0x34c] sm:$0xf0]  ;;  %v11713_v53 = vld [vmem:[%s20998_s5 + $0x230] sm:$0xf0] }
 0x6f6   : > { %7302 = vmatpush.bf16.msra.mxu1 %v11744_v61  ;;  %v11728_v61 = vor.u32 %v13483_v19, %v11727_v46  ;;  %v11711_v19 = vld [vmem:[%s20998_s5 + $0x220] sm:$0xf] }
 0x6f7   : > { %7315 = vmatpush.bf16.msra.mxu3 %v11872_v17  ;;  %7328 = vmatpush.bf16.msra.mxu0 %v11748_v15  ;;  %v11856_v17 = vor.u32 %v13515_v54, %v11855_v37  ;;  %v11857_v15 = vld [vmem:[%s20998_s5 + $0x350] sm:$0xf0]  ;;  %v13479_v37 = vld [vmem:[%s20998_s5 + $0x22c] sm:$0xf0]  ;;  %v11839_v54 = vld [vmem:[%s20998_s5 + $0x320] sm:$0xf] }
 0x6f9   : > { %v6658_v6 = vpop.f32.mrf.mxu1  ;;  %7341 = vmatpush.bf16.msra.mxu2 %v11876_v26 }
 0x6fa   : > { %v6659_v32 = vadd.f32 %v6658_v6, %v19172_v13  ;;  %v13513_v13 = vld [vmem:[%s20998_s5 + $0x344] sm:$0xf]  ;;  %7303 = vmatpush.bf16.msra.mxu1 %v11728_v61  ;;  %v13511_v61 = vld [vmem:[%s20998_s5 + $0x32c] sm:$0xf0] }
 0x6fb   : > { %v19371_v6 = vpop.f32.mrf.mxu0  ;;  %v11860_v46 = vor.u32 %v13513_v13, %v11857_v15  ;;  %7316 = vmatpush.bf16.msra.mxu3 %v11856_v17  ;;  %7329 = vmatpush.bf16.msra.mxu0 %v11732_v25  ;;  %v11840_v17 = vor.u32 %v13511_v61, %v11839_v54  ;;  %v11716_v13 = vor.u32 %v13477_v31, %v11713_v53  ;;  %v13509_v25 = vld [vmem:[%s20998_s5 + $0x324] sm:$0xf]  ;;  %v11841_v15 = vld [vmem:[%s20998_s5 + $0x330] sm:$0xf0]  ;;  %v11695_v54 = vld [vmem:[%s20998_s5 + $0x200] sm:$0xf]  ;;  %v19410_v53 = vpop.f32.mrf.mxu2 }
 0x6fc   : > { %v19369_v26 = vadd.f32 %v6659_v32, %v21327_v45  ;;  %v11712_v32 = vor.u32 %v13479_v37, %v11711_v19  ;;  %v6632_v45 = vadd.f32 %v19161_v59, %v19186_v29  ;;  %v11844_v19 = vor.u32 %v13509_v25, %v11841_v15  ;;  %v13475_v61 = vld [vmem:[%s20998_s5 + $0x20c] sm:$0xf0]  ;;  %v11823_v31 = vld [vmem:[%s20998_s5 + $0x300] sm:$0xf]  ;;  %v11697_v25 = vld [vmem:[%s20998_s5 + $0x210] sm:$0xf0] }
 0x6fd   : > { %7342 = vmatpush.bf16.msra.mxu2 %v11860_v46  ;;  %v19399_v46 = vpop.f32.mrf.mxu3  ;;  %v11696_v29 = vor.u32 %v13475_v61, %v11695_v54 }
 0x6fe   : > { %7304 = vmatpush.bf16.msra.mxu1 %v11712_v32  ;;  %v13507_v32 = vld [vmem:[%s20998_s5 + $0x30c] sm:$0xf0] }
 0x6ff   : > { %7317 = vmatpush.bf16.msra.mxu3 %v11840_v17  ;;  %7330 = vmatpush.bf16.msra.mxu0 %v11716_v13  ;;  %v13473_v17 = vld [vmem:[%s20998_s5 + $0x204] sm:$0xf]  ;;  %v11824_v15 = vor.u32 %v13507_v32, %v11823_v31  ;;  %v13504_v31 = vld [vmem:[%s20998_s5 + $0x2f4] sm:$0xf0]  ;;  %v11943_v32 = vld [vmem:[%s20998_s5 + $0x3e8] sm:$0xf] }
 0x700   : > { %v11700_v60 = vor.u32 %v13473_v17, %v11697_v25  ;;  %v13505_v13 = vld [vmem:[%s20998_s5 + $0x304] sm:$0xf]  ;;  %v13536_v17 = vld [vmem:[%s20998_s5 + $0x3f4] sm:$0xf0] }
 0x701   : > { %v6660_v37 = vpop.f32.mrf.mxu1  ;;  %7343 = vmatpush.bf16.msra.mxu2 %v11844_v19  ;;  %v11815_v19 = vld [vmem:[%s20998_s5 + $0x2e8] sm:$0xf] }
 0x702   : > { %v6661_v59 = vadd.f32 %v6660_v37, %v6632_v45  ;;  %v11825_v45 = vld [vmem:[%s20998_s5 + $0x310] sm:$0xf0]  ;;  %v21328_v37 = vld [vmem:[#allocation26_spill] sm:$0xff]  ;;  %7305 = vmatpush.bf16.msra.mxu1 %v11696_v29  ;;  %v13502_v29 = vld [vmem:[%s20998_s5 + $0x2ec] sm:$0xf] }
 0x703   : > { %v6711_v61 = vpop.f32.mrf.mxu0  ;;  %v11828_v39 = vor.u32 %v13505_v13, %v11825_v45  ;;  %7318 = vmatpush.bf16.msra.mxu3 %v11824_v15  ;;  %v11817_v13 = vld [vmem:[%s20998_s5 + $0x2f8] sm:$0xf0]  ;;  %v13534_v45 = vld [vmem:[%s20998_s5 + $0x3ec] sm:$0xf]  ;;  %7331 = vmatpush.bf16.msra.mxu0 %v11700_v60  ;;  %v11799_v15 = vld [vmem:[%s20998_s5 + $0x2c8] sm:$0xf] }
 0x704   : > { %v19431_v54 = vadd.f32 %v6661_v59, %v21328_v37  ;;  %v6712_v25 = vadd.f32 %v6711_v61, %v19324_v16  ;;  %v11816_v59 = vor.u32 %v13504_v31, %v11815_v19  ;;  %v11944_v37 = vor.u32 %v13536_v17, %v11943_v32  ;;  %v11945_v16 = vld [vmem:[%s20998_s5 + $0x3f8] sm:$0xf0]  ;;  %v13500_v19 = vld [vmem:[%s20998_s5 + $0x2d4] sm:$0xf0]  ;;  %v13498_v17 = vld [vmem:[%s20998_s5 + $0x2cc] sm:$0xf] }
 0x705   : > { %7344 = vmatpush.bf16.msra.mxu2 %v11828_v39  ;;  %v11820_v4 = vor.u32 %v13502_v29, %v11817_v13  ;;  %v11948_v31 = vor.u32 %v13534_v45, %v11945_v16  ;;  %v11800_v60 = vor.u32 %v13500_v19, %v11799_v15  ;;  %v11927_v39 = vld [vmem:[%s20998_s5 + $0x3c8] sm:$0xf]  ;;  %v13532_v32 = vld [vmem:[%s20998_s5 + $0x3d4] sm:$0xf0]  ;;  %v6687_v16 = vpop.f32.mrf.mxu3 }
 0x706   : > { %v6741_v61 = vadd.f32 %v19341_v7, %v6712_v25  ;;  %7350 = vmatpush.bf16.msrb.mxu1 %v11816_v59  ;;  %v11928_v29 = vor.u32 %v13532_v32, %v11927_v39  ;;  %v11801_v7 = vld [vmem:[%s20998_s5 + $0x2d8] sm:$0xf0]  ;;  %v13530_v25 = vld [vmem:[%s20998_s5 + $0x3cc] sm:$0xf]  ;;  %v11783_v19 = vld [vmem:[%s20998_s5 + $0x2a8] sm:$0xf] }
 0x707   : > { %7363 = vmatpush.bf16.msrb.mxu3 %v11944_v37  ;;  %7376 = vmatpush.bf16.msrb.mxu0 %v11820_v4  ;;  %v11929_v59 = vld [vmem:[%s20998_s5 + $0x3d8] sm:$0xf0]  ;;  %v11804_v45 = vor.u32 %v13498_v17, %v11801_v7  ;;  %v13496_v39 = vld [vmem:[%s20998_s5 + $0x2b4] sm:$0xf0]  ;;  %v6745_v17 = vpop.f32.mrf.mxu2 }
 0x708   : > { %v19481_v37 = vadd.f32 %v6741_v61, %v18994_v40  ;;  %v11932_v4 = vor.u32 %v13530_v25, %v11929_v59  ;;  %v11911_v40 = vld [vmem:[%s20998_s5 + $0x3a8] sm:$0xf]  ;;  %v11784_v61 = vor.u32 %v13496_v39, %v11783_v19  ;;  %v11785_v32 = vld [vmem:[%s20998_s5 + $0x2b8] sm:$0xf0]  ;;  %v13526_v59 = vld [vmem:[%s20998_s5 + $0x3ac] sm:$0xf]  ;;  %v6627_v39 = vadd.f32 %v19145_v47, %v19164_v34 }
 0x709   : > { %v6663_v13 = vpop.f32.mrf.mxu1  ;;  %7389 = vmatpush.bf16.msrb.mxu2 %v11948_v31  ;;  %v13528_v31 = vld [vmem:[%s20998_s5 + $0x3b4] sm:$0xf0] }
 0x70a   : > { %v6664_v15 = vadd.f32 %v6663_v13, %v19196_v63  ;;  %7351 = vmatpush.bf16.msrb.mxu1 %v11800_v60  ;;  %v13494_v63 = vld [vmem:[%s20998_s5 + $0x2ac] sm:$0xf]  ;;  %v11912_v60 = vor.u32 %v13528_v31, %v11911_v40  ;;  %v11913_v13 = vld [vmem:[%s20998_s5 + $0x3b8] sm:$0xf0]  ;;  %v11895_v40 = vld [vmem:[%s20998_s5 + $0x388] sm:$0xf] }
 0x70b   : > { %7364 = vmatpush.bf16.msrb.mxu3 %v11928_v29  ;;  %v19503_v25 = vpop.f32.mrf.mxu0  ;;  %7377 = vmatpush.bf16.msrb.mxu0 %v11804_v45  ;;  %v11788_v29 = vor.u32 %v13494_v63, %v11785_v32  ;;  %v11916_v19 = vor.u32 %v13526_v59, %v11913_v13  ;;  %v11767_v45 = vld [vmem:[%s20998_s5 + $0x288] sm:$0xf]  ;;  %v13524_v34 = vld [vmem:[%s20998_s5 + $0x394] sm:$0xf0]  ;;  %v11769_v31 = vld [vmem:[%s20998_s5 + $0x298] sm:$0xf0]  ;;  %v6656_v63 = vadd.f32 %v19286_v36, %v6627_v39 }
 0x70c   : > { %v6778_v7 = vadd.f32 %v6664_v15, %v19004_v49  ;;  %v13492_v15 = vld [vmem:[%s20998_s5 + $0x294] sm:$0xf0]  ;;  %v13522_v32 = vld [vmem:[%s20998_s5 + $0x38c] sm:$0xf]  ;;  %v11753_v39 = vld [vmem:[%s20998_s5 + $0x278] sm:$0xf0] }
 0x70d   : > { %7390 = vmatpush.bf16.msrb.mxu2 %v11932_v4  ;;  %v6637_v4 = vadd.f32 %v19181_v33, %v19258_v10  ;;  %v11768_v47 = vor.u32 %v13492_v15, %v11767_v45  ;;  %v11896_v10 = vor.u32 %v13524_v34, %v11895_v40  ;;  %v13520_v13 = vld [vmem:[%s20998_s5 + $0x374] sm:$0xf0]  ;;  %v6689_v15 = vpop.f32.mrf.mxu3 }
 0x70e   : > { %v6794_v49 = vmax.f32 %v19256_v23, %v6778_v7  ;;  %7352 = vmatpush.bf16.msrb.mxu1 %v11784_v61  ;;  %v13490_v23 = vld [vmem:[%s20998_s5 + $0x28c] sm:$0xf]  ;;  %v11897_v7 = vld [vmem:[%s20998_s5 + $0x398] sm:$0xf0] }
 0x70f   : > { %7365 = vmatpush.bf16.msrb.mxu3 %v11912_v60  ;;  %7378 = vmatpush.bf16.msrb.mxu0 %v11788_v29  ;;  %v11772_v61 = vor.u32 %v13490_v23, %v11769_v31  ;;  %v11900_v59 = vor.u32 %v13522_v32, %v11897_v7  ;;  %v11752_v29 = vor.u32 %v13488_v0, %v11751_v55  ;;  %v13518_v23 = vld [vmem:[%s20998_s5 + $0x36c] sm:$0xf]  ;;  %v11881_v31 = vld [vmem:[%s20998_s5 + $0x378] sm:$0xf0]  ;;  %v6747_v7 = vpop.f32.mrf.mxu2 }
 0x710   : > { %v19538_v33 = vmax.f32 %v6792_v48, %v6794_v49  ;;  %v11879_v48 = vld [vmem:[%s20998_s5 + $0x368] sm:$0xf]  ;;  %v11884_v32 = vor.u32 %v13518_v23, %v11881_v31  ;;  %v13482_v55 = vld [vmem:[%s20998_s5 + $0x24c] sm:$0xf]  ;;  %v11737_v0 = vld [vmem:[%s20998_s5 + $0x258] sm:$0xf0] }
 0x711   : > { %v6665_v60 = vpop.f32.mrf.mxu1  ;;  %7391 = vmatpush.bf16.msrb.mxu2 %v11916_v19  ;;  %v13486_v19 = vld [vmem:[%s20998_s5 + $0x26c] sm:$0xf] }
 0x712   : > { %v6666_v36 = vadd.f32 %v6665_v60, %v6637_v4  ;;  %7353 = vmatpush.bf16.msrb.mxu1 %v11768_v47  ;;  %v21329_v49 = vld [vmem:[#allocation11_spill] sm:$0xff]  ;;  %v11880_v47 = vor.u32 %v13520_v13, %v11879_v48  ;;  %v11756_v34 = vor.u32 %v13486_v19, %v11753_v39  ;;  %v11865_v19 = vld [vmem:[%s20998_s5 + $0x358] sm:$0xf0]  ;;  %v19604_v39 = vld [vmem:[%s20997_s4] sm:$0x3] }
 0x713   : > { %7366 = vmatpush.bf16.msrb.mxu3 %v11896_v10  ;;  %v6766_v45 = vadd.f32 %v6656_v63, %v21329_v49  ;;  %v6716_v4 = vpop.f32.mrf.mxu0  ;;  %7379 = vmatpush.bf16.msrb.mxu0 %v11772_v61  ;;  %v13484_v61 = vld [vmem:[%s20998_s5 + $0x254] sm:$0xf0]  ;;  %v11863_v60 = vld [vmem:[%s20998_s5 + $0x348] sm:$0xf]  ;;  %v13514_v13 = vld [vmem:[%s20998_s5 + $0x34c] sm:$0xf] }
 0x714   : > { %v6782_v40 = vadd.f32 %v6666_v36, %v19028_v38  ;;  %v6717_v10 = vadd.f32 %v6716_v4, %v6687_v16  ;;  %v11735_v38 = vld [vmem:[%s20998_s5 + $0x248] sm:$0xf] }
 0x715   : > { %7392 = vmatpush.bf16.msrb.mxu2 %v11900_v59  ;;  %v11736_v16 = vor.u32 %v13484_v61, %v11735_v38  ;;  %v13516_v59 = vld [vmem:[%s20998_s5 + $0x354] sm:$0xf0]  ;;  %v11847_v4 = vld [vmem:[%s20998_s5 + $0x328] sm:$0xf]  ;;  %v11849_v38 = vld [vmem:[%s20998_s5 + $0x338] sm:$0xf0] }
 0x716   : > { %v6798_v63 = vmax.f32 %v6766_v45, %v6782_v40  ;;  %v6746_v36 = vadd.f32 %v6745_v17, %v6717_v10  ;;  %7354 = vmatpush.bf16.msrb.mxu1 %v11752_v29  ;;  %v11864_v17 = vor.u32 %v13516_v59, %v11863_v60  ;;  %v11740_v29 = vor.u32 %v13482_v55, %v11737_v0  ;;  %v11719_v45 = vld [vmem:[%s20998_s5 + $0x228] sm:$0xf]  ;;  %v13480_v40 = vld [vmem:[%s20998_s5 + $0x234] sm:$0xf0] }
 0x717   : > { %7367 = vmatpush.bf16.msrb.mxu3 %v11880_v47  ;;  %7380 = vmatpush.bf16.msrb.mxu0 %v11756_v34  ;;  %v13512_v47 = vld [vmem:[%s20998_s5 + $0x334] sm:$0xf0]  ;;  %v11721_v34 = vld [vmem:[%s20998_s5 + $0x238] sm:$0xf0]  ;;  %v19636_v61 = vperm.slane %v19604_v39, 0 }
 0x718   : > { %v19593_v48 = vmax.f32 %v6796_v5, %v6798_v63  ;;  %v19607_v27 = vadd.f32 %v6746_v36, %v19040_v8  ;;  %v11868_v5 = vor.u32 %v13514_v13, %v11865_v19  ;;  %v11720_v8 = vor.u32 %v13480_v40, %v11719_v45  ;;  %v13510_v63 = vld [vmem:[%s20998_s5 + $0x32c] sm:$0xf]  ;;  %v11703_v59 = vld [vmem:[%s20998_s5 + $0x208] sm:$0xf]  ;;  %v13476_v55 = vld [vmem:[%s20998_s5 + $0x214] sm:$0xf0] }
 0x719   : > { %v6668_v22 = vpop.f32.mrf.mxu1  ;;  %7393 = vmatpush.bf16.msrb.mxu2 %v11884_v32  ;;  %v11848_v10 = vor.u32 %v13512_v47, %v11847_v4  ;;  %v11852_v36 = vor.u32 %v13510_v63, %v11849_v38  ;;  %v11831_v0 = vld [vmem:[%s20998_s5 + $0x308] sm:$0xf]  ;;  %v11705_v13 = vld [vmem:[%s20998_s5 + $0x218] sm:$0xf0]  ;;  %v6642_v19 = vadd.f32 %v19269_v9, %v19371_v6  ;;  %v13506_v45 = vld [vmem:[%s20998_s5 + $0x30c] sm:$0xf] }
 0x71a   : > { %v6669_v49 = vadd.f32 %v6668_v22, %v19313_v18  ;;  %7355 = vmatpush.bf16.msrb.mxu1 %v11736_v16  ;;  %v13478_v18 = vld [vmem:[%s20998_s5 + $0x22c] sm:$0xf]  ;;  %v6692_v16 = vpop.f32.mrf.mxu3  ;;  %v6750_v22 = vpop.f32.mrf.mxu2  ;;  %v11833_v40 = vld [vmem:[%s20998_s5 + $0x318] sm:$0xf0]  ;;  %v19687_v38 = vperm.slane %v19604_v39, 1  ;;  %v6824_v56 = vadd.f32 %v19636_v61, %v19593_v48 }
 0x71b   : > { %7368 = vmatpush.bf16.msrb.mxu3 %v11864_v17  ;;  %v6718_v31 = vpop.f32.mrf.mxu0  ;;  %7381 = vmatpush.bf16.msrb.mxu0 %v11740_v29  ;;  %v11724_v32 = vor.u32 %v13478_v18, %v11721_v34  ;;  %v13474_v29 = vld [vmem:[%s20998_s5 + $0x20c] sm:$0xf]  ;;  %v11836_v6 = vor.u32 %v13506_v45, %v11833_v40  ;;  %v13471_v48 = vld [vmem:[%s20998_s5 + $0x1ec] sm:$0xf0]  ;;  %v12065_v45 = vld [vmem:[%s20998_s5 + $0xf0] sm:$0xf0] }
 0x71c   : > { %v6786_v23 = vadd.f32 %v6669_v49, %v19050_v3  ;;  %v6719_v60 = vadd.f32 %v6718_v31, %v6689_v15  ;;  %v11704_v15 = vor.u32 %v13476_v55, %v11703_v59  ;;  %v11708_v49 = vor.u32 %v13474_v29, %v11705_v13  ;;  %v13469_v40 = vld [vmem:[%s20998_s5 + $0x1e4] sm:$0xf] }
 0x71d   : > { %7394 = vmatpush.bf16.msrb.mxu2 %v11868_v5  ;;  %v6714_v31 = vadd.f32 %v19503_v25, %v19399_v46 }
 0x71e   : > { %v6802_v3 = vmax.f32 %v19369_v26, %v6786_v23  ;;  %v6748_v17 = vadd.f32 %v6747_v7, %v6719_v60  ;;  %7356 = vmatpush.bf16.msrb.mxu1 %v11720_v8  ;;  %v13508_v26 = vld [vmem:[%s20998_s5 + $0x314] sm:$0xf0]  ;;  %v6822_v60 = vadd.f32 %v19636_v61, %v19538_v33 }
 0x71f   : > { %7369 = vmatpush.bf16.msrb.mxu3 %v11848_v10  ;;  %7382 = vmatpush.bf16.msrb.mxu0 %v11724_v32  ;;  %v11832_v5 = vor.u32 %v13508_v26, %v11831_v0  ;;  %v6743_v52 = vadd.f32 %v19410_v53, %v6714_v31  ;;  %v12063_v26 = vld [vmem:[%s20998_s5 + $0xe0] sm:$0xf] }
 0x720   : > { %v6812_v7 = vmax.f32 %v6800_v43, %v6802_v3  ;;  %v19669_v4 = vadd.f32 %v6748_v17, %v19064_v2  ;;  %v6830_v25 = vmax.f32 %v6822_v60, 0.0  ;;  %v6832_v17 = vmax.f32 %v6824_v56, 0.0  ;;  %v12033_v56 = vld [vmem:[%s20998_s5 + $0xb0] sm:$0xf0] }
 0x721   : > { %v6670_v9 = vpop.f32.mrf.mxu1  ;;  %7395 = vmatpush.bf16.msrb.mxu2 %v11852_v36 }
 0x722   : > { %v19672_v35 = vadd.f32 %v19636_v61, %v6812_v7  ;;  %v6671_v12 = vadd.f32 %v6670_v9, %v6642_v19  ;;  %7357 = vmatpush.bf16.msrb.mxu1 %v11704_v15  ;;  %v6694_v2 = vpop.f32.mrf.mxu3  ;;  %v6752_v32 = vpop.f32.mrf.mxu2  ;;  %v13437_v19 = vld [vmem:[%s20998_s5 + $0xe4] sm:$0xf]  ;;  %v12193_v9 = vld [vmem:[%s20998_s5 + $0x1f0] sm:$0xf0] }
 0x723   : > { %7370 = vmatpush.bf16.msrb.mxu3 %v11832_v5  ;;  %v6721_v8 = vpop.f32.mrf.mxu0  ;;  %7383 = vmatpush.bf16.msrb.mxu0 %v11708_v49  ;;  %v12196_v31 = vor.u32 %v13469_v40, %v12193_v9  ;;  %v12001_v40 = vld [vmem:[%s20998_s5 + $0x70] sm:$0xf0]  ;;  %v13453_v9 = vld [vmem:[%s20998_s5 + $0x164] sm:$0xf] }
 0x724   : > { %v6790_v43 = vadd.f32 %v6671_v12, %v19074_v42  ;;  %v6722_v47 = vadd.f32 %v6721_v8, %v6692_v16  ;;  %v12064_v12 = vor.u32 %v13439_v51, %v12063_v26  ;;  %v13425_v26 = vld [vmem:[%s20998_s5 + $0x84] sm:$0xf] }
 0x725   : > { %7396 = vmatpush.bf16.msrb.mxu2 %v11836_v6 }
 0x726   : > { %v6806_v18 = vmax.f32 %v19431_v54, %v6790_v43  ;;  %v6751_v34 = vadd.f32 %v6750_v22, %v6722_v47  ;;  %v12192_v43 = vor.u32 %v13471_v48, %v12191_v21  ;;  %v13457_v21 = vld [vmem:[%s20998_s5 + $0x184] sm:$0xf]  ;;  %v12145_v48 = vld [vmem:[%s20998_s5 + $0x190] sm:$0xf0] }
 0x728   : > { %v6814_v23 = vmax.f32 %v6804_v30, %v6806_v18  ;;  %v6779_v10 = vadd.f32 %v6751_v34, %v19078_v57  ;;  %v12047_v18 = vld [vmem:[%s20998_s5 + $0xc0] sm:$0xf]  ;;  %v13435_v34 = vld [vmem:[%s20998_s5 + $0xcc] sm:$0xf0] }
 0x72a   : > { %v19683_v42 = vadd.f32 %v19636_v61, %v6814_v23  ;;  %v6795_v63 = vmax.f32 %v19481_v37, %v6779_v10  ;;  %v6767_v37 = vadd.f32 %v6743_v52, %v19018_v41  ;;  %v6697_v16 = vpop.f32.mrf.mxu3  ;;  %v6755_v59 = vpop.f32.mrf.mxu2  ;;  %v12068_v23 = vor.u32 %v13437_v19, %v12065_v45  ;;  %v13467_v10 = vld [vmem:[%s20998_s5 + $0x1cc] sm:$0xf0]  ;;  %v13421_v45 = vld [vmem:[%s20998_s5 + $0x64] sm:$0xf] }
 0x72b   : > { %v6723_v54 = vpop.f32.mrf.mxu0 }
 0x72c   : > { %v6809_v28 = vmax.f32 %v6793_v11, %v6795_v63  ;;  %v6724_v57 = vadd.f32 %v6723_v54, %v6694_v2  ;;  %v12175_v2 = vld [vmem:[%s20998_s5 + $0x1c0] sm:$0xf]  ;;  %v12049_v63 = vld [vmem:[%s20998_s5 + $0xd0] sm:$0xf0]  ;;  %v6834_v54 = vmax.f32 %v19672_v35, 0.0  ;;  %v12048_v35 = vor.u32 %v13435_v34, %v12047_v18 }
 0x72d   : > { %v12004_v18 = vor.u32 %v13421_v45, %v12001_v40  ;;  %v13468_v45 = vld [vmem:[%s20998_s5 + $0x1d4] sm:$0xf0]  ;;  %v12057_v40 = vld [vmem:[%s20998_s5 + $0xd8] sm:$0xf0] }
 0x72e   : > { %v6823_v30 = vadd.f32 %v19687_v38, %v6809_v28  ;;  %v6753_v46 = vadd.f32 %v6752_v32, %v6724_v57  ;;  %v13433_v32 = vld [vmem:[%s20998_s5 + $0xc4] sm:$0xf]  ;;  %v12177_v57 = vld [vmem:[%s20998_s5 + $0x1d0] sm:$0xf0] }
 0x72f   : > { %v13465_v28 = vld [vmem:[%s20998_s5 + $0x1c4] sm:$0xf] }
 0x730   : > { %v6831_v36 = vmax.f32 %v6823_v30, 0.0  ;;  %v6783_v39 = vadd.f32 %v6753_v46, %v19084_v62  ;;  %v12176_v46 = vor.u32 %v13467_v10, %v12175_v2  ;;  %v12111_v2 = vld [vmem:[%s20998_s5 + $0x140] sm:$0xf]  ;;  %v11985_v10 = vld [vmem:[%s20998_s5 + $0x50] sm:$0xf0] }
 0x732   : > { %v19698_v3 = vpack.c.bf16 %v6831_v36, %v6830_v25  ;;  %v6799_v33 = vmax.f32 %v6767_v37, %v6783_v39  ;;  %v6757_v6 = vpop.f32.mrf.mxu2  ;;  %v12031_v25 = vld [vmem:[%s20998_s5 + $0xa0] sm:$0xf]  ;;  %v13431_v37 = vld [vmem:[%s20998_s5 + $0xac] sm:$0xf0]  ;;  %v12052_v36 = vor.u32 %v13433_v32, %v12049_v63  ;;  %v12180_v39 = vor.u32 %v13465_v28, %v12177_v57  ;;  %v13449_v32 = vld [vmem:[%s20998_s5 + $0x144] sm:$0xf] }
 0x733   : > { %v6726_v53 = vpop.f32.mrf.mxu0  ;;  %v12113_v63 = vld [vmem:[%s20998_s5 + $0x150] sm:$0xf0]  ;;  %v13415_v28 = vld [vmem:[%s20998_s5 + $0x2c] sm:$0xf0] }
 0x734   : > { %v6811_v11 = vmax.f32 %v21330_v44, %v6799_v33  ;;  %v6727_v55 = vadd.f32 %v6726_v53, %v6697_v16  ;;  %v12159_v16 = vld [vmem:[%s20998_s5 + $0x1a0] sm:$0xf]  ;;  %v13429_v33 = vld [vmem:[%s20998_s5 + $0xa4] sm:$0xf] }
 0x735   : > { %v13461_v44 = vld [vmem:[%s20998_s5 + $0x1a4] sm:$0xf] }
 0x736   : > { %v6825_v0 = vadd.f32 %v19687_v38, %v6811_v11  ;;  %v6756_v41 = vadd.f32 %v6755_v59, %v6727_v55  ;;  %v21332_v59 = vmax.f32 %v19233_v1, %v19236_v58  ;;  %v12161_v11 = vld [vmem:[%s20998_s5 + $0x1b0] sm:$0xf0]  ;;  %v12015_v1 = vld [vmem:[%s20998_s5 + $0x80] sm:$0xf]  ;;  %v13427_v58 = vld [vmem:[%s20998_s5 + $0x8c] sm:$0xf0] }
 0x738   : > { %v6833_v15 = vmax.f32 %v6825_v0, 0.0  ;;  %v6787_v62 = vadd.f32 %v6756_v41, %v19090_v20  ;;  %v6699_v20 = vpop.f32.mrf.mxu3  ;;  %v12032_v0 = vor.u32 %v13431_v37, %v12031_v25  ;;  %v13445_v25 = vld [vmem:[%s20998_s5 + $0x124] sm:$0xf]  ;;  %v12097_v37 = vld [vmem:[%s20998_s5 + $0x130] sm:$0xf0] }
 0x73a   : > { %v6839_v29 = vpack.c.bf16 %v6833_v15, %v6832_v17  ;;  %v6803_v13 = vmax.f32 %v19607_v27, %v6787_v62  ;;  %v21331_v27 = vmax.f32 %v19159_v50, %v19189_v14  ;;  %v12143_v17 = vld [vmem:[%s20998_s5 + $0x180] sm:$0xf]  ;;  %v12036_v15 = vor.u32 %v13429_v33, %v12033_v56  ;;  %v13459_v62 = vld [vmem:[%s20998_s5 + $0x18c] sm:$0xf0] }
 0x73b   : > { %v6728_v61 = vpop.f32.mrf.mxu0  ;;  %v12144_v19 = vor.u32 %v13459_v62, %v12143_v17  ;;  %v12079_v33 = vld [vmem:[%s20998_s5 + $0x100] sm:$0xf]  ;;  %v12100_v56 = vor.u32 %v13445_v25, %v12097_v37  ;;  %v13472_v17 = vld [vmem:[%s20998_s5 + $0x1f4] sm:$0xf0]  ;;  %v13426_v25 = vld [vmem:[%s20998_s5 + $0x8c] sm:$0xf] }
 0x73c   : > { %v6813_v22 = vmax.f32 %v21331_v27, %v6803_v13  ;;  %v6729_v7 = vadd.f32 %v6728_v61, %v6699_v20  ;;  %v6972_v5 = vunpack.c.l.b16 %v6839_v29  ;;  %v6973_v49 = vunpack.c.h.b16 %v6839_v29  ;;  %v12017_v29 = vld [vmem:[%s20998_s5 + $0x90] sm:$0xf0]  ;;  %v11999_v27 = vld [vmem:[%s20998_s5 + $0x60] sm:$0xf]  ;;  %v12025_v37 = vld [vmem:[%s20998_s5 + $0x98] sm:$0xf0] }
 0x73d   : > { %v6836_v13 = vmax.f32 %v19683_v42, 0.0  ;;  %v12016_v61 = vor.u32 %v13427_v58, %v12015_v1  ;;  %v13423_v42 = vld [vmem:[%s20998_s5 + $0x6c] sm:$0xf0]  ;;  %v13440_v1 = vld [vmem:[%s20998_s5 + $0xf4] sm:$0xf0] }
 0x73e   : > { %v6827_v50 = vadd.f32 %v19687_v38, %v6813_v22  ;;  %v6758_v14 = vadd.f32 %v6757_v6, %v6729_v7  ;;  %v19736_v8 = vpack.c.b16 %v6972_v5, %v6972_v5  ;;  %v19738_v47 = vpack.c.b16 %v6973_v49, %v6973_v49  ;;  %v12127_v5 = vld [vmem:[%s20998_s5 + $0x160] sm:$0xf]  ;;  %v13455_v49 = vld [vmem:[%s20998_s5 + $0x16c] sm:$0xf0]  ;;  %v12129_v6 = vld [vmem:[%s20998_s5 + $0x170] sm:$0xf0] }
 0x73f   : > { %v12020_v22 = vor.u32 %v13425_v26, %v12017_v29  ;;  %v12148_v7 = vor.u32 %v13457_v21, %v12145_v48  ;;  %v12132_v34 = vor.u32 %v13453_v9, %v12129_v6  ;;  %v12199_v58 = vld [vmem:[%s20998_s5 + $0x1e8] sm:$0xf]  ;;  %v12073_v26 = vld [vmem:[%s20998_s5 + $0xf8] sm:$0xf0]  ;;  %v13470_v29 = vld [vmem:[%s20998_s5 + $0x1ec] sm:$0xf]  ;;  %v7403_v48 = vunpack.c.l.b16 %v19698_v3 }
 0x740   : > { %v6835_v60 = vmax.f32 %v6827_v50, 0.0  ;;  %v6791_v52 = vadd.f32 %v6758_v14, %v19098_v24  ;;  %7306 = vmatmul.bf16.vlgmr.msra.gmra.mxu1 %v19736_v8  ;;  %7319 = vmatmul.bf16.vlgmr.msra.gmra.mxu3 %v19738_v47  ;;  %v11983_v50 = vld [vmem:[%s20998_s5 + $0x40] sm:$0xf]  ;;  %v13419_v14 = vld [vmem:[%s20998_s5 + $0x4c] sm:$0xf0] }
 0x741   : > { %7332 = vmatmul.bf16.vlgmr.msra.gmra.mxu0 %v19736_v8  ;;  %7345 = vmatmul.bf16.vlgmr.msra.gmra.mxu2 %v19738_v47  ;;  %v13466_v9 = vld [vmem:[%s20998_s5 + $0x1cc] sm:$0xf]  ;;  %v12185_v6 = vld [vmem:[%s20998_s5 + $0x1d8] sm:$0xf0] }
 0x742   : > { %v19770_v30 = vpack.c.bf16 %v6835_v60, %v6834_v54  ;;  %v6807_v24 = vmax.f32 %v19669_v4, %v6791_v52  ;;  %7729 = vmatpush.bf16.msra.mxu1 %v12064_v12  ;;  %7742 = vmatpush.bf16.msra.mxu3 %v12192_v43  ;;  %v13463_v4 = vld [vmem:[%s20998_s5 + $0x1ac] sm:$0xf0]  ;;  %v12000_v12 = vor.u32 %v13423_v42, %v11999_v27  ;;  %v11967_v52 = vld [vmem:[%s20998_s5 + $0x20] sm:$0xf]  ;;  %v7404_v27 = vunpack.c.h.b16 %v19698_v3  ;;  %v12055_v42 = vld [vmem:[%s20998_s5 + $0xc8] sm:$0xf] }
 0x743   : > { %7755 = vmatpush.bf16.msra.mxu0 %v12068_v23  ;;  %7768 = vmatpush.bf16.msra.mxu2 %v12196_v31  ;;  %v12160_v41 = vor.u32 %v13463_v4, %v12159_v16  ;;  %v12128_v43 = vor.u32 %v13455_v49, %v12127_v5  ;;  %v13451_v23 = vld [vmem:[%s20998_s5 + $0x14c] sm:$0xf0]  ;;  %v13417_v31 = vld [vmem:[%s20998_s5 + $0x44] sm:$0xf]  ;;  %v11984_v54 = vor.u32 %v13419_v14, %v11983_v50  ;;  %v12183_v49 = vld [vmem:[%s20998_s5 + $0x1c8] sm:$0xf] }
 0x744   : > { %v6815_v53 = vmax.f32 %v21332_v59, %v6807_v24  ;;  %v12112_v60 = vor.u32 %v13451_v23, %v12111_v2  ;;  %v11988_v57 = vor.u32 %v13417_v31, %v11985_v10  ;;  %v13413_v24 = vld [vmem:[%s20998_s5 + $0x24] sm:$0xf]  ;;  %v13411_v4 = vld [vmem:[%s20998_s5 + $0xc] sm:$0xf0]  ;;  %v13434_v3 = vld [vmem:[%s20998_s5 + $0xcc] sm:$0xf]  ;;  %v12184_v14 = vor.u32 %v13468_v45, %v12183_v49 }
 0x745   : > { %v13443_v59 = vld [vmem:[%s20998_s5 + $0x10c] sm:$0xf0]  ;;  %v12060_v2 = vor.u32 %v13434_v3, %v12057_v40  ;;  %v12188_v23 = vor.u32 %v13466_v9, %v12185_v6  ;;  %v12167_v31 = vld [vmem:[%s20998_s5 + $0x1a8] sm:$0xf]  ;;  %v13464_v10 = vld [vmem:[%s20998_s5 + $0x1b4] sm:$0xf0] }
 0x746   : > { %v6829_v55 = vadd.f32 %v19687_v38, %v6815_v53  ;;  %7730 = vmatpush.bf16.msra.mxu1 %v12048_v35  ;;  %7743 = vmatpush.bf16.msra.mxu3 %v12176_v46  ;;  %v12164_v38 = vor.u32 %v13461_v44, %v12161_v11  ;;  %v12116_v35 = vor.u32 %v13449_v32, %v12113_v63  ;;  %v11969_v46 = vld [vmem:[%s20998_s5 + $0x30] sm:$0xf0]  ;;  %v13409_v44 = vld [vmem:[%s20998_s5 + $0x4] sm:$0xf]  ;;  %v13430_v32 = vld [vmem:[%s20998_s5 + $0xac] sm:$0xf] }
 0x747   : > { %7756 = vmatpush.bf16.msra.mxu0 %v12052_v36  ;;  %7769 = vmatpush.bf16.msra.mxu2 %v12180_v39  ;;  %v11951_v36 = vld [vmem:[%s20998_s5] sm:$0xf]  ;;  %v11968_v39 = vor.u32 %v13415_v28, %v11967_v52  ;;  %v11972_v53 = vor.u32 %v13413_v24, %v11969_v46  ;;  %v11953_v11 = vld [vmem:[%s20998_s5 + $0x10] sm:$0xf0]  ;;  %v12080_v62 = vor.u32 %v13443_v59, %v12079_v33  ;;  %v12041_v63 = vld [vmem:[%s20998_s5 + $0xb8] sm:$0xf0] }
 0x748   : > { %v6837_v51 = vmax.f32 %v6829_v55, 0.0  ;;  %v13441_v55 = vld [vmem:[%s20998_s5 + $0x104] sm:$0xf]  ;;  %v12168_v28 = vor.u32 %v13464_v10, %v12167_v31  ;;  %v12151_v24 = vld [vmem:[%s20998_s5 + $0x188] sm:$0xf] }
 0x749   : > { %v13460_v46 = vld [vmem:[%s20998_s5 + $0x194] sm:$0xf0]  ;;  %v12007_v33 = vld [vmem:[%s20998_s5 + $0x68] sm:$0xf]  ;;  %v13414_v3 = vld [vmem:[%s20998_s5 + $0x2c] sm:$0xf] }
 0x74a   : > { %v19826_v20 = vpack.c.bf16 %v6837_v51, %v6836_v13  ;;  %7731 = vmatpush.bf16.msra.mxu1 %v12032_v0  ;;  %7744 = vmatpush.bf16.msra.mxu3 %v12160_v41  ;;  %v12081_v0 = vld [vmem:[%s20998_s5 + $0x110] sm:$0xf0]  ;;  %v12071_v41 = vld [vmem:[%s20998_s5 + $0xe8] sm:$0xf]  ;;  %v12201_v13 = vld [vmem:[%s20998_s5 + $0x1f8] sm:$0xf0]  ;;  %v11956_v51 = vor.u32 %v13409_v44, %v11953_v11 }
 0x74b   : > { %7757 = vmatpush.bf16.msra.mxu0 %v12036_v15  ;;  %7770 = vmatpush.bf16.msra.mxu2 %v12164_v38  ;;  %v13438_v15 = vld [vmem:[%s20998_s5 + $0xec] sm:$0xf]  ;;  %v11952_v38 = vor.u32 %v13411_v4, %v11951_v36  ;;  %v12084_v21 = vor.u32 %v13441_v55, %v12081_v0  ;;  %v12204_v5 = vor.u32 %v13470_v29, %v12201_v13  ;;  %v13424_v59 = vld [vmem:[%s20998_s5 + $0x74] sm:$0xf0]  ;;  %v12135_v44 = vld [vmem:[%s20998_s5 + $0x168] sm:$0xf] }
 0x74c   : > { %v13458_v36 = vld [vmem:[%s20998_s5 + $0x18c] sm:$0xf]  ;;  %v12152_v4 = vor.u32 %v13460_v46, %v12151_v24  ;;  %v13456_v11 = vld [vmem:[%s20998_s5 + $0x174] sm:$0xf0]  ;;  %v12009_v0 = vld [vmem:[%s20998_s5 + $0x78] sm:$0xf0] }
 0x74d   : > { %v13422_v55 = vld [vmem:[%s20998_s5 + $0x6c] sm:$0xf]  ;;  %v12119_v29 = vld [vmem:[%s20998_s5 + $0x148] sm:$0xf]  ;;  %v13452_v13 = vld [vmem:[%s20998_s5 + $0x154] sm:$0xf0] }
 0x74e   : > { %7732 = vmatpush.bf16.msra.mxu1 %v12016_v61  ;;  %7745 = vmatpush.bf16.msra.mxu3 %v12144_v19  ;;  %v12072_v61 = vor.u32 %v13440_v1, %v12071_v41  ;;  %v12200_v19 = vor.u32 %v13472_v17, %v12199_v58  ;;  %v13454_v41 = vld [vmem:[%s20998_s5 + $0x16c] sm:$0xf]  ;;  %v12137_v1 = vld [vmem:[%s20998_s5 + $0x178] sm:$0xf0]  ;;  %v12008_v58 = vor.u32 %v13424_v59, %v12007_v33  ;;  %v12103_v49 = vld [vmem:[%s20998_s5 + $0x128] sm:$0xf] }
 0x74f   : > { %7758 = vmatpush.bf16.msra.mxu0 %v12020_v22  ;;  %7771 = vmatpush.bf16.msra.mxu2 %v12148_v7  ;;  %v13436_v22 = vld [vmem:[%s20998_s5 + $0xd4] sm:$0xf0]  ;;  %v12076_v7 = vor.u32 %v13438_v15, %v12073_v26  ;;  %v12136_v17 = vor.u32 %v13456_v11, %v12135_v44  ;;  %v11991_v15 = vld [vmem:[%s20998_s5 + $0x48] sm:$0xf]  ;;  %v12140_v26 = vor.u32 %v13454_v41, %v12137_v1  ;;  %v11977_v40 = vld [vmem:[%s20998_s5 + $0x38] sm:$0xf0] }
 0x750   : > { %7358 = vmatmul.bf16.vlgmr.msrb.gmra.mxu1 %v19736_v8  ;;  %7371 = vmatmul.bf16.vlgmr.msrb.gmra.mxu3 %v19738_v47  ;;  %v12056_v50 = vor.u32 %v13436_v22, %v12055_v42  ;;  %v11975_v42 = vld [vmem:[%s20998_s5 + $0x28] sm:$0xf]  ;;  %v13416_v22 = vld [vmem:[%s20998_s5 + $0x34] sm:$0xf0]  ;;  %v13446_v9 = vld [vmem:[%s20998_s5 + $0x12c] sm:$0xf]  ;;  %v11980_v31 = vor.u32 %v13414_v3, %v11977_v40 }
 0x751   : > { %7384 = vmatmul.bf16.vlgmr.msrb.gmra.mxu0 %v19736_v8  ;;  %7397 = vmatmul.bf16.vlgmr.msrb.gmra.mxu2 %v19738_v47  ;;  %v12095_v8 = vld [vmem:[%s20998_s5 + $0x120] sm:$0xf]  ;;  %v13447_v47 = vld [vmem:[%s20998_s5 + $0x12c] sm:$0xf0]  ;;  %v13448_v45 = vld [vmem:[%s20998_s5 + $0x134] sm:$0xf0] }
 0x752   : > { %7733 = vmatpush.bf16.msra.mxu1 %v12000_v12  ;;  %7746 = vmatpush.bf16.msra.mxu3 %v12128_v43  ;;  %v12096_v16 = vor.u32 %v13447_v47, %v12095_v8  ;;  %v19978_v12 = vpack.c.b16 %v7403_v48, %v7403_v48  ;;  %v19980_v43 = vpack.c.b16 %v7404_v27, %v7404_v27  ;;  %v13450_v48 = vld [vmem:[%s20998_s5 + $0x14c] sm:$0xf]  ;;  %v12105_v6 = vld [vmem:[%s20998_s5 + $0x138] sm:$0xf0]  ;;  %v12385_v46 = vld [vmem:[%s20998_s5 + $0x4f0] sm:$0xf0] }
 0x753   : > { %7759 = vmatpush.bf16.msra.mxu0 %v12004_v18  ;;  %7772 = vmatpush.bf16.msra.mxu2 %v12132_v34  ;;  %v12039_v18 = vld [vmem:[%s20998_s5 + $0xa8] sm:$0xf]  ;;  %v13432_v34 = vld [vmem:[%s20998_s5 + $0xb4] sm:$0xf0]  ;;  %v12044_v8 = vor.u32 %v13430_v32, %v12041_v63  ;;  %v12120_v27 = vor.u32 %v13452_v13, %v12119_v29  ;;  %v12108_v10 = vor.u32 %v13446_v9, %v12105_v6  ;;  %v13410_v32 = vld [vmem:[%s20998_s5 + $0xc] sm:$0xf] }
 0x754   : > { %v12040_v52 = vor.u32 %v13432_v34, %v12039_v18  ;;  %v12104_v18 = vor.u32 %v13448_v45, %v12103_v49  ;;  %v13412_v34 = vld [vmem:[%s20998_s5 + $0x14] sm:$0xf0]  ;;  %v11961_v63 = vld [vmem:[%s20998_s5 + $0x18] sm:$0xf0]  ;;  %v12367_v33 = vld [vmem:[%s20998_s5 + $0x4c0] sm:$0xf] }
 0x755   : > { %v13563_v59 = vld [vmem:[%s20998_s5 + $0x4cc] sm:$0xf0]  ;;  %v12495_v44 = vld [vmem:[%s20998_s5 + $0x5c0] sm:$0xf]  ;;  %v13593_v41 = vld [vmem:[%s20998_s5 + $0x5c4] sm:$0xf] }
 0x756   : > { %7734 = vmatpush.bf16.msra.mxu1 %v11984_v54  ;;  %7747 = vmatpush.bf16.msra.mxu3 %v12112_v60  ;;  %v13462_v54 = vld [vmem:[%s20998_s5 + $0x1ac] sm:$0xf]  ;;  %v12169_v60 = vld [vmem:[%s20998_s5 + $0x1b8] sm:$0xf0]  ;;  %v13595_v11 = vld [vmem:[%s20998_s5 + $0x5cc] sm:$0xf0] }
 0x757   : > { %7760 = vmatpush.bf16.msra.mxu0 %v11988_v57  ;;  %7773 = vmatpush.bf16.msra.mxu2 %v12116_v35  ;;  %v12023_v57 = vld [vmem:[%s20998_s5 + $0x88] sm:$0xf]  ;;  %v13428_v35 = vld [vmem:[%s20998_s5 + $0x94] sm:$0xf0]  ;;  %v12172_v47 = vor.u32 %v13462_v54, %v12169_v60  ;;  %v13442_v54 = vld [vmem:[%s20998_s5 + $0x10c] sm:$0xf] }
 0x758   : > { %v12089_v60 = vld [vmem:[%s20998_s5 + $0x118] sm:$0xf0]  ;;  %v12497_v1 = vld [vmem:[%s20998_s5 + $0x5d0] sm:$0xf0]  ;;  %v12479_v29 = vld [vmem:[%s20998_s5 + $0x5a0] sm:$0xf] }
 0x759   : > { %v13591_v13 = vld [vmem:[%s20998_s5 + $0x5ac] sm:$0xf0]  ;;  %v13553_v49 = vld [vmem:[%s20998_s5 + $0x484] sm:$0xf]  ;;  %v12337_v45 = vld [vmem:[%s20998_s5 + $0x490] sm:$0xf0] }
 0x75a   : > { %7735 = vmatpush.bf16.msra.mxu1 %v11968_v39  ;;  %7748 = vmatpush.bf16.msra.mxu3 %v12096_v16  ;;  %v12153_v39 = vld [vmem:[%s20998_s5 + $0x198] sm:$0xf0]  ;;  %v12024_v16 = vor.u32 %v13428_v35, %v12023_v57  ;;  %v12511_v57 = vld [vmem:[%s20998_s5 + $0x5e0] sm:$0xf]  ;;  %v13599_v35 = vld [vmem:[%s20998_s5 + $0x5ec] sm:$0xf0] }
 0x75b   : > { %7761 = vmatpush.bf16.msra.mxu0 %v11972_v53  ;;  %7774 = vmatpush.bf16.msra.mxu2 %v12100_v56  ;;  %v12028_v53 = vor.u32 %v13426_v25, %v12025_v37  ;;  %v12156_v56 = vor.u32 %v13458_v36, %v12153_v39  ;;  %v13597_v25 = vld [vmem:[%s20998_s5 + $0x5e4] sm:$0xf]  ;;  %v12513_v37 = vld [vmem:[%s20998_s5 + $0x5f0] sm:$0xf0]  ;;  %v11964_v36 = vor.u32 %v13410_v32, %v11961_v63 }
 0x75c   : > { %v12092_v39 = vor.u32 %v13442_v54, %v12089_v60  ;;  %v13585_v3 = vld [vmem:[%s20998_s5 + $0x584] sm:$0xf]  ;;  %v12465_v40 = vld [vmem:[%s20998_s5 + $0x590] sm:$0xf0] }
 0x75d   : > { %v13581_v32 = vld [vmem:[%s20998_s5 + $0x564] sm:$0xf]  ;;  %v12449_v63 = vld [vmem:[%s20998_s5 + $0x570] sm:$0xf0] }
 0x75e   : > { %7736 = vmatpush.bf16.msra.mxu1 %v11952_v38  ;;  %7749 = vmatpush.bf16.msra.mxu3 %v12080_v62  ;;  %v13420_v38 = vld [vmem:[%s20998_s5 + $0x54] sm:$0xf0]  ;;  %v12012_v62 = vor.u32 %v13422_v55, %v12009_v0  ;;  %v13561_v55 = vld [vmem:[%s20998_s5 + $0x4c4] sm:$0xf]  ;;  %v12369_v0 = vld [vmem:[%s20998_s5 + $0x4d0] sm:$0xf0] }
 0x75f   : > { %7762 = vmatpush.bf16.msra.mxu0 %v11956_v51  ;;  %7775 = vmatpush.bf16.msra.mxu2 %v12084_v21  ;;  %v13418_v51 = vld [vmem:[%s20998_s5 + $0x4c] sm:$0xf]  ;;  %v11993_v21 = vld [vmem:[%s20998_s5 + $0x58] sm:$0xf0] }
 0x761   : > { %7737 = vmatmul.bf16.vlgmr.msra.gmra.mxu1 %v19978_v12  ;;  %7750 = vmatmul.bf16.vlgmr.msra.gmra.mxu3 %v19980_v43 }
 0x762   : > { %7781 = vmatpush.bf16.msrb.mxu1 %v12072_v61  ;;  %7794 = vmatpush.bf16.msrb.mxu3 %v12200_v19  ;;  %v12121_v61 = vld [vmem:[%s20998_s5 + $0x158] sm:$0xf0]  ;;  %v11992_v19 = vor.u32 %v13420_v38, %v11991_v15  ;;  %v12351_v15 = vld [vmem:[%s20998_s5 + $0x4a0] sm:$0xf]  ;;  %v13559_v38 = vld [vmem:[%s20998_s5 + $0x4ac] sm:$0xf0] }
 0x763   : > { %7807 = vmatpush.bf16.msrb.mxu0 %v12076_v7  ;;  %7820 = vmatpush.bf16.msrb.mxu2 %v12204_v5  ;;  %v11996_v7 = vor.u32 %v13418_v51, %v11993_v21  ;;  %v12124_v5 = vor.u32 %v13450_v48, %v12121_v61  ;;  %v13557_v51 = vld [vmem:[%s20998_s5 + $0x4a4] sm:$0xf]  ;;  %v12353_v21 = vld [vmem:[%s20998_s5 + $0x4b0] sm:$0xf0] }
 0x764   : > { %7763 = vmatmul.bf16.vlgmr.msra.gmra.mxu0 %v19978_v12  ;;  %7776 = vmatmul.bf16.vlgmr.msra.gmra.mxu2 %v19980_v43  ;;  %v13589_v48 = vld [vmem:[%s20998_s5 + $0x5a4] sm:$0xf]  ;;  %v12481_v61 = vld [vmem:[%s20998_s5 + $0x5b0] sm:$0xf0] }
 0x766   : > { %7782 = vmatpush.bf16.msrb.mxu1 %v12056_v50  ;;  %7795 = vmatpush.bf16.msrb.mxu3 %v12184_v14  ;;  %v11959_v50 = vld [vmem:[%s20998_s5 + $0x8] sm:$0xf]  ;;  %v11976_v14 = vor.u32 %v13416_v22, %v11975_v42  ;;  %v12335_v42 = vld [vmem:[%s20998_s5 + $0x480] sm:$0xf]  ;;  %v13555_v22 = vld [vmem:[%s20998_s5 + $0x48c] sm:$0xf0] }
 0x767   : > { %7808 = vmatpush.bf16.msrb.mxu0 %v12060_v2  ;;  %7821 = vmatpush.bf16.msrb.mxu2 %v12188_v23  ;;  %v12087_v2 = vld [vmem:[%s20998_s5 + $0x108] sm:$0xf]  ;;  %v13444_v23 = vld [vmem:[%s20998_s5 + $0x114] sm:$0xf0]  ;;  %v12336_v9 = vor.u32 %v13555_v22, %v12335_v42  ;;  %v13566_v42 = vld [vmem:[%s20998_s5 + $0x4ec] sm:$0xf] }
 0x768   : > { %v12088_v24 = vor.u32 %v13444_v23, %v12087_v2  ;;  %v12447_v2 = vld [vmem:[%s20998_s5 + $0x560] sm:$0xf]  ;;  %v13583_v23 = vld [vmem:[%s20998_s5 + $0x56c] sm:$0xf0] }
 0x769   : > { %v12448_v60 = vor.u32 %v13583_v23, %v12447_v2  ;;  %v12503_v2 = vld [vmem:[%s20998_s5 + $0x5c8] sm:$0xf]  ;;  %v13596_v23 = vld [vmem:[%s20998_s5 + $0x5d4] sm:$0xf0] }
 0x76a   : > { %7783 = vmatpush.bf16.msrb.mxu1 %v12040_v52  ;;  %7796 = vmatpush.bf16.msrb.mxu3 %v12168_v28  ;;  %v12383_v52 = vld [vmem:[%s20998_s5 + $0x4e0] sm:$0xf]  ;;  %v13567_v28 = vld [vmem:[%s20998_s5 + $0x4ec] sm:$0xf0] }
 0x76b   : > { %7809 = vmatpush.bf16.msrb.mxu0 %v12044_v8  ;;  %7822 = vmatpush.bf16.msrb.mxu2 %v12172_v47  ;;  %v13565_v8 = vld [vmem:[%s20998_s5 + $0x4e4] sm:$0xf]  ;;  %v11960_v47 = vor.u32 %v13412_v34, %v11959_v50  ;;  %v12319_v50 = vld [vmem:[%s20998_s5 + $0x460] sm:$0xf]  ;;  %v12468_v34 = vor.u32 %v13585_v3, %v12465_v40  ;;  %v7899_v3 = vunpack.c.l.b16 %v19770_v30 }
 0x76e   : > { %7784 = vmatpush.bf16.msrb.mxu1 %v12024_v16  ;;  %7797 = vmatpush.bf16.msrb.mxu3 %v12152_v4  ;;  %v12384_v16 = vor.u32 %v13567_v28, %v12383_v52  ;;  %v12512_v4 = vor.u32 %v13599_v35, %v12511_v57  ;;  %v12303_v52 = vld [vmem:[%s20998_s5 + $0x440] sm:$0xf]  ;;  %v13547_v28 = vld [vmem:[%s20998_s5 + $0x44c] sm:$0xf0]  ;;  %v12452_v35 = vor.u32 %v13581_v32, %v12449_v63  ;;  %v12505_v32 = vld [vmem:[%s20998_s5 + $0x5d8] sm:$0xf0] }
 0x76f   : > { %7810 = vmatpush.bf16.msrb.mxu0 %v12028_v53  ;;  %7823 = vmatpush.bf16.msrb.mxu2 %v12156_v56  ;;  %v12388_v53 = vor.u32 %v13565_v8, %v12385_v46  ;;  %v12516_v56 = vor.u32 %v13597_v25, %v12513_v37  ;;  %v12431_v8 = vld [vmem:[%s20998_s5 + $0x540] sm:$0xf]  ;;  %v12305_v46 = vld [vmem:[%s20998_s5 + $0x450] sm:$0xf0]  ;;  %v13577_v25 = vld [vmem:[%s20998_s5 + $0x544] sm:$0xf]  ;;  %v20376_v63 = vpack.c.b16 %v7899_v3, %v7899_v3 }
 0x770   : > { %v12433_v37 = vld [vmem:[%s20998_s5 + $0x550] sm:$0xf0]  ;;  %v12441_v3 = vld [vmem:[%s20998_s5 + $0x558] sm:$0xf0] }
 0x772   : > { %7785 = vmatpush.bf16.msrb.mxu1 %v12008_v58  ;;  %7798 = vmatpush.bf16.msrb.mxu3 %v12136_v17  ;;  %v12368_v58 = vor.u32 %v13563_v59, %v12367_v33  ;;  %v12496_v17 = vor.u32 %v13595_v11, %v12495_v44  ;;  %v12436_v59 = vor.u32 %v13577_v25, %v12433_v37  ;;  %v13541_v44 = vld [vmem:[%s20998_s5 + $0x424] sm:$0xf]  ;;  %v12289_v11 = vld [vmem:[%s20998_s5 + $0x430] sm:$0xf0]  ;;  %v12361_v25 = vld [vmem:[%s20998_s5 + $0x4b8] sm:$0xf0] }
 0x773   : > { %7811 = vmatpush.bf16.msrb.mxu0 %v12012_v62  ;;  %7824 = vmatpush.bf16.msrb.mxu2 %v12140_v26  ;;  %v12372_v62 = vor.u32 %v13561_v55, %v12369_v0  ;;  %v12500_v26 = vor.u32 %v13593_v41, %v12497_v1  ;;  %v13573_v55 = vld [vmem:[%s20998_s5 + $0x524] sm:$0xf]  ;;  %v12417_v0 = vld [vmem:[%s20998_s5 + $0x530] sm:$0xf0]  ;;  %v12271_v41 = vld [vmem:[%s20998_s5 + $0x400] sm:$0xf] }
 0x774   : > { %v13590_v37 = vld [vmem:[%s20998_s5 + $0x5ac] sm:$0xf] }
 0x776   : > { %7786 = vmatpush.bf16.msrb.mxu1 %v11992_v19  ;;  %7799 = vmatpush.bf16.msrb.mxu3 %v12120_v27  ;;  %v12352_v19 = vor.u32 %v13559_v38, %v12351_v15  ;;  %v12480_v27 = vor.u32 %v13591_v13, %v12479_v29  ;;  %v12399_v15 = vld [vmem:[%s20998_s5 + $0x500] sm:$0xf]  ;;  %v13571_v38 = vld [vmem:[%s20998_s5 + $0x50c] sm:$0xf0]  ;;  %v13537_v29 = vld [vmem:[%s20998_s5 + $0x404] sm:$0xf] }
 0x777   : > { %7812 = vmatpush.bf16.msrb.mxu0 %v11996_v7  ;;  %7825 = vmatpush.bf16.msrb.mxu2 %v12124_v5  ;;  %v12356_v7 = vor.u32 %v13557_v51, %v12353_v21  ;;  %v12484_v5 = vor.u32 %v13589_v48, %v12481_v61  ;;  %v12273_v13 = vld [vmem:[%s20998_s5 + $0x410] sm:$0xf0]  ;;  %v13569_v51 = vld [vmem:[%s20998_s5 + $0x504] sm:$0xf]  ;;  %v12391_v48 = vld [vmem:[%s20998_s5 + $0x4e8] sm:$0xf] }
 0x778   : > { %v12401_v21 = vld [vmem:[%s20998_s5 + $0x510] sm:$0xf0]  ;;  %v13568_v61 = vld [vmem:[%s20998_s5 + $0x4f4] sm:$0xf0] }
 0x779   : > { %v12392_v40 = vor.u32 %v13568_v61, %v12391_v48  ;;  %v12457_v48 = vld [vmem:[%s20998_s5 + $0x578] sm:$0xf0] }
 0x77a   : > { %7787 = vmatpush.bf16.msrb.mxu1 %v11976_v14  ;;  %7800 = vmatpush.bf16.msrb.mxu3 %v12104_v18  ;;  %v13551_v14 = vld [vmem:[%s20998_s5 + $0x46c] sm:$0xf0]  ;;  %v12340_v18 = vor.u32 %v13553_v49, %v12337_v45  ;;  %v12276_v49 = vor.u32 %v13537_v29, %v12273_v13  ;;  %v12404_v45 = vor.u32 %v13569_v51, %v12401_v21  ;;  %v13584_v29 = vld [vmem:[%s20998_s5 + $0x574] sm:$0xf0]  ;;  %v13550_v13 = vld [vmem:[%s20998_s5 + $0x46c] sm:$0xf] }
 0x77b   : > { %7813 = vmatpush.bf16.msrb.mxu0 %v11980_v31  ;;  %7826 = vmatpush.bf16.msrb.mxu2 %v12108_v10  ;;  %v13549_v31 = vld [vmem:[%s20998_s5 + $0x464] sm:$0xf]  ;;  %v12321_v10 = vld [vmem:[%s20998_s5 + $0x470] sm:$0xf0]  ;;  %v12320_v54 = vor.u32 %v13551_v14, %v12319_v50  ;;  %v12375_v50 = vld [vmem:[%s20998_s5 + $0x4c8] sm:$0xf] }
 0x77c   : > { %v12324_v57 = vor.u32 %v13549_v31, %v12321_v10  ;;  %v13564_v14 = vld [vmem:[%s20998_s5 + $0x4d4] sm:$0xf0]  ;;  %v12377_v31 = vld [vmem:[%s20998_s5 + $0x4d8] sm:$0xf0]  ;;  %v13594_v10 = vld [vmem:[%s20998_s5 + $0x5cc] sm:$0xf] }
 0x77d   : > { %v12329_v51 = vld [vmem:[%s20998_s5 + $0x478] sm:$0xf0]  ;;  %v13582_v21 = vld [vmem:[%s20998_s5 + $0x56c] sm:$0xf] }
 0x77e   : > { %7788 = vmatpush.bf16.msrb.mxu1 %v11960_v47  ;;  %7801 = vmatpush.bf16.msrb.mxu3 %v12088_v24  ;;  %v13579_v47 = vld [vmem:[%s20998_s5 + $0x54c] sm:$0xf0]  ;;  %v13545_v24 = vld [vmem:[%s20998_s5 + $0x444] sm:$0xf] }
 0x77f   : > { %7814 = vmatpush.bf16.msrb.mxu0 %v11964_v36  ;;  %7827 = vmatpush.bf16.msrb.mxu2 %v12092_v39  ;;  %v12304_v36 = vor.u32 %v13547_v28, %v12303_v52  ;;  %v12432_v39 = vor.u32 %v13579_v47, %v12431_v8  ;;  %v12308_v33 = vor.u32 %v13545_v24, %v12305_v46  ;;  %v12359_v28 = vld [vmem:[%s20998_s5 + $0x4a8] sm:$0xf]  ;;  %v13592_v24 = vld [vmem:[%s20998_s5 + $0x5b4] sm:$0xf0]  ;;  %v13558_v46 = vld [vmem:[%s20998_s5 + $0x4ac] sm:$0xf] }
 0x780   : > { %v12504_v52 = vor.u32 %v13596_v23, %v12503_v2  ;;  %v12508_v8 = vor.u32 %v13594_v10, %v12505_v32  ;;  %v12487_v47 = vld [vmem:[%s20998_s5 + $0x5a8] sm:$0xf]  ;;  %v13576_v2 = vld [vmem:[%s20998_s5 + $0x534] sm:$0xf0]  ;;  %v13542_v23 = vld [vmem:[%s20998_s5 + $0x42c] sm:$0xf] }
 0x781   : > { %7789 = vmatmul.bf16.vlgmr.msrb.gmra.mxu1 %v19978_v12  ;;  %7802 = vmatmul.bf16.vlgmr.msrb.gmra.mxu3 %v19980_v43  ;;  %v12425_v10 = vld [vmem:[%s20998_s5 + $0x538] sm:$0xf0]  ;;  %v12279_v32 = vld [vmem:[%s20998_s5 + $0x408] sm:$0xf] }
 0x782   : > { %8225 = vmatpush.bf16.msra.mxu1 %v12384_v16  ;;  %8238 = vmatpush.bf16.msra.mxu3 %v12512_v4  ;;  %v12287_v16 = vld [vmem:[%s20998_s5 + $0x420] sm:$0xf]  ;;  %v13543_v4 = vld [vmem:[%s20998_s5 + $0x42c] sm:$0xf0] }
 0x783   : > { %8251 = vmatpush.bf16.msra.mxu0 %v12388_v53  ;;  %8264 = vmatpush.bf16.msra.mxu2 %v12516_v56  ;;  %v12415_v53 = vld [vmem:[%s20998_s5 + $0x520] sm:$0xf]  ;;  %v13575_v56 = vld [vmem:[%s20998_s5 + $0x52c] sm:$0xf0]  ;;  %v12288_v1 = vor.u32 %v13543_v4, %v12287_v16  ;;  %v12488_v16 = vor.u32 %v13592_v24, %v12487_v47  ;;  %v12343_v4 = vld [vmem:[%s20998_s5 + $0x488] sm:$0xf] }
 0x784   : > { %7815 = vmatmul.bf16.vlgmr.msrb.gmra.mxu0 %v19978_v12  ;;  %7828 = vmatmul.bf16.vlgmr.msrb.gmra.mxu2 %v19980_v43  ;;  %v12463_v12 = vld [vmem:[%s20998_s5 + $0x580] sm:$0xf]  ;;  %v13587_v43 = vld [vmem:[%s20998_s5 + $0x58c] sm:$0xf0]  ;;  %v13538_v24 = vld [vmem:[%s20998_s5 + $0x40c] sm:$0xf] }
 0x785   : > { %v12464_v6 = vor.u32 %v13587_v43, %v12463_v12  ;;  %v13598_v12 = vld [vmem:[%s20998_s5 + $0x5ec] sm:$0xf]  ;;  %v12521_v43 = vld [vmem:[%s20998_s5 + $0x5f8] sm:$0xf0] }
 0x786   : > { %8226 = vmatpush.bf16.msra.mxu1 %v12368_v58  ;;  %8239 = vmatpush.bf16.msra.mxu3 %v12496_v17  ;;  %v12416_v58 = vor.u32 %v13575_v56, %v12415_v53  ;;  %v13539_v17 = vld [vmem:[%s20998_s5 + $0x40c] sm:$0xf0]  ;;  %v12471_v56 = vld [vmem:[%s20998_s5 + $0x588] sm:$0xf] }
 0x787   : > { %8252 = vmatpush.bf16.msra.mxu0 %v12372_v62  ;;  %8265 = vmatpush.bf16.msra.mxu2 %v12500_v26  ;;  %v12292_v62 = vor.u32 %v13541_v44, %v12289_v11  ;;  %v12420_v26 = vor.u32 %v13573_v55, %v12417_v0  ;;  %v12272_v22 = vor.u32 %v13539_v17, %v12271_v41  ;;  %v13588_v44 = vld [vmem:[%s20998_s5 + $0x594] sm:$0xf0]  ;;  %v13554_v11 = vld [vmem:[%s20998_s5 + $0x48c] sm:$0xf]  ;;  %v12345_v55 = vld [vmem:[%s20998_s5 + $0x498] sm:$0xf0] }
 0x788   : > { %v13586_v0 = vld [vmem:[%s20998_s5 + $0x58c] sm:$0xf]  ;;  %v12473_v41 = vld [vmem:[%s20998_s5 + $0x598] sm:$0xf0]  ;;  %v12327_v17 = vld [vmem:[%s20998_s5 + $0x468] sm:$0xf] }
 0x78a   : > { %8227 = vmatpush.bf16.msra.mxu1 %v12352_v19  ;;  %8240 = vmatpush.bf16.msra.mxu3 %v12480_v27  ;;  %v12519_v19 = vld [vmem:[%s20998_s5 + $0x5e8] sm:$0xf]  ;;  %v13600_v27 = vld [vmem:[%s20998_s5 + $0x5f4] sm:$0xf0] }
 0x78b   : > { %8253 = vmatpush.bf16.msra.mxu0 %v12356_v7  ;;  %8266 = vmatpush.bf16.msra.mxu2 %v12484_v5  ;;  %v12400_v7 = vor.u32 %v13571_v38, %v12399_v15  ;;  %v12393_v5 = vld [vmem:[%s20998_s5 + $0x4f8] sm:$0xf0]  ;;  %v13552_v15 = vld [vmem:[%s20998_s5 + $0x474] sm:$0xf0]  ;;  %v12348_v38 = vor.u32 %v13554_v11, %v12345_v55  ;;  %v12833_v11 = vld [vmem:[%s20998_s5 + $0x7f0] sm:$0xf0] }
 0x78c   : > { %v12328_v61 = vor.u32 %v13552_v15, %v12327_v17  ;;  %v13627_v17 = vld [vmem:[%s20998_s5 + $0x6cc] sm:$0xf0] }
 0x78e   : > { %8228 = vmatpush.bf16.msra.mxu1 %v12336_v9  ;;  %8241 = vmatpush.bf16.msra.mxu3 %v12464_v6  ;;  %v12520_v9 = vor.u32 %v13600_v27, %v12519_v19  ;;  %v7900_v6 = vunpack.c.h.b16 %v19770_v30  ;;  %v13562_v30 = vld [vmem:[%s20998_s5 + $0x4cc] sm:$0xf]  ;;  %v12311_v27 = vld [vmem:[%s20998_s5 + $0x448] sm:$0xf] }
 0x78f   : > { %8254 = vmatpush.bf16.msra.mxu0 %v12340_v18  ;;  %8267 = vmatpush.bf16.msra.mxu2 %v12468_v34  ;;  %v12396_v18 = vor.u32 %v13566_v42, %v12393_v5  ;;  %v12524_v34 = vor.u32 %v13598_v12, %v12521_v43  ;;  %v13548_v42 = vld [vmem:[%s20998_s5 + $0x454] sm:$0xf0]  ;;  %v12439_v5 = vld [vmem:[%s20998_s5 + $0x548] sm:$0xf]  ;;  %v13546_v43 = vld [vmem:[%s20998_s5 + $0x44c] sm:$0xf] }
 0x790   : > { %v13580_v12 = vld [vmem:[%s20998_s5 + $0x554] sm:$0xf0] }
 0x792   : > { %8229 = vmatpush.bf16.msra.mxu1 %v12320_v54  ;;  %8242 = vmatpush.bf16.msra.mxu3 %v12448_v60  ;;  %v20378_v54 = vpack.c.b16 %v7900_v6, %v7900_v6  ;;  %v12376_v60 = vor.u32 %v13564_v14, %v12375_v50  ;;  %v12295_v6 = vld [vmem:[%s20998_s5 + $0x428] sm:$0xf]  ;;  %v13544_v50 = vld [vmem:[%s20998_s5 + $0x434] sm:$0xf0] }
 0x793   : > { %8255 = vmatpush.bf16.msra.mxu0 %v12324_v57  ;;  %8268 = vmatpush.bf16.msra.mxu2 %v12452_v35  ;;  %v13560_v57 = vld [vmem:[%s20998_s5 + $0x4b4] sm:$0xf0]  ;;  %v12380_v35 = vor.u32 %v13562_v30, %v12377_v31  ;;  %v12297_v30 = vld [vmem:[%s20998_s5 + $0x438] sm:$0xf0]  ;;  %v13574_v31 = vld [vmem:[%s20998_s5 + $0x52c] sm:$0xf] }
 0x794   : > { %v12428_v47 = vor.u32 %v13574_v31, %v12425_v10  ;;  %v12785_v31 = vld [vmem:[%s20998_s5 + $0x790] sm:$0xf0] }
 0x796   : > { %8230 = vmatpush.bf16.msra.mxu1 %v12304_v36  ;;  %8243 = vmatpush.bf16.msra.mxu3 %v12432_v39  ;;  %v12489_v36 = vld [vmem:[%s20998_s5 + $0x5b8] sm:$0xf0]  ;;  %v12360_v39 = vor.u32 %v13560_v57, %v12359_v28  ;;  %v13540_v28 = vld [vmem:[%s20998_s5 + $0x414] sm:$0xf0]  ;;  %v12407_v57 = vld [vmem:[%s20998_s5 + $0x508] sm:$0xf] }
 0x797   : > { %8256 = vmatpush.bf16.msra.mxu0 %v12308_v33  ;;  %8269 = vmatpush.bf16.msra.mxu2 %v12436_v59  ;;  %v13556_v33 = vld [vmem:[%s20998_s5 + $0x494] sm:$0xf0]  ;;  %v12364_v59 = vor.u32 %v13558_v46, %v12361_v25  ;;  %v12492_v53 = vor.u32 %v13590_v37, %v12489_v36  ;;  %v12281_v46 = vld [vmem:[%s20998_s5 + $0x418] sm:$0xf0]  ;;  %v13570_v25 = vld [vmem:[%s20998_s5 + $0x50c] sm:$0xf] }
 0x798   : > { %v12409_v37 = vld [vmem:[%s20998_s5 + $0x518] sm:$0xf0]  ;;  %v12703_v36 = vld [vmem:[%s20998_s5 + $0x6e0] sm:$0xf]  ;;  %v12284_v55 = vor.u32 %v13538_v24, %v12281_v46  ;;  %v13613_v24 = vld [vmem:[%s20998_s5 + $0x664] sm:$0xf] }
 0x79a   : > { %8231 = vmatpush.bf16.msra.mxu1 %v12288_v1  ;;  %8244 = vmatpush.bf16.msra.mxu3 %v12416_v58  ;;  %v12344_v1 = vor.u32 %v13556_v33, %v12343_v4  ;;  %v12472_v58 = vor.u32 %v13588_v44, %v12471_v56  ;;  %v13663_v4 = vld [vmem:[%s20998_s5 + $0x7ec] sm:$0xf0]  ;;  %v13629_v33 = vld [vmem:[%s20998_s5 + $0x6e4] sm:$0xf]  ;;  %v12705_v56 = vld [vmem:[%s20998_s5 + $0x6f0] sm:$0xf0] }
 0x79b   : > { %8257 = vmatpush.bf16.msra.mxu0 %v12292_v62  ;;  %8270 = vmatpush.bf16.msra.mxu2 %v12420_v26  ;;  %v12476_v62 = vor.u32 %v13586_v0, %v12473_v41  ;;  %v12455_v26 = vld [vmem:[%s20998_s5 + $0x568] sm:$0xf]  ;;  %v13661_v44 = vld [vmem:[%s20998_s5 + $0x7e4] sm:$0xf]  ;;  %v12412_v0 = vor.u32 %v13570_v25, %v12409_v37  ;;  %v12708_v15 = vor.u32 %v13629_v33, %v12705_v56  ;;  %v12641_v37 = vld [vmem:[%s20998_s5 + $0x670] sm:$0xf0] }
 0x79c   : > { %v12456_v19 = vor.u32 %v13584_v29, %v12455_v26  ;;  %v13659_v26 = vld [vmem:[%s20998_s5 + $0x7cc] sm:$0xf0]  ;;  %v13625_v29 = vld [vmem:[%s20998_s5 + $0x6c4] sm:$0xf]  ;;  %v12623_v56 = vld [vmem:[%s20998_s5 + $0x640] sm:$0xf] }
 0x79e   : > { %8232 = vmatpush.bf16.msra.mxu1 %v12272_v22  ;;  %8245 = vmatpush.bf16.msra.mxu3 %v12400_v7  ;;  %v12332_v22 = vor.u32 %v13550_v13, %v12329_v51  ;;  %v12460_v7 = vor.u32 %v13582_v21, %v12457_v48  ;;  %v12689_v13 = vld [vmem:[%s20998_s5 + $0x6d0] sm:$0xf0]  ;;  %v13657_v51 = vld [vmem:[%s20998_s5 + $0x7c4] sm:$0xf] }
 0x79f   : > { %8258 = vmatpush.bf16.msra.mxu0 %v12276_v49  ;;  %8271 = vmatpush.bf16.msra.mxu2 %v12404_v45  ;;  %v12313_v49 = vld [vmem:[%s20998_s5 + $0x458] sm:$0xf0]  ;;  %v13578_v45 = vld [vmem:[%s20998_s5 + $0x54c] sm:$0xf]  ;;  %v12817_v21 = vld [vmem:[%s20998_s5 + $0x7d0] sm:$0xf0] }
 0x7a0   : > { %v12316_v14 = vor.u32 %v13546_v43, %v12313_v49  ;;  %v12673_v43 = vld [vmem:[%s20998_s5 + $0x6b0] sm:$0xf0]  ;;  %v13653_v49 = vld [vmem:[%s20998_s5 + $0x7a4] sm:$0xf] }
 0x7a1   : > { %8233 = vmatmul.bf16.vlgmr.msra.gmra.mxu1 %v20376_v63  ;;  %8246 = vmatmul.bf16.vlgmr.msra.gmra.mxu3 %v20378_v54 }
 0x7a2   : > { %8277 = vmatpush.bf16.msrb.mxu1 %v12392_v40  ;;  %8290 = vmatpush.bf16.msrb.mxu3 %v12520_v9  ;;  %v12312_v40 = vor.u32 %v13548_v42, %v12311_v27  ;;  %v12440_v9 = vor.u32 %v13580_v12, %v12439_v5  ;;  %v13623_v27 = vld [vmem:[%s20998_s5 + $0x6ac] sm:$0xf0]  ;;  %v12692_v42 = vor.u32 %v13625_v29, %v12689_v13  ;;  %v13621_v12 = vld [vmem:[%s20998_s5 + $0x6a4] sm:$0xf] }
 0x7a3   : > { %8303 = vmatpush.bf16.msrb.mxu0 %v12396_v18  ;;  %8316 = vmatpush.bf16.msrb.mxu2 %v12524_v34  ;;  %v12444_v18 = vor.u32 %v13578_v45, %v12441_v3  ;;  %v12423_v34 = vld [vmem:[%s20998_s5 + $0x528] sm:$0xf]  ;;  %v13655_v5 = vld [vmem:[%s20998_s5 + $0x7ac] sm:$0xf0]  ;;  %v12801_v45 = vld [vmem:[%s20998_s5 + $0x7b0] sm:$0xf0] }
 0x7a4   : > { %8259 = vmatmul.bf16.vlgmr.msra.gmra.mxu0 %v20376_v63  ;;  %8272 = vmatmul.bf16.vlgmr.msra.gmra.mxu2 %v20378_v54  ;;  %v13607_v29 = vld [vmem:[%s20998_s5 + $0x62c] sm:$0xf0] }
 0x7a6   : > { %8278 = vmatpush.bf16.msrb.mxu1 %v12376_v60  ;;  %8291 = vmatpush.bf16.msrb.mxu3 %v12504_v52  ;;  %v12296_v60 = vor.u32 %v13544_v50, %v12295_v6  ;;  %v12424_v52 = vor.u32 %v13576_v2, %v12423_v34  ;;  %v12655_v50 = vld [vmem:[%s20998_s5 + $0x680] sm:$0xf]  ;;  %v13651_v34 = vld [vmem:[%s20998_s5 + $0x78c] sm:$0xf0]  ;;  %v13617_v2 = vld [vmem:[%s20998_s5 + $0x684] sm:$0xf] }
 0x7a7   : > { %8304 = vmatpush.bf16.msrb.mxu0 %v12380_v35  ;;  %8317 = vmatpush.bf16.msrb.mxu2 %v12508_v8  ;;  %v13572_v35 = vld [vmem:[%s20998_s5 + $0x514] sm:$0xf0]  ;;  %v12300_v8 = vor.u32 %v13542_v23, %v12297_v30  ;;  %v12657_v23 = vld [vmem:[%s20998_s5 + $0x690] sm:$0xf0]  ;;  %v13649_v30 = vld [vmem:[%s20998_s5 + $0x784] sm:$0xf] }
 0x7aa   : > { %8279 = vmatpush.bf16.msrb.mxu1 %v12360_v39  ;;  %8292 = vmatpush.bf16.msrb.mxu3 %v12488_v16  ;;  %v13631_v39 = vld [vmem:[%s20998_s5 + $0x6ec] sm:$0xf0]  ;;  %v12831_v16 = vld [vmem:[%s20998_s5 + $0x7e0] sm:$0xf] }
 0x7ab   : > { %8305 = vmatpush.bf16.msrb.mxu0 %v12364_v59  ;;  %8318 = vmatpush.bf16.msrb.mxu2 %v12492_v53  ;;  %v12280_v59 = vor.u32 %v13540_v28, %v12279_v32  ;;  %v12408_v53 = vor.u32 %v13572_v35, %v12407_v57  ;;  %v12704_v41 = vor.u32 %v13631_v39, %v12703_v36  ;;  %v13645_v36 = vld [vmem:[%s20998_s5 + $0x764] sm:$0xf]  ;;  %v12769_v39 = vld [vmem:[%s20998_s5 + $0x770] sm:$0xf0] }
 0x7ac   : > { %v12660_v28 = vor.u32 %v13617_v2, %v12657_v23  ;;  %v12788_v57 = vor.u32 %v13649_v30, %v12785_v31  ;;  %v13632_v2 = vld [vmem:[%s20998_s5 + $0x6f4] sm:$0xf0]  ;;  %v12839_v23 = vld [vmem:[%s20998_s5 + $0x7e8] sm:$0xf]  ;;  %v13630_v31 = vld [vmem:[%s20998_s5 + $0x6ec] sm:$0xf] }
 0x7ad   : > { %v13664_v30 = vld [vmem:[%s20998_s5 + $0x7f4] sm:$0xf0] }
 0x7ae   : > { %8280 = vmatpush.bf16.msrb.mxu1 %v12344_v1  ;;  %8293 = vmatpush.bf16.msrb.mxu3 %v12472_v58  ;;  %v12832_v1 = vor.u32 %v13663_v4, %v12831_v16  ;;  %v12687_v58 = vld [vmem:[%s20998_s5 + $0x6c0] sm:$0xf] }
 0x7af   : > { %8306 = vmatpush.bf16.msrb.mxu0 %v12348_v38  ;;  %8319 = vmatpush.bf16.msrb.mxu2 %v12476_v62  ;;  %v12836_v38 = vor.u32 %v13661_v44, %v12833_v11  ;;  %v12815_v62 = vld [vmem:[%s20998_s5 + $0x7c0] sm:$0xf]  ;;  %v12688_v48 = vor.u32 %v13627_v17, %v12687_v58  ;;  %v13611_v44 = vld [vmem:[%s20998_s5 + $0x64c] sm:$0xf0]  ;;  %v12644_v11 = vor.u32 %v13613_v24, %v12641_v37  ;;  %v12625_v58 = vld [vmem:[%s20998_s5 + $0x650] sm:$0xf0] }
 0x7b0   : > { %v13641_v17 = vld [vmem:[%s20998_s5 + $0x744] sm:$0xf] }
 0x7b2   : > { %8281 = vmatpush.bf16.msrb.mxu1 %v12328_v61  ;;  %8294 = vmatpush.bf16.msrb.mxu3 %v12456_v19  ;;  %v12816_v61 = vor.u32 %v13659_v26, %v12815_v62  ;;  %v12671_v19 = vld [vmem:[%s20998_s5 + $0x6a0] sm:$0xf] }
 0x7b3   : > { %8307 = vmatpush.bf16.msrb.mxu0 %v12332_v22  ;;  %8320 = vmatpush.bf16.msrb.mxu2 %v12460_v7  ;;  %v12820_v22 = vor.u32 %v13657_v51, %v12817_v21  ;;  %v12799_v7 = vld [vmem:[%s20998_s5 + $0x7a0] sm:$0xf] }
 0x7b4   : > { %v12607_v26 = vld [vmem:[%s20998_s5 + $0x620] sm:$0xf] }
 0x7b6   : > { %8282 = vmatpush.bf16.msrb.mxu1 %v12312_v40  ;;  %8295 = vmatpush.bf16.msrb.mxu3 %v12440_v9  ;;  %v12672_v40 = vor.u32 %v13623_v27, %v12671_v19  ;;  %v12800_v9 = vor.u32 %v13655_v5, %v12799_v7  ;;  %v13605_v19 = vld [vmem:[%s20998_s5 + $0x624] sm:$0xf]  ;;  %v12737_v7 = vld [vmem:[%s20998_s5 + $0x730] sm:$0xf0] }
 0x7b7   : > { %8308 = vmatpush.bf16.msrb.mxu0 %v12316_v14  ;;  %8321 = vmatpush.bf16.msrb.mxu2 %v12444_v18  ;;  %v13619_v14 = vld [vmem:[%s20998_s5 + $0x68c] sm:$0xf0]  ;;  %v12676_v18 = vor.u32 %v13621_v12, %v12673_v43  ;;  %v12591_v12 = vld [vmem:[%s20998_s5 + $0x600] sm:$0xf]  ;;  %v12608_v43 = vor.u32 %v13607_v29, %v12607_v26  ;;  %v12679_v26 = vld [vmem:[%s20998_s5 + $0x6a8] sm:$0xf] }
 0x7b8   : > { %v12656_v10 = vor.u32 %v13619_v14, %v12655_v50  ;;  %v13601_v14 = vld [vmem:[%s20998_s5 + $0x604] sm:$0xf]  ;;  %v13624_v29 = vld [vmem:[%s20998_s5 + $0x6b4] sm:$0xf0] }
 0x7ba   : > { %8283 = vmatpush.bf16.msrb.mxu1 %v12296_v60  ;;  %8296 = vmatpush.bf16.msrb.mxu3 %v12424_v52  ;;  %v12639_v60 = vld [vmem:[%s20998_s5 + $0x660] sm:$0xf]  ;;  %v13615_v52 = vld [vmem:[%s20998_s5 + $0x66c] sm:$0xf0] }
 0x7bb   : > { %8309 = vmatpush.bf16.msrb.mxu0 %v12300_v8  ;;  %8322 = vmatpush.bf16.msrb.mxu2 %v12428_v47  ;;  %v12767_v8 = vld [vmem:[%s20998_s5 + $0x760] sm:$0xf]  ;;  %v13647_v47 = vld [vmem:[%s20998_s5 + $0x76c] sm:$0xf0]  ;;  %v12640_v33 = vor.u32 %v13615_v52, %v12639_v60  ;;  %v12713_v60 = vld [vmem:[%s20998_s5 + $0x6f8] sm:$0xf0] }
 0x7bc   : > { %v13662_v52 = vld [vmem:[%s20998_s5 + $0x7ec] sm:$0xf] }
 0x7bd   : > { %v7307_v3 = vpop.f32.mrf.mxu1 }
 0x7be   : > { %8284 = vmatpush.bf16.msrb.mxu1 %v12280_v59  ;;  %8297 = vmatpush.bf16.msrb.mxu3 %v12408_v53  ;;  %v7333_v6 = vpop.f32.mrf.mxu0  ;;  %v12768_v59 = vor.u32 %v13647_v47, %v12767_v8  ;;  %v8399_v47 = vunpack.c.l.b16 %v19826_v20 }
 0x7bf   : > { %8310 = vmatpush.bf16.msrb.mxu0 %v12284_v55  ;;  %8323 = vmatpush.bf16.msrb.mxu2 %v12412_v0  ;;  %v12772_v55 = vor.u32 %v13645_v36, %v12769_v39  ;;  %v12751_v0 = vld [vmem:[%s20998_s5 + $0x740] sm:$0xf]  ;;  %v8400_v39 = vunpack.c.h.b16 %v19826_v20  ;;  %v13660_v20 = vld [vmem:[%s20998_s5 + $0x7d4] sm:$0xf0] }
 0x7c1   : > { %8285 = vmatmul.bf16.vlgmr.msrb.gmra.mxu1 %v20376_v63  ;;  %8298 = vmatmul.bf16.vlgmr.msrb.gmra.mxu3 %v20378_v54 }
 0x7c2   : > { %8725 = vmatpush.bf16.msra.mxu1 %v12704_v41  ;;  %8738 = vmatpush.bf16.msra.mxu3 %v12832_v1  ;;  %v13643_v41 = vld [vmem:[%s20998_s5 + $0x74c] sm:$0xf0]  ;;  %v13609_v1 = vld [vmem:[%s20998_s5 + $0x644] sm:$0xf] }
 0x7c3   : > { %8751 = vmatpush.bf16.msra.mxu0 %v12708_v15  ;;  %8764 = vmatpush.bf16.msra.mxu2 %v12836_v38  ;;  %v7320_v35 = vpop.f32.mrf.mxu3  ;;  %v12753_v15 = vld [vmem:[%s20998_s5 + $0x750] sm:$0xf0]  ;;  %v12624_v38 = vor.u32 %v13611_v44, %v12623_v56  ;;  %v12752_v62 = vor.u32 %v13643_v41, %v12751_v0  ;;  %v12628_v13 = vor.u32 %v13609_v1, %v12625_v58  ;;  %v12697_v41 = vld [vmem:[%s20998_s5 + $0x6d8] sm:$0xf0]  ;;  %v13658_v1 = vld [vmem:[%s20998_s5 + $0x7cc] sm:$0xf] }
 0x7c4   : > { %8311 = vmatmul.bf16.vlgmr.msrb.gmra.mxu0 %v20376_v63  ;;  %8324 = vmatmul.bf16.vlgmr.msrb.gmra.mxu2 %v20378_v54  ;;  %v12804_v63 = vor.u32 %v13653_v49, %v12801_v45  ;;  %v12783_v54 = vld [vmem:[%s20998_s5 + $0x780] sm:$0xf]  ;;  %v20643_v46 = vadd.f32 %v7320_v35, %v7307_v3  ;;  %v7346_v25 = vpop.f32.mrf.mxu2  ;;  %v12756_v51 = vor.u32 %v13641_v17, %v12753_v15  ;;  %v13603_v3 = vld [vmem:[%s20998_s5 + $0x60c] sm:$0xf0]  ;;  %v12825_v58 = vld [vmem:[%s20998_s5 + $0x7d8] sm:$0xf0] }
 0x7c5   : > { %v12784_v32 = vor.u32 %v13651_v34, %v12783_v54  ;;  %v20654_v16 = vadd.f32 %v7346_v25, %v7333_v6  ;;  %v7309_v4 = vpop.f32.mrf.mxu1  ;;  %v12721_v54 = vld [vmem:[%s20998_s5 + $0x710] sm:$0xf0]  ;;  %v12711_v34 = vld [vmem:[%s20998_s5 + $0x6e8] sm:$0xf]  ;;  %v12840_v25 = vor.u32 %v13664_v30, %v12839_v23  ;;  %v20782_v17 = vpack.c.b16 %v8399_v47, %v8399_v47 }
 0x7c6   : > { %8726 = vmatpush.bf16.msra.mxu1 %v12688_v48  ;;  %8739 = vmatpush.bf16.msra.mxu3 %v12816_v61  ;;  %v7335_v53 = vpop.f32.mrf.mxu0  ;;  %v12735_v48 = vld [vmem:[%s20998_s5 + $0x720] sm:$0xf]  ;;  %v13639_v61 = vld [vmem:[%s20998_s5 + $0x72c] sm:$0xf0]  ;;  %v12712_v24 = vor.u32 %v13632_v2, %v12711_v34  ;;  %v12695_v4 = vld [vmem:[%s20998_s5 + $0x6c8] sm:$0xf]  ;;  %v20784_v15 = vpack.c.b16 %v8400_v39, %v8400_v39 }
 0x7c7   : > { %8752 = vmatpush.bf16.msra.mxu0 %v12692_v42  ;;  %8765 = vmatpush.bf16.msra.mxu2 %v12820_v22  ;;  %v12609_v42 = vld [vmem:[%s20998_s5 + $0x630] sm:$0xf0]  ;;  %v13637_v22 = vld [vmem:[%s20998_s5 + $0x724] sm:$0xf]  ;;  %v12736_v49 = vor.u32 %v13639_v61, %v12735_v48  ;;  %v13656_v48 = vld [vmem:[%s20998_s5 + $0x7b4] sm:$0xf0] }
 0x7c8   : > { %v12612_v6 = vor.u32 %v13605_v19, %v12609_v42  ;;  %v12740_v50 = vor.u32 %v13637_v22, %v12737_v7  ;;  %v13622_v61 = vld [vmem:[%s20998_s5 + $0x6ac] sm:$0xf]  ;;  %v12681_v19 = vld [vmem:[%s20998_s5 + $0x6b8] sm:$0xf0]  ;;  %v12680_v7 = vor.u32 %v13624_v29, %v12679_v26  ;;  %v12647_v30 = vld [vmem:[%s20998_s5 + $0x668] sm:$0xf] }
 0x7c9   : > { %v12809_v42 = vld [vmem:[%s20998_s5 + $0x7b8] sm:$0xf0]  ;;  %v12615_v26 = vld [vmem:[%s20998_s5 + $0x628] sm:$0xf]  ;;  %v13608_v29 = vld [vmem:[%s20998_s5 + $0x634] sm:$0xf0] }
 0x7ca   : > { %8727 = vmatpush.bf16.msra.mxu1 %v12672_v40  ;;  %8740 = vmatpush.bf16.msra.mxu3 %v12800_v9  ;;  %v12719_v40 = vld [vmem:[%s20998_s5 + $0x700] sm:$0xf]  ;;  %v13635_v9 = vld [vmem:[%s20998_s5 + $0x70c] sm:$0xf0] }
 0x7cb   : > { %8753 = vmatpush.bf16.msra.mxu0 %v12676_v18  ;;  %8766 = vmatpush.bf16.msra.mxu2 %v12804_v63  ;;  %v7322_v21 = vpop.f32.mrf.mxu3  ;;  %v12593_v18 = vld [vmem:[%s20998_s5 + $0x610] sm:$0xf0]  ;;  %v13633_v63 = vld [vmem:[%s20998_s5 + $0x704] sm:$0xf] }
 0x7cc   : > { %v7348_v27 = vpop.f32.mrf.mxu2  ;;  %v12724_v35 = vor.u32 %v13633_v63, %v12721_v54  ;;  %v12807_v21 = vld [vmem:[%s20998_s5 + $0x7a8] sm:$0xf] }
 0x7cd   : > { %v7359_v5 = vpop.f32.mrf.mxu1  ;;  %v13654_v27 = vld [vmem:[%s20998_s5 + $0x7ac] sm:$0xf] }
 0x7ce   : > { %8728 = vmatpush.bf16.msra.mxu1 %v12656_v10  ;;  %8741 = vmatpush.bf16.msra.mxu3 %v12784_v32  ;;  %v7385_v45 = vpop.f32.mrf.mxu0  ;;  %v12592_v10 = vor.u32 %v13603_v3, %v12591_v12  ;;  %v12720_v32 = vor.u32 %v13635_v9, %v12719_v40  ;;  %v12812_v3 = vor.u32 %v13654_v27, %v12809_v42  ;;  %v12791_v40 = vld [vmem:[%s20998_s5 + $0x788] sm:$0xf]  ;;  %v13652_v9 = vld [vmem:[%s20998_s5 + $0x794] sm:$0xf0]  ;;  %v13638_v27 = vld [vmem:[%s20998_s5 + $0x72c] sm:$0xf] }
 0x7cf   : > { %8754 = vmatpush.bf16.msra.mxu0 %v12660_v28  ;;  %8767 = vmatpush.bf16.msra.mxu2 %v12788_v57  ;;  %v12841_v28 = vld [vmem:[%s20998_s5 + $0x7f8] sm:$0xf0]  ;;  %v12596_v57 = vor.u32 %v13601_v14, %v12593_v18  ;;  %v13650_v14 = vld [vmem:[%s20998_s5 + $0x78c] sm:$0xf]  ;;  %v12792_v23 = vor.u32 %v13652_v9, %v12791_v40  ;;  %v13636_v40 = vld [vmem:[%s20998_s5 + $0x714] sm:$0xf0] }
 0x7d0   : > { %v12844_v53 = vor.u32 %v13662_v52, %v12841_v28  ;;  %v12793_v18 = vld [vmem:[%s20998_s5 + $0x798] sm:$0xf0]  ;;  %v13648_v52 = vld [vmem:[%s20998_s5 + $0x774] sm:$0xf0]  ;;  %v13614_v28 = vld [vmem:[%s20998_s5 + $0x66c] sm:$0xf] }
 0x7d1   : > { %v12745_v42 = vld [vmem:[%s20998_s5 + $0x738] sm:$0xf0]  ;;  %v13602_v9 = vld [vmem:[%s20998_s5 + $0x60c] sm:$0xf] }
 0x7d2   : > { %8729 = vmatpush.bf16.msra.mxu1 %v12640_v33  ;;  %8742 = vmatpush.bf16.msra.mxu3 %v12768_v59  ;;  %v13628_v33 = vld [vmem:[%s20998_s5 + $0x6d4] sm:$0xf0]  ;;  %v12716_v59 = vor.u32 %v13630_v31, %v12713_v60  ;;  %v12796_v60 = vor.u32 %v13650_v14, %v12793_v18  ;;  %v13634_v14 = vld [vmem:[%s20998_s5 + $0x70c] sm:$0xf]  ;;  %v12729_v18 = vld [vmem:[%s20998_s5 + $0x718] sm:$0xf0] }
 0x7d3   : > { %8755 = vmatpush.bf16.msra.mxu0 %v12644_v11  ;;  %8768 = vmatpush.bf16.msra.mxu2 %v12772_v55  ;;  %v7372_v8 = vpop.f32.mrf.mxu3  ;;  %v12823_v11 = vld [vmem:[%s20998_s5 + $0x7c8] sm:$0xf]  ;;  %v13626_v55 = vld [vmem:[%s20998_s5 + $0x6cc] sm:$0xf]  ;;  %v13616_v31 = vld [vmem:[%s20998_s5 + $0x674] sm:$0xf0] }
 0x7d4   : > { %v20753_v37 = vadd.f32 %v7372_v8, %v7359_v5  ;;  %v7398_v36 = vpop.f32.mrf.mxu2  ;;  %v12808_v5 = vor.u32 %v13656_v48, %v12807_v21  ;;  %v12648_v8 = vor.u32 %v13616_v31, %v12647_v30  ;;  %v12743_v21 = vld [vmem:[%s20998_s5 + $0x728] sm:$0xf]  ;;  %v13640_v48 = vld [vmem:[%s20998_s5 + $0x734] sm:$0xf0] }
 0x7d5   : > { %v20762_v56 = vadd.f32 %v7398_v36, %v7385_v45  ;;  %v7361_v44 = vpop.f32.mrf.mxu1  ;;  %v12684_v45 = vor.u32 %v13622_v61, %v12681_v19  ;;  %v13606_v61 = vld [vmem:[%s20998_s5 + $0x62c] sm:$0xf]  ;;  %v12617_v19 = vld [vmem:[%s20998_s5 + $0x638] sm:$0xf0] }
 0x7d6   : > { %8730 = vmatpush.bf16.msra.mxu1 %v12624_v38  ;;  %8743 = vmatpush.bf16.msra.mxu3 %v12752_v62  ;;  %v7387_v0 = vpop.f32.mrf.mxu0  ;;  %v12696_v38 = vor.u32 %v13628_v33, %v12695_v4  ;;  %v12824_v62 = vor.u32 %v13660_v20, %v12823_v11  ;;  %v12759_v33 = vld [vmem:[%s20998_s5 + $0x748] sm:$0xf]  ;;  %v12633_v20 = vld [vmem:[%s20998_s5 + $0x658] sm:$0xf0] }
 0x7d7   : > { %8756 = vmatpush.bf16.msra.mxu0 %v12628_v13  ;;  %8769 = vmatpush.bf16.msra.mxu2 %v12756_v51  ;;  %v12700_v13 = vor.u32 %v13626_v55, %v12697_v41  ;;  %v12828_v51 = vor.u32 %v13658_v1, %v12825_v58  ;;  %v13642_v55 = vld [vmem:[%s20998_s5 + $0x74c] sm:$0xf]  ;;  %v12761_v0 = vld [vmem:[%s20998_s5 + $0x758] sm:$0xf0] }
 0x7da   : > { %8731 = vmatpush.bf16.msra.mxu1 %v12608_v43  ;;  %8744 = vmatpush.bf16.msra.mxu3 %v12736_v49  ;;  %v12663_v43 = vld [vmem:[%s20998_s5 + $0x688] sm:$0xf]  ;;  %v13620_v49 = vld [vmem:[%s20998_s5 + $0x694] sm:$0xf0] }
 0x7db   : > { %8757 = vmatpush.bf16.msra.mxu0 %v12612_v6  ;;  %8770 = vmatpush.bf16.msra.mxu2 %v12740_v50  ;;  %v7374_v22 = vpop.f32.mrf.mxu3  ;;  %v13618_v6 = vld [vmem:[%s20998_s5 + $0x68c] sm:$0xf]  ;;  %v12665_v50 = vld [vmem:[%s20998_s5 + $0x698] sm:$0xf0]  ;;  %v12664_v2 = vor.u32 %v13620_v49, %v12663_v43  ;;  %v12620_v43 = vor.u32 %v13606_v61, %v12617_v19  ;;  %v12748_v49 = vor.u32 %v13638_v27, %v12745_v42 }
 0x7dc   : > { %v7400_v12 = vpop.f32.mrf.mxu2  ;;  %v12616_v22 = vor.u32 %v13608_v29, %v12615_v26 }
 0x7dd   : > { %v13604_v12 = vld [vmem:[%s20998_s5 + $0x614] sm:$0xf0] }
 0x7de   : > { %8732 = vmatpush.bf16.msra.mxu1 %v12592_v10  ;;  %8745 = vmatpush.bf16.msra.mxu3 %v12720_v32  ;;  %v7738_v63 = vpop.f32.mrf.mxu1  ;;  %v12668_v32 = vor.u32 %v13618_v6, %v12665_v50  ;;  %v12601_v50 = vld [vmem:[%s20998_s5 + $0x618] sm:$0xf0] }
 0x7df   : > { %8758 = vmatpush.bf16.msra.mxu0 %v12596_v57  ;;  %8771 = vmatpush.bf16.msra.mxu2 %v12724_v35  ;;  %v7739_v54 = vadd.f32 %v7738_v63, %v20643_v46  ;;  %v12775_v46 = vld [vmem:[%s20998_s5 + $0x768] sm:$0xf]  ;;  %v12649_v57 = vld [vmem:[%s20998_s5 + $0x678] sm:$0xf0] }
 0x7e0   : > { %v12777_v35 = vld [vmem:[%s20998_s5 + $0x778] sm:$0xf0]  ;;  %v12776_v47 = vor.u32 %v13648_v52, %v12775_v46  ;;  %v12652_v36 = vor.u32 %v13614_v28, %v12649_v57 }
 0x7e1   : > { %8733 = vmatmul.bf16.vlgmr.msra.gmra.mxu1 %v20782_v17  ;;  %8746 = vmatmul.bf16.vlgmr.msra.gmra.mxu3 %v20784_v15  ;;  %v7764_v34 = vpop.f32.mrf.mxu0 }
 0x7e2   : > { %8777 = vmatpush.bf16.msrb.mxu1 %v12712_v24  ;;  %8790 = vmatpush.bf16.msrb.mxu3 %v12840_v25  ;;  %v7765_v10 = vadd.f32 %v7764_v34, %v20654_v16  ;;  %v13646_v16 = vld [vmem:[%s20998_s5 + $0x76c] sm:$0xf]  ;;  %v12631_v24 = vld [vmem:[%s20998_s5 + $0x648] sm:$0xf]  ;;  %v13612_v25 = vld [vmem:[%s20998_s5 + $0x654] sm:$0xf0]  ;;  %v12604_v34 = vor.u32 %v13602_v9, %v12601_v50 }
 0x7e3   : > { %8803 = vmatpush.bf16.msrb.mxu0 %v12716_v59  ;;  %8816 = vmatpush.bf16.msrb.mxu2 %v12844_v53  ;;  %v12780_v39 = vor.u32 %v13646_v16, %v12777_v35  ;;  %v13644_v59 = vld [vmem:[%s20998_s5 + $0x754] sm:$0xf0]  ;;  %v13610_v53 = vld [vmem:[%s20998_s5 + $0x64c] sm:$0xf] }
 0x7e4   : > { %8759 = vmatmul.bf16.vlgmr.msra.gmra.mxu0 %v20782_v17  ;;  %8772 = vmatmul.bf16.vlgmr.msra.gmra.mxu2 %v20784_v15  ;;  %v7751_v4 = vpop.f32.mrf.mxu3 }
 0x7e5   : > { %v20879_v44 = vadd.f32 %v7751_v4, %v7739_v54 }
 0x7e6   : > { %8778 = vmatpush.bf16.msrb.mxu1 %v12696_v38  ;;  %8791 = vmatpush.bf16.msrb.mxu3 %v12824_v62  ;;  %v7740_v1 = vpop.f32.mrf.mxu1  ;;  %v12632_v38 = vor.u32 %v13612_v25, %v12631_v24  ;;  %v12760_v62 = vor.u32 %v13644_v59, %v12759_v33 }
 0x7e7   : > { %8804 = vmatpush.bf16.msrb.mxu0 %v12700_v13  ;;  %8817 = vmatpush.bf16.msrb.mxu2 %v12828_v51  ;;  %v7777_v11 = vpop.f32.mrf.mxu2  ;;  %v12636_v13 = vor.u32 %v13610_v53, %v12633_v20  ;;  %v12764_v51 = vor.u32 %v13642_v55, %v12761_v0 }
 0x7e8   : > { %v20890_v41 = vadd.f32 %v7777_v11, %v7765_v10 }
 0x7e9   : > { %v7766_v58 = vpop.f32.mrf.mxu0 }
 0x7ea   : > { %8779 = vmatpush.bf16.msrb.mxu1 %v12680_v7  ;;  %8792 = vmatpush.bf16.msrb.mxu3 %v12808_v5  ;;  %v12744_v7 = vor.u32 %v13640_v48, %v12743_v21  ;;  %v12599_v5 = vld [vmem:[%s20998_s5 + $0x608] sm:$0xf] }
 0x7eb   : > { %8805 = vmatpush.bf16.msrb.mxu0 %v12684_v45  ;;  %8818 = vmatpush.bf16.msrb.mxu2 %v12812_v3  ;;  %v12727_v3 = vld [vmem:[%s20998_s5 + $0x708] sm:$0xf]  ;;  %v12600_v63 = vor.u32 %v13604_v12, %v12599_v5 }
 0x7ec   : > { %v7753_v45 = vpop.f32.mrf.mxu3  ;;  %v12728_v54 = vor.u32 %v13636_v40, %v12727_v3 }
 0x7ee   : > { %8780 = vmatpush.bf16.msrb.mxu1 %v12664_v2  ;;  %8793 = vmatpush.bf16.msrb.mxu3 %v12792_v23  ;;  %v12732_v2 = vor.u32 %v13634_v14, %v12729_v18 }
 0x7ef   : > { %8806 = vmatpush.bf16.msrb.mxu0 %v12668_v32  ;;  %8819 = vmatpush.bf16.msrb.mxu2 %v12796_v60  ;;  %v7779_v6 = vpop.f32.mrf.mxu2 }
 0x7f2   : > { %8781 = vmatpush.bf16.msrb.mxu1 %v12648_v8  ;;  %8794 = vmatpush.bf16.msrb.mxu3 %v12776_v47 }
 0x7f3   : > { %8807 = vmatpush.bf16.msrb.mxu0 %v12652_v36  ;;  %8820 = vmatpush.bf16.msrb.mxu2 %v12780_v39 }
 0x7f6   : > { %8782 = vmatpush.bf16.msrb.mxu1 %v12632_v38  ;;  %8795 = vmatpush.bf16.msrb.mxu3 %v12760_v62 }
 0x7f7   : > { %8808 = vmatpush.bf16.msrb.mxu0 %v12636_v13  ;;  %8821 = vmatpush.bf16.msrb.mxu2 %v12764_v51 }
 0x7fa   : > { %8783 = vmatpush.bf16.msrb.mxu1 %v12616_v22  ;;  %8796 = vmatpush.bf16.msrb.mxu3 %v12744_v7 }
 0x7fb   : > { %8809 = vmatpush.bf16.msrb.mxu0 %v12620_v43  ;;  %8822 = vmatpush.bf16.msrb.mxu2 %v12748_v49 }
 0x7fe   : > { %8784 = vmatpush.bf16.msrb.mxu1 %v12600_v63  ;;  %8797 = vmatpush.bf16.msrb.mxu3 %v12728_v54  ;;  %v7790_v23 = vpop.f32.mrf.mxu1 }
 0x7ff   : > { %8810 = vmatpush.bf16.msrb.mxu0 %v12604_v34  ;;  %8823 = vmatpush.bf16.msrb.mxu2 %v12732_v2  ;;  %v7791_v30 = vadd.f32 %v7790_v23, %v20753_v37 }
 0x801   : > { %8785 = vmatmul.bf16.vlgmr.msrb.gmra.mxu1 %v20782_v17  ;;  %8798 = vmatmul.bf16.vlgmr.msrb.gmra.mxu3 %v20784_v15  ;;  %v7816_v31 = vpop.f32.mrf.mxu0 }
 0x802   : > { %8811 = vmatmul.bf16.vlgmr.msrb.gmra.mxu0 %v20782_v17  ;;  %8824 = vmatmul.bf16.vlgmr.msrb.gmra.mxu2 %v20784_v15  ;;  %v7817_v10 = vadd.f32 %v7816_v31, %v20762_v56 }
 0x804   : > { %v7803_v32 = vpop.f32.mrf.mxu3 }
 0x805   : > { %v7804_v60 = vadd.f32 %v7803_v32, %v7791_v30 }
 0x806   : > { %v7792_v28 = vpop.f32.mrf.mxu1 }
 0x807   : > { %v7829_v46 = vpop.f32.mrf.mxu2 }
 0x808   : > { %v7830_v52 = vadd.f32 %v7829_v46, %v7817_v10 }
 0x809   : > { %v7818_v57 = vpop.f32.mrf.mxu0 }
 0x80c   : > { %v7805_v16 = vpop.f32.mrf.mxu3 }
 0x80f   : > { %v7831_v35 = vpop.f32.mrf.mxu2 }
 0x81e   : > { %v8234_v8 = vpop.f32.mrf.mxu1 }
 0x821   : > { %v8260_v47 = vpop.f32.mrf.mxu0 }
 0x824   : > { %v8247_v24 = vpop.f32.mrf.mxu3 }
 0x825   : > { %v8248_v17 = vadd.f32 %v8247_v24, %v8234_v8 }
 0x826   : > { %v8236_v36 = vpop.f32.mrf.mxu1 }
 0x827   : > { %v8273_v25 = vpop.f32.mrf.mxu2  ;;  %v8329_v37 = vadd.f32 %v8248_v17, %v20879_v44  ;;  %v8833_v44 = vld [vmem:[%s20999_s6] sm:$0xf] }
 0x828   : > { %v8274_v15 = vadd.f32 %v8273_v25, %v8260_v47  ;;  %v8836_v21 = vperm.slane %v8833_v44, 1  ;;  %v8837_v6 = vperm.slane %v8833_v44, 2  ;;  %v8838_v63 = vperm.slane %v8833_v44, 3 }
 0x829   : > { %v8262_v39 = vpop.f32.mrf.mxu0 }
 0x82a   : > { %v8330_v56 = vadd.f32 %v8274_v15, %v20890_v41  ;;  %v8835_v41 = vperm.slane %v8833_v44, 0 }
 0x82c   : > { %v8249_v4 = vpop.f32.mrf.mxu3 }
 0x82f   : > { %v8275_v33 = vpop.f32.mrf.mxu2 }
 0x83e   : > { %v8286_v59 = vpop.f32.mrf.mxu1 }
 0x841   : > { %v8312_v53 = vpop.f32.mrf.mxu0 }
 0x844   : > { %v8299_v11 = vpop.f32.mrf.mxu3 }
 0x845   : > { %v8300_v49 = vadd.f32 %v8299_v11, %v8286_v59 }
 0x846   : > { %v8288_v55 = vpop.f32.mrf.mxu1 }
 0x847   : > { %v8325_v20 = vpop.f32.mrf.mxu2  ;;  %v8331_v40 = vadd.f32 %v8300_v49, %v7804_v60 }
 0x848   : > { %v8326_v45 = vadd.f32 %v8325_v20, %v8312_v53 }
 0x849   : > { %v8314_v0 = vpop.f32.mrf.mxu0 }
 0x84a   : > { %v8332_v14 = vadd.f32 %v8326_v45, %v7830_v52 }
 0x84c   : > { %v8301_v1 = vpop.f32.mrf.mxu3 }
 0x84f   : > { %v8327_v58 = vpop.f32.mrf.mxu2 }
 0x85e   : > { %v8734_v38 = vpop.f32.mrf.mxu1 }
 0x861   : > { %v8760_v62 = vpop.f32.mrf.mxu0 }
 0x864   : > { %v8747_v26 = vpop.f32.mrf.mxu3 }
 0x865   : > { %v8748_v29 = vadd.f32 %v8747_v26, %v8734_v38 }
 0x866   : > { %v8736_v48 = vpop.f32.mrf.mxu1 }
 0x867   : > { %v8773_v13 = vpop.f32.mrf.mxu2  ;;  %v8829_v61 = vadd.f32 %v8748_v29, %v8329_v37 }
 0x868   : > { %v8774_v51 = vadd.f32 %v8773_v13, %v8760_v62 }
 0x869   : > { %v8762_v19 = vpop.f32.mrf.mxu0  ;;  %v8843_v42 = vadd.f32 %v8835_v41, %v8829_v61 }
 0x86a   : > { %v8830_v27 = vadd.f32 %v8774_v51, %v8330_v56 }
 0x86b   : > { %8847 = vst [vmem:[%s20952_s9] sm:$0xff] %v8843_v42 }
 0x86c   : > { %v8844_v22 = vadd.f32 %v8836_v21, %v8830_v27  ;;  %v8749_v7 = vpop.f32.mrf.mxu3 }
 0x86e   : > { %8848 = vst [vmem:[%s20952_s9 + $0x8] sm:$0xff] %v8844_v22 }
 0x86f   : > { %v8775_v5 = vpop.f32.mrf.mxu2 }
 0x87e   : > { %v8786_v12 = vpop.f32.mrf.mxu1 }
 0x87f   : > { %v8812_v43 = vpop.f32.mrf.mxu0 }
 0x884   : > { %v8799_v3 = vpop.f32.mrf.mxu3 }
 0x885   : > { %v8800_v9 = vadd.f32 %v8799_v3, %v8786_v12  ;;  %v8825_v50 = vpop.f32.mrf.mxu2 }
 0x886   : > { %v8826_v18 = vadd.f32 %v8825_v50, %v8812_v43  ;;  %v8788_v54 = vpop.f32.mrf.mxu1 }
 0x887   : > { %v8831_v34 = vadd.f32 %v8800_v9, %v8331_v40  ;;  %v8814_v2 = vpop.f32.mrf.mxu0 }
 0x888   : > { %v8832_v23 = vadd.f32 %v8826_v18, %v8332_v14 }
 0x889   : > { %v8845_v30 = vadd.f32 %v8837_v6, %v8831_v34 }
 0x88a   : > { %v8846_v31 = vadd.f32 %v8838_v63, %v8832_v23 }
 0x88b   : > { %8849 = vst [vmem:[%s20952_s9 + $0x10] sm:$0xff] %v8845_v30 }
 0x88c   : > { %8851 = vst.msk [vmem:[%s20952_s9 + $0x18] sm:$0xff] %vm8850_vm2, %v8846_v31  ;;  %v8801_v10 = vpop.f32.mrf.mxu3 }
 0x88d   : > { %v8827_v32 = vpop.f32.mrf.mxu2 }
 0x88e   : > { %13734 = shalt.err (!%p13731_p5)
}
 0x88f   : > { %13668 = dma.vmem_to_hbm [thread:$0]  (%p13849_p6), %s8867_s28, 512, %s8869_s17, %s8853_s23  }
 0x890 PF: > { %s8880_s22 = sand.u32 1, %s13757_s24   ;;  %p13671_p7 = pnand %p8936_p9, %p13853_p8 }
 0x891   : > { %s8881_s9 = scalar_lea.sflag [#allocation4], %s8880_s22 }
 0x892   : > { %p13672_p10 = pneg %p13671_p7 }
 0x894   : > { %13752 = dma.done.wait (%p13672_p10), %s8881_s9, 512  }
 0x895   : > { %13754 = vsyncadd (%p13672_p10), %s8881_s9, 4294966784  ;;  %p17_p11 = scmp.ge.s32.totalorder %s13834_s30, 4   ;;  %s21333_s24 = smov %s13761_s25 }
 0x896   : > { %s21334_s25 = smov %s13765_s26  ;;  %s21335_s26 = smov %s13847_s10 }
 0x897   : > { %s21336_s27 = smov %s13834_s30  ;;  %19 = sbr.rel (!%p17_p11) target bundleno = 3 (0x3), region = 133 }
 0x89c   :  { %8887 = vsyncpa [#allocation4], 1 }
 0x89d   :  { %8889 = vsyncpa [#allocation4 + $0x1], 1 }

</bundles_post_ra>
